<compile_context>
chip_gen: v6e
topology: v6e:2x2x1
jax: 0.10.0
libtpu: 0.0.40
codegen_flags: <defaults>
</compile_context>

<pallas_src>
import functools

import jax
import jax.numpy as jnp
from jax import lax
from jax.experimental import pallas as pl
from jax.experimental.pallas import tpu as pltpu


_LANE = 128
_STORE_DTYPE = jnp.bfloat16


# ----------------------------------------------------------------------------
# chip-aware budgets
# ----------------------------------------------------------------------------
@functools.lru_cache(maxsize=None)
def _vmem_limit_bytes():
    cap = 64 * 1024 * 1024                        # conservative default (v7x physical)
    try:
        info = pltpu.get_tpu_info()
        for name in ("vmem_capacity_bytes", "vmem_bytes", "vmem_size_bytes"):
            v = getattr(info, name, None)
            if v:
                cap = int(v)
                break
    except Exception:
        pass
    # ~48 MiB on 64 MiB parts (v7x), ~96 MiB on 128 MiB parts (v5e/v6e)
    return max(32 << 20, min((cap * 3) // 4, cap - (8 << 20)))


def _tile_budget_bytes():
    # budget for per-grid-step value intermediates (accumulators, strips, scratch)
    return max(1 << 20, _vmem_limit_bytes() // 16)


# ----------------------------------------------------------------------------
# small helpers
# ----------------------------------------------------------------------------
def _rup(n, m=_LANE):
    return ((n + m - 1) // m) * m


def _pad_last(x, target):
    c = x.shape[-1]
    if c == target:
        return x
    return jnp.pad(x, [(0, 0)] * (x.ndim - 1) + [(0, target - c)])


def _pick_row_tile(n_rows, per_row_bytes, n_batch, *, min_steps=4):
    """Largest divisor of n_rows whose per-step footprint fits the tile budget,
    shrunk further (when possible) so the grid has >= min_steps steps (2 v7x TCs)."""
    budget = _tile_budget_bytes()
    cap = max(1, min(n_rows, budget // max(per_row_bytes, 1)))
    while cap > 1 and n_batch * ((n_rows + cap - 1) // cap) < min_steps:
        cap //= 2
    for cand in range(cap, 0, -1):
        if n_rows % cand == 0:
            return cand
    return 1


def _phase_split(xp):
    """(N, Hp, Wp, C) -> (N, Hp/2, Wp/2, 4*C); phase p = py*2+px at channels [p*C,(p+1)*C)."""
    n, hp, wp, c = xp.shape
    assert hp % 2 == 0 and wp % 2 == 0
    phases = [xp[:, py::2, px::2, :] for py in range(2) for px in range(2)]
    return jnp.concatenate(phases, axis=-1)


def fold_bn(bn, eps=1e-5):
    """Inference-mode BatchNorm folded to per-channel scale/bias (f32)."""
    gamma, beta, mean, var = bn
    scale = gamma / jnp.sqrt(var + eps)
    bias = beta - mean * scale
    return scale.astype(jnp.float32), bias.astype(jnp.float32)


def _bn_rows(bn, cp):
    s, b = fold_bn(bn)
    c = s.shape[0]
    return _pad_last(s.reshape(1, c), cp), _pad_last(b.reshape(1, c), cp)


def _prep_conv3_w(w, cp_in, cp_out):
    """(3,3,cin,cout) HWIO f32 -> (3, 3*cp_in, cp_out) bf16, grouped by kx and stacked
    over ky along K (matches the in-kernel per-kx window concatenation)."""
    kh, kw, cin, cout = w.shape
    assert kh == 3 and kw == 3
    wp = jnp.zeros((3, 3, cp_in, cp_out), jnp.float32).at[:, :, :cin, :cout].set(w)
    wg = jnp.transpose(wp, (1, 0, 2, 3)).reshape(3, 3 * cp_in, cp_out)
    return wg.astype(_STORE_DTYPE)


def _prep_conv1_w(w, cp_in, cp_out):
    cin, cout = w.shape[-2], w.shape[-1]
    wp = jnp.zeros((cp_in, cp_out), jnp.float32).at[:cin, :cout].set(
        w.reshape(cin, cout))
    return wp.astype(_STORE_DTYPE)


def _block_specs(single_buffer, entries):
    """entries: list of (block_shape, index_map, is_grid_constant).  Grid-constant
    blocks are single-buffered (pl.Buffered(1)) so they are not held twice in VMEM."""
    specs = []
    for shape, index_map, is_const in entries:
        if is_const and single_buffer:
            specs.append(pl.BlockSpec(shape, index_map, pipeline_mode=pl.Buffered(1)))
        else:
            specs.append(pl.BlockSpec(shape, index_map))
    return specs


# ----------------------------------------------------------------------------
# in-kernel direct conv helper (per-kx strips, K-concatenated over ky)
# ----------------------------------------------------------------------------
def _grouped_conv(src_ref, row_start, n_rows, n_cols, groups, w_ref, cin):
    """Direct 3x3 conv on a resident source ref.

    groups : tuple of (ox, ((c_off, oy), ...)) -- one width shift per group; the
             group's row-shifted windows are concatenated along K so there is a
             single MXU matmul (one f32 accumulator update) per group.
    w_ref  : (n_groups, n_taps_per_group * cin, cout) bf16.
    Returns an (n_rows * n_cols, cout) f32 accumulator.
    """
    cout = w_ref.shape[-1]
    acc = jnp.zeros((n_rows * n_cols, cout), jnp.float32)
    for g, (ox, taps) in enumerate(groups):
        parts = [src_ref[0, pl.ds(row_start + oy, n_rows), ox:ox + n_cols,
                         c_off:c_off + cin]
                 for (c_off, oy) in taps]
        win = parts[0] if len(parts) == 1 else jnp.concatenate(parts, axis=-1)
        acc = acc + jnp.dot(win.reshape(n_rows * n_cols, cin * len(taps)),
                            w_ref[g], preferred_element_type=jnp.float32)
    return acc


# ----------------------------------------------------------------------------
# fused BasicBlock kernel: conv1+BN+ReLU (VMEM scratch) -> conv2+BN +res [+ReLU]
# ----------------------------------------------------------------------------
def _fused_block_kernel(*refs, groups1, groups2, pool_taps, th, ho, wo,
                        cin, cmid, cout, has_pool, has_dconv, relu_last):
    if has_dconv:
        (x_ref, w1_ref, s1_ref, b1_ref, w2_ref, s2_ref, b2_ref,
         wd_ref, sd_ref, bd_ref, o_ref, y1_ref) = refs
    else:
        (x_ref, w1_ref, s1_ref, b1_ref, w2_ref, s2_ref, b2_ref,
         o_ref, y1_ref) = refs
        wd_ref = sd_ref = bd_ref = None

    row0 = pl.program_id(1) * th
    nr, nc = th + 2, wo + 2                       # conv1 tile + 1-pixel halo ring

    # ---- conv1 + BN1 + ReLU -> bf16 VMEM scratch (never touches HBM) --------
    a1 = _grouped_conv(x_ref, row0, nr, nc, groups1, w1_ref, cin)
    y1 = jnp.maximum(a1 * s1_ref[...] + b1_ref[...], 0.0).reshape(nr, nc, cmid)
    # conv2's zero padding: halo rows outside [0, ho) and the first/last columns of
    # the scratch must be exactly zero.
    rix = lax.broadcasted_iota(jnp.int32, (nr, nc, 1), 0) + (row0 - 1)
    cix = lax.broadcasted_iota(jnp.int32, (nr, nc, 1), 1)
    valid = (rix >= 0) & (rix < ho) & (cix >= 1) & (cix <= wo)
    y1_ref[0] = jnp.where(valid, y1, 0.0).astype(y1_ref.dtype)

    # ---- conv2 + BN2 ---------------------------------------------------------
    out = _grouped_conv(y1_ref, 0, th, wo, groups2, w2_ref, cmid)
    out = out * s2_ref[...] + b2_ref[...]

    # ---- residual branch (from the same resident input) ---------------------
    if has_pool:
        # AvgPool2d(3, stride=2, padding=1, count_include_pad=True) on the
        # phase-split input (pure VPU work, overlaps the MXU).
        pooled = jnp.zeros((th, wo, cin), jnp.float32)
        for (c_off, oy, ox) in pool_taps:
            pooled = pooled + x_ref[0, pl.ds(row0 + 1 + oy, th),
                                    1 + ox:1 + ox + wo,
                                    c_off:c_off + cin].astype(jnp.float32)
        res_src = (pooled * (1.0 / 9.0)).reshape(th * wo, cin)
    else:
        res_src = x_ref[0, pl.ds(row0 + 2, th), 2:2 + wo, :].reshape(th * wo, cin)

    if has_dconv:
        res = jnp.dot(res_src.astype(_STORE_DTYPE), wd_ref[...],
                      preferred_element_type=jnp.float32)
        res = res * sd_ref[...] + bd_ref[...]
    else:
        res = res_src.astype(jnp.float32)         # identity / pooled (cin == cout)

    out = out + res
    if relu_last:
        out = jnp.maximum(out, 0.0)
    o_ref[0] = out.reshape(th, wo, cout).astype(o_ref.dtype)


def fused_basic_block(x, p, stride, last_relu):
    """One residual BasicBlock as a single fused pallas_call.

    x : (N, H, W, cp_in) bf16, channels zero-padded to a multiple of 128.
    Returns (N, Ho, Wo, cp_out) bf16 (padded channels stay exactly zero).
    """
    N, H, W, cp_in = x.shape
    cmid = p["w1"].shape[-1]
    cout = p["w2"].shape[-1]
    cp_mid, cp_out = _rup(cmid), _rup(cout)

    ds = p["downsample"]
    has_pool = stride != 1
    has_dconv = ds is not None and ("wd" in ds)
    assert stride in (1, 2)
    if not has_dconv:
        assert cp_in == cp_out                    # identity / pooled residual

    # --- host-side packing (weights, BN folds, padded / phase-split input) ---
    w1 = _prep_conv3_w(p["w1"], cp_in, cp_mid)
    w2 = _prep_conv3_w(p["w2"], cp_mid, cp_out)
    s1, b1 = _bn_rows(p["bn1"], cp_mid)
    s2, b2 = _bn_rows(p["bn2"], cp_out)

    if stride == 1:
        # pad 2 so the conv1 halo rows/cols can be computed from in-bounds reads
        xt = jnp.pad(x, ((0, 0), (2, 2), (2, 2), (0, 0)))
        groups1 = tuple((kx, tuple((0, ky) for ky in range(3))) for kx in range(3))
        ho, wo = H, W
    else:
        assert H % 2 == 0 and W % 2 == 0
        # pad 3 (keeps dims even), then phase-split once; conv1, avgpool and the
        # 1x1 downsample all read this single resident copy.
        xt = _phase_split(jnp.pad(x, ((0, 0), (3, 3), (3, 3), (0, 0))))
        groups1 = tuple(
            (kx // 2, tuple((((ky % 2) * 2 + (kx % 2)) * cp_in, ky // 2)
                            for ky in range(3)))
            for kx in range(3))
        ho, wo = H // 2, W // 2
    groups2 = tuple((kx, tuple((0, ky) for ky in range(3))) for kx in range(3))
    pool_taps = tuple((((ky % 2) * 2 + (kx % 2)) * cp_in, ky // 2, kx // 2)
                      for ky in range(3) for kx in range(3)) if has_pool else ()

    # --- tiling ---------------------------------------------------------------
    per_row = (4 * (wo + 2) * (3 * cp_mid + 4 * cp_in)
               + 4 * wo * (4 * cp_out + 2 * cp_in))
    th = _pick_row_tile(ho, per_row, N)
    grid = (N, ho // th)

    xs = xt.shape
    spec_entries = [
        ((1, xs[1], xs[2], xs[3]), lambda n, t: (n, 0, 0, 0), True),
        (w1.shape, lambda n, t: (0, 0, 0), True),
        (s1.shape, lambda n, t: (0, 0), True),
        (b1.shape, lambda n, t: (0, 0), True),
        (w2.shape, lambda n, t: (0, 0, 0), True),
        (s2.shape, lambda n, t: (0, 0), True),
        (b2.shape, lambda n, t: (0, 0), True),
    ]
    args = [xt.astype(_STORE_DTYPE), w1, s1, b1, w2, s2, b2]

    ds_flops = 0
    if has_dconv:
        wd = _prep_conv1_w(ds["wd"], cp_in, cp_out)
        sd, bd = _bn_rows(ds["bnd"], cp_out)
        spec_entries += [
            (wd.shape, lambda n, t: (0, 0), True),
            (sd.shape, lambda n, t: (0, 0), True),
            (bd.shape, lambda n, t: (0, 0), True),
        ]
        args += [wd, sd, bd]
        ds_flops = 2 * N * ho * wo * cp_in * cp_out

    kernel = functools.partial(
        _fused_block_kernel, groups1=groups1, groups2=groups2, pool_taps=pool_taps,
        th=th, ho=ho, wo=wo, cin=cp_in, cmid=cp_mid, cout=cp_out,
        has_pool=has_pool, has_dconv=has_dconv, relu_last=last_relu)

    flops = 2 * N * ho * wo * 9 * (cp_in * cp_mid + cp_mid * cp_out) + ds_flops
    bytes_accessed = (int(xt.size) * 2 + int(N * ho * wo * cp_out) * 2
                      + int(w1.size + w2.size) * 2)

    def _run(single_buffer):
        return pl.pallas_call(
            kernel,
            out_shape=jax.ShapeDtypeStruct((N, ho, wo, cp_out), _STORE_DTYPE),
            grid=grid,
            in_specs=_block_specs(single_buffer, spec_entries),
            out_specs=pl.BlockSpec((1, th, wo, cp_out), lambda n, t: (n, t, 0, 0)),
            scratch_shapes=[pltpu.VMEM((1, th + 2, wo + 2, cp_mid), _STORE_DTYPE)],
            compiler_params=pltpu.CompilerParams(
                dimension_semantics=("parallel", "parallel"),
                vmem_limit_bytes=_vmem_limit_bytes()),
            cost_estimate=pl.CostEstimate(flops=int(flops), transcendentals=0,
                                          bytes_accessed=int(bytes_accessed)),
        )(*args)

    try:
        return _run(True)
    except Exception:
        # Fallback for Pallas builds that reject pipeline_mode=pl.Buffered(1).
        return _run(False)


# ----------------------------------------------------------------------------
# fused: 2x bilinear upsample + little_e (1x1 conv + BN) + add + ReLU
# ----------------------------------------------------------------------------
def _upsample_fuse_kernel(xb_ref, xr_ref, w_ref, s_ref, b_ref, o_ref, *,
                          tr, h, w, cin_r, cout):
    """xb_ref : (1, h, w, cout)         resident base image (bf16)
       xr_ref : (1, 2*tr, w, 2, cin_r)  refine tile (width pre-split as (w, 2))
       o_ref  : (1, 2*tr, w, 2, cout)   output tile (same width split)
    2x bilinear, align_corners=False:
       even output = 0.25*x[i-1] + 0.75*x[i]; odd = 0.75*x[i] + 0.25*x[i+1] (edge clamp).
    """
    r0 = pl.program_id(1) * tr

    xb = xb_ref[0, pl.ds(r0, tr), :, :].astype(jnp.float32)            # (tr, w, C)
    prow = xb_ref[0, pl.ds(jnp.maximum(r0 - 1, 0), 1), :, :].astype(jnp.float32)
    nrow = xb_ref[0, pl.ds(jnp.minimum(r0 + tr, h - 1), 1), :, :].astype(jnp.float32)
    prev = jnp.concatenate([prow, xb], axis=0)[:tr]
    nxt = jnp.concatenate([xb, nrow], axis=0)[1:]
    up_r = jnp.stack([0.25 * prev + 0.75 * xb, 0.75 * xb + 0.25 * nxt],
                     axis=1).reshape(2 * tr, w, cout)                   # rows doubled

    pcol = jnp.concatenate([up_r[:, :1], up_r], axis=1)[:, :w]
    ncol = jnp.concatenate([up_r, up_r[:, -1:]], axis=1)[:, 1:]
    up = jnp.stack([0.25 * pcol + 0.75 * up_r, 0.75 * up_r + 0.25 * ncol],
                   axis=2)                                              # (2tr, w, 2, C)

    xr = xr_ref[0].reshape(2 * tr * w * 2, cin_r)
    le = jnp.dot(xr, w_ref[...], preferred_element_type=jnp.float32)
    le = (le * s_ref[...] + b_ref[...]).reshape(2 * tr, w, 2, cout)

    o_ref[0] = jnp.maximum(up + le, 0.0).astype(o_ref.dtype)


def upsample_little_e_add_relu(x_base, x_refine, w_le, bn_le):
    """relu(F.interpolate(x_base, 2x, bilinear, align_corners=False)
            + BN(Conv1x1(x_refine)))  -- one fused, row-tiled pallas_call."""
    N, h, w, cpb = x_base.shape
    Nr, H2, W2, cpr = x_refine.shape
    assert Nr == N and H2 == 2 * h and W2 == 2 * w
    cout = w_le.shape[-1]
    cp_out = _rup(cout)
    assert cp_out == cpb

    wle = _prep_conv1_w(w_le, cpr, cp_out)
    sle, ble = _bn_rows(bn_le, cp_out)

    xr5 = x_refine.reshape(N, H2, w, 2, cpr)      # free row-major split of the W axis

    per_row = 4 * 2 * w * (6 * cp_out + 2 * cpr)  # rough f32 intermediates per base row
    tr = _pick_row_tile(h, per_row, N)
    grid = (N, h // tr)

    spec_entries = [
        ((1, h, w, cpb), lambda n, t: (n, 0, 0, 0), True),
        ((1, 2 * tr, w, 2, cpr), lambda n, t: (n, t, 0, 0, 0), False),
        (wle.shape, lambda n, t: (0, 0), True),
        (sle.shape, lambda n, t: (0, 0), True),
        (ble.shape, lambda n, t: (0, 0), True),
    ]
    args = [x_base, xr5, wle, sle, ble]

    flops = 2 * N * H2 * W2 * cpr * cp_out
    bytes_accessed = int(x_base.size * 2 + x_refine.size * 2 + N * H2 * W2 * cp_out * 2)

    kernel = functools.partial(_upsample_fuse_kernel, tr=tr, h=h, w=w,
                               cin_r=cpr, cout=cp_out)

    def _run(single_buffer):
        return pl.pallas_call(
            kernel,
            out_shape=jax.ShapeDtypeStruct((N, H2, w, 2, cp_out), _STORE_DTYPE),
            grid=grid,
            in_specs=_block_specs(single_buffer, spec_entries),
            out_specs=pl.BlockSpec((1, 2 * tr, w, 2, cp_out),
                                   lambda n, t: (n, t, 0, 0, 0)),
            compiler_params=pltpu.CompilerParams(
                dimension_semantics=("parallel", "parallel"),
                vmem_limit_bytes=_vmem_limit_bytes()),
            cost_estimate=pl.CostEstimate(flops=int(flops), transcendentals=0,
                                          bytes_accessed=bytes_accessed),
        )(*args)

    try:
        out5 = _run(True)
    except Exception:
        out5 = _run(False)
    return out5.reshape(N, H2, W2, cp_out)        # free row-major merge


# ----------------------------------------------------------------------------
# sarModule forward
# ----------------------------------------------------------------------------
def run_layer(x, layer):
    out = x
    for blk in layer:
        out = fused_basic_block(out, blk["p"], blk["stride"], blk["last_relu"])
    return out


def sar_module_forward(x_nchw, params):
    """Mirrors sarModule.forward.  Input/output NCHW (PyTorch convention), f32."""
    x = jnp.transpose(x_nchw, (0, 2, 3, 1))                   # NCHW -> NHWC
    x = _pad_last(x, _rup(x.shape[-1])).astype(_STORE_DTYPE)  # lane-dense, bf16

    x_base = run_layer(x, params["base_module"])
    x_refine = run_layer(x, params["refine_module"])

    # relu(up2x(x_base) + BN(conv1x1(x_refine)))  -- little_e fused into the upsample
    out = upsample_little_e_add_relu(x_base, x_refine,
                                     params["little_e_w"], params["little_e_bn"])

    fus = params["fusion"][0]
    out = fused_basic_block(out, fus["p"], fus["stride"], fus["last_relu"])

    true_cout = params["fusion"][0]["p"]["w2"].shape[-1]
    out = out[..., :true_cout].astype(jnp.float32)            # drop channel padding
    return jnp.transpose(out, (0, 3, 1, 2))                   # NHWC -> NCHW


# ----------------------------------------------------------------------------
# Deterministic parameter initialization (mirrors sarModule.__init__ shapes)
# ----------------------------------------------------------------------------
def init_conv(key, kh, kw, cin, cout):
    fan = kh * kw * cin
    return (jax.random.normal(key, (kh, kw, cin, cout), jnp.float32)
            * (2.0 / fan) ** 0.5)


def init_bn(key, c):
    k1, k2, k3, k4 = jax.random.split(key, 4)
    gamma = 1.0 + 0.1 * jax.random.normal(k1, (c,), jnp.float32)
    beta = 0.1 * jax.random.normal(k2, (c,), jnp.float32)
    mean = 0.1 * jax.random.normal(k3, (c,), jnp.float32)
    var = 1.0 + 0.1 * jax.random.uniform(k4, (c,), jnp.float32)
    return (gamma, beta, mean, var)


def init_basic_block(key, cin, cout, stride):
    keys = jax.random.split(key, 6)
    p = {
        "w1": init_conv(keys[0], 3, 3, cin, cout),
        "bn1": init_bn(keys[1], cout),
        "w2": init_conv(keys[2], 3, 3, cout, cout),
        "bn2": init_bn(keys[3], cout),
        "downsample": None,
    }
    if stride != 1 or cin != cout:
        ds = {"avgpool": stride != 1}
        if cin != cout:
            ds["wd"] = init_conv(keys[4], 1, 1, cin, cout)
            ds["bnd"] = init_bn(keys[5], cout)
        p["downsample"] = ds
    return p


def init_layer(key, inplanes, planes, blocks, stride, last_relu=True):
    """Mirrors sarModule._make_layer (including its blocks==0 behaviour: the else
    branch still emits one strided block, exactly as the PyTorch code does)."""
    keys = jax.random.split(key, max(blocks, 1))
    layers = []
    if blocks == 1:
        layers.append(dict(p=init_basic_block(keys[0], inplanes, planes, stride),
                           stride=stride, last_relu=True))
    else:
        layers.append(dict(p=init_basic_block(keys[0], inplanes, planes, stride),
                           stride=stride, last_relu=True))
        for i in range(1, blocks):
            layers.append(dict(p=init_basic_block(keys[i], planes, planes, 1),
                               stride=1,
                               last_relu=(last_relu if i == blocks - 1 else True)))
    return layers


def init_sar_module(key, in_channels, out_channels, blocks, stride,
                    groups=1, alpha=1, beta=1):
    assert groups == 1  # TODO(synk): grouped (patch_groups > 1) convs not implemented
    k_base, k_ref, k_le1, k_le2, k_fus = jax.random.split(key, 5)
    return {
        "base_module": init_layer(k_base, in_channels, out_channels,
                                  blocks - 1, 2, last_relu=False),
        "refine_module": init_layer(k_ref, in_channels, out_channels // alpha,
                                    max(1, blocks // beta - 1), 1, last_relu=True),
        "little_e_w": init_conv(k_le1, 1, 1, out_channels // alpha, out_channels),
        "little_e_bn": init_bn(k_le2, out_channels),
        "fusion": init_layer(k_fus, out_channels, out_channels, 1, stride=stride),
    }


# ----------------------------------------------------------------------------
if __name__ == "__main__":
    key = jax.random.PRNGKey(0)
    k_x, k_p = jax.random.split(key)

    # small config: in_channels=4, out_channels=8, blocks=2, stride=1
    in_channels, out_channels, blocks, stride = 4, 8, 2, 1
    x = jax.random.normal(k_x, (2, in_channels, 16, 16), jnp.float32)   # NCHW

    params = init_sar_module(k_p, in_channels, out_channels, blocks, stride)

    out = sar_module_forward(x, params)
    out = jax.block_until_ready(out)

    assert out.shape == (2, out_channels, 16, 16), out.shape
    assert bool(jnp.all(jnp.isfinite(out)))
    print("KERNEL_OK")
</pallas_src>

<mosaic_0001>
module attributes {stable_mosaic.version = 11 : i64} {
  func.func @_fused_block_kernel(%arg0: i32, %arg1: i32, %arg2: memref<1x11x11x512xbf16, #tpu.memory_space<vmem>>, %arg3: memref<3x384x128xbf16, #tpu.memory_space<vmem>>, %arg4: memref<1x128xf32, #tpu.memory_space<vmem>>, %arg5: memref<1x128xf32, #tpu.memory_space<vmem>>, %arg6: memref<3x384x128xbf16, #tpu.memory_space<vmem>>, %arg7: memref<1x128xf32, #tpu.memory_space<vmem>>, %arg8: memref<1x128xf32, #tpu.memory_space<vmem>>, %arg9: memref<128x128xbf16, #tpu.memory_space<vmem>>, %arg10: memref<1x128xf32, #tpu.memory_space<vmem>>, %arg11: memref<1x128xf32, #tpu.memory_space<vmem>>, %arg12: memref<1x4x8x128xbf16, #tpu.memory_space<vmem>>, %arg13: memref<1x6x10x128xbf16, #tpu.memory_space<vmem>>) attributes {dimension_semantics = [#tpu.dimension_semantics<parallel>, #tpu.dimension_semantics<parallel>], iteration_bounds = array<i64: 2, 2>, scalar_prefetch = 0 : i64, scratch_operands = 1 : i64, tpu.core_type = #tpu.core_type<tc>, window_params = [{pipeline_mode = #tpu.pipeline_mode<synchronous>, transform_indices = @transform_0, window_bounds = array<i64: 1, 11, 11, 512>}, {pipeline_mode = #tpu.pipeline_mode<synchronous>, transform_indices = @transform_1, window_bounds = array<i64: 3, 384, 128>}, {pipeline_mode = #tpu.pipeline_mode<synchronous>, transform_indices = @transform_2, window_bounds = array<i64: 1, 128>}, {pipeline_mode = #tpu.pipeline_mode<synchronous>, transform_indices = @transform_3, window_bounds = array<i64: 1, 128>}, {pipeline_mode = #tpu.pipeline_mode<synchronous>, transform_indices = @transform_4, window_bounds = array<i64: 3, 384, 128>}, {pipeline_mode = #tpu.pipeline_mode<synchronous>, transform_indices = @transform_5, window_bounds = array<i64: 1, 128>}, {pipeline_mode = #tpu.pipeline_mode<synchronous>, transform_indices = @transform_6, window_bounds = array<i64: 1, 128>}, {pipeline_mode = #tpu.pipeline_mode<synchronous>, transform_indices = @transform_7, window_bounds = array<i64: 128, 128>}, {pipeline_mode = #tpu.pipeline_mode<synchronous>, transform_indices = @transform_8, window_bounds = array<i64: 1, 128>}, {pipeline_mode = #tpu.pipeline_mode<synchronous>, transform_indices = @transform_9, window_bounds = array<i64: 1, 128>}, {transform_indices = @transform_10, window_bounds = array<i64: 1, 4, 8, 128>}]} {
    %c4_i32 = arith.constant 4 : i32
    %0 = arith.muli %arg1, %c4_i32 : i32
    %cst = arith.constant 0.000000e+00 : f32
    %1 = vector.broadcast %cst : f32 to vector<60x128xf32>
    %c0_i32 = arith.constant 0 : i32
    %2 = arith.addi %0, %c0_i32 : i32
    %c0 = arith.constant 0 : index
    %3 = arith.index_cast %2 : i32 to index
    %c0_0 = arith.constant 0 : index
    %c0_1 = arith.constant 0 : index
    %4 = vector.load %arg2[%c0, %3, %c0_0, %c0_1] : memref<1x11x11x512xbf16, #tpu.memory_space<vmem>>, vector<1x6x10x128xbf16>
    %5 = vector.shape_cast %4 : vector<1x6x10x128xbf16> to vector<6x10x128xbf16>
    %c0_i32_2 = arith.constant 0 : i32
    %6 = arith.addi %0, %c0_i32_2 : i32
    %c0_3 = arith.constant 0 : index
    %7 = arith.index_cast %6 : i32 to index
    %c0_4 = arith.constant 0 : index
    %c256 = arith.constant 256 : index
    %8 = vector.load %arg2[%c0_3, %7, %c0_4, %c256] : memref<1x11x11x512xbf16, #tpu.memory_space<vmem>>, vector<1x6x10x128xbf16>
    %9 = vector.shape_cast %8 : vector<1x6x10x128xbf16> to vector<6x10x128xbf16>
    %c1_i32 = arith.constant 1 : i32
    %10 = arith.addi %0, %c1_i32 : i32
    %c0_5 = arith.constant 0 : index
    %11 = arith.index_cast %10 : i32 to index
    %c0_6 = arith.constant 0 : index
    %c0_7 = arith.constant 0 : index
    %12 = vector.load %arg2[%c0_5, %11, %c0_6, %c0_7] : memref<1x11x11x512xbf16, #tpu.memory_space<vmem>>, vector<1x6x10x128xbf16>
    %13 = vector.shape_cast %12 : vector<1x6x10x128xbf16> to vector<6x10x128xbf16>
    %14 = tpu.concatenate %5, %9, %13 in 2 : vector<6x10x128xbf16>, vector<6x10x128xbf16>, vector<6x10x128xbf16> -> vector<6x10x384xbf16>
    %15 = vector.shape_cast %14 : vector<6x10x384xbf16> to vector<60x384xbf16>
    %c0_8 = arith.constant 0 : index
    %c0_9 = arith.constant 0 : index
    %c0_10 = arith.constant 0 : index
    %16 = vector.load %arg3[%c0_8, %c0_9, %c0_10] : memref<3x384x128xbf16, #tpu.memory_space<vmem>>, vector<1x384x128xbf16>
    %17 = vector.shape_cast %16 : vector<1x384x128xbf16> to vector<384x128xbf16>
    %cst_11 = arith.constant dense<0.000000e+00> : vector<60x128xf32>
    %18 = tpu.matmul %15, %17, %cst_11 {dimension_numbers = #tpu.dot_dimension_numbers<[1], [0], [0], [1], [0, 0, 1, 1], [], []>} : vector<60x384xbf16>, vector<384x128xbf16>, vector<60x128xf32> -> vector<60x128xf32>
    %19 = arith.addf %1, %18 : vector<60x128xf32>
    %c0_i32_12 = arith.constant 0 : i32
    %20 = arith.addi %0, %c0_i32_12 : i32
    %c0_13 = arith.constant 0 : index
    %21 = arith.index_cast %20 : i32 to index
    %c0_14 = arith.constant 0 : index
    %c128 = arith.constant 128 : index
    %22 = vector.load %arg2[%c0_13, %21, %c0_14, %c128] : memref<1x11x11x512xbf16, #tpu.memory_space<vmem>>, vector<1x6x10x128xbf16>
    %23 = vector.shape_cast %22 : vector<1x6x10x128xbf16> to vector<6x10x128xbf16>
    %c0_i32_15 = arith.constant 0 : i32
    %24 = arith.addi %0, %c0_i32_15 : i32
    %c0_16 = arith.constant 0 : index
    %25 = arith.index_cast %24 : i32 to index
    %c0_17 = arith.constant 0 : index
    %c384 = arith.constant 384 : index
    %26 = vector.load %arg2[%c0_16, %25, %c0_17, %c384] : memref<1x11x11x512xbf16, #tpu.memory_space<vmem>>, vector<1x6x10x128xbf16>
    %27 = vector.shape_cast %26 : vector<1x6x10x128xbf16> to vector<6x10x128xbf16>
    %c1_i32_18 = arith.constant 1 : i32
    %28 = arith.addi %0, %c1_i32_18 : i32
    %c0_19 = arith.constant 0 : index
    %29 = arith.index_cast %28 : i32 to index
    %c0_20 = arith.constant 0 : index
    %c128_21 = arith.constant 128 : index
    %30 = vector.load %arg2[%c0_19, %29, %c0_20, %c128_21] : memref<1x11x11x512xbf16, #tpu.memory_space<vmem>>, vector<1x6x10x128xbf16>
    %31 = vector.shape_cast %30 : vector<1x6x10x128xbf16> to vector<6x10x128xbf16>
    %32 = tpu.concatenate %23, %27, %31 in 2 : vector<6x10x128xbf16>, vector<6x10x128xbf16>, vector<6x10x128xbf16> -> vector<6x10x384xbf16>
    %33 = vector.shape_cast %32 : vector<6x10x384xbf16> to vector<60x384xbf16>
    %c1 = arith.constant 1 : index
    %c0_22 = arith.constant 0 : index
    %c0_23 = arith.constant 0 : index
    %34 = vector.load %arg3[%c1, %c0_22, %c0_23] : memref<3x384x128xbf16, #tpu.memory_space<vmem>>, vector<1x384x128xbf16>
    %35 = vector.shape_cast %34 : vector<1x384x128xbf16> to vector<384x128xbf16>
    %cst_24 = arith.constant dense<0.000000e+00> : vector<60x128xf32>
    %36 = tpu.matmul %33, %35, %cst_24 {dimension_numbers = #tpu.dot_dimension_numbers<[1], [0], [0], [1], [0, 0, 1, 1], [], []>} : vector<60x384xbf16>, vector<384x128xbf16>, vector<60x128xf32> -> vector<60x128xf32>
    %37 = arith.addf %19, %36 : vector<60x128xf32>
    %c0_i32_25 = arith.constant 0 : i32
    %38 = arith.addi %0, %c0_i32_25 : i32
    %c0_26 = arith.constant 0 : index
    %39 = arith.index_cast %38 : i32 to index
    %c1_27 = arith.constant 1 : index
    %c0_28 = arith.constant 0 : index
    %40 = vector.load %arg2[%c0_26, %39, %c1_27, %c0_28] : memref<1x11x11x512xbf16, #tpu.memory_space<vmem>>, vector<1x6x10x128xbf16>
    %41 = vector.shape_cast %40 : vector<1x6x10x128xbf16> to vector<6x10x128xbf16>
    %c0_i32_29 = arith.constant 0 : i32
    %42 = arith.addi %0, %c0_i32_29 : i32
    %c0_30 = arith.constant 0 : index
    %43 = arith.index_cast %42 : i32 to index
    %c1_31 = arith.constant 1 : index
    %c256_32 = arith.constant 256 : index
    %44 = vector.load %arg2[%c0_30, %43, %c1_31, %c256_32] : memref<1x11x11x512xbf16, #tpu.memory_space<vmem>>, vector<1x6x10x128xbf16>
    %45 = vector.shape_cast %44 : vector<1x6x10x128xbf16> to vector<6x10x128xbf16>
    %c1_i32_33 = arith.constant 1 : i32
    %46 = arith.addi %0, %c1_i32_33 : i32
    %c0_34 = arith.constant 0 : index
    %47 = arith.index_cast %46 : i32 to index
    %c1_35 = arith.constant 1 : index
    %c0_36 = arith.constant 0 : index
    %48 = vector.load %arg2[%c0_34, %47, %c1_35, %c0_36] : memref<1x11x11x512xbf16, #tpu.memory_space<vmem>>, vector<1x6x10x128xbf16>
    %49 = vector.shape_cast %48 : vector<1x6x10x128xbf16> to vector<6x10x128xbf16>
    %50 = tpu.concatenate %41, %45, %49 in 2 : vector<6x10x128xbf16>, vector<6x10x128xbf16>, vector<6x10x128xbf16> -> vector<6x10x384xbf16>
    %51 = vector.shape_cast %50 : vector<6x10x384xbf16> to vector<60x384xbf16>
    %c2 = arith.constant 2 : index
    %c0_37 = arith.constant 0 : index
    %c0_38 = arith.constant 0 : index
    %52 = vector.load %arg3[%c2, %c0_37, %c0_38] : memref<3x384x128xbf16, #tpu.memory_space<vmem>>, vector<1x384x128xbf16>
    %53 = vector.shape_cast %52 : vector<1x384x128xbf16> to vector<384x128xbf16>
    %cst_39 = arith.constant dense<0.000000e+00> : vector<60x128xf32>
    %54 = tpu.matmul %51, %53, %cst_39 {dimension_numbers = #tpu.dot_dimension_numbers<[1], [0], [0], [1], [0, 0, 1, 1], [], []>} : vector<60x384xbf16>, vector<384x128xbf16>, vector<60x128xf32> -> vector<60x128xf32>
    %55 = arith.addf %37, %54 : vector<60x128xf32>
    %c0_40 = arith.constant 0 : index
    %c0_41 = arith.constant 0 : index
    %56 = vector.load %arg4[%c0_40, %c0_41] : memref<1x128xf32, #tpu.memory_space<vmem>>, vector<1x128xf32>
    %57 = vector.broadcast %56 : vector<1x128xf32> to vector<60x128xf32>
    %58 = arith.mulf %55, %57 : vector<60x128xf32>
    %c0_42 = arith.constant 0 : index
    %c0_43 = arith.constant 0 : index
    %59 = vector.load %arg5[%c0_42, %c0_43] : memref<1x128xf32, #tpu.memory_space<vmem>>, vector<1x128xf32>
    %60 = vector.broadcast %59 : vector<1x128xf32> to vector<60x128xf32>
    %61 = arith.addf %58, %60 : vector<60x128xf32>
    %cst_44 = arith.constant 0.000000e+00 : f32
    %62 = vector.broadcast %cst_44 : f32 to vector<60x128xf32>
    %63 = arith.maximumf %61, %62 : vector<60x128xf32>
    %64 = vector.shape_cast %63 : vector<60x128xf32> to vector<6x10x128xf32>
    %65 = tpu.iota {dimensions = array<i32: 0>} : vector<6x10x1xi32>
    %c1_i32_45 = arith.constant 1 : i32
    %66 = arith.subi %0, %c1_i32_45 : i32
    %67 = vector.broadcast %66 : i32 to vector<6x10x1xi32>
    %68 = arith.addi %65, %67 : vector<6x10x1xi32>
    %69 = tpu.iota {dimensions = array<i32: 1>} : vector<6x10x1xi32>
    %c0_i32_46 = arith.constant 0 : i32
    %70 = vector.broadcast %c0_i32_46 : i32 to vector<6x10x1xi32>
    %71 = arith.cmpi sge, %68, %70 : vector<6x10x1xi32>
    %c8_i32 = arith.constant 8 : i32
    %72 = vector.broadcast %c8_i32 : i32 to vector<6x10x1xi32>
    %73 = arith.cmpi slt, %68, %72 : vector<6x10x1xi32>
    %74 = arith.andi %71, %73 : vector<6x10x1xi1>
    %c1_i32_47 = arith.constant 1 : i32
    %75 = vector.broadcast %c1_i32_47 : i32 to vector<6x10x1xi32>
    %76 = arith.cmpi sge, %69, %75 : vector<6x10x1xi32>
    %77 = arith.andi %74, %76 : vector<6x10x1xi1>
    %c8_i32_48 = arith.constant 8 : i32
    %78 = vector.broadcast %c8_i32_48 : i32 to vector<6x10x1xi32>
    %79 = arith.cmpi sle, %69, %78 : vector<6x10x1xi32>
    %80 = arith.andi %77, %79 : vector<6x10x1xi1>
    %cst_49 = arith.constant 0.000000e+00 : f32
    %81 = vector.shape_cast %80 : vector<6x10x1xi1> to vector<6x10x1xi1>
    %82 = vector.broadcast %81 : vector<6x10x1xi1> to vector<6x10x128xi1>
    %83 = vector.broadcast %cst_49 : f32 to vector<6x10x128xf32>
    %84 = arith.select %82, %64, %83 : vector<6x10x128xi1>, vector<6x10x128xf32>
    %85 = arith.truncf %84 : vector<6x10x128xf32> to vector<6x10x128xbf16>
    %c0_50 = arith.constant 0 : index
    %c0_51 = arith.constant 0 : index
    %c0_52 = arith.constant 0 : index
    %c0_53 = arith.constant 0 : index
    %86 = vector.load %arg13[%c0_50, %c0_51, %c0_52, %c0_53] : memref<1x6x10x128xbf16, #tpu.memory_space<vmem>>, vector<1x6x10x128xbf16>
    %87 = vector.shape_cast %86 : vector<1x6x10x128xbf16> to vector<6x10x128xbf16>
    %88 = vector.shape_cast %85 : vector<6x10x128xbf16> to vector<1x6x10x128xbf16>
    tpu.vector_store %arg13[%c0_50, %c0_51, %c0_52, %c0_53], %88 {strides = array<i32>} : memref<1x6x10x128xbf16, #tpu.memory_space<vmem>>, vector<1x6x10x128xbf16>,
    %cst_54 = arith.constant 0.000000e+00 : f32
    %89 = vector.broadcast %cst_54 : f32 to vector<32x128xf32>
    %c0_55 = arith.constant 0 : index
    %c0_56 = arith.constant 0 : index
    %c0_57 = arith.constant 0 : index
    %c0_58 = arith.constant 0 : index
    %90 = vector.load %arg13[%c0_55, %c0_56, %c0_57, %c0_58] : memref<1x6x10x128xbf16, #tpu.memory_space<vmem>>, vector<1x4x8x128xbf16>
    %91 = vector.shape_cast %90 : vector<1x4x8x128xbf16> to vector<4x8x128xbf16>
    %c0_59 = arith.constant 0 : index
    %c1_60 = arith.constant 1 : index
    %c0_61 = arith.constant 0 : index
    %c0_62 = arith.constant 0 : index
    %92 = vector.load %arg13[%c0_59, %c1_60, %c0_61, %c0_62] : memref<1x6x10x128xbf16, #tpu.memory_space<vmem>>, vector<1x4x8x128xbf16>
    %93 = vector.shape_cast %92 : vector<1x4x8x128xbf16> to vector<4x8x128xbf16>
    %c0_63 = arith.constant 0 : index
    %c2_64 = arith.constant 2 : index
    %c0_65 = arith.constant 0 : index
    %c0_66 = arith.constant 0 : index
    %94 = vector.load %arg13[%c0_63, %c2_64, %c0_65, %c0_66] : memref<1x6x10x128xbf16, #tpu.memory_space<vmem>>, vector<1x4x8x128xbf16>
    %95 = vector.shape_cast %94 : vector<1x4x8x128xbf16> to vector<4x8x128xbf16>
    %96 = tpu.concatenate %91, %93, %95 in 2 : vector<4x8x128xbf16>, vector<4x8x128xbf16>, vector<4x8x128xbf16> -> vector<4x8x384xbf16>
    %97 = vector.shape_cast %96 : vector<4x8x384xbf16> to vector<32x384xbf16>
    %c0_67 = arith.constant 0 : index
    %c0_68 = arith.constant 0 : index
    %c0_69 = arith.constant 0 : index
    %98 = vector.load %arg6[%c0_67, %c0_68, %c0_69] : memref<3x384x128xbf16, #tpu.memory_space<vmem>>, vector<1x384x128xbf16>
    %99 = vector.shape_cast %98 : vector<1x384x128xbf16> to vector<384x128xbf16>
    %cst_70 = arith.constant dense<0.000000e+00> : vector<32x128xf32>
    %100 = tpu.matmul %97, %99, %cst_70 {dimension_numbers = #tpu.dot_dimension_numbers<[1], [0], [0], [1], [0, 0, 1, 1], [], []>} : vector<32x384xbf16>, vector<384x128xbf16>, vector<32x128xf32> -> vector<32x128xf32>
    %101 = arith.addf %89, %100 : vector<32x128xf32>
    %c0_71 = arith.constant 0 : index
    %c0_72 = arith.constant 0 : index
    %c1_73 = arith.constant 1 : index
    %c0_74 = arith.constant 0 : index
    %102 = vector.load %arg13[%c0_71, %c0_72, %c1_73, %c0_74] : memref<1x6x10x128xbf16, #tpu.memory_space<vmem>>, vector<1x4x8x128xbf16>
    %103 = vector.shape_cast %102 : vector<1x4x8x128xbf16> to vector<4x8x128xbf16>
    %c0_75 = arith.constant 0 : index
    %c1_76 = arith.constant 1 : index
    %c1_77 = arith.constant 1 : index
    %c0_78 = arith.constant 0 : index
    %104 = vector.load %arg13[%c0_75, %c1_76, %c1_77, %c0_78] : memref<1x6x10x128xbf16, #tpu.memory_space<vmem>>, vector<1x4x8x128xbf16>
    %105 = vector.shape_cast %104 : vector<1x4x8x128xbf16> to vector<4x8x128xbf16>
    %c0_79 = arith.constant 0 : index
    %c2_80 = arith.constant 2 : index
    %c1_81 = arith.constant 1 : index
    %c0_82 = arith.constant 0 : index
    %106 = vector.load %arg13[%c0_79, %c2_80, %c1_81, %c0_82] : memref<1x6x10x128xbf16, #tpu.memory_space<vmem>>, vector<1x4x8x128xbf16>
    %107 = vector.shape_cast %106 : vector<1x4x8x128xbf16> to vector<4x8x128xbf16>
    %108 = tpu.concatenate %103, %105, %107 in 2 : vector<4x8x128xbf16>, vector<4x8x128xbf16>, vector<4x8x128xbf16> -> vector<4x8x384xbf16>
    %109 = vector.shape_cast %108 : vector<4x8x384xbf16> to vector<32x384xbf16>
    %c1_83 = arith.constant 1 : index
    %c0_84 = arith.constant 0 : index
    %c0_85 = arith.constant 0 : index
    %110 = vector.load %arg6[%c1_83, %c0_84, %c0_85] : memref<3x384x128xbf16, #tpu.memory_space<vmem>>, vector<1x384x128xbf16>
    %111 = vector.shape_cast %110 : vector<1x384x128xbf16> to vector<384x128xbf16>
    %cst_86 = arith.constant dense<0.000000e+00> : vector<32x128xf32>
    %112 = tpu.matmul %109, %111, %cst_86 {dimension_numbers = #tpu.dot_dimension_numbers<[1], [0], [0], [1], [0, 0, 1, 1], [], []>} : vector<32x384xbf16>, vector<384x128xbf16>, vector<32x128xf32> -> vector<32x128xf32>
    %113 = arith.addf %101, %112 : vector<32x128xf32>
    %c0_87 = arith.constant 0 : index
    %c0_88 = arith.constant 0 : index
    %c2_89 = arith.constant 2 : index
    %c0_90 = arith.constant 0 : index
    %114 = vector.load %arg13[%c0_87, %c0_88, %c2_89, %c0_90] : memref<1x6x10x128xbf16, #tpu.memory_space<vmem>>, vector<1x4x8x128xbf16>
    %115 = vector.shape_cast %114 : vector<1x4x8x128xbf16> to vector<4x8x128xbf16>
    %c0_91 = arith.constant 0 : index
    %c1_92 = arith.constant 1 : index
    %c2_93 = arith.constant 2 : index
    %c0_94 = arith.constant 0 : index
    %116 = vector.load %arg13[%c0_91, %c1_92, %c2_93, %c0_94] : memref<1x6x10x128xbf16, #tpu.memory_space<vmem>>, vector<1x4x8x128xbf16>
    %117 = vector.shape_cast %116 : vector<1x4x8x128xbf16> to vector<4x8x128xbf16>
    %c0_95 = arith.constant 0 : index
    %c2_96 = arith.constant 2 : index
    %c2_97 = arith.constant 2 : index
    %c0_98 = arith.constant 0 : index
    %118 = vector.load %arg13[%c0_95, %c2_96, %c2_97, %c0_98] : memref<1x6x10x128xbf16, #tpu.memory_space<vmem>>, vector<1x4x8x128xbf16>
    %119 = vector.shape_cast %118 : vector<1x4x8x128xbf16> to vector<4x8x128xbf16>
    %120 = tpu.concatenate %115, %117, %119 in 2 : vector<4x8x128xbf16>, vector<4x8x128xbf16>, vector<4x8x128xbf16> -> vector<4x8x384xbf16>
    %121 = vector.shape_cast %120 : vector<4x8x384xbf16> to vector<32x384xbf16>
    %c2_99 = arith.constant 2 : index
    %c0_100 = arith.constant 0 : index
    %c0_101 = arith.constant 0 : index
    %122 = vector.load %arg6[%c2_99, %c0_100, %c0_101] : memref<3x384x128xbf16, #tpu.memory_space<vmem>>, vector<1x384x128xbf16>
    %123 = vector.shape_cast %122 : vector<1x384x128xbf16> to vector<384x128xbf16>
    %cst_102 = arith.constant dense<0.000000e+00> : vector<32x128xf32>
    %124 = tpu.matmul %121, %123, %cst_102 {dimension_numbers = #tpu.dot_dimension_numbers<[1], [0], [0], [1], [0, 0, 1, 1], [], []>} : vector<32x384xbf16>, vector<384x128xbf16>, vector<32x128xf32> -> vector<32x128xf32>
    %125 = arith.addf %113, %124 : vector<32x128xf32>
    %c0_103 = arith.constant 0 : index
    %c0_104 = arith.constant 0 : index
    %126 = vector.load %arg7[%c0_103, %c0_104] : memref<1x128xf32, #tpu.memory_space<vmem>>, vector<1x128xf32>
    %127 = vector.broadcast %126 : vector<1x128xf32> to vector<32x128xf32>
    %128 = arith.mulf %125, %127 : vector<32x128xf32>
    %c0_105 = arith.constant 0 : index
    %c0_106 = arith.constant 0 : index
    %129 = vector.load %arg8[%c0_105, %c0_106] : memref<1x128xf32, #tpu.memory_space<vmem>>, vector<1x128xf32>
    %130 = vector.broadcast %129 : vector<1x128xf32> to vector<32x128xf32>
    %131 = arith.addf %128, %130 : vector<32x128xf32>
    %cst_107 = arith.constant 0.000000e+00 : f32
    %132 = vector.broadcast %cst_107 : f32 to vector<4x8x128xf32>
    %c1_i32_108 = arith.constant 1 : i32
    %133 = arith.addi %0, %c1_i32_108 : i32
    %c0_i32_109 = arith.constant 0 : i32
    %134 = arith.addi %133, %c0_i32_109 : i32
    %c0_110 = arith.constant 0 : index
    %135 = arith.index_cast %134 : i32 to index
    %c1_111 = arith.constant 1 : index
    %c0_112 = arith.constant 0 : index
    %136 = vector.load %arg2[%c0_110, %135, %c1_111, %c0_112] : memref<1x11x11x512xbf16, #tpu.memory_space<vmem>>, vector<1x4x8x128xbf16>
    %137 = vector.shape_cast %136 : vector<1x4x8x128xbf16> to vector<4x8x128xbf16>
    %138 = arith.extf %137 : vector<4x8x128xbf16> to vector<4x8x128xf32>
    %139 = arith.addf %132, %138 : vector<4x8x128xf32>
    %c1_i32_113 = arith.constant 1 : i32
    %140 = arith.addi %0, %c1_i32_113 : i32
    %c0_i32_114 = arith.constant 0 : i32
    %141 = arith.addi %140, %c0_i32_114 : i32
    %c0_115 = arith.constant 0 : index
    %142 = arith.index_cast %141 : i32 to index
    %c1_116 = arith.constant 1 : index
    %c128_117 = arith.constant 128 : index
    %143 = vector.load %arg2[%c0_115, %142, %c1_116, %c128_117] : memref<1x11x11x512xbf16, #tpu.memory_space<vmem>>, vector<1x4x8x128xbf16>
    %144 = vector.shape_cast %143 : vector<1x4x8x128xbf16> to vector<4x8x128xbf16>
    %145 = arith.extf %144 : vector<4x8x128xbf16> to vector<4x8x128xf32>
    %146 = arith.addf %139, %145 : vector<4x8x128xf32>
    %c1_i32_118 = arith.constant 1 : i32
    %147 = arith.addi %0, %c1_i32_118 : i32
    %c0_i32_119 = arith.constant 0 : i32
    %148 = arith.addi %147, %c0_i32_119 : i32
    %c0_120 = arith.constant 0 : index
    %149 = arith.index_cast %148 : i32 to index
    %c2_121 = arith.constant 2 : index
    %c0_122 = arith.constant 0 : index
    %150 = vector.load %arg2[%c0_120, %149, %c2_121, %c0_122] : memref<1x11x11x512xbf16, #tpu.memory_space<vmem>>, vector<1x4x8x128xbf16>
    %151 = vector.shape_cast %150 : vector<1x4x8x128xbf16> to vector<4x8x128xbf16>
    %152 = arith.extf %151 : vector<4x8x128xbf16> to vector<4x8x128xf32>
    %153 = arith.addf %146, %152 : vector<4x8x128xf32>
    %c1_i32_123 = arith.constant 1 : i32
    %154 = arith.addi %0, %c1_i32_123 : i32
    %c0_i32_124 = arith.constant 0 : i32
    %155 = arith.addi %154, %c0_i32_124 : i32
    %c0_125 = arith.constant 0 : index
    %156 = arith.index_cast %155 : i32 to index
    %c1_126 = arith.constant 1 : index
    %c256_127 = arith.constant 256 : index
    %157 = vector.load %arg2[%c0_125, %156, %c1_126, %c256_127] : memref<1x11x11x512xbf16, #tpu.memory_space<vmem>>, vector<1x4x8x128xbf16>
    %158 = vector.shape_cast %157 : vector<1x4x8x128xbf16> to vector<4x8x128xbf16>
    %159 = arith.extf %158 : vector<4x8x128xbf16> to vector<4x8x128xf32>
    %160 = arith.addf %153, %159 : vector<4x8x128xf32>
    %c1_i32_128 = arith.constant 1 : i32
    %161 = arith.addi %0, %c1_i32_128 : i32
    %c0_i32_129 = arith.constant 0 : i32
    %162 = arith.addi %161, %c0_i32_129 : i32
    %c0_130 = arith.constant 0 : index
    %163 = arith.index_cast %162 : i32 to index
    %c1_131 = arith.constant 1 : index
    %c384_132 = arith.constant 384 : index
    %164 = vector.load %arg2[%c0_130, %163, %c1_131, %c384_132] : memref<1x11x11x512xbf16, #tpu.memory_space<vmem>>, vector<1x4x8x128xbf16>
    %165 = vector.shape_cast %164 : vector<1x4x8x128xbf16> to vector<4x8x128xbf16>
    %166 = arith.extf %165 : vector<4x8x128xbf16> to vector<4x8x128xf32>
    %167 = arith.addf %160, %166 : vector<4x8x128xf32>
    %c1_i32_133 = arith.constant 1 : i32
    %168 = arith.addi %0, %c1_i32_133 : i32
    %c0_i32_134 = arith.constant 0 : i32
    %169 = arith.addi %168, %c0_i32_134 : i32
    %c0_135 = arith.constant 0 : index
    %170 = arith.index_cast %169 : i32 to index
    %c2_136 = arith.constant 2 : index
    %c256_137 = arith.constant 256 : index
    %171 = vector.load %arg2[%c0_135, %170, %c2_136, %c256_137] : memref<1x11x11x512xbf16, #tpu.memory_space<vmem>>, vector<1x4x8x128xbf16>
    %172 = vector.shape_cast %171 : vector<1x4x8x128xbf16> to vector<4x8x128xbf16>
    %173 = arith.extf %172 : vector<4x8x128xbf16> to vector<4x8x128xf32>
    %174 = arith.addf %167, %173 : vector<4x8x128xf32>
    %c1_i32_138 = arith.constant 1 : i32
    %175 = arith.addi %0, %c1_i32_138 : i32
    %c1_i32_139 = arith.constant 1 : i32
    %176 = arith.addi %175, %c1_i32_139 : i32
    %c0_140 = arith.constant 0 : index
    %177 = arith.index_cast %176 : i32 to index
    %c1_141 = arith.constant 1 : index
    %c0_142 = arith.constant 0 : index
    %178 = vector.load %arg2[%c0_140, %177, %c1_141, %c0_142] : memref<1x11x11x512xbf16, #tpu.memory_space<vmem>>, vector<1x4x8x128xbf16>
    %179 = vector.shape_cast %178 : vector<1x4x8x128xbf16> to vector<4x8x128xbf16>
    %180 = arith.extf %179 : vector<4x8x128xbf16> to vector<4x8x128xf32>
    %181 = arith.addf %174, %180 : vector<4x8x128xf32>
    %c1_i32_143 = arith.constant 1 : i32
    %182 = arith.addi %0, %c1_i32_143 : i32
    %c1_i32_144 = arith.constant 1 : i32
    %183 = arith.addi %182, %c1_i32_144 : i32
    %c0_145 = arith.constant 0 : index
    %184 = arith.index_cast %183 : i32 to index
    %c1_146 = arith.constant 1 : index
    %c128_147 = arith.constant 128 : index
    %185 = vector.load %arg2[%c0_145, %184, %c1_146, %c128_147] : memref<1x11x11x512xbf16, #tpu.memory_space<vmem>>, vector<1x4x8x128xbf16>
    %186 = vector.shape_cast %185 : vector<1x4x8x128xbf16> to vector<4x8x128xbf16>
    %187 = arith.extf %186 : vector<4x8x128xbf16> to vector<4x8x128xf32>
    %188 = arith.addf %181, %187 : vector<4x8x128xf32>
    %c1_i32_148 = arith.constant 1 : i32
    %189 = arith.addi %0, %c1_i32_148 : i32
    %c1_i32_149 = arith.constant 1 : i32
    %190 = arith.addi %189, %c1_i32_149 : i32
    %c0_150 = arith.constant 0 : index
    %191 = arith.index_cast %190 : i32 to index
    %c2_151 = arith.constant 2 : index
    %c0_152 = arith.constant 0 : index
    %192 = vector.load %arg2[%c0_150, %191, %c2_151, %c0_152] : memref<1x11x11x512xbf16, #tpu.memory_space<vmem>>, vector<1x4x8x128xbf16>
    %193 = vector.shape_cast %192 : vector<1x4x8x128xbf16> to vector<4x8x128xbf16>
    %194 = arith.extf %193 : vector<4x8x128xbf16> to vector<4x8x128xf32>
    %195 = arith.addf %188, %194 : vector<4x8x128xf32>
    %cst_153 = arith.constant 0.111111112 : f32
    %196 = vector.broadcast %cst_153 : f32 to vector<4x8x128xf32>
    %197 = arith.mulf %195, %196 : vector<4x8x128xf32>
    %198 = vector.shape_cast %197 : vector<4x8x128xf32> to vector<32x128xf32>
    %199 = arith.truncf %198 : vector<32x128xf32> to vector<32x128xbf16>
    %c0_154 = arith.constant 0 : index
    %c0_155 = arith.constant 0 : index
    %200 = vector.load %arg9[%c0_154, %c0_155] : memref<128x128xbf16, #tpu.memory_space<vmem>>, vector<128x128xbf16>
    %cst_156 = arith.constant dense<0.000000e+00> : vector<32x128xf32>
    %201 = tpu.matmul %199, %200, %cst_156 {dimension_numbers = #tpu.dot_dimension_numbers<[1], [0], [0], [1], [0, 0, 1, 1], [], []>} : vector<32x128xbf16>, vector<128x128xbf16>, vector<32x128xf32> -> vector<32x128xf32>
    %c0_157 = arith.constant 0 : index
    %c0_158 = arith.constant 0 : index
    %202 = vector.load %arg10[%c0_157, %c0_158] : memref<1x128xf32, #tpu.memory_space<vmem>>, vector<1x128xf32>
    %203 = vector.broadcast %202 : vector<1x128xf32> to vector<32x128xf32>
    %204 = arith.mulf %201, %203 : vector<32x128xf32>
    %c0_159 = arith.constant 0 : index
    %c0_160 = arith.constant 0 : index
    %205 = vector.load %arg11[%c0_159, %c0_160] : memref<1x128xf32, #tpu.memory_space<vmem>>, vector<1x128xf32>
    %206 = vector.broadcast %205 : vector<1x128xf32> to vector<32x128xf32>
    %207 = arith.addf %204, %206 : vector<32x128xf32>
    %208 = arith.addf %131, %207 : vector<32x128xf32>
    %cst_161 = arith.constant 0.000000e+00 : f32
    %209 = vector.broadcast %cst_161 : f32 to vector<32x128xf32>
    %210 = arith.maximumf %208, %209 : vector<32x128xf32>
    %211 = vector.shape_cast %210 : vector<32x128xf32> to vector<4x8x128xf32>
    %212 = arith.truncf %211 : vector<4x8x128xf32> to vector<4x8x128xbf16>
    %c0_162 = arith.constant 0 : index
    %c0_163 = arith.constant 0 : index
    %c0_164 = arith.constant 0 : index
    %c0_165 = arith.constant 0 : index
    %213 = vector.load %arg12[%c0_162, %c0_163, %c0_164, %c0_165] : memref<1x4x8x128xbf16, #tpu.memory_space<vmem>>, vector<1x4x8x128xbf16>
    %214 = vector.shape_cast %213 : vector<1x4x8x128xbf16> to vector<4x8x128xbf16>
    %215 = vector.shape_cast %212 : vector<4x8x128xbf16> to vector<1x4x8x128xbf16>
    tpu.vector_store %arg12[%c0_162, %c0_163, %c0_164, %c0_165], %215 {strides = array<i32>} : memref<1x4x8x128xbf16, #tpu.memory_space<vmem>>, vector<1x4x8x128xbf16>,
    return
  }
  func.func @transform_0(%arg0: i32, %arg1: i32) -> (i32, i32, i32, i32) {
    %c0_i32 = arith.constant 0 : i32
    %c0_i32_0 = arith.constant 0 : i32
    %c0_i32_1 = arith.constant 0 : i32
    %c0_i32_2 = arith.constant 0 : i32
    return %arg0, %c0_i32, %c0_i32_0, %c0_i32_1 : i32, i32, i32, i32
  }
  func.func @transform_1(%arg0: i32, %arg1: i32) -> (i32, i32, i32) {
    %c0_i32 = arith.constant 0 : i32
    %c0_i32_0 = arith.constant 0 : i32
    %c0_i32_1 = arith.constant 0 : i32
    %c0_i32_2 = arith.constant 0 : i32
    return %c0_i32, %c0_i32_0, %c0_i32_1 : i32, i32, i32
  }
  func.func @transform_2(%arg0: i32, %arg1: i32) -> (i32, i32) {
    %c0_i32 = arith.constant 0 : i32
    %c0_i32_0 = arith.constant 0 : i32
    %c0_i32_1 = arith.constant 0 : i32
    return %c0_i32, %c0_i32_0 : i32, i32
  }
  func.func @transform_3(%arg0: i32, %arg1: i32) -> (i32, i32) {
    %c0_i32 = arith.constant 0 : i32
    %c0_i32_0 = arith.constant 0 : i32
    %c0_i32_1 = arith.constant 0 : i32
    return %c0_i32, %c0_i32_0 : i32, i32
  }
  func.func @transform_4(%arg0: i32, %arg1: i32) -> (i32, i32, i32) {
    %c0_i32 = arith.constant 0 : i32
    %c0_i32_0 = arith.constant 0 : i32
    %c0_i32_1 = arith.constant 0 : i32
    %c0_i32_2 = arith.constant 0 : i32
    return %c0_i32, %c0_i32_0, %c0_i32_1 : i32, i32, i32
  }
  func.func @transform_5(%arg0: i32, %arg1: i32) -> (i32, i32) {
    %c0_i32 = arith.constant 0 : i32
    %c0_i32_0 = arith.constant 0 : i32
    %c0_i32_1 = arith.constant 0 : i32
    return %c0_i32, %c0_i32_0 : i32, i32
  }
  func.func @transform_6(%arg0: i32, %arg1: i32) -> (i32, i32) {
    %c0_i32 = arith.constant 0 : i32
    %c0_i32_0 = arith.constant 0 : i32
    %c0_i32_1 = arith.constant 0 : i32
    return %c0_i32, %c0_i32_0 : i32, i32
  }
  func.func @transform_7(%arg0: i32, %arg1: i32) -> (i32, i32) {
    %c0_i32 = arith.constant 0 : i32
    %c0_i32_0 = arith.constant 0 : i32
    %c0_i32_1 = arith.constant 0 : i32
    return %c0_i32, %c0_i32_0 : i32, i32
  }
  func.func @transform_8(%arg0: i32, %arg1: i32) -> (i32, i32) {
    %c0_i32 = arith.constant 0 : i32
    %c0_i32_0 = arith.constant 0 : i32
    %c0_i32_1 = arith.constant 0 : i32
    return %c0_i32, %c0_i32_0 : i32, i32
  }
  func.func @transform_9(%arg0: i32, %arg1: i32) -> (i32, i32) {
    %c0_i32 = arith.constant 0 : i32
    %c0_i32_0 = arith.constant 0 : i32
    %c0_i32_1 = arith.constant 0 : i32
    return %c0_i32, %c0_i32_0 : i32, i32
  }
  func.func @transform_10(%arg0: i32, %arg1: i32) -> (i32, i32, i32, i32) {
    %c0_i32 = arith.constant 0 : i32
    %c0_i32_0 = arith.constant 0 : i32
    %c0_i32_1 = arith.constant 0 : i32
    return %arg0, %arg1, %c0_i32, %c0_i32_0 : i32, i32, i32, i32
  }
}

module attributes {stable_mosaic.version = 11 : i64} {
  func.func @_fused_block_kernel(%arg0: i32, %arg1: i32, %arg2: memref<1x11x11x512xbf16, #tpu.memory_space<vmem>>, %arg3: memref<3x384x128xbf16, #tpu.memory_space<vmem>>, %arg4: memref<1x128xf32, #tpu.memory_space<vmem>>, %arg5: memref<1x128xf32, #tpu.memory_space<vmem>>, %arg6: memref<3x384x128xbf16, #tpu.memory_space<vmem>>, %arg7: memref<1x128xf32, #tpu.memory_space<vmem>>, %arg8: memref<1x128xf32, #tpu.memory_space<vmem>>, %arg9: memref<128x128xbf16, #tpu.memory_space<vmem>>, %arg10: memref<1x128xf32, #tpu.memory_space<vmem>>, %arg11: memref<1x128xf32, #tpu.memory_space<vmem>>, %arg12: memref<1x4x8x128xbf16, #tpu.memory_space<vmem>>, %arg13: memref<1x6x10x128xbf16, #tpu.memory_space<vmem>>) attributes {dimension_semantics = [#tpu.dimension_semantics<parallel>, #tpu.dimension_semantics<parallel>], iteration_bounds = array<i64: 2, 2>, scalar_prefetch = 0 : i64, scratch_operands = 1 : i64, tpu.core_type = #tpu.core_type<tc>, window_params = [{transform_indices = @transform_0, window_bounds = array<i64: 1, 11, 11, 512>}, {pipeline_mode = #tpu.pipeline_mode<synchronous>, transform_indices = @transform_1, window_bounds = array<i64: 3, 384, 128>}, {pipeline_mode = #tpu.pipeline_mode<synchronous>, transform_indices = @transform_2, window_bounds = array<i64: 1, 128>}, {pipeline_mode = #tpu.pipeline_mode<synchronous>, transform_indices = @transform_3, window_bounds = array<i64: 1, 128>}, {pipeline_mode = #tpu.pipeline_mode<synchronous>, transform_indices = @transform_4, window_bounds = array<i64: 3, 384, 128>}, {pipeline_mode = #tpu.pipeline_mode<synchronous>, transform_indices = @transform_5, window_bounds = array<i64: 1, 128>}, {pipeline_mode = #tpu.pipeline_mode<synchronous>, transform_indices = @transform_6, window_bounds = array<i64: 1, 128>}, {pipeline_mode = #tpu.pipeline_mode<synchronous>, transform_indices = @transform_7, window_bounds = array<i64: 128, 128>}, {pipeline_mode = #tpu.pipeline_mode<synchronous>, transform_indices = @transform_8, window_bounds = array<i64: 1, 128>}, {pipeline_mode = #tpu.pipeline_mode<synchronous>, transform_indices = @transform_9, window_bounds = array<i64: 1, 128>}, {transform_indices = @transform_10, window_bounds = array<i64: 1, 4, 8, 128>}]} {
    %c4_i32 = arith.constant 4 : i32
    %0 = arith.muli %arg1, %c4_i32 : i32
    %cst = arith.constant 0.000000e+00 : f32
    %1 = vector.broadcast %cst : f32 to vector<60x128xf32>
    %c0_i32 = arith.constant 0 : i32
    %2 = arith.addi %0, %c0_i32 : i32
    %c0 = arith.constant 0 : index
    %3 = arith.index_cast %2 : i32 to index
    %c0_0 = arith.constant 0 : index
    %c0_1 = arith.constant 0 : index
    %4 = vector.load %arg2[%c0, %3, %c0_0, %c0_1] : memref<1x11x11x512xbf16, #tpu.memory_space<vmem>>, vector<1x6x10x128xbf16>
    %5 = vector.shape_cast %4 : vector<1x6x10x128xbf16> to vector<6x10x128xbf16>
    %c0_i32_2 = arith.constant 0 : i32
    %6 = arith.addi %0, %c0_i32_2 : i32
    %c0_3 = arith.constant 0 : index
    %7 = arith.index_cast %6 : i32 to index
    %c0_4 = arith.constant 0 : index
    %c256 = arith.constant 256 : index
    %8 = vector.load %arg2[%c0_3, %7, %c0_4, %c256] : memref<1x11x11x512xbf16, #tpu.memory_space<vmem>>, vector<1x6x10x128xbf16>
    %9 = vector.shape_cast %8 : vector<1x6x10x128xbf16> to vector<6x10x128xbf16>
    %c1_i32 = arith.constant 1 : i32
    %10 = arith.addi %0, %c1_i32 : i32
    %c0_5 = arith.constant 0 : index
    %11 = arith.index_cast %10 : i32 to index
    %c0_6 = arith.constant 0 : index
    %c0_7 = arith.constant 0 : index
    %12 = vector.load %arg2[%c0_5, %11, %c0_6, %c0_7] : memref<1x11x11x512xbf16, #tpu.memory_space<vmem>>, vector<1x6x10x128xbf16>
    %13 = vector.shape_cast %12 : vector<1x6x10x128xbf16> to vector<6x10x128xbf16>
    %14 = tpu.concatenate %5, %9, %13 in 2 : vector<6x10x128xbf16>, vector<6x10x128xbf16>, vector<6x10x128xbf16> -> vector<6x10x384xbf16>
    %15 = vector.shape_cast %14 : vector<6x10x384xbf16> to vector<60x384xbf16>
    %c0_8 = arith.constant 0 : index
    %c0_9 = arith.constant 0 : index
    %c0_10 = arith.constant 0 : index
    %16 = vector.load %arg3[%c0_8, %c0_9, %c0_10] : memref<3x384x128xbf16, #tpu.memory_space<vmem>>, vector<1x384x128xbf16>
    %17 = vector.shape_cast %16 : vector<1x384x128xbf16> to vector<384x128xbf16>
    %cst_11 = arith.constant dense<0.000000e+00> : vector<60x128xf32>
    %18 = tpu.matmul %15, %17, %cst_11 {dimension_numbers = #tpu.dot_dimension_numbers<[1], [0], [0], [1], [0, 0, 1, 1], [], []>} : vector<60x384xbf16>, vector<384x128xbf16>, vector<60x128xf32> -> vector<60x128xf32>
    %19 = arith.addf %1, %18 : vector<60x128xf32>
    %c0_i32_12 = arith.constant 0 : i32
    %20 = arith.addi %0, %c0_i32_12 : i32
    %c0_13 = arith.constant 0 : index
    %21 = arith.index_cast %20 : i32 to index
    %c0_14 = arith.constant 0 : index
    %c128 = arith.constant 128 : index
    %22 = vector.load %arg2[%c0_13, %21, %c0_14, %c128] : memref<1x11x11x512xbf16, #tpu.memory_space<vmem>>, vector<1x6x10x128xbf16>
    %23 = vector.shape_cast %22 : vector<1x6x10x128xbf16> to vector<6x10x128xbf16>
    %c0_i32_15 = arith.constant 0 : i32
    %24 = arith.addi %0, %c0_i32_15 : i32
    %c0_16 = arith.constant 0 : index
    %25 = arith.index_cast %24 : i32 to index
    %c0_17 = arith.constant 0 : index
    %c384 = arith.constant 384 : index
    %26 = vector.load %arg2[%c0_16, %25, %c0_17, %c384] : memref<1x11x11x512xbf16, #tpu.memory_space<vmem>>, vector<1x6x10x128xbf16>
    %27 = vector.shape_cast %26 : vector<1x6x10x128xbf16> to vector<6x10x128xbf16>
    %c1_i32_18 = arith.constant 1 : i32
    %28 = arith.addi %0, %c1_i32_18 : i32
    %c0_19 = arith.constant 0 : index
    %29 = arith.index_cast %28 : i32 to index
    %c0_20 = arith.constant 0 : index
    %c128_21 = arith.constant 128 : index
    %30 = vector.load %arg2[%c0_19, %29, %c0_20, %c128_21] : memref<1x11x11x512xbf16, #tpu.memory_space<vmem>>, vector<1x6x10x128xbf16>
    %31 = vector.shape_cast %30 : vector<1x6x10x128xbf16> to vector<6x10x128xbf16>
    %32 = tpu.concatenate %23, %27, %31 in 2 : vector<6x10x128xbf16>, vector<6x10x128xbf16>, vector<6x10x128xbf16> -> vector<6x10x384xbf16>
    %33 = vector.shape_cast %32 : vector<6x10x384xbf16> to vector<60x384xbf16>
    %c1 = arith.constant 1 : index
    %c0_22 = arith.constant 0 : index
    %c0_23 = arith.constant 0 : index
    %34 = vector.load %arg3[%c1, %c0_22, %c0_23] : memref<3x384x128xbf16, #tpu.memory_space<vmem>>, vector<1x384x128xbf16>
    %35 = vector.shape_cast %34 : vector<1x384x128xbf16> to vector<384x128xbf16>
    %cst_24 = arith.constant dense<0.000000e+00> : vector<60x128xf32>
    %36 = tpu.matmul %33, %35, %cst_24 {dimension_numbers = #tpu.dot_dimension_numbers<[1], [0], [0], [1], [0, 0, 1, 1], [], []>} : vector<60x384xbf16>, vector<384x128xbf16>, vector<60x128xf32> -> vector<60x128xf32>
    %37 = arith.addf %19, %36 : vector<60x128xf32>
    %c0_i32_25 = arith.constant 0 : i32
    %38 = arith.addi %0, %c0_i32_25 : i32
    %c0_26 = arith.constant 0 : index
    %39 = arith.index_cast %38 : i32 to index
    %c1_27 = arith.constant 1 : index
    %c0_28 = arith.constant 0 : index
    %40 = vector.load %arg2[%c0_26, %39, %c1_27, %c0_28] : memref<1x11x11x512xbf16, #tpu.memory_space<vmem>>, vector<1x6x10x128xbf16>
    %41 = vector.shape_cast %40 : vector<1x6x10x128xbf16> to vector<6x10x128xbf16>
    %c0_i32_29 = arith.constant 0 : i32
    %42 = arith.addi %0, %c0_i32_29 : i32
    %c0_30 = arith.constant 0 : index
    %43 = arith.index_cast %42 : i32 to index
    %c1_31 = arith.constant 1 : index
    %c256_32 = arith.constant 256 : index
    %44 = vector.load %arg2[%c0_30, %43, %c1_31, %c256_32] : memref<1x11x11x512xbf16, #tpu.memory_space<vmem>>, vector<1x6x10x128xbf16>
    %45 = vector.shape_cast %44 : vector<1x6x10x128xbf16> to vector<6x10x128xbf16>
    %c1_i32_33 = arith.constant 1 : i32
    %46 = arith.addi %0, %c1_i32_33 : i32
    %c0_34 = arith.constant 0 : index
    %47 = arith.index_cast %46 : i32 to index
    %c1_35 = arith.constant 1 : index
    %c0_36 = arith.constant 0 : index
    %48 = vector.load %arg2[%c0_34, %47, %c1_35, %c0_36] : memref<1x11x11x512xbf16, #tpu.memory_space<vmem>>, vector<1x6x10x128xbf16>
    %49 = vector.shape_cast %48 : vector<1x6x10x128xbf16> to vector<6x10x128xbf16>
    %50 = tpu.concatenate %41, %45, %49 in 2 : vector<6x10x128xbf16>, vector<6x10x128xbf16>, vector<6x10x128xbf16> -> vector<6x10x384xbf16>
    %51 = vector.shape_cast %50 : vector<6x10x384xbf16> to vector<60x384xbf16>
    %c2 = arith.constant 2 : index
    %c0_37 = arith.constant 0 : index
    %c0_38 = arith.constant 0 : index
    %52 = vector.load %arg3[%c2, %c0_37, %c0_38] : memref<3x384x128xbf16, #tpu.memory_space<vmem>>, vector<1x384x128xbf16>
    %53 = vector.shape_cast %52 : vector<1x384x128xbf16> to vector<384x128xbf16>
    %cst_39 = arith.constant dense<0.000000e+00> : vector<60x128xf32>
    %54 = tpu.matmul %51, %53, %cst_39 {dimension_numbers = #tpu.dot_dimension_numbers<[1], [0], [0], [1], [0, 0, 1, 1], [], []>} : vector<60x384xbf16>, vector<384x128xbf16>, vector<60x128xf32> -> vector<60x128xf32>
    %55 = arith.addf %37, %54 : vector<60x128xf32>
    %c0_40 = arith.constant 0 : index
    %c0_41 = arith.constant 0 : index
    %56 = vector.load %arg4[%c0_40, %c0_41] : memref<1x128xf32, #tpu.memory_space<vmem>>, vector<1x128xf32>
    %57 = vector.broadcast %56 : vector<1x128xf32> to vector<60x128xf32>
    %58 = arith.mulf %55, %57 : vector<60x128xf32>
    %c0_42 = arith.constant 0 : index
    %c0_43 = arith.constant 0 : index
    %59 = vector.load %arg5[%c0_42, %c0_43] : memref<1x128xf32, #tpu.memory_space<vmem>>, vector<1x128xf32>
    %60 = vector.broadcast %59 : vector<1x128xf32> to vector<60x128xf32>
    %61 = arith.addf %58, %60 : vector<60x128xf32>
    %cst_44 = arith.constant 0.000000e+00 : f32
    %62 = vector.broadcast %cst_44 : f32 to vector<60x128xf32>
    %63 = arith.maximumf %61, %62 : vector<60x128xf32>
    %64 = vector.shape_cast %63 : vector<60x128xf32> to vector<6x10x128xf32>
    %65 = tpu.iota {dimensions = array<i32: 0>} : vector<6x10x1xi32>
    %c1_i32_45 = arith.constant 1 : i32
    %66 = arith.subi %0, %c1_i32_45 : i32
    %67 = vector.broadcast %66 : i32 to vector<6x10x1xi32>
    %68 = arith.addi %65, %67 : vector<6x10x1xi32>
    %69 = tpu.iota {dimensions = array<i32: 1>} : vector<6x10x1xi32>
    %c0_i32_46 = arith.constant 0 : i32
    %70 = vector.broadcast %c0_i32_46 : i32 to vector<6x10x1xi32>
    %71 = arith.cmpi sge, %68, %70 : vector<6x10x1xi32>
    %c8_i32 = arith.constant 8 : i32
    %72 = vector.broadcast %c8_i32 : i32 to vector<6x10x1xi32>
    %73 = arith.cmpi slt, %68, %72 : vector<6x10x1xi32>
    %74 = arith.andi %71, %73 : vector<6x10x1xi1>
    %c1_i32_47 = arith.constant 1 : i32
    %75 = vector.broadcast %c1_i32_47 : i32 to vector<6x10x1xi32>
    %76 = arith.cmpi sge, %69, %75 : vector<6x10x1xi32>
    %77 = arith.andi %74, %76 : vector<6x10x1xi1>
    %c8_i32_48 = arith.constant 8 : i32
    %78 = vector.broadcast %c8_i32_48 : i32 to vector<6x10x1xi32>
    %79 = arith.cmpi sle, %69, %78 : vector<6x10x1xi32>
    %80 = arith.andi %77, %79 : vector<6x10x1xi1>
    %cst_49 = arith.constant 0.000000e+00 : f32
    %81 = vector.shape_cast %80 : vector<6x10x1xi1> to vector<6x10x1xi1>
    %82 = vector.broadcast %81 : vector<6x10x1xi1> to vector<6x10x128xi1>
    %83 = vector.broadcast %cst_49 : f32 to vector<6x10x128xf32>
    %84 = arith.select %82, %64, %83 : vector<6x10x128xi1>, vector<6x10x128xf32>
    %85 = arith.truncf %84 : vector<6x10x128xf32> to vector<6x10x128xbf16>
    %c0_50 = arith.constant 0 : index
    %c0_51 = arith.constant 0 : index
    %c0_52 = arith.constant 0 : index
    %c0_53 = arith.constant 0 : index
    %86 = vector.load %arg13[%c0_50, %c0_51, %c0_52, %c0_53] : memref<1x6x10x128xbf16, #tpu.memory_space<vmem>>, vector<1x6x10x128xbf16>
    %87 = vector.shape_cast %86 : vector<1x6x10x128xbf16> to vector<6x10x128xbf16>
    %88 = vector.shape_cast %85 : vector<6x10x128xbf16> to vector<1x6x10x128xbf16>
    tpu.vector_store %arg13[%c0_50, %c0_51, %c0_52, %c0_53], %88 {strides = array<i32>} : memref<1x6x10x128xbf16, #tpu.memory_space<vmem>>, vector<1x6x10x128xbf16>,
    %cst_54 = arith.constant 0.000000e+00 : f32
    %89 = vector.broadcast %cst_54 : f32 to vector<32x128xf32>
    %c0_55 = arith.constant 0 : index
    %c0_56 = arith.constant 0 : index
    %c0_57 = arith.constant 0 : index
    %c0_58 = arith.constant 0 : index
    %90 = vector.load %arg13[%c0_55, %c0_56, %c0_57, %c0_58] : memref<1x6x10x128xbf16, #tpu.memory_space<vmem>>, vector<1x4x8x128xbf16>
    %91 = vector.shape_cast %90 : vector<1x4x8x128xbf16> to vector<4x8x128xbf16>
    %c0_59 = arith.constant 0 : index
    %c1_60 = arith.constant 1 : index
    %c0_61 = arith.constant 0 : index
    %c0_62 = arith.constant 0 : index
    %92 = vector.load %arg13[%c0_59, %c1_60, %c0_61, %c0_62] : memref<1x6x10x128xbf16, #tpu.memory_space<vmem>>, vector<1x4x8x128xbf16>
    %93 = vector.shape_cast %92 : vector<1x4x8x128xbf16> to vector<4x8x128xbf16>
    %c0_63 = arith.constant 0 : index
    %c2_64 = arith.constant 2 : index
    %c0_65 = arith.constant 0 : index
    %c0_66 = arith.constant 0 : index
    %94 = vector.load %arg13[%c0_63, %c2_64, %c0_65, %c0_66] : memref<1x6x10x128xbf16, #tpu.memory_space<vmem>>, vector<1x4x8x128xbf16>
    %95 = vector.shape_cast %94 : vector<1x4x8x128xbf16> to vector<4x8x128xbf16>
    %96 = tpu.concatenate %91, %93, %95 in 2 : vector<4x8x128xbf16>, vector<4x8x128xbf16>, vector<4x8x128xbf16> -> vector<4x8x384xbf16>
    %97 = vector.shape_cast %96 : vector<4x8x384xbf16> to vector<32x384xbf16>
    %c0_67 = arith.constant 0 : index
    %c0_68 = arith.constant 0 : index
    %c0_69 = arith.constant 0 : index
    %98 = vector.load %arg6[%c0_67, %c0_68, %c0_69] : memref<3x384x128xbf16, #tpu.memory_space<vmem>>, vector<1x384x128xbf16>
    %99 = vector.shape_cast %98 : vector<1x384x128xbf16> to vector<384x128xbf16>
    %cst_70 = arith.constant dense<0.000000e+00> : vector<32x128xf32>
    %100 = tpu.matmul %97, %99, %cst_70 {dimension_numbers = #tpu.dot_dimension_numbers<[1], [0], [0], [1], [0, 0, 1, 1], [], []>} : vector<32x384xbf16>, vector<384x128xbf16>, vector<32x128xf32> -> vector<32x128xf32>
    %101 = arith.addf %89, %100 : vector<32x128xf32>
    %c0_71 = arith.constant 0 : index
    %c0_72 = arith.constant 0 : index
    %c1_73 = arith.constant 1 : index
    %c0_74 = arith.constant 0 : index
    %102 = vector.load %arg13[%c0_71, %c0_72, %c1_73, %c0_74] : memref<1x6x10x128xbf16, #tpu.memory_space<vmem>>, vector<1x4x8x128xbf16>
    %103 = vector.shape_cast %102 : vector<1x4x8x128xbf16> to vector<4x8x128xbf16>
    %c0_75 = arith.constant 0 : index
    %c1_76 = arith.constant 1 : index
    %c1_77 = arith.constant 1 : index
    %c0_78 = arith.constant 0 : index
    %104 = vector.load %arg13[%c0_75, %c1_76, %c1_77, %c0_78] : memref<1x6x10x128xbf16, #tpu.memory_space<vmem>>, vector<1x4x8x128xbf16>
    %105 = vector.shape_cast %104 : vector<1x4x8x128xbf16> to vector<4x8x128xbf16>
    %c0_79 = arith.constant 0 : index
    %c2_80 = arith.constant 2 : index
    %c1_81 = arith.constant 1 : index
    %c0_82 = arith.constant 0 : index
    %106 = vector.load %arg13[%c0_79, %c2_80, %c1_81, %c0_82] : memref<1x6x10x128xbf16, #tpu.memory_space<vmem>>, vector<1x4x8x128xbf16>
    %107 = vector.shape_cast %106 : vector<1x4x8x128xbf16> to vector<4x8x128xbf16>
    %108 = tpu.concatenate %103, %105, %107 in 2 : vector<4x8x128xbf16>, vector<4x8x128xbf16>, vector<4x8x128xbf16> -> vector<4x8x384xbf16>
    %109 = vector.shape_cast %108 : vector<4x8x384xbf16> to vector<32x384xbf16>
    %c1_83 = arith.constant 1 : index
    %c0_84 = arith.constant 0 : index
    %c0_85 = arith.constant 0 : index
    %110 = vector.load %arg6[%c1_83, %c0_84, %c0_85] : memref<3x384x128xbf16, #tpu.memory_space<vmem>>, vector<1x384x128xbf16>
    %111 = vector.shape_cast %110 : vector<1x384x128xbf16> to vector<384x128xbf16>
    %cst_86 = arith.constant dense<0.000000e+00> : vector<32x128xf32>
    %112 = tpu.matmul %109, %111, %cst_86 {dimension_numbers = #tpu.dot_dimension_numbers<[1], [0], [0], [1], [0, 0, 1, 1], [], []>} : vector<32x384xbf16>, vector<384x128xbf16>, vector<32x128xf32> -> vector<32x128xf32>
    %113 = arith.addf %101, %112 : vector<32x128xf32>
    %c0_87 = arith.constant 0 : index
    %c0_88 = arith.constant 0 : index
    %c2_89 = arith.constant 2 : index
    %c0_90 = arith.constant 0 : index
    %114 = vector.load %arg13[%c0_87, %c0_88, %c2_89, %c0_90] : memref<1x6x10x128xbf16, #tpu.memory_space<vmem>>, vector<1x4x8x128xbf16>
    %115 = vector.shape_cast %114 : vector<1x4x8x128xbf16> to vector<4x8x128xbf16>
    %c0_91 = arith.constant 0 : index
    %c1_92 = arith.constant 1 : index
    %c2_93 = arith.constant 2 : index
    %c0_94 = arith.constant 0 : index
    %116 = vector.load %arg13[%c0_91, %c1_92, %c2_93, %c0_94] : memref<1x6x10x128xbf16, #tpu.memory_space<vmem>>, vector<1x4x8x128xbf16>
    %117 = vector.shape_cast %116 : vector<1x4x8x128xbf16> to vector<4x8x128xbf16>
    %c0_95 = arith.constant 0 : index
    %c2_96 = arith.constant 2 : index
    %c2_97 = arith.constant 2 : index
    %c0_98 = arith.constant 0 : index
    %118 = vector.load %arg13[%c0_95, %c2_96, %c2_97, %c0_98] : memref<1x6x10x128xbf16, #tpu.memory_space<vmem>>, vector<1x4x8x128xbf16>
    %119 = vector.shape_cast %118 : vector<1x4x8x128xbf16> to vector<4x8x128xbf16>
    %120 = tpu.concatenate %115, %117, %119 in 2 : vector<4x8x128xbf16>, vector<4x8x128xbf16>, vector<4x8x128xbf16> -> vector<4x8x384xbf16>
    %121 = vector.shape_cast %120 : vector<4x8x384xbf16> to vector<32x384xbf16>
    %c2_99 = arith.constant 2 : index
    %c0_100 = arith.constant 0 : index
    %c0_101 = arith.constant 0 : index
    %122 = vector.load %arg6[%c2_99, %c0_100, %c0_101] : memref<3x384x128xbf16, #tpu.memory_space<vmem>>, vector<1x384x128xbf16>
    %123 = vector.shape_cast %122 : vector<1x384x128xbf16> to vector<384x128xbf16>
    %cst_102 = arith.constant dense<0.000000e+00> : vector<32x128xf32>
    %124 = tpu.matmul %121, %123, %cst_102 {dimension_numbers = #tpu.dot_dimension_numbers<[1], [0], [0], [1], [0, 0, 1, 1], [], []>} : vector<32x384xbf16>, vector<384x128xbf16>, vector<32x128xf32> -> vector<32x128xf32>
    %125 = arith.addf %113, %124 : vector<32x128xf32>
    %c0_103 = arith.constant 0 : index
    %c0_104 = arith.constant 0 : index
    %126 = vector.load %arg7[%c0_103, %c0_104] : memref<1x128xf32, #tpu.memory_space<vmem>>, vector<1x128xf32>
    %127 = vector.broadcast %126 : vector<1x128xf32> to vector<32x128xf32>
    %128 = arith.mulf %125, %127 : vector<32x128xf32>
    %c0_105 = arith.constant 0 : index
    %c0_106 = arith.constant 0 : index
    %129 = vector.load %arg8[%c0_105, %c0_106] : memref<1x128xf32, #tpu.memory_space<vmem>>, vector<1x128xf32>
    %130 = vector.broadcast %129 : vector<1x128xf32> to vector<32x128xf32>
    %131 = arith.addf %128, %130 : vector<32x128xf32>
    %cst_107 = arith.constant 0.000000e+00 : f32
    %132 = vector.broadcast %cst_107 : f32 to vector<4x8x128xf32>
    %c1_i32_108 = arith.constant 1 : i32
    %133 = arith.addi %0, %c1_i32_108 : i32
    %c0_i32_109 = arith.constant 0 : i32
    %134 = arith.addi %133, %c0_i32_109 : i32
    %c0_110 = arith.constant 0 : index
    %135 = arith.index_cast %134 : i32 to index
    %c1_111 = arith.constant 1 : index
    %c0_112 = arith.constant 0 : index
    %136 = vector.load %arg2[%c0_110, %135, %c1_111, %c0_112] : memref<1x11x11x512xbf16, #tpu.memory_space<vmem>>, vector<1x4x8x128xbf16>
    %137 = vector.shape_cast %136 : vector<1x4x8x128xbf16> to vector<4x8x128xbf16>
    %138 = arith.extf %137 : vector<4x8x128xbf16> to vector<4x8x128xf32>
    %139 = arith.addf %132, %138 : vector<4x8x128xf32>
    %c1_i32_113 = arith.constant 1 : i32
    %140 = arith.addi %0, %c1_i32_113 : i32
    %c0_i32_114 = arith.constant 0 : i32
    %141 = arith.addi %140, %c0_i32_114 : i32
    %c0_115 = arith.constant 0 : index
    %142 = arith.index_cast %141 : i32 to index
    %c1_116 = arith.constant 1 : index
    %c128_117 = arith.constant 128 : index
    %143 = vector.load %arg2[%c0_115, %142, %c1_116, %c128_117] : memref<1x11x11x512xbf16, #tpu.memory_space<vmem>>, vector<1x4x8x128xbf16>
    %144 = vector.shape_cast %143 : vector<1x4x8x128xbf16> to vector<4x8x128xbf16>
    %145 = arith.extf %144 : vector<4x8x128xbf16> to vector<4x8x128xf32>
    %146 = arith.addf %139, %145 : vector<4x8x128xf32>
    %c1_i32_118 = arith.constant 1 : i32
    %147 = arith.addi %0, %c1_i32_118 : i32
    %c0_i32_119 = arith.constant 0 : i32
    %148 = arith.addi %147, %c0_i32_119 : i32
    %c0_120 = arith.constant 0 : index
    %149 = arith.index_cast %148 : i32 to index
    %c2_121 = arith.constant 2 : index
    %c0_122 = arith.constant 0 : index
    %150 = vector.load %arg2[%c0_120, %149, %c2_121, %c0_122] : memref<1x11x11x512xbf16, #tpu.memory_space<vmem>>, vector<1x4x8x128xbf16>
    %151 = vector.shape_cast %150 : vector<1x4x8x128xbf16> to vector<4x8x128xbf16>
    %152 = arith.extf %151 : vector<4x8x128xbf16> to vector<4x8x128xf32>
    %153 = arith.addf %146, %152 : vector<4x8x128xf32>
    %c1_i32_123 = arith.constant 1 : i32
    %154 = arith.addi %0, %c1_i32_123 : i32
    %c0_i32_124 = arith.constant 0 : i32
    %155 = arith.addi %154, %c0_i32_124 : i32
    %c0_125 = arith.constant 0 : index
    %156 = arith.index_cast %155 : i32 to index
    %c1_126 = arith.constant 1 : index
    %c256_127 = arith.constant 256 : index
    %157 = vector.load %arg2[%c0_125, %156, %c1_126, %c256_127] : memref<1x11x11x512xbf16, #tpu.memory_space<vmem>>, vector<1x4x8x128xbf16>
    %158 = vector.shape_cast %157 : vector<1x4x8x128xbf16> to vector<4x8x128xbf16>
    %159 = arith.extf %158 : vector<4x8x128xbf16> to vector<4x8x128xf32>
    %160 = arith.addf %153, %159 : vector<4x8x128xf32>
    %c1_i32_128 = arith.constant 1 : i32
    %161 = arith.addi %0, %c1_i32_128 : i32
    %c0_i32_129 = arith.constant 0 : i32
    %162 = arith.addi %161, %c0_i32_129 : i32
    %c0_130 = arith.constant 0 : index
    %163 = arith.index_cast %162 : i32 to index
    %c1_131 = arith.constant 1 : index
    %c384_132 = arith.constant 384 : index
    %164 = vector.load %arg2[%c0_130, %163, %c1_131, %c384_132] : memref<1x11x11x512xbf16, #tpu.memory_space<vmem>>, vector<1x4x8x128xbf16>
    %165 = vector.shape_cast %164 : vector<1x4x8x128xbf16> to vector<4x8x128xbf16>
    %166 = arith.extf %165 : vector<4x8x128xbf16> to vector<4x8x128xf32>
    %167 = arith.addf %160, %166 : vector<4x8x128xf32>
    %c1_i32_133 = arith.constant 1 : i32
    %168 = arith.addi %0, %c1_i32_133 : i32
    %c0_i32_134 = arith.constant 0 : i32
    %169 = arith.addi %168, %c0_i32_134 : i32
    %c0_135 = arith.constant 0 : index
    %170 = arith.index_cast %169 : i32 to index
    %c2_136 = arith.constant 2 : index
    %c256_137 = arith.constant 256 : index
    %171 = vector.load %arg2[%c0_135, %170, %c2_136, %c256_137] : memref<1x11x11x512xbf16, #tpu.memory_space<vmem>>, vector<1x4x8x128xbf16>
    %172 = vector.shape_cast %171 : vector<1x4x8x128xbf16> to vector<4x8x128xbf16>
    %173 = arith.extf %172 : vector<4x8x128xbf16> to vector<4x8x128xf32>
    %174 = arith.addf %167, %173 : vector<4x8x128xf32>
    %c1_i32_138 = arith.constant 1 : i32
    %175 = arith.addi %0, %c1_i32_138 : i32
    %c1_i32_139 = arith.constant 1 : i32
    %176 = arith.addi %175, %c1_i32_139 : i32
    %c0_140 = arith.constant 0 : index
    %177 = arith.index_cast %176 : i32 to index
    %c1_141 = arith.constant 1 : index
    %c0_142 = arith.constant 0 : index
    %178 = vector.load %arg2[%c0_140, %177, %c1_141, %c0_142] : memref<1x11x11x512xbf16, #tpu.memory_space<vmem>>, vector<1x4x8x128xbf16>
    %179 = vector.shape_cast %178 : vector<1x4x8x128xbf16> to vector<4x8x128xbf16>
    %180 = arith.extf %179 : vector<4x8x128xbf16> to vector<4x8x128xf32>
    %181 = arith.addf %174, %180 : vector<4x8x128xf32>
    %c1_i32_143 = arith.constant 1 : i32
    %182 = arith.addi %0, %c1_i32_143 : i32
    %c1_i32_144 = arith.constant 1 : i32
    %183 = arith.addi %182, %c1_i32_144 : i32
    %c0_145 = arith.constant 0 : index
    %184 = arith.index_cast %183 : i32 to index
    %c1_146 = arith.constant 1 : index
    %c128_147 = arith.constant 128 : index
    %185 = vector.load %arg2[%c0_145, %184, %c1_146, %c128_147] : memref<1x11x11x512xbf16, #tpu.memory_space<vmem>>, vector<1x4x8x128xbf16>
    %186 = vector.shape_cast %185 : vector<1x4x8x128xbf16> to vector<4x8x128xbf16>
    %187 = arith.extf %186 : vector<4x8x128xbf16> to vector<4x8x128xf32>
    %188 = arith.addf %181, %187 : vector<4x8x128xf32>
    %c1_i32_148 = arith.constant 1 : i32
    %189 = arith.addi %0, %c1_i32_148 : i32
    %c1_i32_149 = arith.constant 1 : i32
    %190 = arith.addi %189, %c1_i32_149 : i32
    %c0_150 = arith.constant 0 : index
    %191 = arith.index_cast %190 : i32 to index
    %c2_151 = arith.constant 2 : index
    %c0_152 = arith.constant 0 : index
    %192 = vector.load %arg2[%c0_150, %191, %c2_151, %c0_152] : memref<1x11x11x512xbf16, #tpu.memory_space<vmem>>, vector<1x4x8x128xbf16>
    %193 = vector.shape_cast %192 : vector<1x4x8x128xbf16> to vector<4x8x128xbf16>
    %194 = arith.extf %193 : vector<4x8x128xbf16> to vector<4x8x128xf32>
    %195 = arith.addf %188, %194 : vector<4x8x128xf32>
    %cst_153 = arith.constant 0.111111112 : f32
    %196 = vector.broadcast %cst_153 : f32 to vector<4x8x128xf32>
    %197 = arith.mulf %195, %196 : vector<4x8x128xf32>
    %198 = vector.shape_cast %197 : vector<4x8x128xf32> to vector<32x128xf32>
    %199 = arith.truncf %198 : vector<32x128xf32> to vector<32x128xbf16>
    %c0_154 = arith.constant 0 : index
    %c0_155 = arith.constant 0 : index
    %200 = vector.load %arg9[%c0_154, %c0_155] : memref<128x128xbf16, #tpu.memory_space<vmem>>, vector<128x128xbf16>
    %cst_156 = arith.constant dense<0.000000e+00> : vector<32x128xf32>
    %201 = tpu.matmul %199, %200, %cst_156 {dimension_numbers = #tpu.dot_dimension_numbers<[1], [0], [0], [1], [0, 0, 1, 1], [], []>} : vector<32x128xbf16>, vector<128x128xbf16>, vector<32x128xf32> -> vector<32x128xf32>
    %c0_157 = arith.constant 0 : index
    %c0_158 = arith.constant 0 : index
    %202 = vector.load %arg10[%c0_157, %c0_158] : memref<1x128xf32, #tpu.memory_space<vmem>>, vector<1x128xf32>
    %203 = vector.broadcast %202 : vector<1x128xf32> to vector<32x128xf32>
    %204 = arith.mulf %201, %203 : vector<32x128xf32>
    %c0_159 = arith.constant 0 : index
    %c0_160 = arith.constant 0 : index
    %205 = vector.load %arg11[%c0_159, %c0_160] : memref<1x128xf32, #tpu.memory_space<vmem>>, vector<1x128xf32>
    %206 = vector.broadcast %205 : vector<1x128xf32> to vector<32x128xf32>
    %207 = arith.addf %204, %206 : vector<32x128xf32>
    %208 = arith.addf %131, %207 : vector<32x128xf32>
    %cst_161 = arith.constant 0.000000e+00 : f32
    %209 = vector.broadcast %cst_161 : f32 to vector<32x128xf32>
    %210 = arith.maximumf %208, %209 : vector<32x128xf32>
    %211 = vector.shape_cast %210 : vector<32x128xf32> to vector<4x8x128xf32>
    %212 = arith.truncf %211 : vector<4x8x128xf32> to vector<4x8x128xbf16>
    %c0_162 = arith.constant 0 : index
    %c0_163 = arith.constant 0 : index
    %c0_164 = arith.constant 0 : index
    %c0_165 = arith.constant 0 : index
    %213 = vector.load %arg12[%c0_162, %c0_163, %c0_164, %c0_165] : memref<1x4x8x128xbf16, #tpu.memory_space<vmem>>, vector<1x4x8x128xbf16>
    %214 = vector.shape_cast %213 : vector<1x4x8x128xbf16> to vector<4x8x128xbf16>
    %215 = vector.shape_cast %212 : vector<4x8x128xbf16> to vector<1x4x8x128xbf16>
    tpu.vector_store %arg12[%c0_162, %c0_163, %c0_164, %c0_165], %215 {strides = array<i32>} : memref<1x4x8x128xbf16, #tpu.memory_space<vmem>>, vector<1x4x8x128xbf16>,
    return
  }
  func.func @transform_0(%arg0: i32, %arg1: i32) -> (i32, i32, i32, i32) {
    %c0_i32 = arith.constant 0 : i32
    %c0_i32_0 = arith.constant 0 : i32
    %c0_i32_1 = arith.constant 0 : i32
    %c0_i32_2 = arith.constant 0 : i32
    return %arg0, %c0_i32, %c0_i32_0, %c0_i32_1 : i32, i32, i32, i32
  }
  func.func @transform_1(%arg0: i32, %arg1: i32) -> (i32, i32, i32) {
    %c0_i32 = arith.constant 0 : i32
    %c0_i32_0 = arith.constant 0 : i32
    %c0_i32_1 = arith.constant 0 : i32
    %c0_i32_2 = arith.constant 0 : i32
    return %c0_i32, %c0_i32_0, %c0_i32_1 : i32, i32, i32
  }
  func.func @transform_2(%arg0: i32, %arg1: i32) -> (i32, i32) {
    %c0_i32 = arith.constant 0 : i32
    %c0_i32_0 = arith.constant 0 : i32
    %c0_i32_1 = arith.constant 0 : i32
    return %c0_i32, %c0_i32_0 : i32, i32
  }
  func.func @transform_3(%arg0: i32, %arg1: i32) -> (i32, i32) {
    %c0_i32 = arith.constant 0 : i32
    %c0_i32_0 = arith.constant 0 : i32
    %c0_i32_1 = arith.constant 0 : i32
    return %c0_i32, %c0_i32_0 : i32, i32
  }
  func.func @transform_4(%arg0: i32, %arg1: i32) -> (i32, i32, i32) {
    %c0_i32 = arith.constant 0 : i32
    %c0_i32_0 = arith.constant 0 : i32
    %c0_i32_1 = arith.constant 0 : i32
    %c0_i32_2 = arith.constant 0 : i32
    return %c0_i32, %c0_i32_0, %c0_i32_1 : i32, i32, i32
  }
  func.func @transform_5(%arg0: i32, %arg1: i32) -> (i32, i32) {
    %c0_i32 = arith.constant 0 : i32
    %c0_i32_0 = arith.constant 0 : i32
    %c0_i32_1 = arith.constant 0 : i32
    return %c0_i32, %c0_i32_0 : i32, i32
  }
  func.func @transform_6(%arg0: i32, %arg1: i32) -> (i32, i32) {
    %c0_i32 = arith.constant 0 : i32
    %c0_i32_0 = arith.constant 0 : i32
    %c0_i32_1 = arith.constant 0 : i32
    return %c0_i32, %c0_i32_0 : i32, i32
  }
  func.func @transform_7(%arg0: i32, %arg1: i32) -> (i32, i32) {
    %c0_i32 = arith.constant 0 : i32
    %c0_i32_0 = arith.constant 0 : i32
    %c0_i32_1 = arith.constant 0 : i32
    return %c0_i32, %c0_i32_0 : i32, i32
  }
  func.func @transform_8(%arg0: i32, %arg1: i32) -> (i32, i32) {
    %c0_i32 = arith.constant 0 : i32
    %c0_i32_0 = arith.constant 0 : i32
    %c0_i32_1 = arith.constant 0 : i32
    return %c0_i32, %c0_i32_0 : i32, i32
  }
  func.func @transform_9(%arg0: i32, %arg1: i32) -> (i32, i32) {
    %c0_i32 = arith.constant 0 : i32
    %c0_i32_0 = arith.constant 0 : i32
    %c0_i32_1 = arith.constant 0 : i32
    return %c0_i32, %c0_i32_0 : i32, i32
  }
  func.func @transform_10(%arg0: i32, %arg1: i32) -> (i32, i32, i32, i32) {
    %c0_i32 = arith.constant 0 : i32
    %c0_i32_0 = arith.constant 0 : i32
    %c0_i32_1 = arith.constant 0 : i32
    return %arg0, %arg1, %c0_i32, %c0_i32_0 : i32, i32, i32, i32
  }
}

</mosaic_0001>

<bundles_post_ra>
// kernel: tpu_custom_call.1
= control target key start
LH: loop header
LB: loop body
LE: loop exit
PB: predicated region body
PF: predicated region fallthrough
CT: control target
= control target key end

     0   :  { %s9485_s0 = inlined_call_operand.vmem [shape: bf16[2,11,11,512], index: 0, kind: input, shape index: {}]   ;;  %s9486_s1 = inlined_call_operand.vmem [shape: bf16[3,384,128], index: 1, kind: input, shape index: {}]   ;;  %s9487_s2 = inlined_call_operand.vmem [shape: f32[1,128], index: 2, kind: input, shape index: {}]   ;;  %s9488_s3 = inlined_call_operand.vmem [shape: f32[1,128], index: 3, kind: input, shape index: {}]   ;;  %s9489_s4 = inlined_call_operand.vmem [shape: bf16[3,384,128], index: 4, kind: input, shape index: {}]   ;;  %s9490_s5 = inlined_call_operand.vmem [shape: f32[1,128], index: 5, kind: input, shape index: {}]   ;;  %s9491_s6 = inlined_call_operand.vmem [shape: f32[1,128], index: 6, kind: input, shape index: {}]   ;;  %s9492_s7 = inlined_call_operand.hbm [shape: bf16[128,128], index: 7, kind: input, shape index: {}]   ;;  %s9493_s8 = inlined_call_operand.vmem [shape: f32[1,128], index: 8, kind: input, shape index: {}]   ;;  %s9494_s9 = inlined_call_operand.vmem [shape: f32[1,128], index: 9, kind: input, shape index: {}]   ;;  %s9495_s10 = inlined_call_operand.hbm [shape: bf16[2,8,8,128], index: 10, kind: output, shape index: {}]  }
   0x1   :  { %9500 = sst [smem:[#allocation14_spill]] %s9492_s7 }
   0x2   :  { %15 = vsyncpa [#allocation4], 0 }
   0x3   :  { %16 = vsyncpa [#allocation5], 0 }
   0x4   :  { %18 = vsyncpa [#allocation5 + $0x1], 0  ;;  %s7868_s13 = smov 0   ;;  %s7870_s14 = smov 0  }
   0x5   :  { %s7872_s15 = smov 0   ;;  %s7874_s16 = smov 0  }
   0x6   :  { %s7876_s17 = smov 0   ;;  %s7878_s18 = smov 0  }
   0x7   :  { %s7880_s19 = smov 0   ;;  %s7882_s20 = smov 0  }
   0x8 LB: > { %9501 = sst [smem:[#allocation9_spill]] %s7795_s18  ;;  %s6205_s21 = sadd.s32 4294967295, %s7803_s20   ;;  %s7803_s20 = sphi %s7882_s20, %s24_s20   ;;  %s7799_s19 = sphi %s7880_s19, %s9548_s19   ;;  %s7795_s18 = sphi %s7878_s18, %s9547_s18   ;;  %s7791_s17 = sphi %s7876_s17, %s9546_s17   ;;  %s7787_s16 = sphi %s7874_s16, %s9545_s16   ;;  %s7783_s15 = sphi %s7872_s15, %s9551_s15   ;;  %s7779_s14 = sphi %s7870_s14, %s9550_s14   ;;  %s7775_s13 = sphi %s7868_s13, %s9549_s13  }
   0x9   : > { %9502 = sst [smem:[#allocation10_spill]] %s7799_s19  ;;  %s6206_s22 = sadd.s32 4294967294, %s7803_s20  }
   0xa   : > { %s33_s23 = sadd.s32 1, %s7795_s18  ;;  %s36_s24 = sadd.s32 1, %s7799_s19 }
   0xb   : > { %p34_p0 = scmp.ge.s32.totalorder %s33_s23, 2  ;;  %s260_s25 = sadd.s32 1, %s7783_s15 }
   0xc   : > { %p270_p1 = scmp.ne.s32.totalorder %s7783_s15, %s7779_s14  ;;  %p271_p2 = scmp.eq.s32.totalorder %s6205_s21, 3 }
   0xd   : > { %s9553_s23 = smov (%p34_p0, %s33_s23), 0  ;;  %s9555_s24 = smov (!%p34_p0, %s36_s24), %s7799_s19 }
   0xe   : > { %9503 = sst [smem:[#allocation11_spill]] %s9553_s23  ;;  %s256_s26 = ssub.s32 %s7795_s18, %s9553_s23 }
   0xf   : > { %p7920_p3 = por %p271_p2, %p270_p1  ;;  %p38_p4 = scmp.ge.s32.totalorder %s9555_s24, 2 }
  0x10   : > { %p276_p5 = scmp.ne.s32.totalorder %s7779_s14, %s7775_s13  ;;  %p277_p6 = scmp.eq.s32.totalorder %s6206_s22, 3 }
  0x11   : > { %p6207_p7 = scmp.ge.s32.totalorder %s7803_s20, 1  ;;  %s9557_s24 = smov (%p38_p4, %s9555_s24), 0 }
  0x12   : > { %9505 = sst [smem:[#allocation12_spill]] %s9557_s24  ;;  %p7929_p8 = por %p277_p6, %p276_p5 }
  0x13   : > { %p284_p9 = scmp.lt.s32.totalorder %s7803_s20, 5  ;;  %s255_s29 = ssub.s32 %s7799_s19, %s9557_s24 }
  0x14   : > { %s257_s30 = sor.u32 %s256_s26, %s255_s29  ;;  %p7940_p12 = scmp.eq.s32.totalorder %s6205_s21, 0 }
  0x15   : > { %p7936_p10 = pnand %p6207_p7, %p284_p9  ;;  %p258_p11 = scmp.eq.s32.totalorder %s257_s30, 0 }
  0x16   : > { %s7805_s23 = smov [#allocation3]  }
  0x17   : > { %p7345_p13 = pneg %p7936_p10  ;;  %s322_s18 = sshll.u32 %s7805_s23, 4  ;;  %s323_s18 = int_to_ptr.vmem [resolvable:$true] %s322_s18 }
  0x18   : > { %s7947_s22 = scalar_select %p258_p11, %s7783_s15, %s260_s25  }
  0x19   : > { %p7951_p0 = pnand %p7940_p12, %p7345_p13  ;;  %s7692_s21 = scalar_lea.vmem %s323_s18, 1024 }
  0x1a   : > { %9509 = sst [smem:[#allocation13_spill]] %s7947_s22  ;;  %p7693_p2 = scmp.ne.s32.totalorder %s323_s18, %s7692_s21 }
  0x1b   : > { %p7683_p1 = pneg %p7951_p0  ;;  %p7700_p6 = scmp.lt.s32.totalorder %s323_s18, %s323_s18 }
  0x1c   : > { %p7701_p7 = scmp.lt.s32.totalorder %s7692_s21, %s7692_s21 }
  0x1d   : > { %p7695_p4 = pnand %p7693_p2, %p7683_p1 }
  0x1e   : > { %p7702_p9 = por %p7701_p7, %p7700_p6 }
  0x1f   : > { %p7696_p5 = pneg %p7695_p4 }
  0x21   : > { %p7703_p11 = pnand %p7702_p9, %p7696_p5 }
  0x23   : > { %7706 = shalt.err (!%p7703_p11)
}
  0x24   : > { %s7806_s25 = smov 64   ;;  %s7807_s23 = smov 4  }
  0x25   : > { %s9511_s7 = sld [smem:[#allocation14_spill]] }
  0x27   : > { %344 = sbr.rel (%p7936_p10) target bundleno = 762 (0x2fa), region = 60 }
  0x2b   : > { %7348 = dma.hbm_to_vmem [thread:$0]  (!%p7951_p0), %s9511_s7, 1024, %s323_s18, [#allocation4], %s7806_s25, %s7806_s25, %s7807_s23  }
  0x2c   : > { %7766 = dma.done.wait (%p7940_p12), [#allocation4], 1024  }
  0x2d   : > { %7768 = vsyncadd (%p7940_p12), [#allocation4], 4294966272  ;;  %v7427_v0 = vld [vmem:[%s9486_s1 + $0x138] sm:$0xff]   ;;  %v7430_v3 = vld [vmem:[%s9486_s1 + $0x130] sm:$0xff]   ;;  %p382_p10 = scmp.lt.s32.totalorder %s7791_s17, 1  ;;  %v529_v18 = vlaneseq  ;;  %s6880_s25 = sshll.u32 %s7787_s16, 7 }
  0x2e   : > { %v7428_v1 = vld [vmem:[%s9486_s1 + $0xf8] sm:$0xff]   ;;  %6906 = vmatprep.subr.bf16.mxu0 %v7427_v0  ;;  %v7431_v4 = vld [vmem:[%s9486_s1 + $0xf0] sm:$0xff]   ;;  %v7433_v6 = vld [vmem:[%s9486_s1 + $0x128] sm:$0xff]   ;;  %v7808_v16 = vmov 1966171168   ;;  %s6213_s19 = sshll.u32 %s7787_s16, 2 }
  0x2f   : > { %v7429_v2 = vld [vmem:[%s9486_s1 + $0x178] sm:$0xff]   ;;  %6907 = vmatpush3.bf16.msra.mxu0 %v7428_v1  ;;  %v7432_v5 = vld [vmem:[%s9486_s1 + $0x170] sm:$0xff]   ;;  %v7434_v7 = vld [vmem:[%s9486_s1 + $0xe8] sm:$0xff]   ;;  %s383_s30 = scalar_select %p382_p10, %s7791_s17, 1  ;;  %v527_v17 = vunpack.c.l.s4 %v7808_v16  ;;  %v8034_v24 = vshrl.u32 %v529_v18, 7 }
  0x30   : > { %7186 = vmatprep.subr.bf16.mxu1 %v7429_v2  ;;  %6908 = vmatprep.subr.bf16.mxu0 %v7430_v3  ;;  %v7435_v8 = vld [vmem:[%s9486_s1 + $0x168] sm:$0xff]   ;;  %v7436_v9 = vld [vmem:[%s9486_s1 + $0x120] sm:$0xff]   ;;  %v7439_v12 = vld [vmem:[%s9486_s1 + $0x118] sm:$0xff]   ;;  %vm3036_vm0 = vsmask.f32 256  ;;  %s6568_s29 = sadd.s32 4294967295, %s6213_s19 }
  0x31   : > { %7187 = vmatpush3.bf16.msra.mxu1 %v7429_v2  ;;  %v7437_v10 = vld [vmem:[%s9486_s1 + $0xe0] sm:$0xff]   ;;  %v7441_v13 = vld [vmem:[%s9486_s1 + $0x158] sm:$0xff]   ;;  %v7442_v15 = vld [vmem:[%s9486_s1 + $0x110] sm:$0xff]   ;;  %s7338_s23 = smul.u32 352, %s383_s30  ;;  %v528_v23 = vunpack.c.0.s8 %v527_v17  ;;  %vm3037_vm1 = vsmask.f32 1284 }
  0x32   : > { %7188 = vmatprep.subr.bf16.mxu1 %v7432_v5  ;;  %v7438_v11 = vld [vmem:[%s9486_s1 + $0x160] sm:$0xff]   ;;  %v7440_v14 = vld [vmem:[%s9486_s1 + $0xd8] sm:$0xff]   ;;  %v7444_v19 = vld [vmem:[%s9486_s1 + $0x150] sm:$0xff]   ;;  %vm3039_vm2 = vsmask.f32 2312  ;;  %s379_s18 = sand.u32 1, %s7779_s14  }
  0x33   : > { %6909 = vmatpush3.bf16.msra.mxu0 %v7431_v4  ;;  %v7443_v20 = vld [vmem:[%s9486_s1 + $0xd0] sm:$0xff]   ;;  %v7445_v21 = vld [vmem:[%s9486_s1 + $0x108] sm:$0xff]   ;;  %s386_s11 = scalar_lea.vmem %s9485_s0, %s7338_s23  ;;  %v7448_v26 = vld [vmem:[%s9486_s1 + $0x100] sm:$0xff]   ;;  %v8051_v29 = vsub.s32 %v528_v23, %v8034_v24  ;;  %vm3041_vm3 = vsmask.f32 3340  ;;  %s6211_s30 = sshll.u32 %s379_s18, 4 }
  0x34   : > { %6910 = vmatprep.subr.bf16.mxu0 %v7433_v6  ;;  %v7446_v22 = vld [vmem:[%s9486_s1 + $0xc8] sm:$0xff]   ;;  %s8042_s23 = scalar_lea.vmem %s386_s11, %s6880_s25  ;;  %v7450_v27 = vld [vmem:[%s9486_s1 + $0x140] sm:$0xff]   ;;  %v7458_v41 = vld [vmem:[%s9486_s1 + $0x78] sm:$0xff]   ;;  %vm3043_vm7 = vsmask.f32 4368  ;;  %s381_s25 = scalar_lea.vmem [#allocation6], %s6211_s30 }
  0x35   : > { %7189 = vmatpush3.bf16.msra.mxu1 %v7432_v5  ;;  %v7447_v25 = vld [vmem:[%s9486_s1 + $0x148] sm:$0xff]   ;;  %v7449_v28 = vld [vmem:[%s9486_s1 + $0xc0] sm:$0xff]   ;;  %v6267_v31 = vld [vmem:[%s8042_s23 + $0x34] sm:$0x1]  ;;  %vm3045_vm9 = vsmask.f32 5396 }
  0x36   : > { %7190 = vmatprep.subr.bf16.mxu1 %v7435_v8  ;;  %v6266_v30 = vld [vmem:[%s8042_s23 + $0x24] sm:$0xf]  ;;  %v6269_v33 = vld [vmem:[%s8042_s23 + $0x54] sm:$0x1]  ;;  %v6298_v36 = vcombine.low %v6267_v31, %v6267_v31  ;;  %v8083_v1 = vld [vmem:[%s9486_s1 + $0xb8] sm:$0xff]  }
  0x37   : > { %6911 = vmatpush3.bf16.msra.mxu0 %v7434_v7  ;;  %v6268_v32 = vld [vmem:[%s8042_s23 + $0x44] sm:$0xf]  ;;  %v6290_v34 = vcombine.low %v6266_v30, %v6267_v31  ;;  %v7454_v39 = vld [vmem:[%s8042_s23 + $0x14] ss:$8 sps:$4 sm:$0x11]   ;;  %v6301_v40 = vcombine.low %v6269_v33, %v6269_v33  ;;  %vm3038_vm4 = vmor %vm3036_vm0, %vm3037_vm1 }
  0x38   : > { %6912 = vmatprep.subr.bf16.mxu0 %v7436_v9  ;;  %v7453_v35 = vld [vmem:[%s8042_s23 + $0x4] ss:$8 sps:$4 sm:$0xff]   ;;  %v6291_v38 = vcombine.low %v6268_v32, %v6269_v33  ;;  %v1069_v44 = vrot.slane %v6298_v36, %v8051_v29  ;;  %v1055_v46 = vrot.slane %v7454_v39, %v8051_v29  ;;  %v6271_v56 = vld [vmem:[%s8042_s23 + $0x74] sm:$0x1]  ;;  %vm8286_vm5 = vmor %vm3038_vm4, %vm3039_vm2  ;;  %vm3047_vm11 = vsmask.f32 6424 }
  0x39   : > { %7191 = vmatpush3.bf16.msra.mxu1 %v7435_v8  ;;  %v7456_v37 = vld [vmem:[%s8042_s23 + $0x24] ss:$8 sps:$4 sm:$0xff]   ;;  %v1048_v42 = vrot.slane %v7453_v35, %v8051_v29  ;;  %v1062_v43 = vrot.slane %v6290_v34, %v8051_v29  ;;  %v1126_v58 = vrot.slane %v6301_v40, %v8051_v29  ;;  %v6273_v62 = vld [vmem:[%s8042_s23 + $0x94] sm:$0x1]  ;;  %v6304_v7 = vcombine.low %v6271_v56, %v6271_v56  ;;  %vm8307_vm6 = vmor %vm8286_vm5, %vm3041_vm3 }
  0x3a   : > { %7192 = vmatprep.subr.bf16.mxu1 %v7438_v11  ;;  %v1105_v45 = vrot.slane %v7456_v37, %v8051_v29  ;;  %v1119_v47 = vrot.slane %v6291_v38, %v8051_v29  ;;  %v1072_v50 = vcombine.low %v1055_v46, %v1069_v44  ;;  %v6270_v55 = vld [vmem:[%s8042_s23 + $0x64] sm:$0xf]  ;;  %v7462_v0 = vld [vmem:[%s8042_s23 + $0x34] ss:$8 sps:$4 sm:$0x11]   ;;  %vm8358_vm8 = vmor %vm8307_vm6, %vm3043_vm7 }
  0x3b   : > { %6913 = vmatpush3.bf16.msra.mxu0 %v7437_v10  ;;  %v1070_v48 = vcombine.low %v1048_v42, %v1062_v43  ;;  %v1071_v49 = vcombine.high %v1048_v42, %v1062_v43  ;;  %v6272_v57 = vld [vmem:[%s8042_s23 + $0x84] sm:$0xf]  ;;  %v6292_v63 = vcombine.low %v6270_v55, %v6271_v56  ;;  %v7464_v6 = vld [vmem:[%s8042_s23 + $0x54] ss:$8 sps:$4 sm:$0x11]   ;;  %v1183_v23 = vrot.slane %v6304_v7, %v8051_v29  ;;  %vm8380_vm10 = vmor %vm8358_vm8, %vm3045_vm9 }
  0x3c   : > { %6914 = vmatprep.subr.bf16.mxu0 %v7439_v12  ;;  %v1127_v51 = vcombine.low %v1105_v45, %v1119_v47  ;;  %v1128_v52 = vcombine.high %v1105_v45, %v1119_v47  ;;  %v1086_v59 = vrot.slane %v1072_v50, %v8051_v29  ;;  %v6293_v4 = vcombine.low %v6272_v57, %v6273_v62  ;;  %v7463_v5 = vld [vmem:[%s8042_s23 + $0x44] ss:$8 sps:$4 sm:$0xff]   ;;  %v7459_v45 = vld [vmem:[%s9486_s1 + $0x38] sm:$0xff]   ;;  %v7468_v50 = vld [vmem:[%s9486_s1 + $0x70] sm:$0xff]  }
  0x3d   : > { %7193 = vmatpush3.bf16.msra.mxu1 %v7438_v11  ;;  %v1079_v53 = vrot.slane %v1070_v48, %v8051_v29  ;;  %v1093_v54 = vrot.slane %v1071_v49, %v8051_v29  ;;  %v1112_v11 = vrot.slane %v7462_v0, %v8051_v29  ;;  %v7466_v12 = vld [vmem:[%s8042_s23 + $0x64] ss:$8 sps:$4 sm:$0xff]   ;;  %v1169_v16 = vrot.slane %v7464_v6, %v8051_v29  ;;  %vm8440_vm13 = vmor %vm8380_vm10, %vm3047_vm11 }
  0x3e   : > { %7194 = vmatprep.subr.bf16.mxu1 %v7441_v13  ;;  %v1136_v60 = vrot.slane %v1127_v51, %v8051_v29  ;;  %v1150_v61 = vrot.slane %v1128_v52, %v8051_v29  ;;  %v1233_v34 = vrot.slane %v6293_v4, %v8051_v29  ;;  %v6307_v42 = vcombine.low %v6273_v62, %v6273_v62 }
  0x3f   : > { %6915 = vmatpush3.bf16.msra.mxu0 %v7440_v14  ;;  %v1430_v2 = vcombine.low %v1079_v53, %v1093_v54  ;;  %v6362_v3 = vcombine.high %v1079_v53, %v1093_v54  ;;  %v1186_v33 = vcombine.low %v1169_v16, %v1183_v23  ;;  %v6277_v23 = vld [vmem:[%s8042_s23 + $0xd4] sm:$0x1]  ;;  %vm3049_vm12 = vsmask.f32 7452 }
  0x40   : > { %6916 = vmatprep.subr.bf16.mxu0 %v7442_v15  ;;  %v1151_v8 = vcombine.high %v1136_v60, %v1136_v60  ;;  %v1152_v9 = vcombine.high %v1150_v61, %v1150_v61  ;;  %v1432_v10 = vcombine.low %v1086_v59, %v1136_v60  ;;  %v1162_v15 = vrot.slane %v7463_v5, %v8051_v29  ;;  %v6274_v59 = vld [vmem:[%s8042_s23 + $0xa4] sm:$0xf]  ;;  %v6275_v60 = vld [vmem:[%s8042_s23 + $0xb4] sm:$0x1]  ;;  %vm8456_vm14 = vmor %vm8440_vm13, %vm3049_vm12 }
  0x41   : > { %7195 = vmatpush3.bf16.msra.mxu1 %v7441_v13  ;;  %v1440_v13 = vrot.slane %v1430_v2, %v8051_v29  ;;  %v1447_v14 = vrot.slane %v6362_v3, %v8051_v29  ;;  %v1200_v39 = vrot.slane %v1186_v33, %v8051_v29  ;;  %v1240_v51 = vrot.slane %v6307_v42, %v8051_v29  ;;  %v7469_v2 = vld [vmem:[%s9486_s1 + $0x30] sm:$0xff]   ;;  %v7472_v33 = vld [vmem:[%s9486_s1 + $0x28] sm:$0xff]  }
  0x42   : > { %7196 = vmatprep.subr.bf16.mxu1 %v7444_v19  ;;  %v1433_v17 = vcombine.low %v1150_v61, %v1151_v8  ;;  %v1454_v18 = vrot.slane %v1432_v10, %v8051_v29  ;;  %v6294_v4 = vcombine.low %v6274_v59, %v6275_v60  ;;  %v7478_v5 = vld [vmem:[%s8042_s23 + $0x74] ss:$8 sps:$4 sm:$0x11]   ;;  %v7471_v10 = vld [vmem:[%s9486_s1 + $0x68] sm:$0xff]   ;;  %vm4100_vm8 = vcmp.ge.s32.totalorder %v8034_v24, 1 }
  0x43   : > { %6917 = vmatpush3.bf16.msra.mxu0 %v7443_v20  ;;  %v1176_v20 = vrot.slane %v6292_v63, %v8051_v29  ;;  %v7480_v63 = vld [vmem:[%s8042_s23 + $0x84] ss:$8 sps:$4 sm:$0xff]  }
  0x44   : > { %6918 = vmatprep.subr.bf16.mxu0 %v7445_v21  ;;  %v1463_v21 = vcombine.high %v1440_v13, %v1447_v14  ;;  %v1276_v7 = vrot.slane %v7480_v63, %v8051_v29  ;;  %v7476_v63 = vld [vmem:[%s9486_s1 + $0xa0] sm:$0xff]  }
  0x45   : > { %7197 = vmatpush3.bf16.msra.mxu1 %v7444_v19  ;;  %v1129_v19 = vcombine.low %v1112_v11, %v1126_v58  ;;  %v1185_v30 = vcombine.high %v1162_v15, %v1176_v20  ;;  %v1226_v11 = vrot.slane %v7478_v5, %v8051_v29 }
  0x46   : > { %7198 = vmatprep.subr.bf16.mxu1 %v7447_v25  ;;  %v1479_v31 = vrot.slane %v1463_v21, %v8051_v29 }
  0x47   : > { %6919 = vmatpush3.bf16.msra.mxu0 %v7446_v22  ;;  %v1462_v22 = vcombine.low %v1440_v13, %v1447_v14  ;;  %v1207_v38 = vrot.slane %v1185_v30, %v8051_v29  ;;  %v1290_v13 = vrot.slane %v6294_v4, %v8051_v29  ;;  %v7484_v30 = vld [vmem:[%s8042_s23 + $0x94] ss:$8 sps:$4 sm:$0x11]  }
  0x48   : > { %6920 = vmatprep.subr.bf16.mxu0 %v7448_v26  ;;  %v1461_v26 = vrot.slane %v1433_v17, %v8051_v29  ;;  %v6310_v17 = vcombine.low %v6275_v60, %v6275_v60  ;;  %v1283_v42 = vrot.slane %v7484_v30, %v8051_v29 }
  0x49   : > { %7199 = vmatpush3.bf16.msra.mxu1 %v7447_v25  ;;  %v1219_v25 = vrot.slane %v7466_v12, %v8051_v29  ;;  %v1472_v32 = vrot.slane %v1462_v22, %v8051_v29  ;;  %v6276_v22 = vld [vmem:[%s8042_s23 + $0xc4] sm:$0xf] }
  0x4a   : > { %7200 = vmatprep.subr.bf16.mxu1 %v7450_v27  ;;  %v1465_v35 = vcombine.high %v1454_v18, %v1461_v26  ;;  %v1464_v36 = vcombine.low %v1454_v18, %v1461_v26  ;;  %v1243_v18 = vcombine.low %v1226_v11, %v1240_v51  ;;  %v7470_v26 = vld [vmem:[%s9486_s1 + $0xb0] sm:$0xff]   ;;  %v7473_v51 = vld [vmem:[%s9486_s1 + $0xa8] sm:$0xff]  }
  0x4b   : > { %6921 = vmatpush3.bf16.msra.mxu0 %v7449_v28  ;;  %v1184_v28 = vcombine.low %v1162_v15, %v1176_v20  ;;  %v1241_v40 = vcombine.low %v1219_v25, %v1233_v34  ;;  %v1242_v52 = vcombine.high %v1219_v25, %v1233_v34  ;;  %v1299_v20 = vcombine.high %v1276_v7, %v1290_v13 }
  0x4c   : > { %6958 = vmatprep.subr.bf16.mxu0 %v7458_v41  ;;  %v1493_v43 = vrot.slane %v1465_v35, %v8051_v29  ;;  %v1486_v44 = vrot.slane %v1464_v36, %v8051_v29  ;;  %v1257_v34 = vrot.slane %v1243_v18, %v8051_v29 }
  0x4d   : > { %7201 = vmatpush3.bf16.msra.mxu1 %v7450_v27  ;;  %v1143_v27 = vrot.slane %v1129_v19, %v8051_v29  ;;  %v1193_v37 = vrot.slane %v1184_v28, %v8051_v29  ;;  %v1250_v48 = vrot.slane %v1241_v40, %v8051_v29  ;;  %v1264_v61 = vrot.slane %v1242_v52, %v8051_v29 }
  0x4e   : > { %7210 = vmatprep.subr.bf16.mxu1 %v8083_v1  ;;  %v1496_v53 = vcombine.low %v1479_v31, %v1493_v43  ;;  %v1494_v54 = vcombine.low %v1472_v32, %v1486_v44  ;;  %v1495_v55 = vcombine.high %v1472_v32, %v1486_v44  ;;  %v1298_v19 = vcombine.low %v1276_v7, %v1290_v13  ;;  %v7486_v32 = vld [vmem:[%s8042_s23 + $0xa4] ss:$8 sps:$4 sm:$0xff]  }
  0x4f   : > { %v1497_v41 = vcombine.low %v1152_v9, %v1143_v27  ;;  %v1498_v46 = vcombine.low %v1193_v37, %v1207_v38  ;;  %v6363_v47 = vcombine.high %v1193_v37, %v1207_v38  ;;  %v1500_v57 = vcombine.low %v1200_v39, %v1250_v48  ;;  %v7487_v37 = vld [vmem:[%s8042_s23 + $0xb4] ss:$8 sps:$4 sm:$0x11]   ;;  %v7474_v43 = vld [vmem:[%s9486_s1 + $0x60] sm:$0xff]  }
  0x50   : > { %v1265_v62 = vcombine.high %v1250_v48, %v1250_v48  ;;  %1877 = vmatprep.mubr.bf16.mxu0 %v1496_v53  ;;  %7202 = vmatprep.mubr.bf16.mxu1 %v1495_v55  ;;  %v1266_v12 = vcombine.high %v1264_v61, %v1264_v61  ;;  %v6295_v28 = vcombine.low %v6276_v22, %v6277_v23  ;;  %v7475_v55 = vld [vmem:[%s9486_s1 + $0x20] sm:$0xff]  }
  0x51   : > { %v1507_v49 = vrot.slane %v1497_v41, %v8051_v29  ;;  %v1514_v56 = vrot.slane %v1498_v46, %v8051_v29  ;;  %v1521_v58 = vrot.slane %v6363_v47, %v8051_v29  ;;  %1878 = vmatmul.mubr.bf16.vlgmr.msra.gmra.mxu0 %v1494_v54  ;;  %v1528_v6 = vrot.slane %v1500_v57, %v8051_v29 }
  0x52   : > { %v1564_v8 = vcombine.low %v1264_v61, %v1265_v62  ;;  %6959 = vmatpush3.bf16.msra.mxu0 %v7459_v45  ;;  %v1297_v31 = vrot.slane %v6310_v17, %v8051_v29  ;;  %v1307_v35 = vrot.slane %v1298_v19, %v8051_v29  ;;  %v1321_v36 = vrot.slane %v1299_v20, %v8051_v29  ;;  %v7481_v62 = vld [vmem:[%s9486_s1 + $0x58] sm:$0xff]  }
  0x53   : > { %v1529_v0 = vcombine.low %v1507_v49, %v1514_v56  ;;  %v1530_v3 = vcombine.high %v1507_v49, %v1514_v56  ;;  %v1531_v14 = vcombine.low %v1521_v58, %v1528_v6  ;;  %6960 = vmatprep.subr.bf16.mxu0 %v7468_v50  ;;  %v1532_v15 = vcombine.high %v1521_v58, %v1528_v6  ;;  %v7489_v19 = vld [vmem:[%s9486_s1 + $0x98] sm:$0xff]  }
  0x54   : > { %v1574_v21 = vrot.slane %v1564_v8, %v8051_v29  ;;  %v6313_v38 = vcombine.low %v6277_v23, %v6277_v23  ;;  %v1565_v44 = vcombine.low %v1266_v12, %v1257_v34  ;;  %v1566_v45 = vcombine.low %v1307_v35, %v1321_v36  ;;  %v7482_v8 = vld [vmem:[%s9486_s1 + $0x18] sm:$0xff]   ;;  %v7490_v12 = vld [vmem:[%s9486_s1 + $0x50] sm:$0xff]  }
  0x55   : > { %v1539_v9 = vrot.slane %v1529_v0, %v8051_v29  ;;  %v1546_v16 = vrot.slane %v1530_v3, %v8051_v29  ;;  %v1553_v25 = vrot.slane %v1531_v14, %v8051_v29  ;;  %v1560_v27 = vrot.slane %v1532_v15, %v8051_v29 }
  0x56   : > { %6961 = vmatpush3.bf16.msra.mxu0 %v7469_v2  ;;  %v6364_v46 = vcombine.high %v1307_v35, %v1321_v36  ;;  %v1333_v47 = vrot.slane %v7486_v32, %v8051_v29  ;;  %v1300_v48 = vcombine.low %v1283_v42, %v1297_v31  ;;  %v1340_v49 = vrot.slane %v7487_v37, %v8051_v29  ;;  %v7501_v32 = vld [vmem:[%s8042_s23] ss:$8 sps:$4 sm:$0xff]   ;;  %v7492_v37 = vld [vmem:[%s9486_s1 + $0x90] sm:$0xff]  }
  0x57   : > { %v1562_v39 = vcombine.high %v1539_v9, %v1553_v25  ;;  %v1563_v40 = vcombine.low %v1546_v16, %v1560_v27  ;;  %v1561_v41 = vcombine.low %v1539_v9, %v1553_v25  ;;  %6962 = vmatprep.subr.bf16.mxu0 %v7471_v10  ;;  %v1347_v50 = vrot.slane %v6295_v28, %v8051_v29  ;;  %v6219_v25 = vld [vmem:[%s8042_s23 + $0x30] sm:$0x1] }
  0x58   : > { %v1581_v52 = vrot.slane %v1565_v44, %v8051_v29  ;;  %v1588_v53 = vrot.slane %v1566_v45, %v8051_v29  ;;  %v1595_v54 = vrot.slane %v6364_v46, %v8051_v29  ;;  %v1314_v56 = vrot.slane %v1300_v48, %v8051_v29  ;;  %v6221_v27 = vld [vmem:[%s8042_s23 + $0x50] sm:$0x1] }
  0x59   : > { %7203 = vmatmul.mubr.bf16.vlgmr.msra.gmra.mxu1 %v1562_v39  ;;  %1885 = vmatprep.mubr.bf16.mxu0 %v1563_v40  ;;  %v1355_v57 = vcombine.low %v1333_v47, %v1347_v50  ;;  %v1356_v0 = vcombine.high %v1333_v47, %v1347_v50  ;;  %v7491_v28 = vld [vmem:[%s9486_s1 + $0x10] sm:$0xff]   ;;  %v6250_v34 = vcombine.low %v6219_v25, %v6219_v25  ;;  %v7493_v39 = vld [vmem:[%s9486_s1 + $0x48] sm:$0xff]  }
  0x5a   : > { %7211 = vmatpush3.bf16.msra.mxu1 %v8083_v1  ;;  %1886 = vmatmul.mubr.bf16.gmra.mxu0 %v1561_v41  ;;  %v1354_v1 = vrot.slane %v6313_v38, %v8051_v29  ;;  %v1597_v58 = vcombine.high %v1574_v21, %v1581_v52  ;;  %v1599_v59 = vcombine.high %v1588_v53, %v1595_v54  ;;  %v7504_v40 = vld [vmem:[%s8042_s23 + $0x20] ss:$8 sps:$4 sm:$0xff]   ;;  %v7505_v41 = vld [vmem:[%s8042_s23 + $0x30] ss:$8 sps:$4 sm:$0x11]  }
  0x5b   : > { %7212 = vmatprep.subr.bf16.mxu1 %v7470_v26  ;;  %6963 = vmatpush3.bf16.msra.mxu0 %v7472_v33  ;;  %v1596_v60 = vcombine.low %v1574_v21, %v1581_v52  ;;  %v1598_v61 = vcombine.low %v1588_v53, %v1595_v54  ;;  %v1364_v3 = vrot.slane %v1355_v57, %v8051_v29  ;;  %v6218_v21 = vld [vmem:[%s8042_s23 + $0x20] sm:$0xf]  ;;  %v7502_v33 = vld [vmem:[%s8042_s23 + $0x10] ss:$8 sps:$4 sm:$0x11]  }
  0x5c   : > { %6964 = vmatprep.subr.bf16.mxu0 %v7474_v43  ;;  %v1357_v2 = vcombine.low %v1340_v49, %v1354_v1  ;;  %v1613_v4 = vrot.slane %v1597_v58, %v8051_v29  ;;  %v1627_v5 = vrot.slane %v1599_v59, %v8051_v29  ;;  %v1378_v10 = vrot.slane %v1356_v0, %v8051_v29  ;;  %v7494_v43 = vld [vmem:[%s9486_s1 + $0x8] sm:$0xff]   ;;  %v7496_v52 = vld [vmem:[%s9486_s1 + $0x40] sm:$0xff]  }
  0x5d   : > { %v1606_v6 = vrot.slane %v1596_v60, %v8051_v29  ;;  %v1620_v7 = vrot.slane %v1598_v61, %v8051_v29  ;;  %v1379_v11 = vcombine.high %v1364_v3, %v1364_v3  ;;  %v1631_v16 = vcombine.low %v1314_v56, %v1364_v3  ;;  %v7495_v59 = vld [vmem:[%s9486_s1 + $0x88] sm:$0xff]   ;;  %v6223_v3 = vld [vmem:[%s8042_s23 + $0x70] sm:$0x1] }
  0x5e   : > { %7213 = vmatpush3.bf16.msra.mxu1 %v7470_v26  ;;  %v1371_v9 = vrot.slane %v1357_v2, %v8051_v29  ;;  %v1630_v13 = vcombine.low %v1613_v4, %v1627_v5  ;;  %v1380_v17 = vcombine.high %v1378_v10, %v1378_v10  ;;  %v6220_v26 = vld [vmem:[%s8042_s23 + $0x40] sm:$0xf]  ;;  %v6242_v30 = vcombine.low %v6218_v21, %v6219_v25 }
  0x5f   : > { %7214 = vmatprep.subr.bf16.mxu1 %v7473_v51  ;;  %6965 = vmatpush3.bf16.msra.mxu0 %v7475_v55  ;;  %v1628_v14 = vcombine.low %v1606_v6, %v1620_v7  ;;  %v1629_v15 = vcombine.high %v1606_v6, %v1620_v7  ;;  %v1632_v18 = vcombine.low %v1378_v10, %v1379_v11  ;;  %v6222_v2 = vld [vmem:[%s8042_s23 + $0x60] sm:$0xf]  ;;  %v8243_v7 = vld [vmem:[%s8042_s23 + $0x90] sm:$0x1] }
  0x60   : > { %6966 = vmatprep.subr.bf16.mxu0 %v7481_v62  ;;  %1893 = vmatprep.mubr.bf16.mxu0 %v1630_v13  ;;  %v1640_v20 = vrot.slane %v1631_v16, %v8051_v29  ;;  %v1633_v22 = vcombine.low %v1380_v17, %v1371_v9  ;;  %v6243_v31 = vcombine.low %v6220_v26, %v6221_v27  ;;  %v6224_v6 = vld [vmem:[%s8042_s23 + $0x80] sm:$0xf]  ;;  %v7513_v16 = vld [vmem:[%s8042_s23 + $0x50] ss:$8 sps:$4 sm:$0x11]  }
  0x61   : > { %v1647_v23 = vrot.slane %v1632_v18, %v8051_v29  ;;  %7206 = vmatprep.mubr.bf16.mxu1 %v1629_v15  ;;  %v6253_v42 = vcombine.low %v6221_v27, %v6221_v27  ;;  %v532_v44 = vrot.slane %v7501_v32, %v8051_v29  ;;  %v539_v45 = vrot.slane %v7502_v33, %v8051_v29  ;;  %v7512_v9 = vld [vmem:[%s8042_s23 + $0x40] ss:$8 sps:$4 sm:$0xff]   ;;  %v7507_v15 = vld [vmem:[%s9486_s1 + $0x1f8] sm:$0xff]  }
  0x62   : > { %7215 = vmatpush3.bf16.msra.mxu1 %v7473_v51  ;;  %1894 = vmatmul.mubr.bf16.gmra.mxu0 %v1628_v14  ;;  %v1654_v35 = vrot.slane %v1633_v22, %v8051_v29  ;;  %v546_v46 = vrot.slane %v6242_v30, %v8051_v29  ;;  %v553_v47 = vrot.slane %v6250_v34, %v8051_v29  ;;  %v7497_v10 = vld [vmem:[%s9486_s1] sm:$0xff]  }
  0x63   : > { %7216 = vmatprep.subr.bf16.mxu1 %v7476_v63  ;;  %6967 = vmatpush3.bf16.msra.mxu0 %v7482_v8  ;;  %v1655_v36 = vcombine.low %v1640_v20, %v1647_v23  ;;  %v1656_v38 = vcombine.high %v1640_v20, %v1647_v23  ;;  %v589_v56 = vrot.slane %v7504_v40, %v8051_v29  ;;  %v7515_v23 = vld [vmem:[%s8042_s23 + $0x60] ss:$8 sps:$4 sm:$0xff]  }
  0x64   : > { %6968 = vmatprep.subr.bf16.mxu0 %v7490_v12  ;;  %v1678_v49 = vrot.slane %v1654_v35, %v8051_v29  ;;  %v1657_v50 = vcombine.high %v1654_v35, %v1654_v35  ;;  %v554_v53 = vcombine.low %v532_v44, %v546_v46  ;;  %v555_v54 = vcombine.high %v532_v44, %v546_v46  ;;  %v7498_v25 = vld [vmem:[%s9486_s1 + $0x80] sm:$0xff]  }
  0x65   : > { %v1664_v48 = vrot.slane %v1655_v36, %v8051_v29  ;;  %v1671_v51 = vrot.slane %v1656_v38, %v8051_v29  ;;  %v556_v55 = vcombine.low %v539_v45, %v553_v47  ;;  %v596_v60 = vrot.slane %v7505_v41, %v8051_v29 }
  0x66   : > { %7217 = vmatpush3.bf16.msra.mxu1 %v7476_v63  ;;  %v1685_v57 = vrot.slane %v1657_v50, %v8051_v29  ;;  %v563_v61 = vrot.slane %v554_v53, %v8051_v29  ;;  %v577_v63 = vrot.slane %v555_v54, %v8051_v29  ;;  %v603_v0 = vrot.slane %v6243_v31, %v8051_v29 }
  0x67   : > { %7218 = vmatprep.subr.bf16.mxu1 %v7489_v19  ;;  %6969 = vmatpush3.bf16.msra.mxu0 %v7491_v28  ;;  %v1687_v1 = vcombine.high %v1664_v48, %v1678_v49  ;;  %v1686_v58 = vcombine.low %v1664_v48, %v1678_v49  ;;  %v570_v62 = vrot.slane %v556_v55, %v8051_v29 }
  0x68   : > { %6970 = vmatprep.subr.bf16.mxu0 %v7493_v39  ;;  %v1688_v4 = vcombine.low %v1671_v51, %v1685_v57  ;;  %v610_v5 = vrot.slane %v6253_v42, %v8051_v29  ;;  %v6244_v8 = vcombine.low %v6222_v2, %v6223_v3  ;;  %v611_v11 = vcombine.low %v589_v56, %v603_v0 }
  0x69   : > { %7207 = vmatmul.mubr.bf16.gmra.mxu1 %v1687_v1  ;;  %v612_v12 = vcombine.high %v589_v56, %v603_v0  ;;  %v1975_v13 = vcombine.low %v563_v61, %v577_v63  ;;  %v6389_v14 = vcombine.high %v563_v61, %v577_v63  ;;  %v6245_v18 = vcombine.low %v6224_v6, %v8243_v7  ;;  %v6226_v61 = vld [vmem:[%s8042_s23 + $0xa0] sm:$0xf]  ;;  %v7526_v6 = vld [vmem:[%s8042_s23 + $0x70] ss:$8 sps:$4 sm:$0x11]  }
  0x6a   : > { %7219 = vmatpush3.bf16.msra.mxu1 %v7489_v19  ;;  %1901 = vmatprep.mubr.bf16.mxu0 %v1688_v4  ;;  %v613_v17 = vcombine.low %v596_v60, %v610_v5  ;;  %v6256_v19 = vcombine.low %v6223_v3, %v6223_v3  ;;  %v620_v20 = vrot.slane %v611_v11, %v8051_v29  ;;  %v7528_v0 = vld [vmem:[%s8042_s23 + $0x80] ss:$8 sps:$4 sm:$0xff]  }
  0x6b   : > { %7220 = vmatprep.subr.bf16.mxu1 %v7492_v37  ;;  %6971 = vmatpush3.bf16.msra.mxu0 %v7494_v43  ;;  %v634_v21 = vrot.slane %v612_v12, %v8051_v29  ;;  %v1985_v22 = vrot.slane %v1975_v13, %v8051_v29  ;;  %v1992_v27 = vrot.slane %v6389_v14, %v8051_v29  ;;  %v8274_v43 = vld [vmem:[%s9486_s1 + $0x238] sm:$0xff]  }
  0x6c   : > { %6972 = vmatprep.subr.bf16.mxu0 %v7496_v52  ;;  %1902 = vmatmul.mubr.bf16.gmra.mxu0 %v1686_v58  ;;  %v627_v26 = vrot.slane %v613_v17, %v8051_v29  ;;  %v646_v28 = vrot.slane %v7512_v9, %v8051_v29  ;;  %v653_v30 = vrot.slane %v7513_v16, %v8051_v29  ;;  %v7508_v14 = vld [vmem:[%s9486_s1 + $0x1b8] sm:$0xff]  }
  0x6d   : > { %v635_v31 = vcombine.high %v620_v20, %v620_v20  ;;  %v636_v32 = vcombine.high %v634_v21, %v634_v21  ;;  %v1977_v33 = vcombine.low %v570_v62, %v620_v20  ;;  %v660_v34 = vrot.slane %v6244_v8, %v8051_v29  ;;  %v6227_v62 = vld [vmem:[%s8042_s23 + $0xb0] sm:$0x1] }
  0x6e   : > { %7221 = vmatpush3.bf16.msra.mxu1 %v7492_v37  ;;  %v2007_v35 = vcombine.low %v1985_v22, %v1992_v27  ;;  %v2008_v36 = vcombine.high %v1985_v22, %v1992_v27  ;;  %v667_v37 = vrot.slane %v6256_v19, %v8051_v29  ;;  %v703_v41 = vrot.slane %v7515_v23, %v8051_v29 }
  0x6f   : > { %7222 = vmatprep.subr.bf16.mxu1 %v7495_v59  ;;  %6973 = vmatpush3.bf16.msra.mxu0 %v7497_v10  ;;  %v1978_v38 = vcombine.low %v634_v21, %v635_v31  ;;  %v1999_v39 = vrot.slane %v1977_v33, %v8051_v29  ;;  %v668_v40 = vcombine.low %v646_v28, %v660_v34  ;;  %v6228_v31 = vld [vmem:[%s8042_s23 + $0xc0] sm:$0xf] }
  0x70   : > { %7010 = vmatprep.subr.bf16.mxu0 %v7507_v15  ;;  %v2042_v42 = vcombine.low %v636_v32, %v627_v26  ;;  %v669_v44 = vcombine.high %v646_v28, %v660_v34  ;;  %v670_v45 = vcombine.low %v653_v30, %v667_v37  ;;  %v2024_v47 = vrot.slane %v2008_v36, %v8051_v29  ;;  %v6229_v32 = vld [vmem:[%s8042_s23 + $0xd0] sm:$0x1] }
  0x71   : > { %v2006_v46 = vrot.slane %v1978_v38, %v8051_v29  ;;  %v677_v48 = vrot.slane %v668_v40, %v8051_v29  ;;  %v717_v49 = vrot.slane %v6245_v18, %v8051_v29  ;;  %v2017_v50 = vrot.slane %v2007_v35, %v8051_v29  ;;  %v7516_v18 = vld [vmem:[%s9486_s1 + $0x1f0] sm:$0xff]   ;;  %v7519_v40 = vld [vmem:[%s9486_s1 + $0x1e8] sm:$0xff]  }
  0x72   : > { %7223 = vmatpush3.bf16.msra.mxu1 %v7495_v59  ;;  %v684_v51 = vrot.slane %v670_v45, %v8051_v29  ;;  %v691_v52 = vrot.slane %v669_v44, %v8051_v29  ;;  %v6259_v53 = vcombine.low %v8243_v7, %v8243_v7  ;;  %v2052_v60 = vrot.slane %v2042_v42, %v8051_v29  ;;  %v7517_v34 = vld [vmem:[%s9486_s1 + $0x1b0] sm:$0xff]  }
  0x73   : > { %7224 = vmatprep.subr.bf16.mxu1 %v7498_v25  ;;  %v2009_v55 = vcombine.low %v1999_v39, %v2006_v46  ;;  %v2010_v56 = vcombine.high %v1999_v39, %v2006_v46  ;;  %v725_v1 = vcombine.low %v703_v41, %v717_v49  ;;  %v726_v57 = vcombine.high %v703_v41, %v717_v49  ;;  %v7533_v38 = vld [vmem:[%s8042_s23 + $0x90] ss:$8 sps:$4 sm:$0x11]   ;;  %v7535_v39 = vld [vmem:[%s8042_s23 + $0xa0] ss:$8 sps:$4 sm:$0xff]  }
  0x74   : > { %v2043_v58 = vcombine.low %v677_v48, %v691_v52  ;;  %v6390_v59 = vcombine.high %v677_v48, %v691_v52  ;;  %v724_v63 = vrot.slane %v6259_v53, %v8051_v29  ;;  %v6246_v5 = vcombine.low %v6226_v61, %v6227_v62  ;;  %v7536_v46 = vld [vmem:[%s8042_s23 + $0xb0] ss:$8 sps:$4 sm:$0x11]  }
  0x75   : > { %v2038_v2 = vrot.slane %v2010_v56, %v8051_v29  ;;  %v2031_v3 = vrot.slane %v2009_v55, %v8051_v29  ;;  %v734_v4 = vrot.slane %v725_v1, %v8051_v29  ;;  %v748_v9 = vrot.slane %v726_v57, %v8051_v29 }
  0x76   : > { %7225 = vmatpush3.bf16.msra.mxu1 %v7498_v25  ;;  %v2059_v7 = vrot.slane %v2043_v58, %v8051_v29  ;;  %v2066_v8 = vrot.slane %v6390_v59, %v8051_v29  ;;  %v760_v10 = vrot.slane %v7528_v0, %v8051_v29  ;;  %v710_v20 = vrot.slane %v7526_v6, %v8051_v29  ;;  %v7520_v58 = vld [vmem:[%s9486_s1 + $0x1a8] sm:$0xff]  }
  0x77   : > { %7234 = vmatprep.subr.bf16.mxu1 %v8274_v43  ;;  %v2041_v12 = vcombine.low %v2024_v47, %v2038_v2  ;;  %v2039_v13 = vcombine.low %v2017_v50, %v2031_v3  ;;  %v2040_v15 = vcombine.high %v2017_v50, %v2031_v3  ;;  %v2045_v16 = vcombine.low %v684_v51, %v734_v4  ;;  %v7518_v51 = vld [vmem:[%s9486_s1 + $0x230] sm:$0xff]   ;;  %v7521_v6 = vld [vmem:[%s9486_s1 + $0x228] sm:$0xff]  }
  0x78   : > { %v2074_v17 = vcombine.low %v2052_v60, %v2059_v7  ;;  %v2075_v19 = vcombine.high %v2052_v60, %v2059_v7  ;;  %v749_v21 = vcombine.high %v734_v4, %v734_v4  ;;  %v750_v23 = vcombine.high %v748_v9, %v748_v9  ;;  %v7522_v60 = vld [vmem:[%s9486_s1 + $0x1e0] sm:$0xff]  }
  0x79   : > { %2422 = vmatprep.mubr.bf16.mxu0 %v2041_v12  ;;  %7226 = vmatprep.mubr.bf16.mxu1 %v2040_v15  ;;  %v2073_v22 = vrot.slane %v2045_v16, %v8051_v29  ;;  %v774_v25 = vrot.slane %v6246_v5, %v8051_v29  ;;  %v727_v28 = vcombine.low %v710_v20, %v724_v63 }
  0x7a   : > { %2423 = vmatmul.mubr.bf16.vlgmr.msra.gmra.mxu0 %v2039_v13  ;;  %v2084_v26 = vrot.slane %v2074_v17, %v8051_v29  ;;  %v2091_v27 = vrot.slane %v2075_v19, %v8051_v29  ;;  %v2109_v30 = vcombine.low %v748_v9, %v749_v21  ;;  %v6247_v44 = vcombine.low %v6228_v31, %v6229_v32  ;;  %v7529_v17 = vld [vmem:[%s9486_s1 + $0x1d8] sm:$0xff]   ;;  %v7524_v19 = vld [vmem:[%s9486_s1 + $0x220] sm:$0xff]  }
  0x7b   : > { %7011 = vmatpush3.bf16.msra.mxu0 %v7508_v14  ;;  %v2076_v33 = vcombine.low %v2066_v8, %v2073_v22  ;;  %v2077_v35 = vcombine.high %v2066_v8, %v2073_v22  ;;  %v782_v36 = vcombine.low %v760_v10, %v774_v25  ;;  %v783_v37 = vcombine.high %v760_v10, %v774_v25  ;;  %v7523_v10 = vld [vmem:[%s9486_s1 + $0x1a0] sm:$0xff]  }
  0x7c   : > { %7012 = vmatprep.subr.bf16.mxu0 %v7516_v18  ;;  %v741_v41 = vrot.slane %v727_v28, %v8051_v29  ;;  %v2119_v42 = vrot.slane %v2109_v30, %v8051_v29  ;;  %v6262_v45 = vcombine.low %v6227_v62, %v6227_v62  ;;  %v767_v53 = vrot.slane %v7533_v38, %v8051_v29  ;;  %v6416_v31 = vld [vmem:[%s8042_s23 + $0x20] sm:$0xf]  ;;  %v6419_v38 = vld [vmem:[%s8042_s23 + $0x50] sm:$0x3] }
  0x7d   : > { %v2098_v47 = vrot.slane %v2076_v33, %v8051_v29  ;;  %v2105_v48 = vrot.slane %v2077_v35, %v8051_v29  ;;  %v791_v49 = vrot.slane %v782_v36, %v8051_v29  ;;  %v805_v50 = vrot.slane %v783_v37, %v8051_v29  ;;  %v8398_v33 = vld [vmem:[%s8042_s23 + $0x40] sm:$0xf] }
  0x7e   : > { %v2110_v52 = vcombine.low %v750_v23, %v741_v41  ;;  %v781_v54 = vrot.slane %v6262_v45, %v8051_v29  ;;  %v6265_v55 = vcombine.low %v6229_v32, %v6229_v32  ;;  %v817_v0 = vrot.slane %v7535_v39, %v8051_v29  ;;  %v6417_v32 = vld [vmem:[%s8042_s23 + $0x30] sm:$0x3]  ;;  %v7549_v39 = vld [vmem:[%s8042_s23] ss:$8 sps:$4 sm:$0xff]  }
  0x7f   : > { %v2107_v56 = vcombine.high %v2084_v26, %v2098_v47  ;;  %7013 = vmatpush3.bf16.msra.mxu0 %v7517_v34  ;;  %v2108_v1 = vcombine.low %v2091_v27, %v2105_v48  ;;  %v2106_v57 = vcombine.low %v2084_v26, %v2098_v47  ;;  %v2111_v59 = vcombine.low %v791_v49, %v805_v50  ;;  %v7530_v26 = vld [vmem:[%s9486_s1 + $0x198] sm:$0xff]  }
  0x80   : > { %7014 = vmatprep.subr.bf16.mxu0 %v7519_v40  ;;  %v6391_v61 = vcombine.high %v791_v49, %v805_v50  ;;  %v2126_v62 = vrot.slane %v2110_v52, %v8051_v29  ;;  %v784_v63 = vcombine.low %v767_v53, %v781_v54  ;;  %v824_v3 = vrot.slane %v7536_v46, %v8051_v29  ;;  %v7552_v40 = vld [vmem:[%s8042_s23 + $0x20] ss:$8 sps:$4 sm:$0xff]   ;;  %v7550_v47 = vld [vmem:[%s8042_s23 + $0x10] ss:$8 sps:$4 sm:$0x33]  }
  0x81   : > { %7227 = vmatmul.mubr.bf16.vlgmr.msra.gmra.mxu1 %v2107_v56  ;;  %2430 = vmatprep.mubr.bf16.mxu0 %v2108_v1  ;;  %v2133_v2 = vrot.slane %v2111_v59, %v8051_v29  ;;  %v831_v4 = vrot.slane %v6247_v44, %v8051_v29  ;;  %v838_v12 = vrot.slane %v6265_v55, %v8051_v29  ;;  %v7538_v44 = vld [vmem:[%s9486_s1 + $0x1d0] sm:$0xff]   ;;  %v7531_v48 = vld [vmem:[%s9486_s1 + $0x218] sm:$0xff]  }
  0x82   : > { %7235 = vmatpush3.bf16.msra.mxu1 %v8274_v43  ;;  %2431 = vmatmul.mubr.bf16.gmra.mxu0 %v2106_v57  ;;  %v2140_v7 = vrot.slane %v6391_v61, %v8051_v29  ;;  %v2142_v8 = vcombine.high %v2119_v42, %v2126_v62  ;;  %v2141_v9 = vcombine.low %v2119_v42, %v2126_v62  ;;  %v7539_v55 = vld [vmem:[%s9486_s1 + $0x190] sm:$0xff]   ;;  %v7541_v61 = vld [vmem:[%s9486_s1 + $0x1c8] sm:$0xff]  }
  0x83   : > { %7236 = vmatprep.subr.bf16.mxu1 %v7518_v51  ;;  %7015 = vmatpush3.bf16.msra.mxu0 %v7520_v58  ;;  %v798_v11 = vrot.slane %v784_v63, %v8051_v29  ;;  %v839_v43 = vcombine.low %v817_v0, %v831_v4  ;;  %v840_v20 = vcombine.high %v817_v0, %v831_v4  ;;  %v7540_v63 = vld [vmem:[%s9486_s1 + $0x210] sm:$0xff]  }
  0x84   : > { %7016 = vmatprep.subr.bf16.mxu0 %v7522_v60  ;;  %v2144_v13 = vcombine.high %v2133_v2, %v2140_v7  ;;  %v2158_v14 = vrot.slane %v2142_v8, %v8051_v29  ;;  %v2143_v15 = vcombine.low %v2133_v2, %v2140_v7  ;;  %v2151_v16 = vrot.slane %v2141_v9, %v8051_v29  ;;  %v7542_v9 = vld [vmem:[%s9486_s1 + $0x188] sm:$0xff]  }
  0x85   : > { %v841_v21 = vcombine.low %v824_v3, %v838_v12  ;;  %v848_v22 = vrot.slane %v839_v43, %v8051_v29  ;;  %v862_v28 = vrot.slane %v840_v20, %v8051_v29  ;;  %v6440_v45 = vcombine.low %v6416_v31, %v6417_v32 }
  0x86   : > { %7237 = vmatpush3.bf16.msra.mxu1 %v7518_v51  ;;  %v2172_v23 = vrot.slane %v2144_v13, %v8051_v29  ;;  %v2165_v25 = vrot.slane %v2143_v15, %v8051_v29  ;;  %v6441_v46 = vcombine.low %v8398_v33, %v6419_v38  ;;  %v6448_v50 = vcombine.low %v6417_v32, %v6417_v32 }
  0x87   : > { %7238 = vmatprep.subr.bf16.mxu1 %v7521_v6  ;;  %7017 = vmatpush3.bf16.msra.mxu0 %v7523_v10  ;;  %v855_v27 = vrot.slane %v841_v21, %v8051_v29  ;;  %v863_v30 = vcombine.high %v848_v22, %v848_v22  ;;  %v2176_v37 = vcombine.low %v798_v11, %v848_v22  ;;  %v7544_v10 = vld [vmem:[%s9486_s1 + $0x1c0] sm:$0xff]  }
  0x88   : > { %v2175_v34 = vcombine.low %v2158_v14, %v2172_v23  ;;  %v2173_v35 = vcombine.low %v2151_v16, %v2165_v25  ;;  %7018 = vmatprep.subr.bf16.mxu0 %v7529_v17  ;;  %v2174_v36 = vcombine.high %v2151_v16, %v2165_v25  ;;  %v864_v41 = vcombine.high %v862_v28, %v862_v28 }
  0x89   : > { %v2177_v42 = vcombine.low %v862_v28, %v863_v30  ;;  %v2185_v49 = vrot.slane %v2176_v37, %v8051_v29  ;;  %v2655_v51 = vrot.slane %v7549_v39, %v8051_v29  ;;  %v2662_v54 = vrot.slane %v7550_v47, %v8051_v29  ;;  %v7556_v47 = vld [vmem:[%s8042_s23 + $0x30] ss:$8 sps:$4 sm:$0x33]  }
  0x8a   : > { %7239 = vmatpush3.bf16.msra.mxu1 %v7521_v6  ;;  %2438 = vmatprep.mubr.bf16.mxu0 %v2175_v34  ;;  %v2178_v52 = vcombine.low %v864_v41, %v855_v27  ;;  %v2669_v56 = vrot.slane %v6440_v45, %v8051_v29  ;;  %v2676_v1 = vrot.slane %v6448_v50, %v8051_v29  ;;  %v7545_v27 = vld [vmem:[%s9486_s1 + $0x180] sm:$0xff]  }
  0x8b   : > { %7240 = vmatprep.subr.bf16.mxu1 %v7524_v19  ;;  %2439 = vmatmul.mubr.bf16.gmra.mxu0 %v2173_v35  ;;  %v2192_v53 = vrot.slane %v2177_v42, %v8051_v29  ;;  %v6451_v57 = vcombine.low %v6419_v38, %v6419_v38  ;;  %v2720_v62 = vrot.slane %v7552_v40, %v8051_v29  ;;  %v6420_v45 = vld [vmem:[%s8042_s23 + $0x60] sm:$0xf] }
  0x8c   : > { %7019 = vmatpush3.bf16.msra.mxu0 %v7530_v26  ;;  %7230 = vmatprep.mubr.bf16.mxu1 %v2174_v36  ;;  %v2199_v58 = vrot.slane %v2178_v52, %v8051_v29  ;;  %v2677_v0 = vcombine.low %v2655_v51, %v2669_v56  ;;  %v2678_v2 = vcombine.high %v2655_v51, %v2669_v56  ;;  %v7543_v26 = vld [vmem:[%s9486_s1 + $0x208] sm:$0xff]  }
  0x8d   : > { %v2200_v59 = vcombine.low %v2185_v49, %v2192_v53  ;;  %7020 = vmatprep.subr.bf16.mxu0 %v7538_v44  ;;  %v2201_v60 = vcombine.high %v2185_v49, %v2192_v53  ;;  %v2679_v3 = vcombine.low %v2662_v54, %v2676_v1  ;;  %v2680_v4 = vcombine.high %v2662_v54, %v2676_v1  ;;  %v6422_v53 = vld [vmem:[%s8042_s23 + $0x80] sm:$0xf]  ;;  %v8484_v54 = vld [vmem:[%s8042_s23 + $0x90] sm:$0x3] }
  0x8e   : > { %7241 = vmatpush3.bf16.msra.mxu1 %v7524_v19  ;;  %v2223_v6 = vrot.slane %v2199_v58, %v8051_v29  ;;  %v2202_v7 = vcombine.high %v2199_v58, %v2199_v58  ;;  %v2687_v12 = vrot.slane %v2677_v0, %v8051_v29  ;;  %v2701_v13 = vrot.slane %v2678_v2, %v8051_v29  ;;  %v7560_v0 = vld [vmem:[%s8042_s23 + $0x60] ss:$8 sps:$4 sm:$0xff]  }
  0x8f   : > { %7242 = vmatprep.subr.bf16.mxu1 %v7531_v48  ;;  %v2209_v5 = vrot.slane %v2200_v59, %v8051_v29  ;;  %v2216_v8 = vrot.slane %v2201_v60, %v8051_v29  ;;  %v2694_v43 = vrot.slane %v2679_v3, %v8051_v29  ;;  %v2708_v14 = vrot.slane %v2680_v4, %v8051_v29  ;;  %v7557_v59 = vld [vmem:[%s8042_s23 + $0x40] ss:$8 sps:$4 sm:$0xff]  }
  0x90   : > { %7021 = vmatpush3.bf16.msra.mxu0 %v7539_v55  ;;  %v2230_v16 = vrot.slane %v2202_v7, %v8051_v29  ;;  %v2734_v18 = vrot.slane %v6441_v46, %v8051_v29  ;;  %v2709_v19 = vcombine.high %v2687_v12, %v2687_v12  ;;  %v2710_v20 = vcombine.high %v2701_v13, %v2701_v13  ;;  %v6421_v46 = vld [vmem:[%s8042_s23 + $0x70] sm:$0x3] }
  0x91   : > { %v2232_v15 = vcombine.high %v2209_v5, %v2223_v6  ;;  %v2231_v17 = vcombine.low %v2209_v5, %v2223_v6  ;;  %7022 = vmatprep.subr.bf16.mxu0 %v7541_v61  ;;  %v8451_v21 = vrot.slane %v6451_v57, %v8051_v29  ;;  %v3052_v23 = vshrl.u32 %v2687_v12, 16  ;;  %v7558_v55 = vld [vmem:[%s8042_s23 + $0x50] ss:$8 sps:$4 sm:$0x33]  }
  0x92   : > { %7243 = vmatpush3.bf16.msra.mxu1 %v7531_v48  ;;  %v2233_v25 = vcombine.low %v2216_v8, %v2230_v16  ;;  %v2742_v28 = vcombine.low %v2720_v62, %v2734_v18  ;;  %v2743_v30 = vcombine.high %v2720_v62, %v2734_v18  ;;  %v3057_v31 = vshll.u32 %v2701_v13, 16  ;;  %v7546_v48 = vld [vmem:[%s9486_s1 + $0x200] sm:$0xff]  }
  0x93   : > { %7231 = vmatmul.mubr.bf16.gmra.mxu1 %v2232_v15  ;;  %7244 = vmatprep.subr.bf16.mxu1 %v7540_v63  ;;  %v3060_v32 = vshrl.u32 %v2701_v13, 16  ;;  %v3065_v33 = vshll.u32 %v2709_v19, 16  ;;  %v3068_v34 = vshrl.u32 %v2709_v19, 16  ;;  %v3073_v35 = vshll.u32 %v2710_v20, 16 }
  0x94   : > { %7023 = vmatpush3.bf16.msra.mxu0 %v7542_v9  ;;  %2446 = vmatprep.mubr.bf16.mxu0 %v2233_v25  ;;  %v2752_v36 = vrot.slane %v2742_v28, %v8051_v29  ;;  %v2766_v37 = vrot.slane %v2743_v30, %v8051_v29  ;;  %v3059_v38 = vsel %vm8456_vm14, %v3052_v23, %v3057_v31  ;;  %v3076_v39 = vshrl.u32 %v2710_v20, 16 }
  0x95   : > { %7024 = vmatprep.subr.bf16.mxu0 %v7544_v10  ;;  %2447 = vmatmul.mubr.bf16.gmra.mxu0 %v2231_v17  ;;  %v3067_v40 = vsel %vm8456_vm14, %v3060_v32, %v3065_v33  ;;  %v3075_v41 = vsel %vm8456_vm14, %v3068_v34, %v3073_v35  ;;  %v3081_v42 = vshll.u32 %v2694_v43, 16  ;;  %v3084_v44 = vshrl.u32 %v2694_v43, 16 }
  0x96   : > { %7245 = vmatpush3.bf16.msra.mxu1 %v7540_v63  ;;  %v2774_v49 = vcombine.high %v2752_v36, %v2752_v36  ;;  %v8480_v50 = vcombine.high %v2766_v37, %v2766_v37  ;;  %v3089_v51 = vshll.u32 %v2708_v14, 16  ;;  %v3093_v52 = vshrl.u32 %v2752_v36, 16 }
  0x97   : > { %7246 = vmatprep.subr.bf16.mxu1 %v7543_v26  ;;  %v3083_v56 = vsel %vm8456_vm14, %v3076_v39, %v3081_v42  ;;  %v3098_v1 = vshll.u32 %v2766_v37, 16  ;;  %v3101_v57 = vshrl.u32 %v2766_v37, 16  ;;  %v3346_v58 = vcombine.low %v3059_v38, %v3067_v40 }
  0x98   : > { %7025 = vmatpush3.bf16.msra.mxu0 %v7545_v27  ;;  %v3091_v60 = vsel %vm8456_vm14, %v3084_v44, %v3089_v51  ;;  %v3106_v61 = vshll.u32 %v2774_v49, 16  ;;  %v3109_v62 = vshrl.u32 %v2774_v49, 16  ;;  %v3114_v63 = vshll.u32 %v8480_v50, 16 }
  0x99   : > { %v3100_v2 = vsel %vm8456_vm14, %v3093_v52, %v3098_v1  ;;  %v3117_v3 = vshrl.u32 %v8480_v50, 16  ;;  %v3347_v4 = vcombine.low %v3075_v41, %v3083_v56  ;;  %v3356_v5 = vrot.slane %v3346_v58, %v8051_v29 }
  0x9a   : > { %7247 = vmatpush3.bf16.msra.mxu1 %v7543_v26  ;;  %v3108_v6 = vsel %vm8456_vm14, %v3101_v57, %v3106_v61  ;;  %v3116_v7 = vsel %vm8456_vm14, %v3109_v62, %v3114_v63  ;;  %v3348_v8 = vcombine.low %v3091_v60, %v3100_v2  ;;  %v6442_v9 = vcombine.low %v6420_v45, %v6421_v46  ;;  %v6424_v61 = vld [vmem:[%s8042_s23 + $0xa0] sm:$0xf]  ;;  %v6425_v62 = vld [vmem:[%s8042_s23 + $0xb0] sm:$0x3] }
  0x9b   : > { %7248 = vmatprep.subr.bf16.mxu1 %v7546_v48  ;;  %v3349_v10 = vcombine.low %v3108_v6, %v3116_v7  ;;  %v3363_v11 = vrot.slane %v3347_v4, %v8051_v29  ;;  %v6443_v12 = vcombine.low %v6422_v53, %v8484_v54  ;;  %v2727_v43 = vrot.slane %v7556_v47, %v8051_v29  ;;  %v7562_v63 = vld [vmem:[%s8042_s23 + $0x70] ss:$8 sps:$4 sm:$0x33]  }
  0x9c   : > { %v3370_v13 = vrot.slane %v3348_v8, %v8051_v29  ;;  %v6454_v14 = vcombine.low %v6421_v46, %v6421_v46  ;;  %v2785_v15 = vrot.slane %v7557_v59, %v8051_v29  ;;  %v2792_v16 = vrot.slane %v7558_v55, %v8051_v29 }
  0x9d   : > { %v3377_v17 = vrot.slane %v3349_v10, %v8051_v29  ;;  %v3378_v18 = vcombine.low %v3356_v5, %v3363_v11  ;;  %v3379_v19 = vcombine.high %v3356_v5, %v3363_v11  ;;  %v2744_v20 = vcombine.low %v2727_v43, %v8451_v21 }
  0x9e   : > { %7249 = vmatpush3.bf16.msra.mxu1 %v7546_v48  ;;  %v2745_v23 = vcombine.high %v2727_v43, %v8451_v21  ;;  %v2799_v25 = vrot.slane %v6442_v9, %v8051_v29  ;;  %v2806_v26 = vrot.slane %v6454_v14, %v8051_v29  ;;  %v2850_v27 = vrot.slane %v7560_v0, %v8051_v29  ;;  %v7564_v9 = vld [vmem:[%s8042_s23 + $0x80] ss:$8 sps:$4 sm:$0xff]  }
  0x9f   : > { %v3380_v28 = vcombine.low %v3370_v13, %v3377_v17  ;;  %v3381_v30 = vcombine.high %v3370_v13, %v3377_v17  ;;  %v3395_v31 = vrot.slane %v3379_v19, %v8051_v29  ;;  %v3388_v32 = vrot.slane %v3378_v18, %v8051_v29  ;;  %v7565_v13 = vld [vmem:[%s8042_s23 + $0x90] ss:$8 sps:$4 sm:$0x33]  }
  0xa0   : > { %v2759_v33 = vrot.slane %v2744_v20, %v8051_v29  ;;  %v2773_v34 = vrot.slane %v2745_v23, %v8051_v29  ;;  %v2807_v35 = vcombine.low %v2785_v15, %v2799_v25  ;;  %v2808_v36 = vcombine.high %v2785_v15, %v2799_v25 }
  0xa1   : > { %v3409_v21 = vrot.slane %v3381_v30, %v8051_v29  ;;  %v3402_v37 = vrot.slane %v3380_v28, %v8051_v29  ;;  %v2809_v38 = vcombine.low %v2792_v16, %v2806_v26  ;;  %v2810_v39 = vcombine.high %v2792_v16, %v2806_v26 }
  0xa2   : > { %v2817_v40 = vrot.slane %v2807_v35, %v8051_v29  ;;  %v2831_v41 = vrot.slane %v2808_v36, %v8051_v29  ;;  %v2864_v42 = vrot.slane %v6443_v12, %v8051_v29  ;;  %v3122_v44 = vshll.u32 %v2759_v33, 16 }
  0xa3   : > { %v3412_v45 = vcombine.low %v3395_v31, %v3409_v21  ;;  %v3410_v46 = vcombine.low %v3388_v32, %v3402_v37  ;;  %v3411_v47 = vcombine.high %v3388_v32, %v3402_v37  ;;  %v2824_v48 = vrot.slane %v2809_v38, %v8051_v29 }
  0xa4   : > { %v2838_v49 = vrot.slane %v2810_v39, %v8051_v29  ;;  %v2839_v50 = vcombine.high %v2817_v40, %v2817_v40  ;;  %v2840_v51 = vcombine.high %v2831_v41, %v2831_v41  ;;  %v2872_v52 = vcombine.low %v2850_v27, %v2864_v42 }
  0xa5   : > { %3793 = vmatprep.mubr.bf16.mxu0 %v3412_v45  ;;  %7250 = vmatprep.mubr.bf16.mxu1 %v3411_v47  ;;  %v2873_v53 = vcombine.high %v2850_v27, %v2864_v42  ;;  %v3124_v55 = vsel %vm8456_vm14, %v3117_v3, %v3122_v44  ;;  %v3125_v56 = vshrl.u32 %v2759_v33, 16  ;;  %v3130_v1 = vshll.u32 %v2773_v34, 16 }
  0xa6   : > { %3794 = vmatmul.mubr.bf16.vlgmr.msra.gmra.mxu0 %v3410_v46  ;;  %v2882_v57 = vrot.slane %v2872_v52, %v8051_v29  ;;  %v3134_v58 = vshrl.u32 %v2817_v40, 16  ;;  %v3139_v59 = vshll.u32 %v2831_v41, 16  ;;  %v3142_v60 = vshrl.u32 %v2831_v41, 16 }
  0xa7   : > { %v8532_v0 = vrot.slane %v2873_v53, %v8051_v29  ;;  %v3132_v2 = vsel %vm8456_vm14, %v3125_v56, %v3130_v1  ;;  %v3147_v3 = vshll.u32 %v2839_v50, 16  ;;  %v3150_v4 = vshrl.u32 %v2839_v50, 16 }
  0xa8   : > { %v3141_v5 = vsel %vm8456_vm14, %v3134_v58, %v3139_v59  ;;  %v3155_v6 = vshll.u32 %v2840_v51, 16  ;;  %v3158_v7 = vshrl.u32 %v2840_v51, 16  ;;  %v3163_v8 = vshll.u32 %v2824_v48, 16 }
  0xa9   : > { %v3149_v10 = vsel %vm8456_vm14, %v3142_v60, %v3147_v3  ;;  %v3166_v11 = vshrl.u32 %v2824_v48, 16  ;;  %v3171_v12 = vshll.u32 %v2838_v49, 16  ;;  %v3175_v43 = vshrl.u32 %v2882_v57, 16 }
  0xaa   : > { %v3157_v14 = vsel %vm8456_vm14, %v3150_v4, %v3155_v6  ;;  %v3165_v15 = vsel %vm8456_vm14, %v3158_v7, %v3163_v8  ;;  %v3180_v16 = vshll.u32 %v8532_v0, 16  ;;  %v3413_v17 = vcombine.low %v3124_v55, %v3132_v2  ;;  %v6426_v6 = vld [vmem:[%s8042_s23 + $0xc0] sm:$0xf]  ;;  %v6427_v7 = vld [vmem:[%s8042_s23 + $0xd0] sm:$0x3] }
  0xab   : > { %v3173_v18 = vsel %vm8456_vm14, %v3166_v11, %v3171_v12  ;;  %v3414_v19 = vcombine.low %v3141_v5, %v3149_v10  ;;  %v3415_v20 = vcombine.low %v3157_v14, %v3165_v15  ;;  %v6444_v23 = vcombine.low %v6424_v61, %v6425_v62  ;;  %v7568_v15 = vld [vmem:[%s8042_s23 + $0xa0] ss:$8 sps:$4 sm:$0xff]  }
  0xac   : > { %v3182_v25 = vsel %vm8456_vm14, %v3175_v43, %v3180_v16  ;;  %v3423_v26 = vrot.slane %v3413_v17, %v8051_v29  ;;  %v6457_v27 = vcombine.low %v8484_v54, %v8484_v54  ;;  %v2857_v28 = vrot.slane %v7562_v63, %v8051_v29  ;;  %v7569_v16 = vld [vmem:[%s8042_s23 + $0xb0] ss:$8 sps:$4 sm:$0x33]  }
  0xad   : > { %v3416_v30 = vcombine.low %v3173_v18, %v3182_v25  ;;  %v3430_v31 = vrot.slane %v3414_v19, %v8051_v29  ;;  %v3437_v32 = vrot.slane %v3415_v20, %v8051_v29  ;;  %v2904_v33 = vcombine.high %v2882_v57, %v2882_v57 }
  0xae   : > { %v2871_v34 = vrot.slane %v6457_v27, %v8051_v29  ;;  %v2905_v35 = vcombine.high %v8532_v0, %v8532_v0  ;;  %v6460_v36 = vcombine.low %v6425_v62, %v6425_v62  ;;  %v2915_v21 = vrot.slane %v7564_v9, %v8051_v29 }
  0xaf   : > { %v3444_v37 = vrot.slane %v3416_v30, %v8051_v29  ;;  %v3445_v38 = vcombine.low %v3423_v26, %v3430_v31  ;;  %v3446_v54 = vcombine.high %v3423_v26, %v3430_v31  ;;  %v8563_v39 = vrot.slane %v7565_v13, %v8051_v29 }
  0xb0   : > { %v2874_v40 = vcombine.low %v2857_v28, %v2871_v34  ;;  %v2875_v41 = vcombine.high %v2857_v28, %v2871_v34  ;;  %v2929_v42 = vrot.slane %v6444_v23, %v8051_v29  ;;  %v2936_v44 = vrot.slane %v6460_v36, %v8051_v29 }
  0xb1   : > { %v3447_v45 = vcombine.low %v3437_v32, %v3444_v37  ;;  %v3455_v46 = vrot.slane %v3445_v38, %v8051_v29  ;;  %v3448_v47 = vcombine.high %v3437_v32, %v3444_v37  ;;  %v3462_v48 = vrot.slane %v3446_v54, %v8051_v29 }
  0xb2   : > { %v2889_v49 = vrot.slane %v2874_v40, %v8051_v29  ;;  %v2903_v50 = vrot.slane %v2875_v41, %v8051_v29  ;;  %v2937_v51 = vcombine.low %v2915_v21, %v2929_v42  ;;  %v2938_v52 = vcombine.high %v2915_v21, %v2929_v42 }
  0xb3   : > { %v3469_v53 = vrot.slane %v3447_v45, %v8051_v29  ;;  %v3476_v55 = vrot.slane %v3448_v47, %v8051_v29  ;;  %v2939_v56 = vcombine.low %v8563_v39, %v2936_v44  ;;  %v3183_v1 = vshrl.u32 %v8532_v0, 16 }
  0xb4   : > { %v2947_v57 = vrot.slane %v2937_v51, %v8051_v29  ;;  %v2961_v58 = vrot.slane %v2938_v52, %v8051_v29  ;;  %v3188_v59 = vshll.u32 %v2904_v33, 16  ;;  %v3191_v60 = vshrl.u32 %v2904_v33, 16 }
  0xb5   : > { %v3478_v61 = vcombine.high %v3455_v46, %v3469_v53  ;;  %v3479_v62 = vcombine.low %v3462_v48, %v3476_v55  ;;  %v3477_v63 = vcombine.low %v3455_v46, %v3469_v53  ;;  %v8578_v2 = vrot.slane %v2939_v56, %v8051_v29 }
  0xb6   : > { %v2969_v3 = vcombine.high %v2947_v57, %v2947_v57  ;;  %v2970_v4 = vcombine.high %v2961_v58, %v2961_v58  ;;  %v3190_v5 = vsel %vm8456_vm14, %v3183_v1, %v3188_v59  ;;  %v3196_v0 = vshll.u32 %v2905_v35, 16 }
  0xb7   : > { %7251 = vmatmul.mubr.bf16.vlgmr.msra.gmra.mxu1 %v3478_v61  ;;  %3801 = vmatprep.mubr.bf16.mxu0 %v3479_v62  ;;  %v3199_v8 = vshrl.u32 %v2905_v35, 16  ;;  %v3204_v9 = vshll.u32 %v2889_v49, 16  ;;  %v3207_v10 = vshrl.u32 %v2889_v49, 16  ;;  %v3212_v11 = vshll.u32 %v2903_v50, 16 }
  0xb8   : > { %3802 = vmatmul.mubr.bf16.gmra.mxu0 %v3477_v63  ;;  %v3198_v12 = vsel %vm8456_vm14, %v3191_v60, %v3196_v0  ;;  %v3216_v43 = vshrl.u32 %v2947_v57, 16  ;;  %v3221_v13 = vshll.u32 %v2961_v58, 16  ;;  %v3224_v14 = vshrl.u32 %v2961_v58, 16 }
  0xb9   : > { %v3206_v17 = vsel %vm8456_vm14, %v3199_v8, %v3204_v9  ;;  %v3214_v18 = vsel %vm8456_vm14, %v3207_v10, %v3212_v11  ;;  %v3229_v19 = vshll.u32 %v2969_v3, 16  ;;  %v3232_v20 = vshrl.u32 %v2969_v3, 16 }
  0xba   : > { %v3223_v23 = vsel %vm8456_vm14, %v3216_v43, %v3221_v13  ;;  %v3237_v25 = vshll.u32 %v2970_v4, 16  ;;  %v3240_v26 = vshrl.u32 %v2970_v4, 16  ;;  %v3245_v27 = vshll.u32 %v8578_v2, 16 }
  0xbb   : > { %v3231_v28 = vsel %vm8456_vm14, %v3224_v14, %v3229_v19  ;;  %v3480_v30 = vcombine.low %v3190_v5, %v3198_v12  ;;  %v3481_v31 = vcombine.low %v3206_v17, %v3214_v18  ;;  %v6445_v32 = vcombine.low %v6426_v6, %v6427_v7 }
  0xbc   : > { %v3239_v33 = vsel %vm8456_vm14, %v3232_v20, %v3237_v25  ;;  %v3247_v34 = vsel %vm8456_vm14, %v3240_v26, %v3245_v27  ;;  %v3482_v35 = vcombine.low %v3223_v23, %v3231_v28  ;;  %v2940_v36 = vcombine.high %v8563_v39, %v2936_v44 }
  0xbd   : > { %v3483_v21 = vcombine.low %v3239_v33, %v3247_v34  ;;  %v3490_v37 = vrot.slane %v3480_v30, %v8051_v29  ;;  %v3497_v38 = vrot.slane %v3481_v31, %v8051_v29  ;;  %v6463_v54 = vcombine.low %v6427_v7, %v6427_v7 }
  0xbe   : > { %v3504_v40 = vrot.slane %v3482_v35, %v8051_v29  ;;  %v2968_v41 = vrot.slane %v2940_v36, %v8051_v29  ;;  %v2980_v42 = vrot.slane %v7568_v15, %v8051_v29  ;;  %v2987_v45 = vrot.slane %v7569_v16, %v8051_v29 }
  0xbf   : > { %v3511_v46 = vrot.slane %v3483_v21, %v8051_v29  ;;  %v3513_v47 = vcombine.high %v3490_v37, %v3497_v38  ;;  %v3512_v48 = vcombine.low %v3490_v37, %v3497_v38  ;;  %v2994_v39 = vrot.slane %v6445_v32, %v8051_v29 }
  0xc0   : > { %v3001_v44 = vrot.slane %v6463_v54, %v8051_v29  ;;  %v3248_v49 = vshrl.u32 %v8578_v2, 16  ;;  %v3253_v50 = vshll.u32 %v2968_v41, 16 }
  0xc1   : > { %v3515_v51 = vcombine.high %v3504_v40, %v3511_v46  ;;  %v3529_v52 = vrot.slane %v3513_v47, %v8051_v29  ;;  %v3514_v53 = vcombine.low %v3504_v40, %v3511_v46  ;;  %v3522_v55 = vrot.slane %v3512_v48, %v8051_v29 }
  0xc2   : > { %v3002_v56 = vcombine.low %v2980_v42, %v2994_v39  ;;  %v3003_v1 = vcombine.high %v2980_v42, %v2994_v39  ;;  %v3004_v57 = vcombine.low %v2987_v45, %v3001_v44  ;;  %v3005_v58 = vcombine.high %v2987_v45, %v3001_v44 }
  0xc3   : > { %v3543_v59 = vrot.slane %v3515_v51, %v8051_v29  ;;  %v3536_v60 = vrot.slane %v3514_v53, %v8051_v29  ;;  %v3255_v0 = vsel %vm8456_vm14, %v3248_v49, %v3253_v50  ;;  %v7571_v50 = vld [vmem:[%s9489_s4 + $0x138] sm:$0xff]  }
  0xc4   : > { %v3012_v61 = vrot.slane %v3002_v56, %v8051_v29  ;;  %v3019_v62 = vrot.slane %v3004_v57, %v8051_v29  ;;  %v3026_v63 = vrot.slane %v3003_v1, %v8051_v29  ;;  %v3033_v2 = vrot.slane %v3005_v58, %v8051_v29  ;;  %v7572_v51 = vld [vmem:[%s9489_s4 + $0xf8] sm:$0xff]   ;;  %7062 = vmatprep.subr.bf16.mxu0 %v7571_v50  ;;  %v7573_v56 = vld [vmem:[%s9489_s4 + $0x130] sm:$0xff]  }
  0xc5   : > { %v3546_v3 = vcombine.low %v3529_v52, %v3543_v59  ;;  %v3544_v4 = vcombine.low %v3522_v55, %v3536_v60  ;;  %v3545_v5 = vcombine.high %v3522_v55, %v3536_v60  ;;  %7063 = vmatpush3.bf16.msra.mxu0 %v7572_v51  ;;  %v7574_v1 = vld [vmem:[%s9489_s4 + $0xf0] sm:$0xff]   ;;  %v7575_v59 = vld [vmem:[%s9489_s4 + $0x128] sm:$0xff]  }
  0xc6   : > { %v3034_v6 = vcombine.high %v3012_v61, %v3012_v61  ;;  %v3035_v7 = vcombine.high %v3026_v63, %v3026_v63  ;;  %v3257_v8 = vshrl.u32 %v3012_v61, 16  ;;  %v3262_v9 = vshll.u32 %v3026_v63, 16  ;;  %7064 = vmatprep.subr.bf16.mxu0 %v7573_v56  ;;  %v7576_v60 = vld [vmem:[%s9489_s4 + $0xe8] sm:$0xff]  }
  0xc7   : > { %3809 = vmatprep.mubr.bf16.mxu0 %v3546_v3  ;;  %7254 = vmatprep.mubr.bf16.mxu1 %v3545_v5  ;;  %v3265_v10 = vshrl.u32 %v3026_v63, 16  ;;  %v3286_v11 = vshll.u32 %v3019_v62, 16  ;;  %v3289_v12 = vshrl.u32 %v3019_v62, 16  ;;  %v3294_v43 = vshll.u32 %v3033_v2, 16  ;;  %v7577_v62 = vld [vmem:[%s9489_s4 + $0x120] sm:$0xff]   ;;  %v7579_v3 = vld [vmem:[%s9489_s4 + $0x178] sm:$0xff]  }
  0xc8   : > { %3810 = vmatmul.mubr.bf16.gmra.mxu0 %v3544_v4  ;;  %v3264_v13 = vsel %vm8456_vm14, %v3257_v8, %v3262_v9  ;;  %v3270_v14 = vshll.u32 %v3034_v6, 16  ;;  %v3273_v15 = vshrl.u32 %v3034_v6, 16  ;;  %v3278_v16 = vshll.u32 %v3035_v7, 16  ;;  %v7578_v2 = vld [vmem:[%s9489_s4 + $0xe0] sm:$0xff]   ;;  %7258 = vmatprep.subr.bf16.mxu1 %v7579_v3  ;;  %v7582_v8 = vld [vmem:[%s9489_s4 + $0x170] sm:$0xff]  }
  0xc9   : > { %v3281_v17 = vshrl.u32 %v3035_v7, 16  ;;  %v3296_v18 = vsel %vm8456_vm14, %v3289_v12, %v3294_v43  ;;  %v3547_v19 = vcombine.low %v3255_v0, %v3264_v13  ;;  %7065 = vmatpush3.bf16.msra.mxu0 %v7574_v1  ;;  %7259 = vmatpush3.bf16.msra.mxu1 %v7579_v3  ;;  %v7580_v0 = vld [vmem:[%s9489_s4 + $0x118] sm:$0xff]   ;;  %v7585_v12 = vld [vmem:[%s9489_s4 + $0x168] sm:$0xff]  }
  0xca   : > { %v3272_v20 = vsel %vm8456_vm14, %v3265_v10, %v3270_v14  ;;  %v3280_v23 = vsel %vm8456_vm14, %v3273_v15, %v3278_v16  ;;  %7066 = vmatprep.subr.bf16.mxu0 %v7575_v59  ;;  %v7581_v7 = vld [vmem:[%s9489_s4 + $0xd8] sm:$0xff]   ;;  %7260 = vmatprep.subr.bf16.mxu1 %v7582_v8  ;;  %v7583_v10 = vld [vmem:[%s9489_s4 + $0x110] sm:$0xff]   ;;  %v7586_v43 = vld [vmem:[%s9489_s4 + $0x108] sm:$0xff]  }
  0xcb   : > { %v3288_v25 = vsel %vm8456_vm14, %v3281_v17, %v3286_v11  ;;  %v3548_v26 = vcombine.low %v3272_v20, %v3280_v23  ;;  %v3556_v27 = vrot.slane %v3547_v19, %v8051_v29  ;;  %v7584_v11 = vld [vmem:[%s9489_s4 + $0xd0] sm:$0xff]   ;;  %v7587_v13 = vld [vmem:[%s9489_s4 + $0xc8] sm:$0xff]   ;;  %v7588_v14 = vld [vmem:[%s9489_s4 + $0x160] sm:$0xff]  }
  0xcc   : > { %v3549_v28 = vcombine.low %v3288_v25, %v3296_v18  ;;  %v7589_v15 = vld [vmem:[%s9489_s4 + $0x100] sm:$0xff]   ;;  %v7591_v17 = vld [vmem:[%s9489_s4 + $0x158] sm:$0xff]   ;;  %v7597_v23 = vld [vmem:[%s9489_s4 + $0x150] sm:$0xff]  }
  0xcd   : > { %v3563_v30 = vrot.slane %v3548_v26, %v8051_v29  ;;  %7067 = vmatpush3.bf16.msra.mxu0 %v7576_v60  ;;  %7261 = vmatpush3.bf16.msra.mxu1 %v7582_v8  ;;  %v7590_v18 = vld [vmem:[%s9489_s4 + $0xc0] sm:$0xff]   ;;  %v7596_v20 = vld [vmem:[%s9489_s4 + $0x78] sm:$0xff]  }
  0xce   : > { %v3570_v31 = vrot.slane %v3549_v28, %v8051_v29  ;;  %7068 = vmatprep.subr.bf16.mxu0 %v7577_v62  ;;  %7262 = vmatprep.subr.bf16.mxu1 %v7585_v12 }
  0xcf   : > { %v3571_v32 = vcombine.low %v3556_v27, %v3563_v30  ;;  %v3572_v33 = vcombine.high %v3556_v27, %v3563_v30 }
  0xd0   : > { %v3594_v34 = vrot.slane %v3570_v31, %v8051_v29  ;;  %v3573_v35 = vcombine.high %v3570_v31, %v3570_v31 }
  0xd1   : > { %v3580_v36 = vrot.slane %v3571_v32, %v8051_v29  ;;  %v3587_v21 = vrot.slane %v3572_v33, %v8051_v29  ;;  %7069 = vmatpush3.bf16.msra.mxu0 %v7578_v2  ;;  %7263 = vmatpush3.bf16.msra.mxu1 %v7585_v12  ;;  %v7604_v32 = vld [vmem:[%s9489_s4 + $0x148] sm:$0xff]  }
  0xd2   : > { %v3601_v22 = vrot.slane %v3573_v35, %v8051_v29  ;;  %7070 = vmatprep.subr.bf16.mxu0 %v7580_v0  ;;  %7264 = vmatprep.subr.bf16.mxu1 %v7588_v14 }
  0xd3   : > { %v3603_v37 = vcombine.high %v3580_v36, %v3594_v34  ;;  %v3602_v38 = vcombine.low %v3580_v36, %v3594_v34  ;;  %v7607_v34 = vld [vmem:[%s9489_s4 + $0x140] sm:$0xff]  }
  0xd4   : > { %v3604_v54 = vcombine.low %v3587_v21, %v3601_v22 }
  0xd5   : > { %7255 = vmatmul.mubr.bf16.gmra.mxu1 %v3603_v37  ;;  %7071 = vmatpush3.bf16.msra.mxu0 %v7581_v7 }
  0xd6   : > { %3817 = vmatprep.mubr.bf16.mxu0 %v3604_v54  ;;  %7072 = vmatprep.subr.bf16.mxu0 %v7583_v10 }
  0xd7   : > { %3818 = vmatmul.mubr.bf16.gmra.mxu0 %v3602_v38  ;;  %7265 = vmatpush3.bf16.msra.mxu1 %v7588_v14  ;;  %v8741_v38 = vld [vmem:[%s9489_s4 + $0xb8] sm:$0xff]  }
  0xd8   : > { %7266 = vmatprep.subr.bf16.mxu1 %v7591_v17 }
  0xd9   : > { %7073 = vmatpush3.bf16.msra.mxu0 %v7584_v11 }
  0xda   : > { %7074 = vmatprep.subr.bf16.mxu0 %v7586_v43 }
  0xdb   : > { %7267 = vmatpush3.bf16.msra.mxu1 %v7591_v17  ;;  %v7809_v17 = vmov 1983009808  }
  0xdc   : > { %7268 = vmatprep.subr.bf16.mxu1 %v7597_v23 }
  0xdd   : > { %7075 = vmatpush3.bf16.msra.mxu0 %v7587_v13 }
  0xde   : > { %7076 = vmatprep.subr.bf16.mxu0 %v7589_v15 }
  0xdf   : > { %7269 = vmatpush3.bf16.msra.mxu1 %v7597_v23 }
  0xe0   : > { %7270 = vmatprep.subr.bf16.mxu1 %v7604_v32 }
  0xe1   : > { %7077 = vmatpush3.bf16.msra.mxu0 %v7590_v18  ;;  %v3947_v18 = vunpack.c.l.s4 %v7809_v17 }
  0xe2   : > { %7100 = vmatprep.subr.bf16.mxu0 %v7596_v20 }
  0xe3   : > { %7271 = vmatpush3.bf16.msra.mxu1 %v7604_v32 }
  0xe4   : > { %7272 = vmatprep.subr.bf16.mxu1 %v7607_v34 }
  0xe7   : > { %7273 = vmatpush3.bf16.msra.mxu1 %v7607_v34 }
  0xe8   : > { %7278 = vmatprep.subr.bf16.mxu1 %v8741_v38 }
 0x111   : > { %v6922_v40 = vpop.f32.mrf.mxu0 }
 0x113   : > { %v6923_v41 = vpop.f32.mrf.mxu0 }
 0x114   : > { %v8639_v42 = vadd.f32 %v6923_v41, %v6922_v40 }
 0x115   : > { %v6925_v45 = vpop.f32.mrf.mxu0 }
 0x117   : > { %v6926_v46 = vpop.f32.mrf.mxu0 }
 0x118   : > { %v8641_v47 = vadd.f32 %v6926_v46, %v6925_v45 }
 0x119   : > { %v7204_v26 = vpop.f32.mrf.mxu1 }
 0x11a   : > { %v8643_v48 = vpop.f32.mrf.mxu0 }
 0x11b   : > { %v1944_v30 = vpop.f32.mrf.mxu1 }
 0x11c   : > { %v8645_v39 = vpop.f32.mrf.mxu0 }
 0x11d   : > { %v7205_v35 = vpop.f32.mrf.mxu1  ;;  %v6930_v0 = vadd.f32 %v8645_v39, %v8643_v48 }
 0x11e   : > { %v8647_v44 = vpop.f32.mrf.mxu0 }
 0x11f   : > { %v1947_v22 = vpop.f32.mrf.mxu1  ;;  %v1953_v13 = vadd.f32 %v7204_v26, %v6930_v0 }
 0x120   : > { %v8649_v29 = vpop.f32.mrf.mxu0 }
 0x121   : > { %v6933_v14 = vadd.f32 %v8649_v29, %v8647_v44  ;;  %v8782_v44 = vld [vmem:[%s9487_s2] ss:$0 sm:$0xff] }
 0x122   : > { %v6934_v49 = vpop.f32.mrf.mxu0 }
 0x123   : > { %v1956_v26 = vadd.f32 %v7205_v35, %v6933_v14 }
 0x124   : > { %v6935_v52 = vpop.f32.mrf.mxu0 }
 0x125   : > { %v8657_v53 = vadd.f32 %v6935_v52, %v6934_v49 }
 0x126   : > { %v6937_v55 = vpop.f32.mrf.mxu0 }
 0x128   : > { %v6938_v57 = vpop.f32.mrf.mxu0 }
 0x129   : > { %v8665_v58 = vadd.f32 %v6938_v57, %v6937_v55  ;;  %v8743_v54 = vpop.f32.mrf.mxu1 }
 0x12b   : > { %v8748_v41 = vpop.f32.mrf.mxu1 }
 0x12c   : > { %v6940_v61 = vpop.f32.mrf.mxu0 }
 0x12d   : > { %v8752_v46 = vpop.f32.mrf.mxu1 }
 0x12e   : > { %v6941_v63 = vpop.f32.mrf.mxu0 }
 0x12f   : > { %v8682_v4 = vadd.f32 %v6941_v63, %v6940_v61  ;;  %v8756_v50 = vpop.f32.mrf.mxu1 }
 0x130   : > { %v6943_v5 = vpop.f32.mrf.mxu0 }
 0x132   : > { %v6944_v6 = vpop.f32.mrf.mxu0 }
 0x133   : > { %v8693_v9 = vadd.f32 %v6944_v6, %v6943_v5  ;;  %v1945_v6 = vadd.f32 %v8639_v42, %v1944_v30 }
 0x13a   : > { %v6974_v16 = vpop.f32.mrf.mxu0 }
 0x13c   : > { %v6975_v19 = vpop.f32.mrf.mxu0 }
 0x13d   : > { %v6976_v5 = vadd.f32 %v6975_v19, %v6974_v16  ;;  %v1948_v16 = vadd.f32 %v8641_v47, %v1947_v22 }
 0x13e   : > { %v6977_v25 = vpop.f32.mrf.mxu0 }
 0x13f   : > { %v2425_v12 = vadd.f32 %v6976_v5, %v1945_v6 }
 0x140   : > { %v6978_v27 = vpop.f32.mrf.mxu0 }
 0x141   : > { %v7228_v51 = vpop.f32.mrf.mxu1  ;;  %v6979_v11 = vadd.f32 %v6978_v27, %v6977_v25 }
 0x142   : > { %v6980_v28 = vpop.f32.mrf.mxu0 }
 0x143   : > { %v2489_v55 = vpop.f32.mrf.mxu1  ;;  %v2428_v23 = vadd.f32 %v6979_v11, %v1948_v16 }
 0x144   : > { %v6981_v31 = vpop.f32.mrf.mxu0  ;;  %v2490_v20 = vadd.f32 %v2489_v55, %v2425_v12 }
 0x145   : > { %v7229_v1 = vpop.f32.mrf.mxu1  ;;  %v6982_v8 = vadd.f32 %v6981_v31, %v6980_v28  ;;  %v3948_v31 = vunpack.c.0.s8 %v3947_v18 }
 0x146   : > { %v6983_v33 = vpop.f32.mrf.mxu0 }
 0x147   : > { %v2492_v59 = vpop.f32.mrf.mxu1  ;;  %v2433_v42 = vadd.f32 %v6982_v8, %v1953_v13  ;;  %v8797_v8 = vsub.s32 %v3948_v31, %v8034_v24 }
 0x148   : > { %v6984_v36 = vpop.f32.mrf.mxu0  ;;  %v2493_v55 = vadd.f32 %v2492_v59, %v2428_v23 }
 0x149   : > { %v6985_v39 = vadd.f32 %v6984_v36, %v6983_v33  ;;  %v2498_v33 = vadd.f32 %v7228_v51, %v2433_v42  ;;  %v8789_v36 = vld [vmem:[%s9488_s3] ss:$0 sm:$0xff] }
 0x14b   : > { %v8734_v21 = vpop.f32.mrf.mxu0  ;;  %v2436_v34 = vadd.f32 %v6985_v39, %v1956_v26 }
 0x14d   : > { %v8736_v37 = vpop.f32.mrf.mxu0  ;;  %v2501_v12 = vadd.f32 %v7229_v1, %v2436_v34 }
 0x14f   : > { %v8746_v40 = vpop.f32.mrf.mxu0 }
 0x151   : > { %v8750_v45 = vpop.f32.mrf.mxu0 }
 0x153   : > { %v8764_v61 = vpop.f32.mrf.mxu1 }
 0x155   : > { %v8754_v49 = vpop.f32.mrf.mxu0  ;;  %v8766_v63 = vpop.f32.mrf.mxu1 }
 0x157   : > { %v8758_v52 = vpop.f32.mrf.mxu0  ;;  %v8768_v3 = vpop.f32.mrf.mxu1 }
 0x159   : > { %v8760_v56 = vpop.f32.mrf.mxu0  ;;  %v8773_v10 = vpop.f32.mrf.mxu1 }
 0x15b   : > { %v8762_v57 = vpop.f32.mrf.mxu0 }
 0x166   : > { %v7026_v60 = vpop.f32.mrf.mxu0 }
 0x168   : > { %v7027_v62 = vpop.f32.mrf.mxu0 }
 0x169   : > { %v7028_v43 = vadd.f32 %v7027_v62, %v7026_v60 }
 0x16a   : > { %v7029_v2 = vpop.f32.mrf.mxu0 }
 0x16c   : > { %v7030_v7 = vpop.f32.mrf.mxu0 }
 0x16d   : > { %v7031_v27 = vadd.f32 %v7030_v7, %v7029_v2  ;;  %v8792_v2 = vstv %s6568_s29  ;;  %s7810_s29 = smov [#allocation6]  }
 0x16e   : > { %v4074_v6 = vadd.s32 1, %v8792_v2  ;;  %vm4082_vm15 = vcmp.ge.s32.totalorder %v8792_v2, 0  ;;  %v4075_v16 = vadd.s32 2, %v8792_v2  ;;  %vm4088_vm0 = vcmp.lt.s32.totalorder %v8792_v2, 8  ;;  %s7711_s7 = sshll.u32 %s7810_s29, 4  ;;  %s7712_s7 = int_to_ptr.vmem [resolvable:$false] %s7711_s7 }
 0x16f   : > { %vm8815_vm4 = vmand %vm4082_vm15, %vm4088_vm0  ;;  %s7713_s21 = scalar_lea.vmem %s7712_s7, 512 }
 0x170   : > { %vm4083_vm1 = vcmp.ge.s32.totalorder %v4074_v6, 0  ;;  %vm4089_vm2 = vcmp.lt.s32.totalorder %v4074_v6, 8  ;;  %vm4084_vm5 = vcmp.ge.s32.totalorder %v4075_v16, 0  ;;  %vm4090_vm7 = vcmp.lt.s32.totalorder %v4075_v16, 8  ;;  %vm4102_vm12 = vmand %vm8815_vm4, %vm4100_vm8 }
 0x171   : > { %vm8821_vm6 = vmand %vm4083_vm1, %vm4089_vm2 }
 0x172   : > { %vm8847_vm11 = vmand %vm4084_vm5, %vm4090_vm7 }
 0x173   : > { %vm4104_vm14 = vmand %vm8821_vm6, %vm4100_vm8 }
 0x174   : > { %vm4106_vm15 = vmand %vm8847_vm11, %vm4100_vm8 }
 0x177   : > { %v7252_v15 = vpop.f32.mrf.mxu1 }
 0x178   : > { %v7032_v48 = vpop.f32.mrf.mxu0 }
 0x179   : > { %v3860_v19 = vpop.f32.mrf.mxu1 }
 0x17a   : > { %v3861_v25 = vadd.f32 %v7028_v43, %v3860_v19  ;;  %v7033_v28 = vpop.f32.mrf.mxu0  ;;  %v8800_v43 = vadd.s32 8, %v8034_v24 }
 0x17b   : > { %v7253_v47 = vpop.f32.mrf.mxu1  ;;  %v7034_v29 = vadd.f32 %v7033_v28, %v7032_v48 }
 0x17c   : > { %v3891_v30 = vadd.f32 %v3861_v25, %v2490_v20  ;;  %v7035_v32 = vpop.f32.mrf.mxu0  ;;  %vm4115_vm3 = vcmp.le.s32.totalorder %v8800_v43, 8 }
 0x17d   : > { %v3863_v35 = vpop.f32.mrf.mxu1  ;;  %v3869_v22 = vadd.f32 %v7252_v15, %v7034_v29  ;;  %vm8832_vm9 = vmand %vm8815_vm4, %vm4115_vm3 }
 0x17e   : > { %v3906_v60 = vmul.f32 %v8782_v44, %v3891_v30  ;;  %v3864_v62 = vadd.f32 %v7031_v27, %v3863_v35  ;;  %v7036_v5 = vpop.f32.mrf.mxu0  ;;  %vm4119_vm10 = vmand %vm8821_vm6, %vm4115_vm3 }
 0x17f   : > { %v3893_v0 = vadd.f32 %v3869_v22, %v2498_v33  ;;  %v7037_v7 = vadd.f32 %v7036_v5, %v7035_v32  ;;  %vm4121_vm13 = vmand %vm8847_vm11, %vm4115_vm3 }
 0x180   : > { %v3921_v51 = vadd.f32 %v8789_v36, %v3906_v60  ;;  %v3892_v11 = vadd.f32 %v3864_v62, %v2493_v55 }
 0x181   : > { %v3908_v59 = vmul.f32 %v8782_v44, %v3893_v0  ;;  %v3872_v13 = vadd.f32 %v7253_v47, %v7037_v7 }
 0x182   : > { %v3929_v14 = vmax.f32 %v3921_v51, 0.0  ;;  %v3907_v15 = vmul.f32 %v8782_v44, %v3892_v11 }
 0x183   : > { %v3923_v17 = vadd.f32 %v8789_v36, %v3908_v59  ;;  %v3894_v18 = vadd.f32 %v3872_v13, %v2501_v12 }
 0x184   : > { %v3945_v1 = vcombine.high %v3929_v14, %v3929_v14  ;;  %v3952_v48 = vrot.slane %v3929_v14, %v8797_v8  ;;  %v3922_v42 = vadd.f32 %v8789_v36, %v3907_v15 }
 0x185   : > { %v3931_v39 = vmax.f32 %v3923_v17, 0.0  ;;  %v3909_v19 = vmul.f32 %v8782_v44, %v3894_v18 }
 0x186   : > { %v3959_v20 = vrot.slane %v3945_v1, %v8797_v8  ;;  %v3960_v23 = vcombine.high %v3952_v48, %v3952_v48  ;;  %v3930_v25 = vmax.f32 %v3922_v42, 0.0  ;;  %v6988_v42 = vadd.f32 %v8736_v37, %v8734_v21 }
 0x187   : > { %v3979_v28 = vcombine.high %v3931_v39, %v3931_v39  ;;  %v3986_v26 = vrot.slane %v3931_v39, %v8797_v8  ;;  %v3924_v29 = vadd.f32 %v8789_v36, %v3909_v19  ;;  %v1961_v37 = vadd.f32 %v8657_v53, %v8748_v41 }
 0x188   : > { %v3961_v30 = vcombine.high %v3959_v20, %v3959_v20  ;;  %v4152_v31 = vcombine.low %v3952_v48, %v3960_v23  ;;  %v3962_v32 = vcombine.high %v3930_v25, %v3930_v25  ;;  %v3969_v33 = vrot.slane %v3930_v25, %v8797_v8  ;;  %v7038_v34 = vpop.f32.mrf.mxu0 }
 0x189   : > { %v3993_v22 = vrot.slane %v3979_v28, %v8797_v8  ;;  %v3994_v55 = vcombine.high %v3986_v26, %v3986_v26  ;;  %v3932_v60 = vmax.f32 %v3924_v29, 0.0 }
 0x18a   : > { %v4153_v62 = vcombine.low %v3959_v20, %v3961_v30  ;;  %v4160_v5 = vrot.slane %v4152_v31, %v8797_v8  ;;  %v3976_v0 = vrot.slane %v3962_v32, %v8797_v8  ;;  %v3977_v6 = vcombine.high %v3969_v33, %v3969_v33  ;;  %v7039_v13 = vpop.f32.mrf.mxu0 }
 0x18b   : > { %v4175_v7 = vrot.slane %v3969_v33, %v8797_v8  ;;  %v3995_v51 = vcombine.high %v3993_v22, %v3993_v22  ;;  %v4199_v11 = vrot.slane %v3994_v55, %v8797_v8  ;;  %v3996_v12 = vcombine.high %v3932_v60, %v3932_v60 }
 0x18c   : > { %v4167_v14 = vrot.slane %v4153_v62, %v8797_v8  ;;  %v3978_v15 = vcombine.high %v3976_v0, %v3976_v0  ;;  %v4176_v17 = vcombine.low %v3977_v6, %v3976_v0  ;;  %v4003_v18 = vrot.slane %v3932_v60, %v8797_v8  ;;  %v7041_v29 = vpop.f32.mrf.mxu0 }
 0x18d   : > { %v4309_v1 = vsel %vm8832_vm9, %v4175_v7, 0.0  ;;  %v4311_v16 = vsel %vm4119_vm10, %v4199_v11, 0.0  ;;  %v8860_v48 = vrot.slane %v3996_v12, %v8797_v8  ;;  %v4200_v23 = vcombine.low %v3993_v22, %v3995_v51 }
 0x18e   : > { %v4168_v39 = vcombine.low %v4160_v5, %v4167_v14  ;;  %v6883_v19 = vpack.c.bf16 %v4309_v1, %v4309_v1  ;;  %v4177_v20 = vcombine.low %v3978_v15, %v3986_v26  ;;  %v6885_v25 = vpack.c.bf16 %v4311_v16, %v4311_v16  ;;  %v7042_v41 = vpop.f32.mrf.mxu0 }
 0x18f   : > { %v4011_v27 = vcombine.high %v4003_v18, %v4003_v18  ;;  %v4223_v28 = vrot.slane %v8860_v48, %v8797_v8  ;;  %v4184_v30 = vrot.slane %v4176_v17, %v8797_v8  ;;  %v6991_v55 = vadd.f32 %v8750_v45, %v8746_v40 }
 0x190   : > { %v4308_v31 = vsel %vm4102_vm12, %v4168_v39, 0.0  ;;  %4369 = vst [vmem:[#allocation2 + $0x4] sm:$0x1] %v6883_v19  ;;  %v4191_v21 = vrot.slane %v4177_v20, %v8797_v8  ;;  %4371 = vst [vmem:[#allocation2 + $0xc] sm:$0x1] %v6885_v25  ;;  %v2441_v60 = vadd.f32 %v6988_v42, %v1961_v37  ;;  %v4208_v62 = vrot.slane %v4200_v23, %v8797_v8 }
 0x191   : > { %v6882_v26 = vpack.c.bf16 %v4308_v31, %v4308_v31  ;;  %v4201_v32 = vcombine.low %v4003_v18, %v4011_v27  ;;  %v4313_v33 = vsel %vm4121_vm13, %v4223_v28, 0.0  ;;  %v6994_v5 = vadd.f32 %v8758_v52, %v8754_v49 }
 0x192   : > { %v4192_v35 = vcombine.low %v4184_v30, %v4191_v21  ;;  %v6887_v22 = vpack.c.bf16 %v4313_v33, %v4313_v33  ;;  %v7040_v0 = vadd.f32 %v7039_v13, %v7038_v34  ;;  %v1964_v40 = vadd.f32 %v8665_v58, %v8756_v50 }
 0x193   : > { %4368 = vst [vmem:[#allocation2] sm:$0xf] %v6882_v26  ;;  %v4215_v53 = vrot.slane %v4201_v32, %v8797_v8  ;;  %v1969_v51 = vadd.f32 %v8743_v54, %v8682_v4  ;;  %v2506_v11 = vadd.f32 %v8766_v63, %v2441_v60  ;;  %v7043_v34 = vadd.f32 %v7042_v41, %v7041_v29 }
 0x194   : > { %v4310_v47 = vsel %vm4104_vm14, %v4192_v35, 0.0  ;;  %4373 = vst [vmem:[#allocation2 + $0x14] sm:$0x1] %v6887_v22  ;;  %v2444_v49 = vadd.f32 %v6991_v55, %v1964_v40  ;;  %v6997_v58 = vadd.f32 %v8762_v57, %v8760_v56  ;;  %v4076_v50 = vadd.s32 3, %v8792_v2 }
 0x195   : > { %v6884_v45 = vpack.c.bf16 %v4310_v47, %v4310_v47  ;;  %v4216_v6 = vcombine.low %v4208_v62, %v4215_v53  ;;  %v7256_v7 = vpop.f32.mrf.mxu1  ;;  %v2449_v59 = vadd.f32 %v6994_v5, %v1969_v51  ;;  %v1972_v63 = vadd.f32 %v8752_v46, %v8693_v9 }
 0x196   : > { %v2509_v1 = vadd.f32 %v8773_v10, %v2444_v49  ;;  %v4077_v42 = vadd.s32 4, %v8792_v2  ;;  %vm4085_vm0 = vcmp.ge.s32.totalorder %v4076_v50, 0  ;;  %vm4091_vm1 = vcmp.lt.s32.totalorder %v4076_v50, 8 }
 0x197   : > { %4370 = vst [vmem:[#allocation2 + $0x8] sm:$0xf] %v6884_v45  ;;  %v4312_v52 = vsel %vm4106_vm15, %v4216_v6, 0.0  ;;  %v3876_v12 = vpop.f32.mrf.mxu1  ;;  %v7044_v14 = vpop.f32.mrf.mxu0  ;;  %v2514_v19 = vadd.f32 %v8764_v61, %v2449_v59  ;;  %v2452_v23 = vadd.f32 %v6997_v58, %v1972_v63  ;;  %v4012_v61 = vcombine.high %v8860_v48, %v8860_v48  ;;  %vm8933_vm7 = vmand %vm4085_vm0, %vm4091_vm1 }
 0x198   : > { %v6886_v15 = vpack.c.bf16 %v4312_v52, %v4312_v52  ;;  %v3877_v17 = vadd.f32 %v7040_v0, %v3876_v12  ;;  %vm4086_vm2 = vcmp.ge.s32.totalorder %v4077_v42, 0  ;;  %v8910_v30 = vadd.s32 5, %v8792_v2  ;;  %vm8953_vm10 = vmand %vm8933_vm7, %vm4115_vm3 }
 0x199   : > { %v7257_v13 = vpop.f32.mrf.mxu1  ;;  %v7045_v18 = vpop.f32.mrf.mxu0  ;;  %v2517_v33 = vadd.f32 %v8768_v3, %v2452_v23  ;;  %vm4092_vm4 = vcmp.lt.s32.totalorder %v4077_v42, 8  ;;  %vm4518_vm12 = vsmask.f32 3328  ;;  %vm4108_vm13 = vmand %vm8933_vm7, %vm4100_vm8  ;;  %vm4519_vm15 = vsmask.f32 7440 }
 0x19a   : > { %4372 = vst [vmem:[#allocation2 + $0x10] sm:$0xf] %v6886_v15  ;;  %v3895_v4 = vadd.f32 %v3877_v17, %v2506_v11  ;;  %v7046_v54 = vadd.f32 %v7045_v18, %v7044_v14  ;;  %v8903_v10 = vld [vmem:[#allocation2] sm:$0xf]  ;;  %vm4087_vm5 = vcmp.ge.s32.totalorder %v8910_v30, 0  ;;  %vm4093_vm6 = vcmp.lt.s32.totalorder %v8910_v30, 8  ;;  %vm8939_vm9 = vmand %vm4086_vm2, %vm4092_vm4 }
 0x19b   : > { %v3879_v16 = vpop.f32.mrf.mxu1  ;;  %v7047_v39 = vpop.f32.mrf.mxu0  ;;  %vm4125_vm11 = vmand %vm8939_vm9, %vm4115_vm3  ;;  %vm5247_vm4 = vcmask 1046532  }
 0x19c   : > { %v3910_v56 = vmul.f32 %v8782_v44, %v3895_v4  ;;  %v3880_v57 = vadd.f32 %v7043_v34, %v3879_v16  ;;  %v3885_v20 = vadd.f32 %v7256_v7, %v7046_v54  ;;  %vm8987_vm14 = vmand %vm4087_vm5, %vm4093_vm6  ;;  %vm5686_vm6 = vcmask 1046528  }
 0x19d   : > { %v7048_v25 = vpop.f32.mrf.mxu0  ;;  %vm4110_vm0 = vmand %vm8939_vm9, %vm4100_vm8 }
 0x19e   : > { %v3925_v27 = vadd.f32 %v8789_v36, %v3910_v56  ;;  %v3896_v28 = vadd.f32 %v3880_v57, %v2509_v1  ;;  %v3897_v9 = vadd.f32 %v3885_v20, %v2514_v19  ;;  %v7049_v46 = vadd.f32 %v7048_v25, %v7047_v39  ;;  %v8905_v29 = vld [vmem:[#allocation2 + $0x8] sm:$0xf]  ;;  %v8976_v25 = vld [vmem:[#allocation2 + $0x4] ss:$8 sps:$4 sm:$0x11]   ;;  %vm4127_vm1 = vmand %vm8987_vm14, %vm4115_vm3 }
 0x19f   : > { %v6581_v31 = vcombine.low %v8903_v10, %v8905_v29  ;;  %v8922_v53 = vld [vmem:[#allocation2 + $0x8] sm:$0xf]  ;;  %vm4112_vm2 = vmand %vm8987_vm14, %vm4100_vm8  ;;  %vm5246_vm8 = vcmask 1042432  }
 0x1a0   : > { %v3933_v21 = vmax.f32 %v3925_v27, 0.0  ;;  %v3911_v37 = vmul.f32 %v8782_v44, %v3896_v28  ;;  %v3912_v26 = vmul.f32 %v8782_v44, %v3897_v9  ;;  %v3888_v32 = vadd.f32 %v7257_v13, %v7049_v46  ;;  %vm9017_vm3 = vmor %vm4518_vm12, %vm4519_vm15 }
 0x1a1   : > { %v8917_v35 = vld [vmem:[#allocation2 + $0x10] sm:$0xf]  ;;  %v4522_v22 = vshrl.u32 %v6581_v31, 16  ;;  %v4525_v48 = vshll.u32 %v6581_v31, 16  ;;  %vm9128_vm5 = vmor %vm5246_vm8, %vm5247_vm4 }
 0x1a2   : > { %v4013_v55 = vcombine.high %v3933_v21, %v3933_v21  ;;  %v4020_v2 = vrot.slane %v3933_v21, %v8797_v8  ;;  %v3926_v60 = vadd.f32 %v8789_v36, %v3911_v37  ;;  %v3927_v62 = vadd.f32 %v8789_v36, %v3912_v26  ;;  %v8980_v31 = vld [vmem:[#allocation2 + $0x10] sm:$0xf] }
 0x1a3   : > { %v3898_v41 = vadd.f32 %v3888_v32, %v2517_v33  ;;  %v8928_v3 = vcombine.low %v8922_v53, %v8917_v35  ;;  %v8944_v11 = vrot.slane %v4522_v22, 4  ;;  %v8946_v49 = vrot.slane %v4525_v48, 5 }
 0x1a4   : > { %v4027_v5 = vrot.slane %v4013_v55, %v8797_v8  ;;  %v4028_v47 = vcombine.high %v4020_v2, %v4020_v2  ;;  %v4224_v40 = vcombine.low %v4012_v61, %v4020_v2  ;;  %v3934_v45 = vmax.f32 %v3926_v60, 0.0  ;;  %v8978_v61 = vld [vmem:[#allocation2 + $0xc] ss:$8 sps:$4 sm:$0x11]  }
 0x1a5   : > { %v3935_v7 = vmax.f32 %v3927_v62, 0.0  ;;  %v3913_v51 = vmul.f32 %v8782_v44, %v3898_v41  ;;  %v4550_v59 = vshrl.u32 %v8928_v3, 16  ;;  %v4528_v32 = vor.u32 %v8946_v49, %v8944_v11 }
 0x1a6   : > { %v4029_v52 = vcombine.high %v4027_v5, %v4027_v5  ;;  %v4225_v12 = vcombine.low %v4028_v47, %v4027_v5  ;;  %v4030_v14 = vcombine.high %v3934_v45, %v3934_v45  ;;  %v4037_v17 = vrot.slane %v3934_v45, %v8797_v8 }
 0x1a7   : > { %v4047_v44 = vcombine.high %v3935_v7, %v3935_v7  ;;  %v4054_v34 = vrot.slane %v3935_v7, %v8797_v8  ;;  %v3928_v58 = vadd.f32 %v8789_v36, %v3913_v51  ;;  %v4232_v50 = vrot.slane %v4224_v40, %v8797_v8 }
 0x1a8   : > { %v4239_v13 = vrot.slane %v4225_v12, %v8797_v8  ;;  %v4247_v18 = vrot.slane %v4029_v52, %v8797_v8  ;;  %v4044_v4 = vrot.slane %v4030_v14, %v8797_v8  ;;  %v4045_v36 = vcombine.high %v4037_v17, %v4037_v17  ;;  %v9021_v14 = vld [vmem:[#allocation2 + $0x14] ss:$0 sps:$4 sm:$0x11]  }
 0x1a9   : > { %v4061_v54 = vrot.slane %v4047_v44, %v8797_v8  ;;  %v4062_v63 = vcombine.high %v4054_v34, %v4054_v34  ;;  %v4271_v1 = vrot.slane %v4054_v34, %v8797_v8  ;;  %v3936_v19 = vmax.f32 %v3928_v58, 0.0  ;;  %v9023_v58 = vld [vmem:[#allocation2 + $0x10] sm:$0xf] }
 0x1aa   : > { %v4240_v16 = vcombine.low %v4232_v50, %v4239_v13  ;;  %v4315_v42 = vsel %vm8953_vm10, %v4247_v18, 0.0  ;;  %v4046_v39 = vcombine.high %v4044_v4, %v4044_v4  ;;  %v4248_v57 = vcombine.low %v4037_v17, %v4045_v36  ;;  %v7626_v12 = vld [vmem:[%s9489_s4 + $0x10] sm:$0xff]  }
 0x1ab   : > { %v6889_v56 = vpack.c.bf16 %v4315_v42, %v4315_v42  ;;  %v4272_v20 = vcombine.low %v4062_v63, %v4061_v54  ;;  %v4317_v23 = vsel %vm4125_vm11, %v4271_v1, 0.0  ;;  %v4063_v46 = vcombine.high %v4061_v54, %v4061_v54 }
 0x1ac   : > { %v4314_v27 = vsel %vm4108_vm13, %v4240_v16, 0.0  ;;  %v4249_v28 = vcombine.low %v4044_v4, %v4046_v39  ;;  %v6891_v9 = vpack.c.bf16 %v4317_v23, %v4317_v23  ;;  %v4070_v37 = vrot.slane %v3936_v19, %v8797_v8  ;;  %v7598_v4 = vld [vmem:[%s9489_s4 + $0x38] sm:$0xff]   ;;  %v7603_v39 = vld [vmem:[%s9489_s4 + $0x70] sm:$0xff]  }
 0x1ad   : > { %v6888_v21 = vpack.c.bf16 %v4314_v27, %v4314_v27  ;;  %4375 = vst [vmem:[#allocation2 + $0x1c] sm:$0x1] %v6889_v56  ;;  %v4256_v33 = vrot.slane %v4248_v57, %v8797_v8  ;;  %v4552_v48 = vrot.slane %v4550_v59, 4  ;;  %v4553_v55 = vshll.u32 %v8928_v3, 16  ;;  %v7605_v27 = vld [vmem:[%s9489_s4 + $0x30] sm:$0xff]  }
 0x1ae   : > { %v4263_v22 = vrot.slane %v4249_v28, %v8797_v8  ;;  %4377 = vst [vmem:[#allocation2 + $0x24] sm:$0x1] %v6891_v9  ;;  %v4071_v30 = vcombine.high %v4070_v37, %v4070_v37  ;;  %v4273_v2 = vcombine.low %v4063_v46, %v4070_v37  ;;  %v4531_v60 = vshll.u32 %v8976_v25, 16 }
 0x1af   : > { %4374 = vst [vmem:[#allocation2 + $0x18] sm:$0xf] %v6888_v21  ;;  %v6582_v62 = vcombine.low %v8980_v31, %v8980_v31  ;;  %v4280_v5 = vrot.slane %v4272_v20, %v8797_v8  ;;  %v4555_v3 = vrot.slane %v4553_v55, 5  ;;  %v4559_v47 = vshll.u32 %v8978_v61, 16 }
 0x1b0   : > { %v4264_v41 = vcombine.low %v4256_v33, %v4263_v22  ;;  %v4287_v0 = vrot.slane %v4273_v2, %v8797_v8  ;;  %v4295_v40 = vrot.slane %v4071_v30, %v8797_v8  ;;  %v4529_v51 = vrot.slane %v4528_v32, 4  ;;  %v7606_v32 = vld [vmem:[%s9489_s4 + $0x68] sm:$0xff]  }
 0x1b1   : > { %v4536_v45 = vshrl.u32 %v6582_v62, 16  ;;  %v4539_v6 = vshll.u32 %v6582_v62, 16  ;;  %v4556_v43 = vor.u32 %v4555_v3, %v4552_v48  ;;  %v4533_v8 = vrot.slane %v4531_v60, 5 }
 0x1b2   : > { %v4316_v7 = vsel %vm4110_vm0, %v4264_v41, 0.0  ;;  %v4288_v49 = vcombine.low %v4280_v5, %v4287_v0  ;;  %v4319_v52 = vsel %vm4127_vm1, %v4295_v40, 0.0  ;;  %v4561_v24 = vrot.slane %v4559_v47, 5 }
 0x1b3   : > { %v6890_v11 = vpack.c.bf16 %v4316_v7, %v4316_v7  ;;  %v6893_v59 = vpack.c.bf16 %v4319_v52, %v4319_v52  ;;  %v4557_v15 = vrot.slane %v4556_v43, 4  ;;  %v4538_v17 = vrot.slane %v4536_v45, 4 }
 0x1b4   : > { %v4318_v44 = vsel %vm4112_vm2, %v4288_v49, 0.0  ;;  %v4541_v34 = vrot.slane %v4539_v6, 5  ;;  %v4534_v13 = vsel %vm9017_vm3, %v4529_v51, %v4533_v8  ;;  %v9034_v54 = vld [vmem:[#allocation2 + $0x1c] ss:$0 sps:$4 sm:$0x11]   ;;  %v4545_v57 = vshll.u32 %v9021_v14, 16 }
 0x1b5   : > { %4376 = vst [vmem:[#allocation2 + $0x20] sm:$0xf] %v6890_v11  ;;  %v6892_v50 = vpack.c.bf16 %v4318_v44, %v4318_v44  ;;  %4379 = vst [vmem:[#allocation2 + $0x2c] sm:$0x1] %v6893_v59  ;;  %v4562_v18 = vsel %vm9017_vm3, %v4557_v15, %v4561_v24  ;;  %v4573_v28 = vshll.u32 %v9034_v54, 16  ;;  %v7608_v6 = vld [vmem:[%s9489_s4 + $0x28] sm:$0xff]  }
 0x1b6   : > { %v9032_v36 = vld [vmem:[#allocation2 + $0x18] sm:$0xf]  ;;  %v6645_v63 = vcombine.low %v4534_v13, %v4562_v18  ;;  %v6646_v1 = vcombine.high %v4534_v13, %v4562_v18  ;;  %v4542_v56 = vor.u32 %v4541_v34, %v4538_v17  ;;  %v9050_v9 = vld [vmem:[#allocation2 + $0x14] ss:$8 sps:$4 sm:$0x11]   ;;  %v4547_v5 = vrot.slane %v4545_v57, 5 }
 0x1b7   : > { %v6586_v16 = vcombine.low %v9032_v36, %v9032_v36  ;;  %v9038_v42 = vld [vmem:[#allocation2 + $0x18] sm:$0xf]  ;;  %4378 = vst [vmem:[#allocation2 + $0x28] sm:$0xf] %v6892_v50  ;;  %v4575_v3 = vrot.slane %v4573_v28, 5  ;;  %v4587_v47 = vshll.u32 %v9050_v9, 16 }
 0x1b8   : > { %v6589_v19 = vcombine.low %v9023_v58, %v9038_v42  ;;  %4882 = vmatprep.mubr.bf16.mxu0 %v6646_v1  ;;  %v9055_v33 = vld [vmem:[#allocation2 + $0x1c] ss:$8 sps:$4 sm:$0x11]   ;;  %v9057_v22 = vld [vmem:[#allocation2 + $0x18] sm:$0xf]  ;;  %v4543_v2 = vrot.slane %v4542_v56, 4 }
 0x1b9   : > { %v4564_v20 = vshrl.u32 %v6586_v16, 16  ;;  %v4567_v23 = vshll.u32 %v6586_v16, 16  ;;  %4883 = vmatmul.mubr.bf16.vlgmr.msra.gmra.mxu0 %v6645_v63  ;;  %v9068_v40 = vld [vmem:[#allocation2 + $0x24] ss:$0 sps:$4 sm:$0x11]   ;;  %v4615_v52 = vshll.u32 %v9055_v33, 16 }
 0x1ba   : > { %v4578_v46 = vshrl.u32 %v6589_v19, 16  ;;  %v4581_v21 = vshll.u32 %v6589_v19, 16  ;;  %7101 = vmatpush3.bf16.msra.mxu0 %v7598_v4  ;;  %v7613_v8 = vld [vmem:[%s9489_s4 + $0x60] sm:$0xff]   ;;  %v4548_v17 = vsel %vm9017_vm3, %v4543_v2, %v4547_v5  ;;  %v9088_v13 = vld [vmem:[%s8042_s23 + $0x30] sm:$0x1]  ;;  %v4601_v28 = vshll.u32 %v9068_v40, 16 }
 0x1bb   : > { %v4566_v37 = vrot.slane %v4564_v20, 4  ;;  %v4569_v26 = vrot.slane %v4567_v23, 5  ;;  %7102 = vmatprep.subr.bf16.mxu0 %v7603_v39  ;;  %v7615_v39 = vld [vmem:[%s9489_s4 + $0x20] sm:$0xff]   ;;  %v9094_v57 = vld [vmem:[%s8042_s23 + $0x50] sm:$0x1]  ;;  %v4589_v20 = vrot.slane %v4587_v47, 5  ;;  %v5631_v2 = vunpack.c.l.bf16 %v9088_v13 }
 0x1bc   : > { %v9059_v48 = vld [vmem:[#allocation2 + $0x20] sm:$0xf]  ;;  %v4580_v55 = vrot.slane %v4578_v46, 4  ;;  %v4583_v30 = vrot.slane %v4581_v21, 5  ;;  %v4617_v23 = vrot.slane %v4615_v52, 5  ;;  %v7622_v46 = vld [vmem:[%s9489_s4 + $0x58] sm:$0xff]  }
 0x1bd   : > { %v4570_v60 = vor.u32 %v4569_v26, %v4566_v37  ;;  %v6593_v62 = vcombine.low %v9057_v22, %v9059_v48  ;;  %v9063_v41 = vld [vmem:[#allocation2 + $0x20] sm:$0xf]  ;;  %v9075_v49 = vld [vmem:[#allocation2 + $0x2c] ss:$0 sps:$4 sm:$0x11]   ;;  %v7623_v47 = vld [vmem:[%s9489_s4 + $0x18] sm:$0xff]  }
 0x1be   : > { %v6590_v0 = vcombine.low %v9063_v41, %v9063_v41  ;;  %7103 = vmatpush3.bf16.msra.mxu0 %v7605_v27  ;;  %v4584_v7 = vor.u32 %v4583_v30, %v4580_v55  ;;  %v9073_v11 = vld [vmem:[#allocation2 + $0x28] sm:$0xf]  ;;  %v6817_v55 = vld [vmem:[%s8042_s23 + $0x20] sm:$0xe]  ;;  %v6810_v52 = vld [vmem:[%s8042_s23 + $0x34] sm:$0x1] }
 0x1bf   : > { %v4571_v45 = vrot.slane %v4570_v60, 4  ;;  %v4606_v51 = vshrl.u32 %v6593_v62, 16  ;;  %v4609_v43 = vshll.u32 %v6593_v62, 16  ;;  %7104 = vmatprep.subr.bf16.mxu0 %v7606_v32  ;;  %v6594_v59 = vcombine.low %v9073_v11, %v9073_v11  ;;  %v7675_v30 = vld [vmem:[#allocation2 + $0x20] ss:$0 sps:$4 sm:$0xee]  }
 0x1c0   : > { %v4592_v15 = vshrl.u32 %v6590_v0, 16  ;;  %v4595_v24 = vshll.u32 %v6590_v0, 16  ;;  %v4585_v1 = vrot.slane %v4584_v7, 4  ;;  %v4629_v32 = vshll.u32 %v9075_v49, 16  ;;  %v7625_v7 = vld [vmem:[%s9489_s4 + $0x50] sm:$0xff]  }
 0x1c1   : > { %v4576_v44 = vsel %vm9017_vm3, %v4571_v45, %v4575_v3  ;;  %v4608_v34 = vrot.slane %v4606_v51, 4  ;;  %v4611_v50 = vrot.slane %v4609_v43, 5  ;;  %v4620_v19 = vshrl.u32 %v6594_v59, 16  ;;  %v7676_v0 = vld [vmem:[#allocation2 + $0x28] ss:$0 sps:$4 sm:$0xee]  }
 0x1c2   : > { %v6647_v18 = vcombine.low %v4548_v17, %v4576_v44  ;;  %v4594_v4 = vrot.slane %v4592_v15, 4  ;;  %v4597_v63 = vrot.slane %v4595_v24, 5  ;;  %7105 = vmatpush3.bf16.msra.mxu0 %v7608_v6  ;;  %v4623_v56 = vshll.u32 %v6594_v59, 16  ;;  %v6801_v51 = vld [vmem:[%s8042_s23 + $0x20] sm:$0xff]  }
 0x1c3   : > { %v4612_v16 = vor.u32 %v4611_v50, %v4608_v34  ;;  %7106 = vmatprep.subr.bf16.mxu0 %v7613_v8  ;;  %v4622_v37 = vrot.slane %v4620_v19, 4  ;;  %v4590_v60 = vsel %vm9017_vm3, %v4585_v1, %v4589_v20  ;;  %v5633_v43 = vunpack.c.l.bf16 %v9094_v57  ;;  %v6818_v44 = vld [vmem:[%s8042_s23 + $0x40] sm:$0xe] }
 0x1c4   : > { %7274 = vmatprep.mubr.bf16.mxu1 %v6647_v18  ;;  %v4598_v27 = vor.u32 %v4597_v63, %v4594_v4  ;;  %v4625_v26 = vrot.slane %v4623_v56, 5  ;;  %v5674_v8 = vunpack.c.l.bf16 %v6817_v55  ;;  %v4603_v59 = vrot.slane %v4601_v28, 5  ;;  %v6812_v4 = vld [vmem:[%s8042_s23 + $0x54] sm:$0x1]  ;;  %v6803_v56 = vld [vmem:[%s8042_s23 + $0x40] sm:$0xff]   ;;  %v7629_v55 = vld [vmem:[%s9489_s4 + $0x8] sm:$0xff]  }
 0x1c5   : > { %v4613_v21 = vrot.slane %v4612_v16, 4  ;;  %v4631_v24 = vrot.slane %v4629_v32, 5  ;;  %v6718_v17 = vrot.slane %v7675_v30, 9  ;;  %v6676_v34 = vcombine.low %v8905_v29, %v8917_v35  ;;  %v7627_v32 = vld [vmem:[%s9489_s4 + $0xa8] sm:$0xff]   ;;  %v7669_v16 = vld [vmem:[%s9489_s4 + $0x210] sm:$0xff]  }
 0x1c6   : > { %7107 = vmatpush3.bf16.msra.mxu0 %v7615_v39  ;;  %v4599_v5 = vrot.slane %v4598_v27, 4  ;;  %v4626_v3 = vor.u32 %v4625_v26, %v4622_v37  ;;  %v5271_v50 = vrot.slane %v9068_v40, 5  ;;  %v6720_v13 = vrot.slane %v7676_v0, 9  ;;  %v6824_v0 = vld [vmem:[%s8042_s23 + $0x58] sm:$0x1] }
 0x1c7   : > { %v4618_v62 = vsel %vm9017_vm3, %v4613_v21, %v4617_v23  ;;  %7108 = vmatprep.subr.bf16.mxu0 %v7622_v46  ;;  %v5279_v18 = vrot.slane %v9075_v49, 5  ;;  %v5630_v29 = vunpack.c.l.bf16 %v6801_v51  ;;  %v5655_v35 = vunpack.c.l.bf16 %v6810_v52  ;;  %v7624_v49 = vld [vmem:[%s9489_s4 + $0xb0] sm:$0xff]   ;;  %v7628_v23 = vld [vmem:[%s9489_s4 + $0x48] sm:$0xff]  }
 0x1c8   : > { %v6649_v45 = vcombine.high %v4590_v60, %v4618_v62  ;;  %v6648_v6 = vcombine.low %v4590_v60, %v4618_v62  ;;  %v4627_v15 = vrot.slane %v4626_v3, 4  ;;  %v4604_v63 = vsel %vm9017_vm3, %v4599_v5, %v4603_v59  ;;  %v6822_v60 = vld [vmem:[%s8042_s23 + $0x38] sm:$0x1]  ;;  %v6837_v52 = vld [vmem:[%s8042_s23 + $0x28] sm:$0xe] }
 0x1c9   : > { %v9140_v39 = vsel %vm9128_vm5, %v6718_v17, %v5271_v50  ;;  %v9144_v19 = vsel %vm9128_vm5, %v6720_v13, %v5279_v18  ;;  %v5675_v57 = vunpack.c.l.bf16 %v6818_v44  ;;  %v6677_v20 = vcombine.low %v8980_v31, %v9032_v36  ;;  %v9179_v59 = vld [vmem:[%s8042_s23 + $0x48] sm:$0xff]  }
 0x1ca   : > { %4890 = vmatprep.mubr.bf16.mxu0 %v6649_v45  ;;  %v4632_v1 = vsel %vm9017_vm3, %v4627_v15, %v4631_v24  ;;  %7109 = vmatpush3.bf16.msra.mxu0 %v7623_v47  ;;  %v6774_v27 = vcombine.low %v9140_v39, %v9144_v19  ;;  %v5654_v28 = vunpack.c.h.bf16 %v6801_v51  ;;  %v5657_v46 = vunpack.c.l.bf16 %v6812_v4  ;;  %v9167_v47 = vld [vmem:[%s8042_s23 + $0x28] sm:$0xff]   ;;  %v7630_v45 = vld [vmem:[%s9489_s4 + $0xa0] sm:$0xff]   ;;  %v6830_v15 = vld [vmem:[%s8042_s23 + $0x3c] sm:$0x1] }
 0x1cb   : > { %4891 = vmatmul.mubr.bf16.gmra.mxu0 %v6648_v6  ;;  %v6650_v40 = vcombine.low %v4604_v63, %v4632_v1  ;;  %7110 = vmatprep.subr.bf16.mxu0 %v7625_v7  ;;  %v5687_v21 = vrot.slane %v5674_v8, 1  ;;  %v5688_v37 = vrot.slane %v5631_v2, 1  ;;  %v5632_v26 = vunpack.c.l.bf16 %v6803_v56  ;;  %v7635_v24 = vld [vmem:[%s9489_s4 + $0x1f8] sm:$0xff]   ;;  %v7647_v17 = vld [vmem:[#allocation2 + $0x8] ss:$8 sps:$4 sm:$0xee]  }
 0x1cc   : > { %5136 = vmatprep.mubr.bf16.mxu0 %v6676_v34  ;;  %v5656_v31 = vunpack.c.h.bf16 %v6803_v56  ;;  %v5663_v36 = vadd.f32 %v5655_v35, %v5631_v2  ;;  %v5690_v30 = vrot.slane %v5675_v57, 1  ;;  %v7631_v2 = vld [vmem:[%s9489_s4 + $0x40] sm:$0xff]   ;;  %v5662_v62 = vadd.f32 %v5654_v28, %v5630_v29  ;;  %v6838_v18 = vld [vmem:[%s8042_s23 + $0x48] sm:$0xe]  ;;  %v6832_v4 = vld [vmem:[%s8042_s23 + $0x5c] sm:$0x1] }
 0x1cd   : > { %7275 = vmatmul.mubr.bf16.vlgmr.msra.gmra.mxu1 %v6650_v40  ;;  %v5665_v5 = vadd.f32 %v5657_v46, %v5633_v43  ;;  %v5689_v3 = vsel %vm5686_vm6, %v5687_v21, %v5688_v37  ;;  %v5724_v51 = vunpack.c.l.bf16 %v6822_v60  ;;  %v5723_v50 = vunpack.c.l.bf16 %v9167_v47  ;;  %v7646_v1 = vld [vmem:[#allocation2] ss:$8 sps:$4 sm:$0xee]   ;;  %v9206_v60 = vld [vmem:[%s8042_s23 + $0x50] sm:$0x1] }
 0x1ce   : > { %7279 = vmatpush3.bf16.msra.mxu1 %v8741_v38  ;;  %7294 = vmatprep.mubr.bf16.mxu1 %v6677_v20  ;;  %v5691_v38 = vrot.slane %v5633_v43, 1  ;;  %v5664_v6 = vadd.f32 %v5656_v31, %v5632_v26  ;;  %v5708_v7 = vadd.f32 %v5688_v37, %v5663_v36  ;;  %v7632_v43 = vld [vmem:[%s9489_s4] sm:$0xff]   ;;  %v5707_v44 = vadd.f32 %v5689_v3, %v5662_v62  ;;  %v7641_v62 = vld [vmem:[%s9489_s4 + $0x1b0] sm:$0xff]  }
 0x1cf   : > { %7280 = vmatprep.subr.bf16.mxu1 %v7624_v49  ;;  %7111 = vmatpush3.bf16.msra.mxu0 %v7626_v12  ;;  %v5726_v13 = vunpack.c.l.bf16 %v6824_v0  ;;  %v5767_v63 = vunpack.c.l.bf16 %v6837_v52  ;;  %v5725_v35 = vunpack.c.l.bf16 %v9179_v59  ;;  %v7633_v12 = vld [vmem:[%s9489_s4 + $0x98] sm:$0xff]   ;;  %v6675_v56 = vcombine.low %v8903_v10, %v8922_v53  ;;  %v7639_v10 = vld [vmem:[%s9489_s4 + $0x1f0] sm:$0xff]  }
 0x1d0   : > { %7112 = vmatprep.subr.bf16.mxu0 %v7628_v23  ;;  %v5692_v8 = vsel %vm5686_vm6, %v5690_v30, %v5691_v38  ;;  %v5710_v34 = vadd.f32 %v5691_v38, %v5665_v5  ;;  %v5732_v40 = vadd.f32 %v5724_v51, %v5708_v7  ;;  %v5747_v57 = vunpack.c.h.bf16 %v9167_v47  ;;  %v7638_v23 = vld [vmem:[%s9489_s4 + $0x1b8] sm:$0xff]   ;;  %v7643_v5 = vld [vmem:[%s9489_s4 + $0x1e8] sm:$0xff]   ;;  %v9229_v52 = vld [vmem:[%s8042_s23 + $0x70] sm:$0x1] }
 0x1d1   : > { %v5709_v29 = vadd.f32 %v5692_v8, %v5664_v6  ;;  %v5768_v20 = vunpack.c.l.bf16 %v6838_v18  ;;  %v6715_v28 = vrot.slane %v7647_v17, 9  ;;  %v5731_v46 = vadd.f32 %v5723_v50, %v5707_v44  ;;  %v9222_v6 = vld [vmem:[#allocation2 + $0x10] ss:$0 sps:$4 sm:$0xee]   ;;  %v6859_v18 = vld [vmem:[%s8042_s23 + $0x40] sm:$0xe] }
 0x1d2   : > { %7281 = vmatpush3.bf16.msra.mxu1 %v7624_v49  ;;  %v5748_v49 = vunpack.c.l.bf16 %v6830_v15  ;;  %v5734_v21 = vadd.f32 %v5726_v13, %v5710_v34  ;;  %v5750_v37 = vunpack.c.l.bf16 %v6832_v4  ;;  %v6679_v26 = vcombine.low %v9038_v42, %v9059_v48  ;;  %v7637_v42 = vld [vmem:[%s9489_s4 + $0x90] sm:$0xff]   ;;  %v7645_v4 = vld [vmem:[%s9489_s4 + $0x1a8] sm:$0xff]  }
 0x1d3   : > { %7282 = vmatprep.subr.bf16.mxu1 %v7627_v32  ;;  %7113 = vmatpush3.bf16.msra.mxu0 %v7629_v55  ;;  %v5259_v53 = vrot.slane %v8978_v61, 5  ;;  %v5779_v31 = vrot.slane %v5767_v63, 1  ;;  %v5780_v36 = vrot.slane %v5724_v51, 1  ;;  %v5733_v55 = vadd.f32 %v5725_v35, %v5709_v29  ;;  %v7653_v61 = vld [vmem:[#allocation2 + $0x18] ss:$0 sps:$4 sm:$0xee]  }
 0x1d4   : > { %7114 = vmatprep.subr.bf16.mxu0 %v7631_v2  ;;  %v5749_v30 = vunpack.c.h.bf16 %v9179_v59  ;;  %v5756_v38 = vadd.f32 %v5748_v49, %v5732_v40  ;;  %v5782_v48 = vrot.slane %v5768_v20, 1  ;;  %v5783_v2 = vrot.slane %v5726_v13, 1  ;;  %v9226_v51 = vld [vmem:[%s8042_s23 + $0x40] sm:$0xff]   ;;  %v6852_v13 = vld [vmem:[%s8042_s23 + $0x54] sm:$0x1] }
 0x1d5   : > { %v5251_v3 = vrot.slane %v8976_v25, 5  ;;  %v9220_v47 = vsel %vm9128_vm5, %v6715_v28, %v5259_v53  ;;  %v5755_v0 = vadd.f32 %v5747_v57, %v5731_v46  ;;  %v5781_v7 = vsel %vm5686_vm6, %v5779_v31, %v5780_v36  ;;  %v9236_v59 = vld [vmem:[%s8042_s23 + $0x60] sm:$0xff]   ;;  %v9256_v35 = vld [vmem:[%s8042_s23 + $0x70] sm:$0x1]  ;;  %v9266_v20 = vld [vmem:[%s8042_s23 + $0x74] sm:$0x1] }
 0x1d6   : > { %7283 = vmatpush3.bf16.msra.mxu1 %v7627_v32  ;;  %v6713_v32 = vrot.slane %v7646_v1, 9  ;;  %v5800_v8 = vadd.f32 %v5780_v36, %v5756_v38  ;;  %v5820_v15 = vunpack.c.l.bf16 %v9206_v60  ;;  %v6678_v17 = vcombine.low %v9023_v58, %v9057_v22  ;;  %v6860_v22 = vld [vmem:[%s8042_s23 + $0x60] sm:$0xe] }
 0x1d7   : > { %7284 = vmatprep.subr.bf16.mxu1 %v7630_v45  ;;  %7115 = vmatpush3.bf16.msra.mxu0 %v7632_v43  ;;  %v5757_v43 = vadd.f32 %v5749_v30, %v5733_v55  ;;  %v6716_v34 = vrot.slane %v7653_v61, 9  ;;  %v5784_v50 = vsel %vm5686_vm6, %v5782_v48, %v5783_v2  ;;  %v5799_v63 = vadd.f32 %v5781_v7, %v5755_v0  ;;  %v7648_v40 = vld [vmem:[%s9489_s4 + $0x1e0] sm:$0xff]  }
 0x1d8   : > { %7138 = vmatprep.subr.bf16.mxu0 %v7635_v24  ;;  %v9233_v25 = vsel %vm9128_vm5, %v6713_v32, %v5251_v3  ;;  %v7640_v24 = vld [vmem:[%s9489_s4 + $0x88] sm:$0xff]   ;;  %v5819_v29 = vunpack.c.l.bf16 %v9226_v51  ;;  %v5822_v58 = vunpack.c.l.bf16 %v9229_v52  ;;  %v6714_v49 = vrot.slane %v9222_v6, 9  ;;  %v7650_v32 = vld [vmem:[%s9489_s4 + $0x1a0] sm:$0xff]   ;;  %v7651_v52 = vld [vmem:[%s9489_s4 + $0x238] sm:$0xff]  }
 0x1d9   : > { %v6770_v44 = vcombine.high %v9233_v25, %v9220_v47  ;;  %v5821_v57 = vunpack.c.l.bf16 %v9236_v59  ;;  %v5828_v28 = vadd.f32 %v5820_v15, %v5800_v8  ;;  %v5844_v46 = vunpack.c.l.bf16 %v6852_v13  ;;  %v6805_v61 = vld [vmem:[%s8042_s23 + $0x60] sm:$0xff]  }
 0x1da   : > { %7285 = vmatpush3.bf16.msra.mxu1 %v7630_v45  ;;  %5137 = vmatmul.mubr.bf16.vlgmr.msra.gmra.mxu0 %v6675_v56  ;;  %v5758_v45 = vadd.f32 %v5750_v37, %v5734_v21  ;;  %v5263_v56 = vrot.slane %v9034_v54, 5  ;;  %v5863_v21 = vunpack.c.l.bf16 %v6859_v18  ;;  %v6808_v37 = vld [vmem:[%s8042_s23 + $0x90] sm:$0x1]  ;;  %v6680_v54 = vcombine.low %v9063_v41, %v9073_v11  ;;  %v6816_v41 = vld [vmem:[%s8042_s23 + $0x94] sm:$0x1]  ;;  %v7654_v11 = vld [vmem:[%s9489_s4 + $0x1d8] sm:$0xff]  }
 0x1db   : > { %7286 = vmatprep.subr.bf16.mxu1 %v7633_v12  ;;  %5144 = vmatprep.mubr.bf16.mxu0 %v6679_v26  ;;  %v6819_v26 = vld [vmem:[%s8042_s23 + $0x60] sm:$0xe]  ;;  %v5843_v31 = vunpack.c.h.bf16 %v9226_v51  ;;  %v5864_v36 = vunpack.c.l.bf16 %v6860_v22  ;;  %v5827_v55 = vadd.f32 %v5819_v29, %v5799_v63  ;;  %v5845_v38 = vunpack.c.h.bf16 %v9236_v59  ;;  %v7657_v18 = vld [vmem:[%s9489_s4 + $0x1d0] sm:$0xff]  }
 0x1dc   : > { %7139 = vmatpush3.bf16.msra.mxu0 %v7638_v23  ;;  %v5802_v1 = vadd.f32 %v5783_v2, %v5758_v45  ;;  %v5801_v23 = vadd.f32 %v5784_v50, %v5757_v43  ;;  %v9278_v53 = vsel %vm9128_vm5, %v6716_v34, %v5263_v56  ;;  %v5846_v60 = vunpack.c.l.bf16 %v9266_v20  ;;  %v6807_v48 = vld [vmem:[%s8042_s23 + $0x80] sm:$0xff]   ;;  %v9300_v34 = vld [vmem:[#allocation2 + $0x10] ss:$8 sps:$4 sm:$0xee]  }
 0x1dd   : > { %7140 = vmatprep.subr.bf16.mxu0 %v7639_v10  ;;  %v6820_v10 = vld [vmem:[%s8042_s23 + $0x80] sm:$0xe]  ;;  %v5635_v2 = vunpack.c.l.bf16 %v9256_v35  ;;  %v5852_v45 = vadd.f32 %v5844_v46, %v5828_v28  ;;  %v5875_v7 = vrot.slane %v5863_v21, 1  ;;  %v5876_v51 = vrot.slane %v5820_v15, 1 }
 0x1de   : > { %7287 = vmatpush3.bf16.msra.mxu1 %v7633_v12  ;;  %v5255_v12 = vrot.slane %v9021_v14, 5  ;;  %v7644_v14 = vld [vmem:[%s9489_s4 + $0x80] sm:$0xff]   ;;  %v5830_v30 = vadd.f32 %v5822_v58, %v5802_v1  ;;  %v5677_v3 = vunpack.c.l.bf16 %v6820_v10  ;;  %v5829_v0 = vadd.f32 %v5821_v57, %v5801_v23  ;;  %v7656_v57 = vld [vmem:[%s9489_s4 + $0x230] sm:$0xff]   ;;  %v7660_v10 = vld [vmem:[%s9489_s4 + $0x1c8] sm:$0xff]  }
 0x1df   : > { %7288 = vmatprep.subr.bf16.mxu1 %v7637_v42  ;;  %v5878_v43 = vrot.slane %v5864_v36, 1  ;;  %v5879_v8 = vrot.slane %v5822_v58, 1  ;;  %v5636_v50 = vunpack.c.l.bf16 %v6807_v48  ;;  %v5658_v13 = vunpack.c.h.bf16 %v6805_v61  ;;  %v9309_v22 = vld [vmem:[#allocation2 + $0x18] ss:$8 sps:$4 sm:$0xee]  }
 0x1e0   : > { %7141 = vmatpush3.bf16.msra.mxu0 %v7641_v62  ;;  %v5637_v62 = vunpack.c.l.bf16 %v6808_v37  ;;  %v5660_v15 = vunpack.c.h.bf16 %v6807_v48  ;;  %v5694_v63 = vrot.slane %v5635_v2, 1  ;;  %v5696_v1 = vrot.slane %v5677_v3, 1  ;;  %v6826_v37 = vld [vmem:[%s8042_s23 + $0x78] sm:$0x1] }
 0x1e1   : > { %7142 = vmatprep.subr.bf16.mxu0 %v7643_v5  ;;  %v5676_v5 = vunpack.c.l.bf16 %v6819_v26  ;;  %v5256_v58 = vsel %vm9128_vm5, %v6714_v49, %v5255_v12  ;;  %v5851_v35 = vadd.f32 %v5843_v31, %v5827_v55  ;;  %v5854_v56 = vadd.f32 %v5846_v60, %v5830_v30  ;;  %v7658_v12 = vld [vmem:[%s9489_s4 + $0x190] sm:$0xff]   ;;  %v6828_v26 = vld [vmem:[%s8042_s23 + $0x98] sm:$0x1]  ;;  %v9332_v55 = vld [vmem:[%s8042_s23 + $0x88] sm:$0xff]  }
 0x1e2   : > { %7289 = vmatpush3.bf16.msra.mxu1 %v7637_v42  ;;  %5145 = vmatmul.mubr.bf16.gmra.mxu0 %v6678_v17  ;;  %v6814_v42 = vld [vmem:[%s8042_s23 + $0x74] sm:$0x1]  ;;  %v5661_v17 = vunpack.c.l.bf16 %v6816_v41  ;;  %v5697_v29 = vrot.slane %v5637_v62, 1  ;;  %v5877_v20 = vsel %vm5686_vm6, %v5875_v7, %v5876_v51  ;;  %v5880_v23 = vsel %vm5686_vm6, %v5878_v43, %v5879_v8  ;;  %v6840_v41 = vld [vmem:[%s8042_s23 + $0x88] sm:$0xe]  ;;  %v7663_v43 = vld [vmem:[%s9489_s4 + $0x1c0] sm:$0xff]  }
 0x1e3   : > { %7290 = vmatprep.subr.bf16.mxu1 %v7640_v24  ;;  %5530 = vmatprep.mubr.bf16.mxu0 %v6770_v44  ;;  %v5659_v59 = vunpack.c.l.bf16 %v6814_v42  ;;  %v7655_v44 = vld [vmem:[%s9489_s4 + $0x198] sm:$0xff]   ;;  %v6771_v49 = vcombine.low %v5256_v58, %v9278_v53  ;;  %v5668_v21 = vadd.f32 %v5660_v15, %v5636_v50  ;;  %v5896_v53 = vadd.f32 %v5876_v51, %v5852_v45  ;;  %v6839_v42 = vld [vmem:[%s8042_s23 + $0x68] sm:$0xe]  ;;  %v7662_v15 = vld [vmem:[%s9489_s4 + $0x220] sm:$0xff]  }
 0x1e4   : > { %7143 = vmatpush3.bf16.msra.mxu0 %v7645_v4  ;;  %v5693_v4 = vrot.slane %v5676_v5, 1  ;;  %v5669_v28 = vadd.f32 %v5661_v17, %v5637_v62  ;;  %v5698_v36 = vsel %vm5686_vm6, %v5696_v1, %v5697_v29  ;;  %v5895_v30 = vadd.f32 %v5877_v20, %v5851_v35  ;;  %v7661_v5 = vld [vmem:[%s9489_s4 + $0x188] sm:$0xff]   ;;  %v6834_v51 = vld [vmem:[%s8042_s23 + $0x7c] sm:$0x1] }
 0x1e5   : > { %7144 = vmatprep.subr.bf16.mxu0 %v7648_v40  ;;  %v5853_v40 = vadd.f32 %v5845_v38, %v5829_v0  ;;  %v5667_v6 = vadd.f32 %v5659_v59, %v5635_v2  ;;  %v5898_v60 = vadd.f32 %v5879_v8, %v5854_v56  ;;  %v5728_v2 = vunpack.c.l.bf16 %v6826_v37 }
 0x1e6   : > { %7291 = vmatpush3.bf16.msra.mxu1 %v7640_v24  ;;  %v5634_v24 = vunpack.c.l.bf16 %v6805_v61  ;;  %v5695_v31 = vsel %vm5686_vm6, %v5693_v4, %v5694_v63  ;;  %v5714_v48 = vadd.f32 %v5697_v29, %v5669_v28  ;;  %v5730_v62 = vunpack.c.l.bf16 %v6828_v26 }
 0x1e7   : > { %7292 = vmatprep.subr.bf16.mxu1 %v7644_v14  ;;  %v5897_v38 = vadd.f32 %v5880_v23, %v5853_v40  ;;  %v5712_v61 = vadd.f32 %v5694_v63, %v5667_v6  ;;  %v5713_v0 = vadd.f32 %v5698_v36, %v5668_v21  ;;  %v5729_v7 = vunpack.c.l.bf16 %v9332_v55  ;;  %v7666_v40 = vld [vmem:[#allocation3 + $0x38] sm:$0xff]   ;;  %v9368_v36 = vld [vmem:[%s8042_s23 + $0x80] sm:$0xff]  }
 0x1e8   : > { %7145 = vmatpush3.bf16.msra.mxu0 %v7650_v32  ;;  %v5666_v46 = vadd.f32 %v5658_v13, %v5634_v24  ;;  %v9329_v32 = vld [vmem:[%s8042_s23 + $0x68] sm:$0xff]   ;;  %v5275_v8 = vrot.slane %v9055_v33, 5  ;;  %v5904_v59 = vmul.f32 0.11111111, %v5896_v53  ;;  %v5769_v17 = vunpack.c.l.bf16 %v6839_v42  ;;  %v7664_v33 = vld [vmem:[%s9489_s4 + $0x180] sm:$0xff]  }
 0x1e9   : > { %7146 = vmatprep.subr.bf16.mxu0 %v7654_v11  ;;  %v7659_v11 = vld [vmem:[%s9489_s4 + $0x228] sm:$0xff]   ;;  %v5727_v45 = vunpack.c.l.bf16 %v9329_v32  ;;  %v5903_v24 = vmul.f32 0.11111111, %v5895_v30  ;;  %v5905_v50 = vmul.f32 0.11111111, %v5897_v38  ;;  %v5738_v4 = vadd.f32 %v5730_v62, %v5714_v48 }
 0x1ea   : > { %7293 = vmatpush3.bf16.msra.mxu1 %v7644_v14  ;;  %v6717_v14 = vrot.slane %v9300_v34, 9  ;;  %v5711_v3 = vadd.f32 %v5695_v31, %v5666_v46  ;;  %v5906_v13 = vmul.f32 0.11111111, %v5898_v60  ;;  %v5752_v63 = vunpack.c.l.bf16 %v6834_v51  ;;  %v7665_v46 = vld [vmem:[%s9489_s4 + $0x218] sm:$0xff]   ;;  %v6849_v60 = vld [vmem:[%s8042_s23 + $0xa0] sm:$0xff]  }
 0x1eb   : > { %7298 = vmatprep.subr.bf16.mxu1 %v7651_v52  ;;  %v5737_v58 = vadd.f32 %v5729_v7, %v5713_v0  ;;  %v5753_v35 = vunpack.c.h.bf16 %v9332_v55  ;;  %v5785_v56 = vrot.slane %v5769_v17, 1  ;;  %v5789_v23 = vrot.slane %v5730_v62, 1  ;;  %v6850_v42 = vld [vmem:[%s8042_s23 + $0xb0] sm:$0x1]  ;;  %v6862_v34 = vld [vmem:[%s8042_s23 + $0xa0] sm:$0xe] }
 0x1ec   : > { %7147 = vmatpush3.bf16.msra.mxu0 %v7655_v44  ;;  %v5770_v44 = vunpack.c.l.bf16 %v6840_v41  ;;  %v5735_v29 = vadd.f32 %v5727_v45, %v5711_v3  ;;  %v5919_v6 = vrot.slane %v5903_v24, 1  ;;  %v5920_v28 = vrot.slane %v5904_v59, 1  ;;  %v6856_v45 = vld [vmem:[%s8042_s23 + $0x94] sm:$0x1]  ;;  %v7672_v7 = vld [vmem:[#allocation3 + $0x28] sm:$0xff]   ;;  %v7671_v17 = vld [vmem:[%s9489_s4 + $0x208] sm:$0xff]  }
 0x1ed   : > { %7295 = vmatmul.mubr.bf16.vlgmr.msra.gmra.mxu1 %v6680_v54  ;;  %7148 = vmatprep.subr.bf16.mxu0 %v7657_v18  ;;  %v6719_v54 = vrot.slane %v9309_v22, 9  ;;  %v5736_v18 = vadd.f32 %v5728_v2, %v5712_v61  ;;  %v5751_v22 = vunpack.c.h.bf16 %v9329_v32  ;;  %v5267_v21 = vrot.slane %v9050_v9, 5  ;;  %v6848_v32 = vld [vmem:[%s8042_s23 + $0x90] sm:$0x1]  ;;  %v6858_v51 = vld [vmem:[%s8042_s23 + $0xb4] sm:$0x1] }
 0x1ee   : > { %7299 = vmatpush3.bf16.msra.mxu1 %v7651_v52  ;;  %7314 = vmatprep.mubr.bf16.mxu1 %v6771_v49  ;;  %v6836_v52 = vld [vmem:[%s8042_s23 + $0x9c] sm:$0x1]  ;;  %v5788_v20 = vrot.slane %v5770_v44, 1  ;;  %v5922_v49 = vrot.slane %v5905_v50, 1  ;;  %v5761_v31 = vadd.f32 %v5753_v35, %v5737_v58  ;;  %v6769_v55 = vcombine.low %v9233_v25, %v9220_v47  ;;  %v6861_v25 = vld [vmem:[%s8042_s23 + $0x80] sm:$0xe] }
 0x1ef   : > { %7300 = vmatprep.subr.bf16.mxu1 %v7656_v57  ;;  %v5754_v1 = vunpack.c.l.bf16 %v6836_v52  ;;  %v9365_v37 = vsel %vm9128_vm5, %v6719_v54, %v5275_v8  ;;  %v5760_v26 = vadd.f32 %v5752_v63, %v5736_v18  ;;  %v5759_v53 = vadd.f32 %v5751_v22, %v5735_v29  ;;  %v7670_v54 = vld [vmem:[#allocation3 + $0x30] sm:$0xff]   ;;  %s6875_s23 = sshll.u32 %s7791_s17, 3  ;;  %s6104_s17 = sshll.u32 %s381_s25, 4  ;;  %s9430_s17 = int_to_ptr.vmem [resolvable:$true] %s6104_s17 }
 0x1f0   : > { %7149 = vmatpush3.bf16.msra.mxu0 %v7658_v12  ;;  %v5923_v12 = vrot.slane %v5906_v13, 1  ;;  %v5268_v9 = vsel %vm9128_vm5, %v6717_v14, %v5267_v21  ;;  %v5790_v38 = vsel %vm5686_vm6, %v5788_v20, %v5789_v23  ;;  %v5823_v48 = vunpack.c.l.bf16 %v9368_v36  ;;  %v7673_v35 = vld [vmem:[%s9489_s4 + $0x200] sm:$0xff]   ;;  %s6101_s26 = sadd.s32 %s6875_s23, %s6213_s19  ;;  %s9434_s19 = scalar_lea.sflag [#allocation5], %s379_s18 }
 0x1f1   : > { %7150 = vmatprep.subr.bf16.mxu0 %v7660_v10  ;;  %v5762_v10 = vadd.f32 %v5754_v1, %v5738_v4  ;;  %v6773_v41 = vcombine.high %v5268_v9, %v9365_v37  ;;  %v5825_v3 = vunpack.c.l.bf16 %v6849_v60  ;;  %v5826_v0 = vunpack.c.l.bf16 %v6850_v42  ;;  %v7674_v1 = vld [vmem:[#allocation3 + $0x20] sm:$0xff]   ;;  %s6876_s11 = sshll.u32 %s6101_s26, 6  ;;  %s7707_s22 = scalar_lea.vmem %s9430_s17, 256 }
 0x1f2   : > { %7301 = vmatpush3.bf16.msra.mxu1 %v7656_v57  ;;  %v5786_v57 = vrot.slane %v5728_v2, 1  ;;  %v5924_v47 = vsel %vm5686_vm6, %v5922_v49, %v5923_v12  ;;  %v5824_v2 = vunpack.c.l.bf16 %v6848_v32  ;;  %v5865_v52 = vunpack.c.l.bf16 %v6861_v25  ;;  %s9428_s16 = scalar_lea.hbm %s9495_s10, %s6876_s11  ;;  %p7708_p12 = scmp.ne.s32.totalorder %s9430_s17, %s7707_s22 }
 0x1f3   : > { %7302 = vmatprep.subr.bf16.mxu1 %v7659_v11  ;;  %v5806_v61 = vadd.f32 %v5789_v23, %v5762_v10  ;;  %v6772_v8 = vcombine.low %v5268_v9, %v9365_v37  ;;  %v5847_v24 = vunpack.c.h.bf16 %v9368_v36  ;;  %v5848_v50 = vunpack.c.l.bf16 %v6856_v45  ;;  %v7677_v23 = vld [vmem:[#allocation3 + $0x18] sm:$0xff]   ;;  %v7678_v37 = vld [vmem:[#allocation3 + $0x10] sm:$0xff]   ;;  %v7679_v36 = vld [vmem:[#allocation3 + $0x8] sm:$0xff]   ;;  %p7714_p1 = scmp.lt.s32.totalorder %s9430_s17, %s7712_s7  ;;  %p7715_p2 = scmp.lt.s32.totalorder %s7713_s21, %s7707_s22 }
 0x1f4   : > { %7151 = vmatpush3.bf16.msra.mxu0 %v7661_v5  ;;  %v5787_v30 = vsel %vm5686_vm6, %v5785_v56, %v5786_v57  ;;  %v5804_v14 = vadd.f32 %v5786_v57, %v5760_v26  ;;  %v5805_v5 = vadd.f32 %v5790_v38, %v5761_v31  ;;  %v5849_v13 = vunpack.c.h.bf16 %v6849_v60  ;;  %p7709_p13 = pnand %p7708_p12, %p7920_p3 }
 0x1f5   : > { %7152 = vmatprep.subr.bf16.mxu0 %v7663_v43  ;;  %v5803_v62 = vadd.f32 %v5787_v30, %v5759_v53  ;;  %v5866_v43 = vunpack.c.l.bf16 %v6862_v34  ;;  %v5834_v4 = vadd.f32 %v5826_v0, %v5806_v61  ;;  %v5850_v63 = vunpack.c.l.bf16 %v6858_v51  ;;  %v7680_v30 = vld [vmem:[#allocation3] sm:$0xff]   ;;  %p7716_p4 = por %p7715_p2, %p7714_p1 }
 0x1f6   : > { %7303 = vmatpush3.bf16.msra.mxu1 %v7659_v11  ;;  %v5921_v11 = vsel %vm5686_vm6, %v5919_v6, %v5920_v28  ;;  %v5832_v44 = vadd.f32 %v5824_v2, %v5804_v14  ;;  %v5833_v18 = vadd.f32 %v5825_v3, %v5805_v5  ;;  %v5882_v29 = vrot.slane %v5824_v2, 1  ;;  %p7710_p0 = pneg %p7709_p13 }
 0x1f7   : > { %7304 = vmatprep.subr.bf16.mxu1 %v7662_v15  ;;  %v5935_v59 = vpack.c.bf16 %v5924_v47, %v5921_v11  ;;  %v5884_v58 = vrot.slane %v5866_v43, 1  ;;  %v5885_v22 = vrot.slane %v5826_v0, 1  ;;  %v5858_v20 = vadd.f32 %v5850_v63, %v5834_v4 }
 0x1f8   : > { %7153 = vmatpush3.bf16.msra.mxu0 %v7664_v33  ;;  %v5881_v33 = vrot.slane %v5865_v52, 1  ;;  %v5857_v57 = vadd.f32 %v5849_v13, %v5833_v18  ;;  %p7717_p5 = pnand %p7716_p4, %p7710_p0 }
 0x1f9   : > { %7318 = vmatprep.subr.bf16.mxu0 %v7666_v40  ;;  %v5886_v28 = vsel %vm5686_vm6, %v5884_v58, %v5885_v22  ;;  %v5902_v21 = vadd.f32 %v5885_v22, %v5858_v20 }
 0x1fa   : > { %7305 = vmatpush3.bf16.msra.mxu1 %v7662_v15  ;;  %v5831_v15 = vadd.f32 %v5823_v48, %v5803_v62  ;;  %v5883_v6 = vsel %vm5686_vm6, %v5881_v33, %v5882_v29 }
 0x1fb   : > { %7306 = vmatprep.subr.bf16.mxu1 %v7665_v46  ;;  %5531 = vmatmul.mubr.bf16.vlgmr.msra.gmra.mxu0 %v6769_v55  ;;  %v5910_v31 = vmul.f32 0.11111111, %v5902_v21 }
 0x1fc   : > { %5538 = vmatprep.mubr.bf16.mxu0 %v6773_v41  ;;  %7319 = vmatpush3.bf16.msra.mxu0 %v7666_v40  ;;  %v5856_v40 = vadd.f32 %v5848_v50, %v5832_v44  ;;  %v5855_v56 = vadd.f32 %v5847_v24, %v5831_v15 }
 0x1fd   : > { %7320 = vmatprep.subr.bf16.mxu0 %v7670_v54 }
 0x1fe   : > { %7307 = vmatpush3.bf16.msra.mxu1 %v7665_v46  ;;  %v5900_v49 = vadd.f32 %v5882_v29, %v5856_v40  ;;  %v5899_v12 = vadd.f32 %v5883_v6, %v5855_v56  ;;  %v5901_v46 = vadd.f32 %v5886_v28, %v5857_v57 }
 0x1ff   : > { %7308 = vmatprep.subr.bf16.mxu1 %v7669_v16 }
 0x200   : > { %7321 = vmatpush3.bf16.msra.mxu0 %v7670_v54  ;;  %v5908_v26 = vmul.f32 0.11111111, %v5900_v49  ;;  %v5907_v10 = vmul.f32 0.11111111, %v5899_v12  ;;  %v5909_v53 = vmul.f32 0.11111111, %v5901_v46 }
 0x201   : > { %7322 = vmatprep.subr.bf16.mxu0 %v7672_v7  ;;  %v5929_v54 = vrot.slane %v5910_v31, 1 }
 0x202   : > { %7309 = vmatpush3.bf16.msra.mxu1 %v7669_v16  ;;  %v5925_v32 = vrot.slane %v5907_v10, 1  ;;  %v5926_v55 = vrot.slane %v5908_v26, 1  ;;  %v5928_v9 = vrot.slane %v5909_v53, 1 }
 0x203   : > { %7310 = vmatprep.subr.bf16.mxu1 %v7671_v17  ;;  %5539 = vmatmul.mubr.bf16.gmra.mxu0 %v6772_v8 }
 0x204   : > { %7323 = vmatpush3.bf16.msra.mxu0 %v7672_v7  ;;  %7334 = vmatprep.mubr.bf16.mxu0 %v5935_v59  ;;  %v5927_v38 = vsel %vm5686_vm6, %v5925_v32, %v5926_v55  ;;  %v5930_v60 = vsel %vm5686_vm6, %v5928_v9, %v5929_v54 }
 0x205   : > { %7324 = vmatprep.subr.bf16.mxu0 %v7674_v1  ;;  %v5936_v42 = vpack.c.bf16 %v5930_v60, %v5927_v38 }
 0x206   : > { %7311 = vmatpush3.bf16.msra.mxu1 %v7671_v17 }
 0x207   : > { %7312 = vmatprep.subr.bf16.mxu1 %v7673_v35 }
 0x208   : > { %7325 = vmatpush3.bf16.msra.mxu0 %v7674_v1 }
 0x209   : > { %7326 = vmatprep.subr.bf16.mxu0 %v7677_v23 }
 0x20a   : > { %7313 = vmatpush3.bf16.msra.mxu1 %v7673_v35 }
 0x20c   : > { %7327 = vmatpush3.bf16.msra.mxu0 %v7677_v23 }
 0x20d   : > { %7315 = vmatmul.mubr.bf16.vlgmr.msra.gmra.mxu1 %v6774_v27  ;;  %7328 = vmatprep.subr.bf16.mxu0 %v7678_v37 }
 0x210   : > { %7329 = vmatpush3.bf16.msra.mxu0 %v7678_v37 }
 0x211   : > { %7330 = vmatprep.subr.bf16.mxu0 %v7679_v36 }
 0x214   : > { %7331 = vmatpush3.bf16.msra.mxu0 %v7679_v36 }
 0x215   : > { %7332 = vmatprep.subr.bf16.mxu0 %v7680_v30 }
 0x218   : > { %7333 = vmatpush3.bf16.msra.mxu0 %v7680_v30 }
 0x21b   : > { %7335 = vmatmul.mubr.bf16.vlgmr.msra.gmra.mxu0 %v5936_v42 }
 0x279   : > { %v7078_v39 = vpop.f32.mrf.mxu0 }
 0x27b   : > { %v7079_v19 = vpop.f32.mrf.mxu0 }
 0x27c   : > { %v7080_v56 = vadd.f32 %v7079_v19, %v7078_v39  ;;  %v6799_v39 = vld [vmem:[%s9490_s5] ss:$0 sm:$0xff] }
 0x27d   : > { %v7081_v27 = vpop.f32.mrf.mxu0 }
 0x27f   : > { %v7082_v41 = vpop.f32.mrf.mxu0 }
 0x280   : > { %v7083_v46 = vadd.f32 %v7082_v41, %v7081_v27  ;;  %v6871_v27 = vld [vmem:[%s9493_s8] ss:$0 sm:$0xff] }
 0x28b   : > { %v7084_v11 = vpop.f32.mrf.mxu0 }
 0x28d   : > { %v7085_v47 = vpop.f32.mrf.mxu0  ;;  %v7276_v62 = vpop.f32.mrf.mxu1 }
 0x28e   : > { %v7086_v4 = vadd.f32 %v7085_v47, %v7084_v11 }
 0x28f   : > { %v7087_v25 = vpop.f32.mrf.mxu0  ;;  %v4933_v3 = vpop.f32.mrf.mxu1 }
 0x290   : > { %v4942_v22 = vadd.f32 %v7276_v62, %v7086_v4  ;;  %v4934_v49 = vadd.f32 %v7080_v56, %v4933_v3 }
 0x291   : > { %v7088_v34 = vpop.f32.mrf.mxu0  ;;  %v7277_v45 = vpop.f32.mrf.mxu1 }
 0x292   : > { %v7089_v1 = vadd.f32 %v7088_v34, %v7087_v25  ;;  %v6872_v25 = vld [vmem:[%s9494_s9] ss:$0 sm:$0xff] }
 0x293   : > { %v4936_v52 = vpop.f32.mrf.mxu1 }
 0x294   : > { %v4945_v23 = vadd.f32 %v7277_v45, %v7089_v1  ;;  %v4937_v36 = vadd.f32 %v7083_v46, %v4936_v52 }
 0x29a   : > { %v7116_v16 = vpop.f32.mrf.mxu0 }
 0x29c   : > { %v7117_v14 = vpop.f32.mrf.mxu0 }
 0x29d   : > { %v7118_v57 = vadd.f32 %v7117_v14, %v7116_v16 }
 0x29e   : > { %v7119_v61 = vpop.f32.mrf.mxu0 }
 0x29f   : > { %v5139_v10 = vadd.f32 %v7118_v57, %v4934_v49 }
 0x2a0   : > { %v7120_v48 = vpop.f32.mrf.mxu0 }
 0x2a1   : > { %v7121_v21 = vadd.f32 %v7120_v48, %v7119_v61  ;;  %v6800_v48 = vld [vmem:[%s9491_s6] ss:$0 sm:$0xff] }
 0x2a2   : > { %v7122_v2 = vpop.f32.mrf.mxu0 }
 0x2a3   : > { %v5142_v38 = vadd.f32 %v7121_v21, %v4937_v36 }
 0x2a4   : > { %v7123_v5 = vpop.f32.mrf.mxu0 }
 0x2a5   : > { %v7124_v33 = vadd.f32 %v7123_v5, %v7122_v2 }
 0x2a6   : > { %v7125_v0 = vpop.f32.mrf.mxu0 }
 0x2a7   : > { %v5147_v6 = vadd.f32 %v7124_v33, %v4942_v22 }
 0x2a8   : > { %v7126_v7 = vpop.f32.mrf.mxu0 }
 0x2a9   : > { %v7127_v35 = vadd.f32 %v7126_v7, %v7125_v0 }
 0x2ab   : > { %v5150_v37 = vadd.f32 %v7127_v35, %v4945_v23 }
 0x2ad   : > { %v7296_v8 = vpop.f32.mrf.mxu1 }
 0x2ae   : > { %v5196_v32 = vadd.f32 %v7296_v8, %v5147_v6 }
 0x2af   : > { %v5187_v44 = vpop.f32.mrf.mxu1 }
 0x2b0   : > { %v5188_v54 = vadd.f32 %v5187_v44, %v5139_v10 }
 0x2b1   : > { %v7297_v50 = vpop.f32.mrf.mxu1 }
 0x2b2   : > { %v5199_v30 = vadd.f32 %v7297_v50, %v5150_v37 }
 0x2b3   : > { %v5190_v15 = vpop.f32.mrf.mxu1 }
 0x2b4   : > { %v5191_v41 = vadd.f32 %v5190_v15, %v5142_v38 }
 0x2bb   : > { %v7154_v51 = vpop.f32.mrf.mxu0 }
 0x2bd   : > { %v7155_v43 = vpop.f32.mrf.mxu0 }
 0x2be   : > { %v7156_v12 = vadd.f32 %v7155_v43, %v7154_v51 }
 0x2bf   : > { %v7157_v59 = vpop.f32.mrf.mxu0 }
 0x2c1   : > { %v7158_v17 = vpop.f32.mrf.mxu0 }
 0x2c2   : > { %v7159_v55 = vadd.f32 %v7158_v17, %v7157_v59 }
 0x2c3   : > { %v7160_v24 = vpop.f32.mrf.mxu0 }
 0x2c5   : > { %v7161_v13 = vpop.f32.mrf.mxu0 }
 0x2c6   : > { %v7162_v40 = vadd.f32 %v7161_v13, %v7160_v24 }
 0x2c7   : > { %v7163_v18 = vpop.f32.mrf.mxu0 }
 0x2c9   : > { %v7164_v29 = vpop.f32.mrf.mxu0 }
 0x2ca   : > { %v7165_v28 = vadd.f32 %v7164_v29, %v7163_v18 }
 0x2cd   : > { %v7316_v63 = vpop.f32.mrf.mxu1 }
 0x2ce   : > { %v5590_v26 = vadd.f32 %v7316_v63, %v7162_v40 }
 0x2cf   : > { %v5581_v58 = vpop.f32.mrf.mxu1 }
 0x2d0   : > { %v5582_v53 = vadd.f32 %v7156_v12, %v5581_v58  ;;  %v5598_v60 = vadd.f32 %v5590_v26, %v5196_v32 }
 0x2d1   : > { %v7317_v20 = vpop.f32.mrf.mxu1 }
 0x2d2   : > { %v5593_v9 = vadd.f32 %v7317_v20, %v7165_v28  ;;  %v5596_v19 = vadd.f32 %v5582_v53, %v5188_v54  ;;  %v5609_v34 = vmul.f32 %v6799_v39, %v5598_v60 }
 0x2d3   : > { %v5584_v31 = vpop.f32.mrf.mxu1 }
 0x2d4   : > { %v5585_v42 = vadd.f32 %v7159_v55, %v5584_v31  ;;  %v5599_v11 = vadd.f32 %v5593_v9, %v5199_v30  ;;  %v5607_v61 = vmul.f32 %v6799_v39, %v5596_v19  ;;  %v5620_v7 = vadd.f32 %v6800_v48, %v5609_v34 }
 0x2d6   : > { %v5597_v16 = vadd.f32 %v5585_v42, %v5191_v41  ;;  %v5610_v62 = vmul.f32 %v6799_v39, %v5599_v11  ;;  %v5618_v43 = vadd.f32 %v6800_v48, %v5607_v61 }
 0x2d8   : > { %v5608_v45 = vmul.f32 %v6799_v39, %v5597_v16  ;;  %v5621_v17 = vadd.f32 %v6800_v48, %v5610_v62 }
 0x2da   : > { %v5619_v15 = vadd.f32 %v6800_v48, %v5608_v45 }
 0x2db   : > { %v7336_v47 = vpop.f32.mrf.mxu0 }
 0x2dc   : > { %v6059_v14 = vmul.f32 %v7336_v47, %v6871_v27 }
 0x2dd   : > { %v6035_v2 = vpop.f32.mrf.mxu0 }
 0x2de   : > { %v6070_v5 = vadd.f32 %v6872_v25, %v6059_v14  ;;  %v6057_v3 = vmul.f32 %v6871_v27, %v6035_v2 }
 0x2df   : > { %v7337_v0 = vpop.f32.mrf.mxu0 }
 0x2e0   : > { %v6068_v51 = vadd.f32 %v6872_v25, %v6057_v3  ;;  %v6060_v52 = vmul.f32 %v7337_v0, %v6871_v27  ;;  %v6074_v59 = vadd.f32 %v6070_v5, %v5620_v7 }
 0x2e1   : > { %v6038_v8 = vpop.f32.mrf.mxu0 }
 0x2e2   : > { %v6071_v44 = vadd.f32 %v6872_v25, %v6060_v52  ;;  %v6058_v24 = vmul.f32 %v6871_v27, %v6038_v8  ;;  %v6072_v50 = vadd.f32 %v6068_v51, %v5618_v43  ;;  %v6078_v4 = vmax.f32 %v6074_v59, 0.0 }
 0x2e4   : > { %v6075_v13 = vadd.f32 %v6071_v44, %v5621_v17  ;;  %v6069_v18 = vadd.f32 %v6872_v25, %v6058_v24  ;;  %v6076_v33 = vmax.f32 %v6072_v50, 0.0 }
 0x2e6   : > { %v6079_v63 = vmax.f32 %v6075_v13, 0.0  ;;  %v6073_v1 = vadd.f32 %v6069_v18, %v5619_v15 }
 0x2e8   : > { %v6903_v29 = vpack.c.bf16 %v6079_v63, %v6078_v4  ;;  %v6077_v58 = vmax.f32 %v6073_v1, 0.0 }
 0x2ea   : > { %6905 = vst [vmem:[%s381_s25 + $0x8] sm:$0xff] %v6903_v29   ;;  %v6898_v22 = vpack.c.bf16 %v6077_v58, %v6076_v33 }
 0x2ec   : > { %6899 = vst [vmem:[%s381_s25] sm:$0xff] %v6898_v22  }
 0x2ed   : > { %7720 = shalt.err (!%p7717_p5)
}
 0x2ee   : > { %s7721_s18 = scalar_lea.hbm %s9428_s16, 256  ;;  %s7725_s26 = scalar_lea.hbm %s9495_s10, 1024 }
 0x2ef   : > { %p7722_p6 = scmp.ne.s32.totalorder %s9428_s16, %s7721_s18  ;;  %p7726_p11 = scmp.lt.s32.totalorder %s9428_s16, %s9495_s10 }
 0x2f0   : > { %p7727_p10 = scmp.lt.s32.totalorder %s7725_s26, %s7721_s18 }
 0x2f1   : > { %p7723_p7 = pnand %p7722_p6, %p7920_p3 }
 0x2f2   : > { %p7728_p12 = por %p7727_p10, %p7726_p11 }
 0x2f3   : > { %p7724_p9 = pneg %p7723_p7 }
 0x2f5   : > { %p7729_p13 = pnand %p7728_p12, %p7724_p9 }
 0x2f7   : > { %7732 = shalt.err (!%p7729_p13)
}
 0x2f8   : > { %s7811_s12 = smov 64   ;;  %s7812_s24 = smov 4  }
 0x2f9   : > { %7343 = dma.vmem_to_hbm [thread:$0]  (%p7920_p3), %s9430_s17, 256, %s9428_s16, %s9434_s19, %s7811_s12, %s7811_s12, %s7812_s24  }
 0x2fa PF: > { %p7355_p0 = scmp.ge.s32.totalorder %s7803_s20, 2  ;;  %s6119_s22 = sand.u32 1, %s7775_s13  }
 0x2fb   : > { %s6120_s29 = scalar_lea.sflag [#allocation5], %s6119_s22 }
 0x2fc   : > { %p7350_p1 = pnand %p7355_p0, %p7929_p8 }
 0x2fe   : > { %p7351_p2 = pneg %p7350_p1 }
 0x300   : > { %7770 = dma.done.wait (%p7351_p2), %s6120_s29, 256  }
 0x301   : > { %7772 = vsyncadd (%p7351_p2), %s6120_s29, 4294967040  ;;  %s24_s20 = sadd.s32 1, %s7803_s20   ;;  %s9544_s7 = sld [smem:[#allocation13_spill]] }
 0x302   : > { %p21_p4 = scmp.ge.s32.totalorder %s24_s20, 6   ;;  %s9545_s16 = sld [smem:[#allocation9_spill]] }
 0x303   : > { %s9546_s17 = sld [smem:[#allocation10_spill]]  ;;  %s9549_s13 = smov %s7779_s14 }
 0x304   : > { %s9547_s18 = sld [smem:[#allocation11_spill]]  ;;  %s9550_s14 = smov %s7783_s15 }
 0x305   : > { %s9548_s19 = sld [smem:[#allocation12_spill]]  ;;  %23 = sbr.rel (!%p21_p4) target bundleno = 8 (0x8), region = 109 }
 0x307   : > { %s9551_s15 = smov %s9544_s7 }
 0x30a   :  { %6125 = vsyncpa [#allocation4], 1 }
 0x30b   :  { %6127 = vsyncpa [#allocation4 + $0x1], 1 }
 0x30c   :  { %6128 = vsyncpa [#allocation5], 1 }
 0x30d   :  { %6130 = vsyncpa [#allocation5 + $0x1], 1 }

// kernel: tpu_custom_call.1
= control target key start
LH: loop header
LB: loop body
LE: loop exit
PB: predicated region body
PF: predicated region fallthrough
CT: control target
= control target key end

     0   :  { %s9483_s0 = inlined_call_operand.vmem [shape: bf16[2,11,11,512], index: 0, kind: input, shape index: {}]   ;;  %s9484_s1 = inlined_call_operand.vmem [shape: bf16[3,384,128], index: 1, kind: input, shape index: {}]   ;;  %s9485_s2 = inlined_call_operand.vmem [shape: f32[1,128], index: 2, kind: input, shape index: {}]   ;;  %s9486_s3 = inlined_call_operand.vmem [shape: f32[1,128], index: 3, kind: input, shape index: {}]   ;;  %s9487_s4 = inlined_call_operand.vmem [shape: bf16[3,384,128], index: 4, kind: input, shape index: {}]   ;;  %s9488_s5 = inlined_call_operand.vmem [shape: f32[1,128], index: 5, kind: input, shape index: {}]   ;;  %s9489_s6 = inlined_call_operand.vmem [shape: f32[1,128], index: 6, kind: input, shape index: {}]   ;;  %s9490_s7 = inlined_call_operand.hbm [shape: bf16[128,128], index: 7, kind: input, shape index: {}]   ;;  %s9491_s8 = inlined_call_operand.vmem [shape: f32[1,128], index: 8, kind: input, shape index: {}]   ;;  %s9492_s9 = inlined_call_operand.vmem [shape: f32[1,128], index: 9, kind: input, shape index: {}]   ;;  %s9493_s10 = inlined_call_operand.hbm [shape: bf16[2,8,8,128], index: 10, kind: output, shape index: {}]  }
   0x1   :  { %9498 = sst [smem:[#allocation14_spill]] %s9490_s7 }
   0x2   :  { %15 = vsyncpa [#allocation4], 0 }
   0x3   :  { %16 = vsyncpa [#allocation5], 0 }
   0x4   :  { %18 = vsyncpa [#allocation5 + $0x1], 0  ;;  %s7866_s13 = smov 0   ;;  %s7868_s14 = smov 0  }
   0x5   :  { %s7870_s15 = smov 0   ;;  %s7872_s16 = smov 0  }
   0x6   :  { %s7874_s17 = smov 0   ;;  %s7876_s18 = smov 0  }
   0x7   :  { %s7878_s19 = smov 0   ;;  %s7880_s20 = smov 0  }
   0x8 LB: > { %9499 = sst [smem:[#allocation9_spill]] %s7793_s18  ;;  %s6202_s21 = sadd.s32 4294967295, %s7801_s20   ;;  %s7801_s20 = sphi %s7880_s20, %s24_s20   ;;  %s7797_s19 = sphi %s7878_s19, %s9546_s19   ;;  %s7793_s18 = sphi %s7876_s18, %s9545_s18   ;;  %s7789_s17 = sphi %s7874_s17, %s9544_s17   ;;  %s7785_s16 = sphi %s7872_s16, %s9543_s16   ;;  %s7781_s15 = sphi %s7870_s15, %s9549_s15   ;;  %s7777_s14 = sphi %s7868_s14, %s9548_s14   ;;  %s7773_s13 = sphi %s7866_s13, %s9547_s13  }
   0x9   : > { %9500 = sst [smem:[#allocation10_spill]] %s7797_s19  ;;  %s6203_s22 = sadd.s32 4294967294, %s7801_s20  }
   0xa   : > { %s33_s23 = sadd.s32 1, %s7793_s18  ;;  %s36_s24 = sadd.s32 1, %s7797_s19 }
   0xb   : > { %p34_p0 = scmp.ge.s32.totalorder %s33_s23, 2  ;;  %s260_s25 = sadd.s32 1, %s7781_s15 }
   0xc   : > { %p270_p1 = scmp.ne.s32.totalorder %s7781_s15, %s7777_s14  ;;  %p271_p2 = scmp.eq.s32.totalorder %s6202_s21, 3 }
   0xd   : > { %s9551_s23 = smov (%p34_p0, %s33_s23), 0  ;;  %s9553_s24 = smov (!%p34_p0, %s36_s24), %s7797_s19 }
   0xe   : > { %9501 = sst [smem:[#allocation11_spill]] %s9551_s23  ;;  %s256_s26 = ssub.s32 %s7793_s18, %s9551_s23 }
   0xf   : > { %p7918_p3 = por %p271_p2, %p270_p1  ;;  %p38_p4 = scmp.ge.s32.totalorder %s9553_s24, 2 }
  0x10   : > { %p276_p5 = scmp.ne.s32.totalorder %s7777_s14, %s7773_s13  ;;  %p277_p6 = scmp.eq.s32.totalorder %s6203_s22, 3 }
  0x11   : > { %p6204_p7 = scmp.ge.s32.totalorder %s7801_s20, 1  ;;  %s9555_s24 = smov (%p38_p4, %s9553_s24), 0 }
  0x12   : > { %9503 = sst [smem:[#allocation12_spill]] %s9555_s24  ;;  %p7927_p8 = por %p277_p6, %p276_p5 }
  0x13   : > { %p284_p9 = scmp.lt.s32.totalorder %s7801_s20, 5  ;;  %s255_s29 = ssub.s32 %s7797_s19, %s9555_s24 }
  0x14   : > { %s257_s30 = sor.u32 %s256_s26, %s255_s29  ;;  %p7938_p12 = scmp.eq.s32.totalorder %s6202_s21, 0 }
  0x15   : > { %p7934_p10 = pnand %p6204_p7, %p284_p9  ;;  %p258_p11 = scmp.eq.s32.totalorder %s257_s30, 0 }
  0x16   : > { %s7803_s23 = smov [#allocation3]  }
  0x17   : > { %p7343_p13 = pneg %p7934_p10  ;;  %s314_s18 = sshll.u32 %s7803_s23, 4  ;;  %s315_s18 = int_to_ptr.vmem [resolvable:$true] %s314_s18 }
  0x18   : > { %s7945_s22 = scalar_select %p258_p11, %s7781_s15, %s260_s25  }
  0x19   : > { %p7949_p0 = pnand %p7938_p12, %p7343_p13  ;;  %s7690_s21 = scalar_lea.vmem %s315_s18, 1024 }
  0x1a   : > { %9507 = sst [smem:[#allocation13_spill]] %s7945_s22  ;;  %p7691_p2 = scmp.ne.s32.totalorder %s315_s18, %s7690_s21 }
  0x1b   : > { %p7681_p1 = pneg %p7949_p0  ;;  %p7698_p6 = scmp.lt.s32.totalorder %s315_s18, %s315_s18 }
  0x1c   : > { %p7699_p7 = scmp.lt.s32.totalorder %s7690_s21, %s7690_s21 }
  0x1d   : > { %p7693_p4 = pnand %p7691_p2, %p7681_p1 }
  0x1e   : > { %p7700_p9 = por %p7699_p7, %p7698_p6 }
  0x1f   : > { %p7694_p5 = pneg %p7693_p4 }
  0x21   : > { %p7701_p11 = pnand %p7700_p9, %p7694_p5 }
  0x23   : > { %7704 = shalt.err (!%p7701_p11)
}
  0x24   : > { %s7804_s25 = smov 64   ;;  %s7805_s23 = smov 4  }
  0x25   : > { %s9509_s7 = sld [smem:[#allocation14_spill]] }
  0x27   : > { %344 = sbr.rel (%p7934_p10) target bundleno = 762 (0x2fa), region = 60 }
  0x2b   : > { %7346 = dma.hbm_to_vmem [thread:$0]  (!%p7949_p0), %s9509_s7, 1024, %s315_s18, [#allocation4], %s7804_s25, %s7804_s25, %s7805_s23  }
  0x2c   : > { %7764 = dma.done.wait (%p7938_p12), [#allocation4], 1024  }
  0x2d   : > { %7766 = vsyncadd (%p7938_p12), [#allocation4], 4294966272  ;;  %v7425_v0 = vld [vmem:[%s9484_s1 + $0x138] sm:$0xff]   ;;  %v7428_v3 = vld [vmem:[%s9484_s1 + $0x130] sm:$0xff]   ;;  %p382_p10 = scmp.lt.s32.totalorder %s7789_s17, 1  ;;  %v529_v18 = vlaneseq  ;;  %s6878_s25 = sshll.u32 %s7785_s16, 7 }
  0x2e   : > { %v7426_v1 = vld [vmem:[%s9484_s1 + $0xf8] sm:$0xff]   ;;  %6904 = vmatprep.subr.bf16.mxu0 %v7425_v0  ;;  %v7429_v4 = vld [vmem:[%s9484_s1 + $0xf0] sm:$0xff]   ;;  %v7431_v6 = vld [vmem:[%s9484_s1 + $0x128] sm:$0xff]   ;;  %v7806_v16 = vmov 1966171168   ;;  %s6211_s19 = sshll.u32 %s7785_s16, 2 }
  0x2f   : > { %v7427_v2 = vld [vmem:[%s9484_s1 + $0x178] sm:$0xff]   ;;  %6905 = vmatpush3.bf16.msra.mxu0 %v7426_v1  ;;  %v7430_v5 = vld [vmem:[%s9484_s1 + $0x170] sm:$0xff]   ;;  %v7432_v7 = vld [vmem:[%s9484_s1 + $0xe8] sm:$0xff]   ;;  %s383_s30 = scalar_select %p382_p10, %s7789_s17, 1  ;;  %v527_v17 = vunpack.c.l.s4 %v7806_v16  ;;  %v8032_v24 = vshrl.u32 %v529_v18, 7 }
  0x30   : > { %7184 = vmatprep.subr.bf16.mxu1 %v7427_v2  ;;  %6906 = vmatprep.subr.bf16.mxu0 %v7428_v3  ;;  %v7433_v8 = vld [vmem:[%s9484_s1 + $0x168] sm:$0xff]   ;;  %v7434_v9 = vld [vmem:[%s9484_s1 + $0x120] sm:$0xff]   ;;  %v7437_v12 = vld [vmem:[%s9484_s1 + $0x118] sm:$0xff]   ;;  %vm3036_vm0 = vsmask.f32 256  ;;  %s6566_s29 = sadd.s32 4294967295, %s6211_s19 }
  0x31   : > { %7185 = vmatpush3.bf16.msra.mxu1 %v7427_v2  ;;  %v7435_v10 = vld [vmem:[%s9484_s1 + $0xe0] sm:$0xff]   ;;  %v7439_v13 = vld [vmem:[%s9484_s1 + $0x158] sm:$0xff]   ;;  %v7440_v15 = vld [vmem:[%s9484_s1 + $0x110] sm:$0xff]   ;;  %s7336_s23 = smul.u32 352, %s383_s30  ;;  %v528_v23 = vunpack.c.0.s8 %v527_v17  ;;  %vm3037_vm1 = vsmask.f32 1284 }
  0x32   : > { %7186 = vmatprep.subr.bf16.mxu1 %v7430_v5  ;;  %v7436_v11 = vld [vmem:[%s9484_s1 + $0x160] sm:$0xff]   ;;  %v7438_v14 = vld [vmem:[%s9484_s1 + $0xd8] sm:$0xff]   ;;  %v7442_v19 = vld [vmem:[%s9484_s1 + $0x150] sm:$0xff]   ;;  %vm3039_vm2 = vsmask.f32 2312  ;;  %s379_s18 = sand.u32 1, %s7777_s14  }
  0x33   : > { %6907 = vmatpush3.bf16.msra.mxu0 %v7429_v4  ;;  %v7441_v20 = vld [vmem:[%s9484_s1 + $0xd0] sm:$0xff]   ;;  %v7443_v21 = vld [vmem:[%s9484_s1 + $0x108] sm:$0xff]   ;;  %s386_s11 = scalar_lea.vmem %s9483_s0, %s7336_s23  ;;  %v7446_v26 = vld [vmem:[%s9484_s1 + $0x100] sm:$0xff]   ;;  %v8049_v29 = vsub.s32 %v528_v23, %v8032_v24  ;;  %vm3041_vm3 = vsmask.f32 3340  ;;  %s6209_s30 = sshll.u32 %s379_s18, 4 }
  0x34   : > { %6908 = vmatprep.subr.bf16.mxu0 %v7431_v6  ;;  %v7444_v22 = vld [vmem:[%s9484_s1 + $0xc8] sm:$0xff]   ;;  %s8040_s23 = scalar_lea.vmem %s386_s11, %s6878_s25  ;;  %v7448_v27 = vld [vmem:[%s9484_s1 + $0x140] sm:$0xff]   ;;  %v7456_v41 = vld [vmem:[%s9484_s1 + $0x78] sm:$0xff]   ;;  %vm3043_vm7 = vsmask.f32 4368  ;;  %s381_s25 = scalar_lea.vmem [#allocation6], %s6209_s30 }
  0x35   : > { %7187 = vmatpush3.bf16.msra.mxu1 %v7430_v5  ;;  %v7445_v25 = vld [vmem:[%s9484_s1 + $0x148] sm:$0xff]   ;;  %v7447_v28 = vld [vmem:[%s9484_s1 + $0xc0] sm:$0xff]   ;;  %v6265_v31 = vld [vmem:[%s8040_s23 + $0x34] sm:$0x1]  ;;  %vm3045_vm9 = vsmask.f32 5396 }
  0x36   : > { %7188 = vmatprep.subr.bf16.mxu1 %v7433_v8  ;;  %v6264_v30 = vld [vmem:[%s8040_s23 + $0x24] sm:$0xf]  ;;  %v6267_v33 = vld [vmem:[%s8040_s23 + $0x54] sm:$0x1]  ;;  %v6296_v36 = vcombine.low %v6265_v31, %v6265_v31  ;;  %v8081_v1 = vld [vmem:[%s9484_s1 + $0xb8] sm:$0xff]  }
  0x37   : > { %6909 = vmatpush3.bf16.msra.mxu0 %v7432_v7  ;;  %v6266_v32 = vld [vmem:[%s8040_s23 + $0x44] sm:$0xf]  ;;  %v6288_v34 = vcombine.low %v6264_v30, %v6265_v31  ;;  %v7452_v39 = vld [vmem:[%s8040_s23 + $0x14] ss:$8 sps:$4 sm:$0x11]   ;;  %v6299_v40 = vcombine.low %v6267_v33, %v6267_v33  ;;  %vm3038_vm4 = vmor %vm3036_vm0, %vm3037_vm1 }
  0x38   : > { %6910 = vmatprep.subr.bf16.mxu0 %v7434_v9  ;;  %v7451_v35 = vld [vmem:[%s8040_s23 + $0x4] ss:$8 sps:$4 sm:$0xff]   ;;  %v6289_v38 = vcombine.low %v6266_v32, %v6267_v33  ;;  %v1069_v44 = vrot.slane %v6296_v36, %v8049_v29  ;;  %v1055_v46 = vrot.slane %v7452_v39, %v8049_v29  ;;  %v6269_v56 = vld [vmem:[%s8040_s23 + $0x74] sm:$0x1]  ;;  %vm8284_vm5 = vmor %vm3038_vm4, %vm3039_vm2  ;;  %vm3047_vm11 = vsmask.f32 6424 }
  0x39   : > { %7189 = vmatpush3.bf16.msra.mxu1 %v7433_v8  ;;  %v7454_v37 = vld [vmem:[%s8040_s23 + $0x24] ss:$8 sps:$4 sm:$0xff]   ;;  %v1048_v42 = vrot.slane %v7451_v35, %v8049_v29  ;;  %v1062_v43 = vrot.slane %v6288_v34, %v8049_v29  ;;  %v1126_v58 = vrot.slane %v6299_v40, %v8049_v29  ;;  %v6271_v62 = vld [vmem:[%s8040_s23 + $0x94] sm:$0x1]  ;;  %v6302_v7 = vcombine.low %v6269_v56, %v6269_v56  ;;  %vm8305_vm6 = vmor %vm8284_vm5, %vm3041_vm3 }
  0x3a   : > { %7190 = vmatprep.subr.bf16.mxu1 %v7436_v11  ;;  %v1105_v45 = vrot.slane %v7454_v37, %v8049_v29  ;;  %v1119_v47 = vrot.slane %v6289_v38, %v8049_v29  ;;  %v1072_v50 = vcombine.low %v1055_v46, %v1069_v44  ;;  %v6268_v55 = vld [vmem:[%s8040_s23 + $0x64] sm:$0xf]  ;;  %v7460_v0 = vld [vmem:[%s8040_s23 + $0x34] ss:$8 sps:$4 sm:$0x11]   ;;  %vm8356_vm8 = vmor %vm8305_vm6, %vm3043_vm7 }
  0x3b   : > { %6911 = vmatpush3.bf16.msra.mxu0 %v7435_v10  ;;  %v1070_v48 = vcombine.low %v1048_v42, %v1062_v43  ;;  %v1071_v49 = vcombine.high %v1048_v42, %v1062_v43  ;;  %v6270_v57 = vld [vmem:[%s8040_s23 + $0x84] sm:$0xf]  ;;  %v6290_v63 = vcombine.low %v6268_v55, %v6269_v56  ;;  %v7462_v6 = vld [vmem:[%s8040_s23 + $0x54] ss:$8 sps:$4 sm:$0x11]   ;;  %v1183_v23 = vrot.slane %v6302_v7, %v8049_v29  ;;  %vm8378_vm10 = vmor %vm8356_vm8, %vm3045_vm9 }
  0x3c   : > { %6912 = vmatprep.subr.bf16.mxu0 %v7437_v12  ;;  %v1127_v51 = vcombine.low %v1105_v45, %v1119_v47  ;;  %v1128_v52 = vcombine.high %v1105_v45, %v1119_v47  ;;  %v1086_v59 = vrot.slane %v1072_v50, %v8049_v29  ;;  %v6291_v4 = vcombine.low %v6270_v57, %v6271_v62  ;;  %v7461_v5 = vld [vmem:[%s8040_s23 + $0x44] ss:$8 sps:$4 sm:$0xff]   ;;  %v7457_v45 = vld [vmem:[%s9484_s1 + $0x38] sm:$0xff]   ;;  %v7466_v50 = vld [vmem:[%s9484_s1 + $0x70] sm:$0xff]  }
  0x3d   : > { %7191 = vmatpush3.bf16.msra.mxu1 %v7436_v11  ;;  %v1079_v53 = vrot.slane %v1070_v48, %v8049_v29  ;;  %v1093_v54 = vrot.slane %v1071_v49, %v8049_v29  ;;  %v1112_v11 = vrot.slane %v7460_v0, %v8049_v29  ;;  %v7464_v12 = vld [vmem:[%s8040_s23 + $0x64] ss:$8 sps:$4 sm:$0xff]   ;;  %v1169_v16 = vrot.slane %v7462_v6, %v8049_v29  ;;  %vm8438_vm13 = vmor %vm8378_vm10, %vm3047_vm11 }
  0x3e   : > { %7192 = vmatprep.subr.bf16.mxu1 %v7439_v13  ;;  %v1136_v60 = vrot.slane %v1127_v51, %v8049_v29  ;;  %v1150_v61 = vrot.slane %v1128_v52, %v8049_v29  ;;  %v1233_v34 = vrot.slane %v6291_v4, %v8049_v29  ;;  %v6305_v42 = vcombine.low %v6271_v62, %v6271_v62 }
  0x3f   : > { %6913 = vmatpush3.bf16.msra.mxu0 %v7438_v14  ;;  %v1430_v2 = vcombine.low %v1079_v53, %v1093_v54  ;;  %v6360_v3 = vcombine.high %v1079_v53, %v1093_v54  ;;  %v1186_v33 = vcombine.low %v1169_v16, %v1183_v23  ;;  %v6275_v23 = vld [vmem:[%s8040_s23 + $0xd4] sm:$0x1]  ;;  %vm3049_vm12 = vsmask.f32 7452 }
  0x40   : > { %6914 = vmatprep.subr.bf16.mxu0 %v7440_v15  ;;  %v1151_v8 = vcombine.high %v1136_v60, %v1136_v60  ;;  %v1152_v9 = vcombine.high %v1150_v61, %v1150_v61  ;;  %v1432_v10 = vcombine.low %v1086_v59, %v1136_v60  ;;  %v1162_v15 = vrot.slane %v7461_v5, %v8049_v29  ;;  %v6272_v59 = vld [vmem:[%s8040_s23 + $0xa4] sm:$0xf]  ;;  %v6273_v60 = vld [vmem:[%s8040_s23 + $0xb4] sm:$0x1]  ;;  %vm8454_vm14 = vmor %vm8438_vm13, %vm3049_vm12 }
  0x41   : > { %7193 = vmatpush3.bf16.msra.mxu1 %v7439_v13  ;;  %v1440_v13 = vrot.slane %v1430_v2, %v8049_v29  ;;  %v1447_v14 = vrot.slane %v6360_v3, %v8049_v29  ;;  %v1200_v39 = vrot.slane %v1186_v33, %v8049_v29  ;;  %v1240_v51 = vrot.slane %v6305_v42, %v8049_v29  ;;  %v7467_v2 = vld [vmem:[%s9484_s1 + $0x30] sm:$0xff]   ;;  %v7470_v33 = vld [vmem:[%s9484_s1 + $0x28] sm:$0xff]  }
  0x42   : > { %7194 = vmatprep.subr.bf16.mxu1 %v7442_v19  ;;  %v1433_v17 = vcombine.low %v1150_v61, %v1151_v8  ;;  %v1454_v18 = vrot.slane %v1432_v10, %v8049_v29  ;;  %v6292_v4 = vcombine.low %v6272_v59, %v6273_v60  ;;  %v7476_v5 = vld [vmem:[%s8040_s23 + $0x74] ss:$8 sps:$4 sm:$0x11]   ;;  %v7469_v10 = vld [vmem:[%s9484_s1 + $0x68] sm:$0xff]   ;;  %vm4100_vm8 = vcmp.ge.s32.totalorder %v8032_v24, 1 }
  0x43   : > { %6915 = vmatpush3.bf16.msra.mxu0 %v7441_v20  ;;  %v1176_v20 = vrot.slane %v6290_v63, %v8049_v29  ;;  %v7478_v63 = vld [vmem:[%s8040_s23 + $0x84] ss:$8 sps:$4 sm:$0xff]  }
  0x44   : > { %6916 = vmatprep.subr.bf16.mxu0 %v7443_v21  ;;  %v1463_v21 = vcombine.high %v1440_v13, %v1447_v14  ;;  %v1276_v7 = vrot.slane %v7478_v63, %v8049_v29  ;;  %v7474_v63 = vld [vmem:[%s9484_s1 + $0xa0] sm:$0xff]  }
  0x45   : > { %7195 = vmatpush3.bf16.msra.mxu1 %v7442_v19  ;;  %v1129_v19 = vcombine.low %v1112_v11, %v1126_v58  ;;  %v1185_v30 = vcombine.high %v1162_v15, %v1176_v20  ;;  %v1226_v11 = vrot.slane %v7476_v5, %v8049_v29 }
  0x46   : > { %7196 = vmatprep.subr.bf16.mxu1 %v7445_v25  ;;  %v1479_v31 = vrot.slane %v1463_v21, %v8049_v29 }
  0x47   : > { %6917 = vmatpush3.bf16.msra.mxu0 %v7444_v22  ;;  %v1462_v22 = vcombine.low %v1440_v13, %v1447_v14  ;;  %v1207_v38 = vrot.slane %v1185_v30, %v8049_v29  ;;  %v1290_v13 = vrot.slane %v6292_v4, %v8049_v29  ;;  %v7482_v30 = vld [vmem:[%s8040_s23 + $0x94] ss:$8 sps:$4 sm:$0x11]  }
  0x48   : > { %6918 = vmatprep.subr.bf16.mxu0 %v7446_v26  ;;  %v1461_v26 = vrot.slane %v1433_v17, %v8049_v29  ;;  %v6308_v17 = vcombine.low %v6273_v60, %v6273_v60  ;;  %v1283_v42 = vrot.slane %v7482_v30, %v8049_v29 }
  0x49   : > { %7197 = vmatpush3.bf16.msra.mxu1 %v7445_v25  ;;  %v1219_v25 = vrot.slane %v7464_v12, %v8049_v29  ;;  %v1472_v32 = vrot.slane %v1462_v22, %v8049_v29  ;;  %v6274_v22 = vld [vmem:[%s8040_s23 + $0xc4] sm:$0xf] }
  0x4a   : > { %7198 = vmatprep.subr.bf16.mxu1 %v7448_v27  ;;  %v1465_v35 = vcombine.high %v1454_v18, %v1461_v26  ;;  %v1464_v36 = vcombine.low %v1454_v18, %v1461_v26  ;;  %v1243_v18 = vcombine.low %v1226_v11, %v1240_v51  ;;  %v7468_v26 = vld [vmem:[%s9484_s1 + $0xb0] sm:$0xff]   ;;  %v7471_v51 = vld [vmem:[%s9484_s1 + $0xa8] sm:$0xff]  }
  0x4b   : > { %6919 = vmatpush3.bf16.msra.mxu0 %v7447_v28  ;;  %v1184_v28 = vcombine.low %v1162_v15, %v1176_v20  ;;  %v1241_v40 = vcombine.low %v1219_v25, %v1233_v34  ;;  %v1242_v52 = vcombine.high %v1219_v25, %v1233_v34  ;;  %v1299_v20 = vcombine.high %v1276_v7, %v1290_v13 }
  0x4c   : > { %6956 = vmatprep.subr.bf16.mxu0 %v7456_v41  ;;  %v1493_v43 = vrot.slane %v1465_v35, %v8049_v29  ;;  %v1486_v44 = vrot.slane %v1464_v36, %v8049_v29  ;;  %v1257_v34 = vrot.slane %v1243_v18, %v8049_v29 }
  0x4d   : > { %7199 = vmatpush3.bf16.msra.mxu1 %v7448_v27  ;;  %v1143_v27 = vrot.slane %v1129_v19, %v8049_v29  ;;  %v1193_v37 = vrot.slane %v1184_v28, %v8049_v29  ;;  %v1250_v48 = vrot.slane %v1241_v40, %v8049_v29  ;;  %v1264_v61 = vrot.slane %v1242_v52, %v8049_v29 }
  0x4e   : > { %7208 = vmatprep.subr.bf16.mxu1 %v8081_v1  ;;  %v1496_v53 = vcombine.low %v1479_v31, %v1493_v43  ;;  %v1494_v54 = vcombine.low %v1472_v32, %v1486_v44  ;;  %v1495_v55 = vcombine.high %v1472_v32, %v1486_v44  ;;  %v1298_v19 = vcombine.low %v1276_v7, %v1290_v13  ;;  %v7484_v32 = vld [vmem:[%s8040_s23 + $0xa4] ss:$8 sps:$4 sm:$0xff]  }
  0x4f   : > { %v1497_v41 = vcombine.low %v1152_v9, %v1143_v27  ;;  %v1498_v46 = vcombine.low %v1193_v37, %v1207_v38  ;;  %v6361_v47 = vcombine.high %v1193_v37, %v1207_v38  ;;  %v1500_v57 = vcombine.low %v1200_v39, %v1250_v48  ;;  %v7485_v37 = vld [vmem:[%s8040_s23 + $0xb4] ss:$8 sps:$4 sm:$0x11]   ;;  %v7472_v43 = vld [vmem:[%s9484_s1 + $0x60] sm:$0xff]  }
  0x50   : > { %v1265_v62 = vcombine.high %v1250_v48, %v1250_v48  ;;  %1877 = vmatprep.mubr.bf16.mxu0 %v1496_v53  ;;  %7200 = vmatprep.mubr.bf16.mxu1 %v1495_v55  ;;  %v1266_v12 = vcombine.high %v1264_v61, %v1264_v61  ;;  %v6293_v28 = vcombine.low %v6274_v22, %v6275_v23  ;;  %v7473_v55 = vld [vmem:[%s9484_s1 + $0x20] sm:$0xff]  }
  0x51   : > { %v1507_v49 = vrot.slane %v1497_v41, %v8049_v29  ;;  %v1514_v56 = vrot.slane %v1498_v46, %v8049_v29  ;;  %v1521_v58 = vrot.slane %v6361_v47, %v8049_v29  ;;  %1878 = vmatmul.mubr.bf16.vlgmr.msra.gmra.mxu0 %v1494_v54  ;;  %v1528_v6 = vrot.slane %v1500_v57, %v8049_v29 }
  0x52   : > { %v1564_v8 = vcombine.low %v1264_v61, %v1265_v62  ;;  %6957 = vmatpush3.bf16.msra.mxu0 %v7457_v45  ;;  %v1297_v31 = vrot.slane %v6308_v17, %v8049_v29  ;;  %v1307_v35 = vrot.slane %v1298_v19, %v8049_v29  ;;  %v1321_v36 = vrot.slane %v1299_v20, %v8049_v29  ;;  %v7479_v62 = vld [vmem:[%s9484_s1 + $0x58] sm:$0xff]  }
  0x53   : > { %v1529_v0 = vcombine.low %v1507_v49, %v1514_v56  ;;  %v1530_v3 = vcombine.high %v1507_v49, %v1514_v56  ;;  %v1531_v14 = vcombine.low %v1521_v58, %v1528_v6  ;;  %6958 = vmatprep.subr.bf16.mxu0 %v7466_v50  ;;  %v1532_v15 = vcombine.high %v1521_v58, %v1528_v6  ;;  %v7487_v19 = vld [vmem:[%s9484_s1 + $0x98] sm:$0xff]  }
  0x54   : > { %v1574_v21 = vrot.slane %v1564_v8, %v8049_v29  ;;  %v6311_v38 = vcombine.low %v6275_v23, %v6275_v23  ;;  %v1565_v44 = vcombine.low %v1266_v12, %v1257_v34  ;;  %v1566_v45 = vcombine.low %v1307_v35, %v1321_v36  ;;  %v7480_v8 = vld [vmem:[%s9484_s1 + $0x18] sm:$0xff]   ;;  %v7488_v12 = vld [vmem:[%s9484_s1 + $0x50] sm:$0xff]  }
  0x55   : > { %v1539_v9 = vrot.slane %v1529_v0, %v8049_v29  ;;  %v1546_v16 = vrot.slane %v1530_v3, %v8049_v29  ;;  %v1553_v25 = vrot.slane %v1531_v14, %v8049_v29  ;;  %v1560_v27 = vrot.slane %v1532_v15, %v8049_v29 }
  0x56   : > { %6959 = vmatpush3.bf16.msra.mxu0 %v7467_v2  ;;  %v6362_v46 = vcombine.high %v1307_v35, %v1321_v36  ;;  %v1333_v47 = vrot.slane %v7484_v32, %v8049_v29  ;;  %v1300_v48 = vcombine.low %v1283_v42, %v1297_v31  ;;  %v1340_v49 = vrot.slane %v7485_v37, %v8049_v29  ;;  %v7499_v32 = vld [vmem:[%s8040_s23] ss:$8 sps:$4 sm:$0xff]   ;;  %v7490_v37 = vld [vmem:[%s9484_s1 + $0x90] sm:$0xff]  }
  0x57   : > { %v1562_v39 = vcombine.high %v1539_v9, %v1553_v25  ;;  %v1563_v40 = vcombine.low %v1546_v16, %v1560_v27  ;;  %v1561_v41 = vcombine.low %v1539_v9, %v1553_v25  ;;  %6960 = vmatprep.subr.bf16.mxu0 %v7469_v10  ;;  %v1347_v50 = vrot.slane %v6293_v28, %v8049_v29  ;;  %v6217_v25 = vld [vmem:[%s8040_s23 + $0x30] sm:$0x1] }
  0x58   : > { %v1581_v52 = vrot.slane %v1565_v44, %v8049_v29  ;;  %v1588_v53 = vrot.slane %v1566_v45, %v8049_v29  ;;  %v1595_v54 = vrot.slane %v6362_v46, %v8049_v29  ;;  %v1314_v56 = vrot.slane %v1300_v48, %v8049_v29  ;;  %v6219_v27 = vld [vmem:[%s8040_s23 + $0x50] sm:$0x1] }
  0x59   : > { %7201 = vmatmul.mubr.bf16.vlgmr.msra.gmra.mxu1 %v1562_v39  ;;  %1885 = vmatprep.mubr.bf16.mxu0 %v1563_v40  ;;  %v1355_v57 = vcombine.low %v1333_v47, %v1347_v50  ;;  %v1356_v0 = vcombine.high %v1333_v47, %v1347_v50  ;;  %v7489_v28 = vld [vmem:[%s9484_s1 + $0x10] sm:$0xff]   ;;  %v6248_v34 = vcombine.low %v6217_v25, %v6217_v25  ;;  %v7491_v39 = vld [vmem:[%s9484_s1 + $0x48] sm:$0xff]  }
  0x5a   : > { %7209 = vmatpush3.bf16.msra.mxu1 %v8081_v1  ;;  %1886 = vmatmul.mubr.bf16.gmra.mxu0 %v1561_v41  ;;  %v1354_v1 = vrot.slane %v6311_v38, %v8049_v29  ;;  %v1597_v58 = vcombine.high %v1574_v21, %v1581_v52  ;;  %v1599_v59 = vcombine.high %v1588_v53, %v1595_v54  ;;  %v7502_v40 = vld [vmem:[%s8040_s23 + $0x20] ss:$8 sps:$4 sm:$0xff]   ;;  %v7503_v41 = vld [vmem:[%s8040_s23 + $0x30] ss:$8 sps:$4 sm:$0x11]  }
  0x5b   : > { %7210 = vmatprep.subr.bf16.mxu1 %v7468_v26  ;;  %6961 = vmatpush3.bf16.msra.mxu0 %v7470_v33  ;;  %v1596_v60 = vcombine.low %v1574_v21, %v1581_v52  ;;  %v1598_v61 = vcombine.low %v1588_v53, %v1595_v54  ;;  %v1364_v3 = vrot.slane %v1355_v57, %v8049_v29  ;;  %v6216_v21 = vld [vmem:[%s8040_s23 + $0x20] sm:$0xf]  ;;  %v7500_v33 = vld [vmem:[%s8040_s23 + $0x10] ss:$8 sps:$4 sm:$0x11]  }
  0x5c   : > { %6962 = vmatprep.subr.bf16.mxu0 %v7472_v43  ;;  %v1357_v2 = vcombine.low %v1340_v49, %v1354_v1  ;;  %v1613_v4 = vrot.slane %v1597_v58, %v8049_v29  ;;  %v1627_v5 = vrot.slane %v1599_v59, %v8049_v29  ;;  %v1378_v10 = vrot.slane %v1356_v0, %v8049_v29  ;;  %v7492_v43 = vld [vmem:[%s9484_s1 + $0x8] sm:$0xff]   ;;  %v7494_v52 = vld [vmem:[%s9484_s1 + $0x40] sm:$0xff]  }
  0x5d   : > { %v1606_v6 = vrot.slane %v1596_v60, %v8049_v29  ;;  %v1620_v7 = vrot.slane %v1598_v61, %v8049_v29  ;;  %v1379_v11 = vcombine.high %v1364_v3, %v1364_v3  ;;  %v1631_v16 = vcombine.low %v1314_v56, %v1364_v3  ;;  %v7493_v59 = vld [vmem:[%s9484_s1 + $0x88] sm:$0xff]   ;;  %v6221_v3 = vld [vmem:[%s8040_s23 + $0x70] sm:$0x1] }
  0x5e   : > { %7211 = vmatpush3.bf16.msra.mxu1 %v7468_v26  ;;  %v1371_v9 = vrot.slane %v1357_v2, %v8049_v29  ;;  %v1630_v13 = vcombine.low %v1613_v4, %v1627_v5  ;;  %v1380_v17 = vcombine.high %v1378_v10, %v1378_v10  ;;  %v6218_v26 = vld [vmem:[%s8040_s23 + $0x40] sm:$0xf]  ;;  %v6240_v30 = vcombine.low %v6216_v21, %v6217_v25 }
  0x5f   : > { %7212 = vmatprep.subr.bf16.mxu1 %v7471_v51  ;;  %6963 = vmatpush3.bf16.msra.mxu0 %v7473_v55  ;;  %v1628_v14 = vcombine.low %v1606_v6, %v1620_v7  ;;  %v1629_v15 = vcombine.high %v1606_v6, %v1620_v7  ;;  %v1632_v18 = vcombine.low %v1378_v10, %v1379_v11  ;;  %v6220_v2 = vld [vmem:[%s8040_s23 + $0x60] sm:$0xf]  ;;  %v8241_v7 = vld [vmem:[%s8040_s23 + $0x90] sm:$0x1] }
  0x60   : > { %6964 = vmatprep.subr.bf16.mxu0 %v7479_v62  ;;  %1893 = vmatprep.mubr.bf16.mxu0 %v1630_v13  ;;  %v1640_v20 = vrot.slane %v1631_v16, %v8049_v29  ;;  %v1633_v22 = vcombine.low %v1380_v17, %v1371_v9  ;;  %v6241_v31 = vcombine.low %v6218_v26, %v6219_v27  ;;  %v6222_v6 = vld [vmem:[%s8040_s23 + $0x80] sm:$0xf]  ;;  %v7511_v16 = vld [vmem:[%s8040_s23 + $0x50] ss:$8 sps:$4 sm:$0x11]  }
  0x61   : > { %v1647_v23 = vrot.slane %v1632_v18, %v8049_v29  ;;  %7204 = vmatprep.mubr.bf16.mxu1 %v1629_v15  ;;  %v6251_v42 = vcombine.low %v6219_v27, %v6219_v27  ;;  %v532_v44 = vrot.slane %v7499_v32, %v8049_v29  ;;  %v539_v45 = vrot.slane %v7500_v33, %v8049_v29  ;;  %v7510_v9 = vld [vmem:[%s8040_s23 + $0x40] ss:$8 sps:$4 sm:$0xff]   ;;  %v7505_v15 = vld [vmem:[%s9484_s1 + $0x1f8] sm:$0xff]  }
  0x62   : > { %7213 = vmatpush3.bf16.msra.mxu1 %v7471_v51  ;;  %1894 = vmatmul.mubr.bf16.gmra.mxu0 %v1628_v14  ;;  %v1654_v35 = vrot.slane %v1633_v22, %v8049_v29  ;;  %v546_v46 = vrot.slane %v6240_v30, %v8049_v29  ;;  %v553_v47 = vrot.slane %v6248_v34, %v8049_v29  ;;  %v7495_v10 = vld [vmem:[%s9484_s1] sm:$0xff]  }
  0x63   : > { %7214 = vmatprep.subr.bf16.mxu1 %v7474_v63  ;;  %6965 = vmatpush3.bf16.msra.mxu0 %v7480_v8  ;;  %v1655_v36 = vcombine.low %v1640_v20, %v1647_v23  ;;  %v1656_v38 = vcombine.high %v1640_v20, %v1647_v23  ;;  %v589_v56 = vrot.slane %v7502_v40, %v8049_v29  ;;  %v7513_v23 = vld [vmem:[%s8040_s23 + $0x60] ss:$8 sps:$4 sm:$0xff]  }
  0x64   : > { %6966 = vmatprep.subr.bf16.mxu0 %v7488_v12  ;;  %v1678_v49 = vrot.slane %v1654_v35, %v8049_v29  ;;  %v1657_v50 = vcombine.high %v1654_v35, %v1654_v35  ;;  %v554_v53 = vcombine.low %v532_v44, %v546_v46  ;;  %v555_v54 = vcombine.high %v532_v44, %v546_v46  ;;  %v7496_v25 = vld [vmem:[%s9484_s1 + $0x80] sm:$0xff]  }
  0x65   : > { %v1664_v48 = vrot.slane %v1655_v36, %v8049_v29  ;;  %v1671_v51 = vrot.slane %v1656_v38, %v8049_v29  ;;  %v556_v55 = vcombine.low %v539_v45, %v553_v47  ;;  %v596_v60 = vrot.slane %v7503_v41, %v8049_v29 }
  0x66   : > { %7215 = vmatpush3.bf16.msra.mxu1 %v7474_v63  ;;  %v1685_v57 = vrot.slane %v1657_v50, %v8049_v29  ;;  %v563_v61 = vrot.slane %v554_v53, %v8049_v29  ;;  %v577_v63 = vrot.slane %v555_v54, %v8049_v29  ;;  %v603_v0 = vrot.slane %v6241_v31, %v8049_v29 }
  0x67   : > { %7216 = vmatprep.subr.bf16.mxu1 %v7487_v19  ;;  %6967 = vmatpush3.bf16.msra.mxu0 %v7489_v28  ;;  %v1687_v1 = vcombine.high %v1664_v48, %v1678_v49  ;;  %v1686_v58 = vcombine.low %v1664_v48, %v1678_v49  ;;  %v570_v62 = vrot.slane %v556_v55, %v8049_v29 }
  0x68   : > { %6968 = vmatprep.subr.bf16.mxu0 %v7491_v39  ;;  %v1688_v4 = vcombine.low %v1671_v51, %v1685_v57  ;;  %v610_v5 = vrot.slane %v6251_v42, %v8049_v29  ;;  %v6242_v8 = vcombine.low %v6220_v2, %v6221_v3  ;;  %v611_v11 = vcombine.low %v589_v56, %v603_v0 }
  0x69   : > { %7205 = vmatmul.mubr.bf16.gmra.mxu1 %v1687_v1  ;;  %v612_v12 = vcombine.high %v589_v56, %v603_v0  ;;  %v1975_v13 = vcombine.low %v563_v61, %v577_v63  ;;  %v6387_v14 = vcombine.high %v563_v61, %v577_v63  ;;  %v6243_v18 = vcombine.low %v6222_v6, %v8241_v7  ;;  %v6224_v61 = vld [vmem:[%s8040_s23 + $0xa0] sm:$0xf]  ;;  %v7524_v6 = vld [vmem:[%s8040_s23 + $0x70] ss:$8 sps:$4 sm:$0x11]  }
  0x6a   : > { %7217 = vmatpush3.bf16.msra.mxu1 %v7487_v19  ;;  %1901 = vmatprep.mubr.bf16.mxu0 %v1688_v4  ;;  %v613_v17 = vcombine.low %v596_v60, %v610_v5  ;;  %v6254_v19 = vcombine.low %v6221_v3, %v6221_v3  ;;  %v620_v20 = vrot.slane %v611_v11, %v8049_v29  ;;  %v7526_v0 = vld [vmem:[%s8040_s23 + $0x80] ss:$8 sps:$4 sm:$0xff]  }
  0x6b   : > { %7218 = vmatprep.subr.bf16.mxu1 %v7490_v37  ;;  %6969 = vmatpush3.bf16.msra.mxu0 %v7492_v43  ;;  %v634_v21 = vrot.slane %v612_v12, %v8049_v29  ;;  %v1985_v22 = vrot.slane %v1975_v13, %v8049_v29  ;;  %v1992_v27 = vrot.slane %v6387_v14, %v8049_v29  ;;  %v8272_v43 = vld [vmem:[%s9484_s1 + $0x238] sm:$0xff]  }
  0x6c   : > { %6970 = vmatprep.subr.bf16.mxu0 %v7494_v52  ;;  %1902 = vmatmul.mubr.bf16.gmra.mxu0 %v1686_v58  ;;  %v627_v26 = vrot.slane %v613_v17, %v8049_v29  ;;  %v646_v28 = vrot.slane %v7510_v9, %v8049_v29  ;;  %v653_v30 = vrot.slane %v7511_v16, %v8049_v29  ;;  %v7506_v14 = vld [vmem:[%s9484_s1 + $0x1b8] sm:$0xff]  }
  0x6d   : > { %v635_v31 = vcombine.high %v620_v20, %v620_v20  ;;  %v636_v32 = vcombine.high %v634_v21, %v634_v21  ;;  %v1977_v33 = vcombine.low %v570_v62, %v620_v20  ;;  %v660_v34 = vrot.slane %v6242_v8, %v8049_v29  ;;  %v6225_v62 = vld [vmem:[%s8040_s23 + $0xb0] sm:$0x1] }
  0x6e   : > { %7219 = vmatpush3.bf16.msra.mxu1 %v7490_v37  ;;  %v2007_v35 = vcombine.low %v1985_v22, %v1992_v27  ;;  %v2008_v36 = vcombine.high %v1985_v22, %v1992_v27  ;;  %v667_v37 = vrot.slane %v6254_v19, %v8049_v29  ;;  %v703_v41 = vrot.slane %v7513_v23, %v8049_v29 }
  0x6f   : > { %7220 = vmatprep.subr.bf16.mxu1 %v7493_v59  ;;  %6971 = vmatpush3.bf16.msra.mxu0 %v7495_v10  ;;  %v1978_v38 = vcombine.low %v634_v21, %v635_v31  ;;  %v1999_v39 = vrot.slane %v1977_v33, %v8049_v29  ;;  %v668_v40 = vcombine.low %v646_v28, %v660_v34  ;;  %v6226_v31 = vld [vmem:[%s8040_s23 + $0xc0] sm:$0xf] }
  0x70   : > { %7008 = vmatprep.subr.bf16.mxu0 %v7505_v15  ;;  %v2042_v42 = vcombine.low %v636_v32, %v627_v26  ;;  %v669_v44 = vcombine.high %v646_v28, %v660_v34  ;;  %v670_v45 = vcombine.low %v653_v30, %v667_v37  ;;  %v2024_v47 = vrot.slane %v2008_v36, %v8049_v29  ;;  %v6227_v32 = vld [vmem:[%s8040_s23 + $0xd0] sm:$0x1] }
  0x71   : > { %v2006_v46 = vrot.slane %v1978_v38, %v8049_v29  ;;  %v677_v48 = vrot.slane %v668_v40, %v8049_v29  ;;  %v717_v49 = vrot.slane %v6243_v18, %v8049_v29  ;;  %v2017_v50 = vrot.slane %v2007_v35, %v8049_v29  ;;  %v7514_v18 = vld [vmem:[%s9484_s1 + $0x1f0] sm:$0xff]   ;;  %v7517_v40 = vld [vmem:[%s9484_s1 + $0x1e8] sm:$0xff]  }
  0x72   : > { %7221 = vmatpush3.bf16.msra.mxu1 %v7493_v59  ;;  %v684_v51 = vrot.slane %v670_v45, %v8049_v29  ;;  %v691_v52 = vrot.slane %v669_v44, %v8049_v29  ;;  %v6257_v53 = vcombine.low %v8241_v7, %v8241_v7  ;;  %v2052_v60 = vrot.slane %v2042_v42, %v8049_v29  ;;  %v7515_v34 = vld [vmem:[%s9484_s1 + $0x1b0] sm:$0xff]  }
  0x73   : > { %7222 = vmatprep.subr.bf16.mxu1 %v7496_v25  ;;  %v2009_v55 = vcombine.low %v1999_v39, %v2006_v46  ;;  %v2010_v56 = vcombine.high %v1999_v39, %v2006_v46  ;;  %v725_v1 = vcombine.low %v703_v41, %v717_v49  ;;  %v726_v57 = vcombine.high %v703_v41, %v717_v49  ;;  %v7531_v38 = vld [vmem:[%s8040_s23 + $0x90] ss:$8 sps:$4 sm:$0x11]   ;;  %v7533_v39 = vld [vmem:[%s8040_s23 + $0xa0] ss:$8 sps:$4 sm:$0xff]  }
  0x74   : > { %v2043_v58 = vcombine.low %v677_v48, %v691_v52  ;;  %v6388_v59 = vcombine.high %v677_v48, %v691_v52  ;;  %v724_v63 = vrot.slane %v6257_v53, %v8049_v29  ;;  %v6244_v5 = vcombine.low %v6224_v61, %v6225_v62  ;;  %v7534_v46 = vld [vmem:[%s8040_s23 + $0xb0] ss:$8 sps:$4 sm:$0x11]  }
  0x75   : > { %v2038_v2 = vrot.slane %v2010_v56, %v8049_v29  ;;  %v2031_v3 = vrot.slane %v2009_v55, %v8049_v29  ;;  %v734_v4 = vrot.slane %v725_v1, %v8049_v29  ;;  %v748_v9 = vrot.slane %v726_v57, %v8049_v29 }
  0x76   : > { %7223 = vmatpush3.bf16.msra.mxu1 %v7496_v25  ;;  %v2059_v7 = vrot.slane %v2043_v58, %v8049_v29  ;;  %v2066_v8 = vrot.slane %v6388_v59, %v8049_v29  ;;  %v760_v10 = vrot.slane %v7526_v0, %v8049_v29  ;;  %v710_v20 = vrot.slane %v7524_v6, %v8049_v29  ;;  %v7518_v58 = vld [vmem:[%s9484_s1 + $0x1a8] sm:$0xff]  }
  0x77   : > { %7232 = vmatprep.subr.bf16.mxu1 %v8272_v43  ;;  %v2041_v12 = vcombine.low %v2024_v47, %v2038_v2  ;;  %v2039_v13 = vcombine.low %v2017_v50, %v2031_v3  ;;  %v2040_v15 = vcombine.high %v2017_v50, %v2031_v3  ;;  %v2045_v16 = vcombine.low %v684_v51, %v734_v4  ;;  %v7516_v51 = vld [vmem:[%s9484_s1 + $0x230] sm:$0xff]   ;;  %v7519_v6 = vld [vmem:[%s9484_s1 + $0x228] sm:$0xff]  }
  0x78   : > { %v2074_v17 = vcombine.low %v2052_v60, %v2059_v7  ;;  %v2075_v19 = vcombine.high %v2052_v60, %v2059_v7  ;;  %v749_v21 = vcombine.high %v734_v4, %v734_v4  ;;  %v750_v23 = vcombine.high %v748_v9, %v748_v9  ;;  %v7520_v60 = vld [vmem:[%s9484_s1 + $0x1e0] sm:$0xff]  }
  0x79   : > { %2422 = vmatprep.mubr.bf16.mxu0 %v2041_v12  ;;  %7224 = vmatprep.mubr.bf16.mxu1 %v2040_v15  ;;  %v2073_v22 = vrot.slane %v2045_v16, %v8049_v29  ;;  %v774_v25 = vrot.slane %v6244_v5, %v8049_v29  ;;  %v727_v28 = vcombine.low %v710_v20, %v724_v63 }
  0x7a   : > { %2423 = vmatmul.mubr.bf16.vlgmr.msra.gmra.mxu0 %v2039_v13  ;;  %v2084_v26 = vrot.slane %v2074_v17, %v8049_v29  ;;  %v2091_v27 = vrot.slane %v2075_v19, %v8049_v29  ;;  %v2109_v30 = vcombine.low %v748_v9, %v749_v21  ;;  %v6245_v44 = vcombine.low %v6226_v31, %v6227_v32  ;;  %v7527_v17 = vld [vmem:[%s9484_s1 + $0x1d8] sm:$0xff]   ;;  %v7522_v19 = vld [vmem:[%s9484_s1 + $0x220] sm:$0xff]  }
  0x7b   : > { %7009 = vmatpush3.bf16.msra.mxu0 %v7506_v14  ;;  %v2076_v33 = vcombine.low %v2066_v8, %v2073_v22  ;;  %v2077_v35 = vcombine.high %v2066_v8, %v2073_v22  ;;  %v782_v36 = vcombine.low %v760_v10, %v774_v25  ;;  %v783_v37 = vcombine.high %v760_v10, %v774_v25  ;;  %v7521_v10 = vld [vmem:[%s9484_s1 + $0x1a0] sm:$0xff]  }
  0x7c   : > { %7010 = vmatprep.subr.bf16.mxu0 %v7514_v18  ;;  %v741_v41 = vrot.slane %v727_v28, %v8049_v29  ;;  %v2119_v42 = vrot.slane %v2109_v30, %v8049_v29  ;;  %v6260_v45 = vcombine.low %v6225_v62, %v6225_v62  ;;  %v767_v53 = vrot.slane %v7531_v38, %v8049_v29  ;;  %v6414_v31 = vld [vmem:[%s8040_s23 + $0x20] sm:$0xf]  ;;  %v6417_v38 = vld [vmem:[%s8040_s23 + $0x50] sm:$0x3] }
  0x7d   : > { %v2098_v47 = vrot.slane %v2076_v33, %v8049_v29  ;;  %v2105_v48 = vrot.slane %v2077_v35, %v8049_v29  ;;  %v791_v49 = vrot.slane %v782_v36, %v8049_v29  ;;  %v805_v50 = vrot.slane %v783_v37, %v8049_v29  ;;  %v8396_v33 = vld [vmem:[%s8040_s23 + $0x40] sm:$0xf] }
  0x7e   : > { %v2110_v52 = vcombine.low %v750_v23, %v741_v41  ;;  %v781_v54 = vrot.slane %v6260_v45, %v8049_v29  ;;  %v6263_v55 = vcombine.low %v6227_v32, %v6227_v32  ;;  %v817_v0 = vrot.slane %v7533_v39, %v8049_v29  ;;  %v6415_v32 = vld [vmem:[%s8040_s23 + $0x30] sm:$0x3]  ;;  %v7547_v39 = vld [vmem:[%s8040_s23] ss:$8 sps:$4 sm:$0xff]  }
  0x7f   : > { %v2107_v56 = vcombine.high %v2084_v26, %v2098_v47  ;;  %7011 = vmatpush3.bf16.msra.mxu0 %v7515_v34  ;;  %v2108_v1 = vcombine.low %v2091_v27, %v2105_v48  ;;  %v2106_v57 = vcombine.low %v2084_v26, %v2098_v47  ;;  %v2111_v59 = vcombine.low %v791_v49, %v805_v50  ;;  %v7528_v26 = vld [vmem:[%s9484_s1 + $0x198] sm:$0xff]  }
  0x80   : > { %7012 = vmatprep.subr.bf16.mxu0 %v7517_v40  ;;  %v6389_v61 = vcombine.high %v791_v49, %v805_v50  ;;  %v2126_v62 = vrot.slane %v2110_v52, %v8049_v29  ;;  %v784_v63 = vcombine.low %v767_v53, %v781_v54  ;;  %v824_v3 = vrot.slane %v7534_v46, %v8049_v29  ;;  %v7550_v40 = vld [vmem:[%s8040_s23 + $0x20] ss:$8 sps:$4 sm:$0xff]   ;;  %v7548_v47 = vld [vmem:[%s8040_s23 + $0x10] ss:$8 sps:$4 sm:$0x33]  }
  0x81   : > { %7225 = vmatmul.mubr.bf16.vlgmr.msra.gmra.mxu1 %v2107_v56  ;;  %2430 = vmatprep.mubr.bf16.mxu0 %v2108_v1  ;;  %v2133_v2 = vrot.slane %v2111_v59, %v8049_v29  ;;  %v831_v4 = vrot.slane %v6245_v44, %v8049_v29  ;;  %v838_v12 = vrot.slane %v6263_v55, %v8049_v29  ;;  %v7536_v44 = vld [vmem:[%s9484_s1 + $0x1d0] sm:$0xff]   ;;  %v7529_v48 = vld [vmem:[%s9484_s1 + $0x218] sm:$0xff]  }
  0x82   : > { %7233 = vmatpush3.bf16.msra.mxu1 %v8272_v43  ;;  %2431 = vmatmul.mubr.bf16.gmra.mxu0 %v2106_v57  ;;  %v2140_v7 = vrot.slane %v6389_v61, %v8049_v29  ;;  %v2142_v8 = vcombine.high %v2119_v42, %v2126_v62  ;;  %v2141_v9 = vcombine.low %v2119_v42, %v2126_v62  ;;  %v7537_v55 = vld [vmem:[%s9484_s1 + $0x190] sm:$0xff]   ;;  %v7539_v61 = vld [vmem:[%s9484_s1 + $0x1c8] sm:$0xff]  }
  0x83   : > { %7234 = vmatprep.subr.bf16.mxu1 %v7516_v51  ;;  %7013 = vmatpush3.bf16.msra.mxu0 %v7518_v58  ;;  %v798_v11 = vrot.slane %v784_v63, %v8049_v29  ;;  %v839_v43 = vcombine.low %v817_v0, %v831_v4  ;;  %v840_v20 = vcombine.high %v817_v0, %v831_v4  ;;  %v7538_v63 = vld [vmem:[%s9484_s1 + $0x210] sm:$0xff]  }
  0x84   : > { %7014 = vmatprep.subr.bf16.mxu0 %v7520_v60  ;;  %v2144_v13 = vcombine.high %v2133_v2, %v2140_v7  ;;  %v2158_v14 = vrot.slane %v2142_v8, %v8049_v29  ;;  %v2143_v15 = vcombine.low %v2133_v2, %v2140_v7  ;;  %v2151_v16 = vrot.slane %v2141_v9, %v8049_v29  ;;  %v7540_v9 = vld [vmem:[%s9484_s1 + $0x188] sm:$0xff]  }
  0x85   : > { %v841_v21 = vcombine.low %v824_v3, %v838_v12  ;;  %v848_v22 = vrot.slane %v839_v43, %v8049_v29  ;;  %v862_v28 = vrot.slane %v840_v20, %v8049_v29  ;;  %v6438_v45 = vcombine.low %v6414_v31, %v6415_v32 }
  0x86   : > { %7235 = vmatpush3.bf16.msra.mxu1 %v7516_v51  ;;  %v2172_v23 = vrot.slane %v2144_v13, %v8049_v29  ;;  %v2165_v25 = vrot.slane %v2143_v15, %v8049_v29  ;;  %v6439_v46 = vcombine.low %v8396_v33, %v6417_v38  ;;  %v6446_v50 = vcombine.low %v6415_v32, %v6415_v32 }
  0x87   : > { %7236 = vmatprep.subr.bf16.mxu1 %v7519_v6  ;;  %7015 = vmatpush3.bf16.msra.mxu0 %v7521_v10  ;;  %v855_v27 = vrot.slane %v841_v21, %v8049_v29  ;;  %v863_v30 = vcombine.high %v848_v22, %v848_v22  ;;  %v2176_v37 = vcombine.low %v798_v11, %v848_v22  ;;  %v7542_v10 = vld [vmem:[%s9484_s1 + $0x1c0] sm:$0xff]  }
  0x88   : > { %v2175_v34 = vcombine.low %v2158_v14, %v2172_v23  ;;  %v2173_v35 = vcombine.low %v2151_v16, %v2165_v25  ;;  %7016 = vmatprep.subr.bf16.mxu0 %v7527_v17  ;;  %v2174_v36 = vcombine.high %v2151_v16, %v2165_v25  ;;  %v864_v41 = vcombine.high %v862_v28, %v862_v28 }
  0x89   : > { %v2177_v42 = vcombine.low %v862_v28, %v863_v30  ;;  %v2185_v49 = vrot.slane %v2176_v37, %v8049_v29  ;;  %v2655_v51 = vrot.slane %v7547_v39, %v8049_v29  ;;  %v2662_v54 = vrot.slane %v7548_v47, %v8049_v29  ;;  %v7554_v47 = vld [vmem:[%s8040_s23 + $0x30] ss:$8 sps:$4 sm:$0x33]  }
  0x8a   : > { %7237 = vmatpush3.bf16.msra.mxu1 %v7519_v6  ;;  %2438 = vmatprep.mubr.bf16.mxu0 %v2175_v34  ;;  %v2178_v52 = vcombine.low %v864_v41, %v855_v27  ;;  %v2669_v56 = vrot.slane %v6438_v45, %v8049_v29  ;;  %v2676_v1 = vrot.slane %v6446_v50, %v8049_v29  ;;  %v7543_v27 = vld [vmem:[%s9484_s1 + $0x180] sm:$0xff]  }
  0x8b   : > { %7238 = vmatprep.subr.bf16.mxu1 %v7522_v19  ;;  %2439 = vmatmul.mubr.bf16.gmra.mxu0 %v2173_v35  ;;  %v2192_v53 = vrot.slane %v2177_v42, %v8049_v29  ;;  %v6449_v57 = vcombine.low %v6417_v38, %v6417_v38  ;;  %v2720_v62 = vrot.slane %v7550_v40, %v8049_v29  ;;  %v6418_v45 = vld [vmem:[%s8040_s23 + $0x60] sm:$0xf] }
  0x8c   : > { %7017 = vmatpush3.bf16.msra.mxu0 %v7528_v26  ;;  %7228 = vmatprep.mubr.bf16.mxu1 %v2174_v36  ;;  %v2199_v58 = vrot.slane %v2178_v52, %v8049_v29  ;;  %v2677_v0 = vcombine.low %v2655_v51, %v2669_v56  ;;  %v2678_v2 = vcombine.high %v2655_v51, %v2669_v56  ;;  %v7541_v26 = vld [vmem:[%s9484_s1 + $0x208] sm:$0xff]  }
  0x8d   : > { %v2200_v59 = vcombine.low %v2185_v49, %v2192_v53  ;;  %7018 = vmatprep.subr.bf16.mxu0 %v7536_v44  ;;  %v2201_v60 = vcombine.high %v2185_v49, %v2192_v53  ;;  %v2679_v3 = vcombine.low %v2662_v54, %v2676_v1  ;;  %v2680_v4 = vcombine.high %v2662_v54, %v2676_v1  ;;  %v6420_v53 = vld [vmem:[%s8040_s23 + $0x80] sm:$0xf]  ;;  %v8482_v54 = vld [vmem:[%s8040_s23 + $0x90] sm:$0x3] }
  0x8e   : > { %7239 = vmatpush3.bf16.msra.mxu1 %v7522_v19  ;;  %v2223_v6 = vrot.slane %v2199_v58, %v8049_v29  ;;  %v2202_v7 = vcombine.high %v2199_v58, %v2199_v58  ;;  %v2687_v12 = vrot.slane %v2677_v0, %v8049_v29  ;;  %v2701_v13 = vrot.slane %v2678_v2, %v8049_v29  ;;  %v7558_v0 = vld [vmem:[%s8040_s23 + $0x60] ss:$8 sps:$4 sm:$0xff]  }
  0x8f   : > { %7240 = vmatprep.subr.bf16.mxu1 %v7529_v48  ;;  %v2209_v5 = vrot.slane %v2200_v59, %v8049_v29  ;;  %v2216_v8 = vrot.slane %v2201_v60, %v8049_v29  ;;  %v2694_v43 = vrot.slane %v2679_v3, %v8049_v29  ;;  %v2708_v14 = vrot.slane %v2680_v4, %v8049_v29  ;;  %v7555_v59 = vld [vmem:[%s8040_s23 + $0x40] ss:$8 sps:$4 sm:$0xff]  }
  0x90   : > { %7019 = vmatpush3.bf16.msra.mxu0 %v7537_v55  ;;  %v2230_v16 = vrot.slane %v2202_v7, %v8049_v29  ;;  %v2734_v18 = vrot.slane %v6439_v46, %v8049_v29  ;;  %v2709_v19 = vcombine.high %v2687_v12, %v2687_v12  ;;  %v2710_v20 = vcombine.high %v2701_v13, %v2701_v13  ;;  %v6419_v46 = vld [vmem:[%s8040_s23 + $0x70] sm:$0x3] }
  0x91   : > { %v2232_v15 = vcombine.high %v2209_v5, %v2223_v6  ;;  %v2231_v17 = vcombine.low %v2209_v5, %v2223_v6  ;;  %7020 = vmatprep.subr.bf16.mxu0 %v7539_v61  ;;  %v8449_v21 = vrot.slane %v6449_v57, %v8049_v29  ;;  %v3052_v23 = vshrl.u32 %v2687_v12, 16  ;;  %v7556_v55 = vld [vmem:[%s8040_s23 + $0x50] ss:$8 sps:$4 sm:$0x33]  }
  0x92   : > { %7241 = vmatpush3.bf16.msra.mxu1 %v7529_v48  ;;  %v2233_v25 = vcombine.low %v2216_v8, %v2230_v16  ;;  %v2742_v28 = vcombine.low %v2720_v62, %v2734_v18  ;;  %v2743_v30 = vcombine.high %v2720_v62, %v2734_v18  ;;  %v3057_v31 = vshll.u32 %v2701_v13, 16  ;;  %v7544_v48 = vld [vmem:[%s9484_s1 + $0x200] sm:$0xff]  }
  0x93   : > { %7229 = vmatmul.mubr.bf16.gmra.mxu1 %v2232_v15  ;;  %7242 = vmatprep.subr.bf16.mxu1 %v7538_v63  ;;  %v3060_v32 = vshrl.u32 %v2701_v13, 16  ;;  %v3065_v33 = vshll.u32 %v2709_v19, 16  ;;  %v3068_v34 = vshrl.u32 %v2709_v19, 16  ;;  %v3073_v35 = vshll.u32 %v2710_v20, 16 }
  0x94   : > { %7021 = vmatpush3.bf16.msra.mxu0 %v7540_v9  ;;  %2446 = vmatprep.mubr.bf16.mxu0 %v2233_v25  ;;  %v2752_v36 = vrot.slane %v2742_v28, %v8049_v29  ;;  %v2766_v37 = vrot.slane %v2743_v30, %v8049_v29  ;;  %v3059_v38 = vsel %vm8454_vm14, %v3052_v23, %v3057_v31  ;;  %v3076_v39 = vshrl.u32 %v2710_v20, 16 }
  0x95   : > { %7022 = vmatprep.subr.bf16.mxu0 %v7542_v10  ;;  %2447 = vmatmul.mubr.bf16.gmra.mxu0 %v2231_v17  ;;  %v3067_v40 = vsel %vm8454_vm14, %v3060_v32, %v3065_v33  ;;  %v3075_v41 = vsel %vm8454_vm14, %v3068_v34, %v3073_v35  ;;  %v3081_v42 = vshll.u32 %v2694_v43, 16  ;;  %v3084_v44 = vshrl.u32 %v2694_v43, 16 }
  0x96   : > { %7243 = vmatpush3.bf16.msra.mxu1 %v7538_v63  ;;  %v2774_v49 = vcombine.high %v2752_v36, %v2752_v36  ;;  %v8478_v50 = vcombine.high %v2766_v37, %v2766_v37  ;;  %v3089_v51 = vshll.u32 %v2708_v14, 16  ;;  %v3093_v52 = vshrl.u32 %v2752_v36, 16 }
  0x97   : > { %7244 = vmatprep.subr.bf16.mxu1 %v7541_v26  ;;  %v3083_v56 = vsel %vm8454_vm14, %v3076_v39, %v3081_v42  ;;  %v3098_v1 = vshll.u32 %v2766_v37, 16  ;;  %v3101_v57 = vshrl.u32 %v2766_v37, 16  ;;  %v3346_v58 = vcombine.low %v3059_v38, %v3067_v40 }
  0x98   : > { %7023 = vmatpush3.bf16.msra.mxu0 %v7543_v27  ;;  %v3091_v60 = vsel %vm8454_vm14, %v3084_v44, %v3089_v51  ;;  %v3106_v61 = vshll.u32 %v2774_v49, 16  ;;  %v3109_v62 = vshrl.u32 %v2774_v49, 16  ;;  %v3114_v63 = vshll.u32 %v8478_v50, 16 }
  0x99   : > { %v3100_v2 = vsel %vm8454_vm14, %v3093_v52, %v3098_v1  ;;  %v3117_v3 = vshrl.u32 %v8478_v50, 16  ;;  %v3347_v4 = vcombine.low %v3075_v41, %v3083_v56  ;;  %v3356_v5 = vrot.slane %v3346_v58, %v8049_v29 }
  0x9a   : > { %7245 = vmatpush3.bf16.msra.mxu1 %v7541_v26  ;;  %v3108_v6 = vsel %vm8454_vm14, %v3101_v57, %v3106_v61  ;;  %v3116_v7 = vsel %vm8454_vm14, %v3109_v62, %v3114_v63  ;;  %v3348_v8 = vcombine.low %v3091_v60, %v3100_v2  ;;  %v6440_v9 = vcombine.low %v6418_v45, %v6419_v46  ;;  %v6422_v61 = vld [vmem:[%s8040_s23 + $0xa0] sm:$0xf]  ;;  %v6423_v62 = vld [vmem:[%s8040_s23 + $0xb0] sm:$0x3] }
  0x9b   : > { %7246 = vmatprep.subr.bf16.mxu1 %v7544_v48  ;;  %v3349_v10 = vcombine.low %v3108_v6, %v3116_v7  ;;  %v3363_v11 = vrot.slane %v3347_v4, %v8049_v29  ;;  %v6441_v12 = vcombine.low %v6420_v53, %v8482_v54  ;;  %v2727_v43 = vrot.slane %v7554_v47, %v8049_v29  ;;  %v7560_v63 = vld [vmem:[%s8040_s23 + $0x70] ss:$8 sps:$4 sm:$0x33]  }
  0x9c   : > { %v3370_v13 = vrot.slane %v3348_v8, %v8049_v29  ;;  %v6452_v14 = vcombine.low %v6419_v46, %v6419_v46  ;;  %v2785_v15 = vrot.slane %v7555_v59, %v8049_v29  ;;  %v2792_v16 = vrot.slane %v7556_v55, %v8049_v29 }
  0x9d   : > { %v3377_v17 = vrot.slane %v3349_v10, %v8049_v29  ;;  %v3378_v18 = vcombine.low %v3356_v5, %v3363_v11  ;;  %v3379_v19 = vcombine.high %v3356_v5, %v3363_v11  ;;  %v2744_v20 = vcombine.low %v2727_v43, %v8449_v21 }
  0x9e   : > { %7247 = vmatpush3.bf16.msra.mxu1 %v7544_v48  ;;  %v2745_v23 = vcombine.high %v2727_v43, %v8449_v21  ;;  %v2799_v25 = vrot.slane %v6440_v9, %v8049_v29  ;;  %v2806_v26 = vrot.slane %v6452_v14, %v8049_v29  ;;  %v2850_v27 = vrot.slane %v7558_v0, %v8049_v29  ;;  %v7562_v9 = vld [vmem:[%s8040_s23 + $0x80] ss:$8 sps:$4 sm:$0xff]  }
  0x9f   : > { %v3380_v28 = vcombine.low %v3370_v13, %v3377_v17  ;;  %v3381_v30 = vcombine.high %v3370_v13, %v3377_v17  ;;  %v3395_v31 = vrot.slane %v3379_v19, %v8049_v29  ;;  %v3388_v32 = vrot.slane %v3378_v18, %v8049_v29  ;;  %v7563_v13 = vld [vmem:[%s8040_s23 + $0x90] ss:$8 sps:$4 sm:$0x33]  }
  0xa0   : > { %v2759_v33 = vrot.slane %v2744_v20, %v8049_v29  ;;  %v2773_v34 = vrot.slane %v2745_v23, %v8049_v29  ;;  %v2807_v35 = vcombine.low %v2785_v15, %v2799_v25  ;;  %v2808_v36 = vcombine.high %v2785_v15, %v2799_v25 }
  0xa1   : > { %v3409_v21 = vrot.slane %v3381_v30, %v8049_v29  ;;  %v3402_v37 = vrot.slane %v3380_v28, %v8049_v29  ;;  %v2809_v38 = vcombine.low %v2792_v16, %v2806_v26  ;;  %v2810_v39 = vcombine.high %v2792_v16, %v2806_v26 }
  0xa2   : > { %v2817_v40 = vrot.slane %v2807_v35, %v8049_v29  ;;  %v2831_v41 = vrot.slane %v2808_v36, %v8049_v29  ;;  %v2864_v42 = vrot.slane %v6441_v12, %v8049_v29  ;;  %v3122_v44 = vshll.u32 %v2759_v33, 16 }
  0xa3   : > { %v3412_v45 = vcombine.low %v3395_v31, %v3409_v21  ;;  %v3410_v46 = vcombine.low %v3388_v32, %v3402_v37  ;;  %v3411_v47 = vcombine.high %v3388_v32, %v3402_v37  ;;  %v2824_v48 = vrot.slane %v2809_v38, %v8049_v29 }
  0xa4   : > { %v2838_v49 = vrot.slane %v2810_v39, %v8049_v29  ;;  %v2839_v50 = vcombine.high %v2817_v40, %v2817_v40  ;;  %v2840_v51 = vcombine.high %v2831_v41, %v2831_v41  ;;  %v2872_v52 = vcombine.low %v2850_v27, %v2864_v42 }
  0xa5   : > { %3793 = vmatprep.mubr.bf16.mxu0 %v3412_v45  ;;  %7248 = vmatprep.mubr.bf16.mxu1 %v3411_v47  ;;  %v2873_v53 = vcombine.high %v2850_v27, %v2864_v42  ;;  %v3124_v55 = vsel %vm8454_vm14, %v3117_v3, %v3122_v44  ;;  %v3125_v56 = vshrl.u32 %v2759_v33, 16  ;;  %v3130_v1 = vshll.u32 %v2773_v34, 16 }
  0xa6   : > { %3794 = vmatmul.mubr.bf16.vlgmr.msra.gmra.mxu0 %v3410_v46  ;;  %v2882_v57 = vrot.slane %v2872_v52, %v8049_v29  ;;  %v3134_v58 = vshrl.u32 %v2817_v40, 16  ;;  %v3139_v59 = vshll.u32 %v2831_v41, 16  ;;  %v3142_v60 = vshrl.u32 %v2831_v41, 16 }
  0xa7   : > { %v8530_v0 = vrot.slane %v2873_v53, %v8049_v29  ;;  %v3132_v2 = vsel %vm8454_vm14, %v3125_v56, %v3130_v1  ;;  %v3147_v3 = vshll.u32 %v2839_v50, 16  ;;  %v3150_v4 = vshrl.u32 %v2839_v50, 16 }
  0xa8   : > { %v3141_v5 = vsel %vm8454_vm14, %v3134_v58, %v3139_v59  ;;  %v3155_v6 = vshll.u32 %v2840_v51, 16  ;;  %v3158_v7 = vshrl.u32 %v2840_v51, 16  ;;  %v3163_v8 = vshll.u32 %v2824_v48, 16 }
  0xa9   : > { %v3149_v10 = vsel %vm8454_vm14, %v3142_v60, %v3147_v3  ;;  %v3166_v11 = vshrl.u32 %v2824_v48, 16  ;;  %v3171_v12 = vshll.u32 %v2838_v49, 16  ;;  %v3175_v43 = vshrl.u32 %v2882_v57, 16 }
  0xaa   : > { %v3157_v14 = vsel %vm8454_vm14, %v3150_v4, %v3155_v6  ;;  %v3165_v15 = vsel %vm8454_vm14, %v3158_v7, %v3163_v8  ;;  %v3180_v16 = vshll.u32 %v8530_v0, 16  ;;  %v3413_v17 = vcombine.low %v3124_v55, %v3132_v2  ;;  %v6424_v6 = vld [vmem:[%s8040_s23 + $0xc0] sm:$0xf]  ;;  %v6425_v7 = vld [vmem:[%s8040_s23 + $0xd0] sm:$0x3] }
  0xab   : > { %v3173_v18 = vsel %vm8454_vm14, %v3166_v11, %v3171_v12  ;;  %v3414_v19 = vcombine.low %v3141_v5, %v3149_v10  ;;  %v3415_v20 = vcombine.low %v3157_v14, %v3165_v15  ;;  %v6442_v23 = vcombine.low %v6422_v61, %v6423_v62  ;;  %v7566_v15 = vld [vmem:[%s8040_s23 + $0xa0] ss:$8 sps:$4 sm:$0xff]  }
  0xac   : > { %v3182_v25 = vsel %vm8454_vm14, %v3175_v43, %v3180_v16  ;;  %v3423_v26 = vrot.slane %v3413_v17, %v8049_v29  ;;  %v6455_v27 = vcombine.low %v8482_v54, %v8482_v54  ;;  %v2857_v28 = vrot.slane %v7560_v63, %v8049_v29  ;;  %v7567_v16 = vld [vmem:[%s8040_s23 + $0xb0] ss:$8 sps:$4 sm:$0x33]  }
  0xad   : > { %v3416_v30 = vcombine.low %v3173_v18, %v3182_v25  ;;  %v3430_v31 = vrot.slane %v3414_v19, %v8049_v29  ;;  %v3437_v32 = vrot.slane %v3415_v20, %v8049_v29  ;;  %v2904_v33 = vcombine.high %v2882_v57, %v2882_v57 }
  0xae   : > { %v2871_v34 = vrot.slane %v6455_v27, %v8049_v29  ;;  %v2905_v35 = vcombine.high %v8530_v0, %v8530_v0  ;;  %v6458_v36 = vcombine.low %v6423_v62, %v6423_v62  ;;  %v2915_v21 = vrot.slane %v7562_v9, %v8049_v29 }
  0xaf   : > { %v3444_v37 = vrot.slane %v3416_v30, %v8049_v29  ;;  %v3445_v38 = vcombine.low %v3423_v26, %v3430_v31  ;;  %v3446_v54 = vcombine.high %v3423_v26, %v3430_v31  ;;  %v8561_v39 = vrot.slane %v7563_v13, %v8049_v29 }
  0xb0   : > { %v2874_v40 = vcombine.low %v2857_v28, %v2871_v34  ;;  %v2875_v41 = vcombine.high %v2857_v28, %v2871_v34  ;;  %v2929_v42 = vrot.slane %v6442_v23, %v8049_v29  ;;  %v2936_v44 = vrot.slane %v6458_v36, %v8049_v29 }
  0xb1   : > { %v3447_v45 = vcombine.low %v3437_v32, %v3444_v37  ;;  %v3455_v46 = vrot.slane %v3445_v38, %v8049_v29  ;;  %v3448_v47 = vcombine.high %v3437_v32, %v3444_v37  ;;  %v3462_v48 = vrot.slane %v3446_v54, %v8049_v29 }
  0xb2   : > { %v2889_v49 = vrot.slane %v2874_v40, %v8049_v29  ;;  %v2903_v50 = vrot.slane %v2875_v41, %v8049_v29  ;;  %v2937_v51 = vcombine.low %v2915_v21, %v2929_v42  ;;  %v2938_v52 = vcombine.high %v2915_v21, %v2929_v42 }
  0xb3   : > { %v3469_v53 = vrot.slane %v3447_v45, %v8049_v29  ;;  %v3476_v55 = vrot.slane %v3448_v47, %v8049_v29  ;;  %v2939_v56 = vcombine.low %v8561_v39, %v2936_v44  ;;  %v3183_v1 = vshrl.u32 %v8530_v0, 16 }
  0xb4   : > { %v2947_v57 = vrot.slane %v2937_v51, %v8049_v29  ;;  %v2961_v58 = vrot.slane %v2938_v52, %v8049_v29  ;;  %v3188_v59 = vshll.u32 %v2904_v33, 16  ;;  %v3191_v60 = vshrl.u32 %v2904_v33, 16 }
  0xb5   : > { %v3478_v61 = vcombine.high %v3455_v46, %v3469_v53  ;;  %v3479_v62 = vcombine.low %v3462_v48, %v3476_v55  ;;  %v3477_v63 = vcombine.low %v3455_v46, %v3469_v53  ;;  %v8576_v2 = vrot.slane %v2939_v56, %v8049_v29 }
  0xb6   : > { %v2969_v3 = vcombine.high %v2947_v57, %v2947_v57  ;;  %v2970_v4 = vcombine.high %v2961_v58, %v2961_v58  ;;  %v3190_v5 = vsel %vm8454_vm14, %v3183_v1, %v3188_v59  ;;  %v3196_v0 = vshll.u32 %v2905_v35, 16 }
  0xb7   : > { %7249 = vmatmul.mubr.bf16.vlgmr.msra.gmra.mxu1 %v3478_v61  ;;  %3801 = vmatprep.mubr.bf16.mxu0 %v3479_v62  ;;  %v3199_v8 = vshrl.u32 %v2905_v35, 16  ;;  %v3204_v9 = vshll.u32 %v2889_v49, 16  ;;  %v3207_v10 = vshrl.u32 %v2889_v49, 16  ;;  %v3212_v11 = vshll.u32 %v2903_v50, 16 }
  0xb8   : > { %3802 = vmatmul.mubr.bf16.gmra.mxu0 %v3477_v63  ;;  %v3198_v12 = vsel %vm8454_vm14, %v3191_v60, %v3196_v0  ;;  %v3216_v43 = vshrl.u32 %v2947_v57, 16  ;;  %v3221_v13 = vshll.u32 %v2961_v58, 16  ;;  %v3224_v14 = vshrl.u32 %v2961_v58, 16 }
  0xb9   : > { %v3206_v17 = vsel %vm8454_vm14, %v3199_v8, %v3204_v9  ;;  %v3214_v18 = vsel %vm8454_vm14, %v3207_v10, %v3212_v11  ;;  %v3229_v19 = vshll.u32 %v2969_v3, 16  ;;  %v3232_v20 = vshrl.u32 %v2969_v3, 16 }
  0xba   : > { %v3223_v23 = vsel %vm8454_vm14, %v3216_v43, %v3221_v13  ;;  %v3237_v25 = vshll.u32 %v2970_v4, 16  ;;  %v3240_v26 = vshrl.u32 %v2970_v4, 16  ;;  %v3245_v27 = vshll.u32 %v8576_v2, 16 }
  0xbb   : > { %v3231_v28 = vsel %vm8454_vm14, %v3224_v14, %v3229_v19  ;;  %v3480_v30 = vcombine.low %v3190_v5, %v3198_v12  ;;  %v3481_v31 = vcombine.low %v3206_v17, %v3214_v18  ;;  %v6443_v32 = vcombine.low %v6424_v6, %v6425_v7 }
  0xbc   : > { %v3239_v33 = vsel %vm8454_vm14, %v3232_v20, %v3237_v25  ;;  %v3247_v34 = vsel %vm8454_vm14, %v3240_v26, %v3245_v27  ;;  %v3482_v35 = vcombine.low %v3223_v23, %v3231_v28  ;;  %v2940_v36 = vcombine.high %v8561_v39, %v2936_v44 }
  0xbd   : > { %v3483_v21 = vcombine.low %v3239_v33, %v3247_v34  ;;  %v3490_v37 = vrot.slane %v3480_v30, %v8049_v29  ;;  %v3497_v38 = vrot.slane %v3481_v31, %v8049_v29  ;;  %v6461_v54 = vcombine.low %v6425_v7, %v6425_v7 }
  0xbe   : > { %v3504_v40 = vrot.slane %v3482_v35, %v8049_v29  ;;  %v2968_v41 = vrot.slane %v2940_v36, %v8049_v29  ;;  %v2980_v42 = vrot.slane %v7566_v15, %v8049_v29  ;;  %v2987_v45 = vrot.slane %v7567_v16, %v8049_v29 }
  0xbf   : > { %v3511_v46 = vrot.slane %v3483_v21, %v8049_v29  ;;  %v3513_v47 = vcombine.high %v3490_v37, %v3497_v38  ;;  %v3512_v48 = vcombine.low %v3490_v37, %v3497_v38  ;;  %v2994_v39 = vrot.slane %v6443_v32, %v8049_v29 }
  0xc0   : > { %v3001_v44 = vrot.slane %v6461_v54, %v8049_v29  ;;  %v3248_v49 = vshrl.u32 %v8576_v2, 16  ;;  %v3253_v50 = vshll.u32 %v2968_v41, 16 }
  0xc1   : > { %v3515_v51 = vcombine.high %v3504_v40, %v3511_v46  ;;  %v3529_v52 = vrot.slane %v3513_v47, %v8049_v29  ;;  %v3514_v53 = vcombine.low %v3504_v40, %v3511_v46  ;;  %v3522_v55 = vrot.slane %v3512_v48, %v8049_v29 }
  0xc2   : > { %v3002_v56 = vcombine.low %v2980_v42, %v2994_v39  ;;  %v3003_v1 = vcombine.high %v2980_v42, %v2994_v39  ;;  %v3004_v57 = vcombine.low %v2987_v45, %v3001_v44  ;;  %v3005_v58 = vcombine.high %v2987_v45, %v3001_v44 }
  0xc3   : > { %v3543_v59 = vrot.slane %v3515_v51, %v8049_v29  ;;  %v3536_v60 = vrot.slane %v3514_v53, %v8049_v29  ;;  %v3255_v0 = vsel %vm8454_vm14, %v3248_v49, %v3253_v50  ;;  %v7569_v50 = vld [vmem:[%s9487_s4 + $0x138] sm:$0xff]  }
  0xc4   : > { %v3012_v61 = vrot.slane %v3002_v56, %v8049_v29  ;;  %v3019_v62 = vrot.slane %v3004_v57, %v8049_v29  ;;  %v3026_v63 = vrot.slane %v3003_v1, %v8049_v29  ;;  %v3033_v2 = vrot.slane %v3005_v58, %v8049_v29  ;;  %v7570_v51 = vld [vmem:[%s9487_s4 + $0xf8] sm:$0xff]   ;;  %7060 = vmatprep.subr.bf16.mxu0 %v7569_v50  ;;  %v7571_v56 = vld [vmem:[%s9487_s4 + $0x130] sm:$0xff]  }
  0xc5   : > { %v3546_v3 = vcombine.low %v3529_v52, %v3543_v59  ;;  %v3544_v4 = vcombine.low %v3522_v55, %v3536_v60  ;;  %v3545_v5 = vcombine.high %v3522_v55, %v3536_v60  ;;  %7061 = vmatpush3.bf16.msra.mxu0 %v7570_v51  ;;  %v7572_v1 = vld [vmem:[%s9487_s4 + $0xf0] sm:$0xff]   ;;  %v7573_v59 = vld [vmem:[%s9487_s4 + $0x128] sm:$0xff]  }
  0xc6   : > { %v3034_v6 = vcombine.high %v3012_v61, %v3012_v61  ;;  %v3035_v7 = vcombine.high %v3026_v63, %v3026_v63  ;;  %v3257_v8 = vshrl.u32 %v3012_v61, 16  ;;  %v3262_v9 = vshll.u32 %v3026_v63, 16  ;;  %7062 = vmatprep.subr.bf16.mxu0 %v7571_v56  ;;  %v7574_v60 = vld [vmem:[%s9487_s4 + $0xe8] sm:$0xff]  }
  0xc7   : > { %3809 = vmatprep.mubr.bf16.mxu0 %v3546_v3  ;;  %7252 = vmatprep.mubr.bf16.mxu1 %v3545_v5  ;;  %v3265_v10 = vshrl.u32 %v3026_v63, 16  ;;  %v3286_v11 = vshll.u32 %v3019_v62, 16  ;;  %v3289_v12 = vshrl.u32 %v3019_v62, 16  ;;  %v3294_v43 = vshll.u32 %v3033_v2, 16  ;;  %v7575_v62 = vld [vmem:[%s9487_s4 + $0x120] sm:$0xff]   ;;  %v7577_v3 = vld [vmem:[%s9487_s4 + $0x178] sm:$0xff]  }
  0xc8   : > { %3810 = vmatmul.mubr.bf16.gmra.mxu0 %v3544_v4  ;;  %v3264_v13 = vsel %vm8454_vm14, %v3257_v8, %v3262_v9  ;;  %v3270_v14 = vshll.u32 %v3034_v6, 16  ;;  %v3273_v15 = vshrl.u32 %v3034_v6, 16  ;;  %v3278_v16 = vshll.u32 %v3035_v7, 16  ;;  %v7576_v2 = vld [vmem:[%s9487_s4 + $0xe0] sm:$0xff]   ;;  %7256 = vmatprep.subr.bf16.mxu1 %v7577_v3  ;;  %v7580_v8 = vld [vmem:[%s9487_s4 + $0x170] sm:$0xff]  }
  0xc9   : > { %v3281_v17 = vshrl.u32 %v3035_v7, 16  ;;  %v3296_v18 = vsel %vm8454_vm14, %v3289_v12, %v3294_v43  ;;  %v3547_v19 = vcombine.low %v3255_v0, %v3264_v13  ;;  %7063 = vmatpush3.bf16.msra.mxu0 %v7572_v1  ;;  %7257 = vmatpush3.bf16.msra.mxu1 %v7577_v3  ;;  %v7578_v0 = vld [vmem:[%s9487_s4 + $0x118] sm:$0xff]   ;;  %v7583_v12 = vld [vmem:[%s9487_s4 + $0x168] sm:$0xff]  }
  0xca   : > { %v3272_v20 = vsel %vm8454_vm14, %v3265_v10, %v3270_v14  ;;  %v3280_v23 = vsel %vm8454_vm14, %v3273_v15, %v3278_v16  ;;  %7064 = vmatprep.subr.bf16.mxu0 %v7573_v59  ;;  %v7579_v7 = vld [vmem:[%s9487_s4 + $0xd8] sm:$0xff]   ;;  %7258 = vmatprep.subr.bf16.mxu1 %v7580_v8  ;;  %v7581_v10 = vld [vmem:[%s9487_s4 + $0x110] sm:$0xff]   ;;  %v7584_v43 = vld [vmem:[%s9487_s4 + $0x108] sm:$0xff]  }
  0xcb   : > { %v3288_v25 = vsel %vm8454_vm14, %v3281_v17, %v3286_v11  ;;  %v3548_v26 = vcombine.low %v3272_v20, %v3280_v23  ;;  %v3556_v27 = vrot.slane %v3547_v19, %v8049_v29  ;;  %v7582_v11 = vld [vmem:[%s9487_s4 + $0xd0] sm:$0xff]   ;;  %v7585_v13 = vld [vmem:[%s9487_s4 + $0xc8] sm:$0xff]   ;;  %v7586_v14 = vld [vmem:[%s9487_s4 + $0x160] sm:$0xff]  }
  0xcc   : > { %v3549_v28 = vcombine.low %v3288_v25, %v3296_v18  ;;  %v7587_v15 = vld [vmem:[%s9487_s4 + $0x100] sm:$0xff]   ;;  %v7589_v17 = vld [vmem:[%s9487_s4 + $0x158] sm:$0xff]   ;;  %v7595_v23 = vld [vmem:[%s9487_s4 + $0x150] sm:$0xff]  }
  0xcd   : > { %v3563_v30 = vrot.slane %v3548_v26, %v8049_v29  ;;  %7065 = vmatpush3.bf16.msra.mxu0 %v7574_v60  ;;  %7259 = vmatpush3.bf16.msra.mxu1 %v7580_v8  ;;  %v7588_v18 = vld [vmem:[%s9487_s4 + $0xc0] sm:$0xff]   ;;  %v7594_v20 = vld [vmem:[%s9487_s4 + $0x78] sm:$0xff]  }
  0xce   : > { %v3570_v31 = vrot.slane %v3549_v28, %v8049_v29  ;;  %7066 = vmatprep.subr.bf16.mxu0 %v7575_v62  ;;  %7260 = vmatprep.subr.bf16.mxu1 %v7583_v12 }
  0xcf   : > { %v3571_v32 = vcombine.low %v3556_v27, %v3563_v30  ;;  %v3572_v33 = vcombine.high %v3556_v27, %v3563_v30 }
  0xd0   : > { %v3594_v34 = vrot.slane %v3570_v31, %v8049_v29  ;;  %v3573_v35 = vcombine.high %v3570_v31, %v3570_v31 }
  0xd1   : > { %v3580_v36 = vrot.slane %v3571_v32, %v8049_v29  ;;  %v3587_v21 = vrot.slane %v3572_v33, %v8049_v29  ;;  %7067 = vmatpush3.bf16.msra.mxu0 %v7576_v2  ;;  %7261 = vmatpush3.bf16.msra.mxu1 %v7583_v12  ;;  %v7602_v32 = vld [vmem:[%s9487_s4 + $0x148] sm:$0xff]  }
  0xd2   : > { %v3601_v22 = vrot.slane %v3573_v35, %v8049_v29  ;;  %7068 = vmatprep.subr.bf16.mxu0 %v7578_v0  ;;  %7262 = vmatprep.subr.bf16.mxu1 %v7586_v14 }
  0xd3   : > { %v3603_v37 = vcombine.high %v3580_v36, %v3594_v34  ;;  %v3602_v38 = vcombine.low %v3580_v36, %v3594_v34  ;;  %v7605_v34 = vld [vmem:[%s9487_s4 + $0x140] sm:$0xff]  }
  0xd4   : > { %v3604_v54 = vcombine.low %v3587_v21, %v3601_v22 }
  0xd5   : > { %7253 = vmatmul.mubr.bf16.gmra.mxu1 %v3603_v37  ;;  %7069 = vmatpush3.bf16.msra.mxu0 %v7579_v7 }
  0xd6   : > { %3817 = vmatprep.mubr.bf16.mxu0 %v3604_v54  ;;  %7070 = vmatprep.subr.bf16.mxu0 %v7581_v10 }
  0xd7   : > { %3818 = vmatmul.mubr.bf16.gmra.mxu0 %v3602_v38  ;;  %7263 = vmatpush3.bf16.msra.mxu1 %v7586_v14  ;;  %v8739_v38 = vld [vmem:[%s9487_s4 + $0xb8] sm:$0xff]  }
  0xd8   : > { %7264 = vmatprep.subr.bf16.mxu1 %v7589_v17 }
  0xd9   : > { %7071 = vmatpush3.bf16.msra.mxu0 %v7582_v11 }
  0xda   : > { %7072 = vmatprep.subr.bf16.mxu0 %v7584_v43 }
  0xdb   : > { %7265 = vmatpush3.bf16.msra.mxu1 %v7589_v17  ;;  %v7807_v17 = vmov 1983009808  }
  0xdc   : > { %7266 = vmatprep.subr.bf16.mxu1 %v7595_v23 }
  0xdd   : > { %7073 = vmatpush3.bf16.msra.mxu0 %v7585_v13 }
  0xde   : > { %7074 = vmatprep.subr.bf16.mxu0 %v7587_v15 }
  0xdf   : > { %7267 = vmatpush3.bf16.msra.mxu1 %v7595_v23 }
  0xe0   : > { %7268 = vmatprep.subr.bf16.mxu1 %v7602_v32 }
  0xe1   : > { %7075 = vmatpush3.bf16.msra.mxu0 %v7588_v18  ;;  %v3947_v18 = vunpack.c.l.s4 %v7807_v17 }
  0xe2   : > { %7098 = vmatprep.subr.bf16.mxu0 %v7594_v20 }
  0xe3   : > { %7269 = vmatpush3.bf16.msra.mxu1 %v7602_v32 }
  0xe4   : > { %7270 = vmatprep.subr.bf16.mxu1 %v7605_v34 }
  0xe7   : > { %7271 = vmatpush3.bf16.msra.mxu1 %v7605_v34 }
  0xe8   : > { %7276 = vmatprep.subr.bf16.mxu1 %v8739_v38 }
 0x111   : > { %v6920_v40 = vpop.f32.mrf.mxu0 }
 0x113   : > { %v6921_v41 = vpop.f32.mrf.mxu0 }
 0x114   : > { %v8637_v42 = vadd.f32 %v6921_v41, %v6920_v40 }
 0x115   : > { %v6923_v45 = vpop.f32.mrf.mxu0 }
 0x117   : > { %v6924_v46 = vpop.f32.mrf.mxu0 }
 0x118   : > { %v8639_v47 = vadd.f32 %v6924_v46, %v6923_v45 }
 0x119   : > { %v7202_v26 = vpop.f32.mrf.mxu1 }
 0x11a   : > { %v8641_v48 = vpop.f32.mrf.mxu0 }
 0x11b   : > { %v1944_v30 = vpop.f32.mrf.mxu1 }
 0x11c   : > { %v8643_v39 = vpop.f32.mrf.mxu0 }
 0x11d   : > { %v7203_v35 = vpop.f32.mrf.mxu1  ;;  %v6928_v0 = vadd.f32 %v8643_v39, %v8641_v48 }
 0x11e   : > { %v8645_v44 = vpop.f32.mrf.mxu0 }
 0x11f   : > { %v1947_v22 = vpop.f32.mrf.mxu1  ;;  %v1953_v13 = vadd.f32 %v7202_v26, %v6928_v0 }
 0x120   : > { %v8647_v29 = vpop.f32.mrf.mxu0 }
 0x121   : > { %v6931_v14 = vadd.f32 %v8647_v29, %v8645_v44  ;;  %v8780_v44 = vld [vmem:[%s9485_s2] ss:$0 sm:$0xff] }
 0x122   : > { %v6932_v49 = vpop.f32.mrf.mxu0 }
 0x123   : > { %v1956_v26 = vadd.f32 %v7203_v35, %v6931_v14 }
 0x124   : > { %v6933_v52 = vpop.f32.mrf.mxu0 }
 0x125   : > { %v8655_v53 = vadd.f32 %v6933_v52, %v6932_v49 }
 0x126   : > { %v6935_v55 = vpop.f32.mrf.mxu0 }
 0x128   : > { %v6936_v57 = vpop.f32.mrf.mxu0 }
 0x129   : > { %v8663_v58 = vadd.f32 %v6936_v57, %v6935_v55  ;;  %v8741_v54 = vpop.f32.mrf.mxu1 }
 0x12b   : > { %v8746_v41 = vpop.f32.mrf.mxu1 }
 0x12c   : > { %v6938_v61 = vpop.f32.mrf.mxu0 }
 0x12d   : > { %v8750_v46 = vpop.f32.mrf.mxu1 }
 0x12e   : > { %v6939_v63 = vpop.f32.mrf.mxu0 }
 0x12f   : > { %v8680_v4 = vadd.f32 %v6939_v63, %v6938_v61  ;;  %v8754_v50 = vpop.f32.mrf.mxu1 }
 0x130   : > { %v6941_v5 = vpop.f32.mrf.mxu0 }
 0x132   : > { %v6942_v6 = vpop.f32.mrf.mxu0 }
 0x133   : > { %v8691_v9 = vadd.f32 %v6942_v6, %v6941_v5  ;;  %v1945_v6 = vadd.f32 %v8637_v42, %v1944_v30 }
 0x13a   : > { %v6972_v16 = vpop.f32.mrf.mxu0 }
 0x13c   : > { %v6973_v19 = vpop.f32.mrf.mxu0 }
 0x13d   : > { %v6974_v5 = vadd.f32 %v6973_v19, %v6972_v16  ;;  %v1948_v16 = vadd.f32 %v8639_v47, %v1947_v22 }
 0x13e   : > { %v6975_v25 = vpop.f32.mrf.mxu0 }
 0x13f   : > { %v2425_v12 = vadd.f32 %v6974_v5, %v1945_v6 }
 0x140   : > { %v6976_v27 = vpop.f32.mrf.mxu0 }
 0x141   : > { %v7226_v51 = vpop.f32.mrf.mxu1  ;;  %v6977_v11 = vadd.f32 %v6976_v27, %v6975_v25 }
 0x142   : > { %v6978_v28 = vpop.f32.mrf.mxu0 }
 0x143   : > { %v2489_v55 = vpop.f32.mrf.mxu1  ;;  %v2428_v23 = vadd.f32 %v6977_v11, %v1948_v16 }
 0x144   : > { %v6979_v31 = vpop.f32.mrf.mxu0  ;;  %v2490_v20 = vadd.f32 %v2489_v55, %v2425_v12 }
 0x145   : > { %v7227_v1 = vpop.f32.mrf.mxu1  ;;  %v6980_v8 = vadd.f32 %v6979_v31, %v6978_v28  ;;  %v3948_v31 = vunpack.c.0.s8 %v3947_v18 }
 0x146   : > { %v6981_v33 = vpop.f32.mrf.mxu0 }
 0x147   : > { %v2492_v59 = vpop.f32.mrf.mxu1  ;;  %v2433_v42 = vadd.f32 %v6980_v8, %v1953_v13  ;;  %v8795_v8 = vsub.s32 %v3948_v31, %v8032_v24 }
 0x148   : > { %v6982_v36 = vpop.f32.mrf.mxu0  ;;  %v2493_v55 = vadd.f32 %v2492_v59, %v2428_v23 }
 0x149   : > { %v6983_v39 = vadd.f32 %v6982_v36, %v6981_v33  ;;  %v2498_v33 = vadd.f32 %v7226_v51, %v2433_v42  ;;  %v8787_v36 = vld [vmem:[%s9486_s3] ss:$0 sm:$0xff] }
 0x14b   : > { %v8732_v21 = vpop.f32.mrf.mxu0  ;;  %v2436_v34 = vadd.f32 %v6983_v39, %v1956_v26 }
 0x14d   : > { %v8734_v37 = vpop.f32.mrf.mxu0  ;;  %v2501_v12 = vadd.f32 %v7227_v1, %v2436_v34 }
 0x14f   : > { %v8744_v40 = vpop.f32.mrf.mxu0 }
 0x151   : > { %v8748_v45 = vpop.f32.mrf.mxu0 }
 0x153   : > { %v8762_v61 = vpop.f32.mrf.mxu1 }
 0x155   : > { %v8752_v49 = vpop.f32.mrf.mxu0  ;;  %v8764_v63 = vpop.f32.mrf.mxu1 }
 0x157   : > { %v8756_v52 = vpop.f32.mrf.mxu0  ;;  %v8766_v3 = vpop.f32.mrf.mxu1 }
 0x159   : > { %v8758_v56 = vpop.f32.mrf.mxu0  ;;  %v8771_v10 = vpop.f32.mrf.mxu1 }
 0x15b   : > { %v8760_v57 = vpop.f32.mrf.mxu0 }
 0x166   : > { %v7024_v60 = vpop.f32.mrf.mxu0 }
 0x168   : > { %v7025_v62 = vpop.f32.mrf.mxu0 }
 0x169   : > { %v7026_v43 = vadd.f32 %v7025_v62, %v7024_v60 }
 0x16a   : > { %v7027_v2 = vpop.f32.mrf.mxu0 }
 0x16c   : > { %v7028_v7 = vpop.f32.mrf.mxu0 }
 0x16d   : > { %v7029_v27 = vadd.f32 %v7028_v7, %v7027_v2  ;;  %v8790_v2 = vstv %s6566_s29  ;;  %s7808_s29 = smov [#allocation6]  }
 0x16e   : > { %v4074_v6 = vadd.s32 1, %v8790_v2  ;;  %vm4082_vm15 = vcmp.ge.s32.totalorder %v8790_v2, 0  ;;  %v4075_v16 = vadd.s32 2, %v8790_v2  ;;  %vm4088_vm0 = vcmp.lt.s32.totalorder %v8790_v2, 8  ;;  %s7709_s7 = sshll.u32 %s7808_s29, 4  ;;  %s7710_s7 = int_to_ptr.vmem [resolvable:$false] %s7709_s7 }
 0x16f   : > { %vm8813_vm4 = vmand %vm4082_vm15, %vm4088_vm0  ;;  %s7711_s21 = scalar_lea.vmem %s7710_s7, 512 }
 0x170   : > { %vm4083_vm1 = vcmp.ge.s32.totalorder %v4074_v6, 0  ;;  %vm4089_vm2 = vcmp.lt.s32.totalorder %v4074_v6, 8  ;;  %vm4084_vm5 = vcmp.ge.s32.totalorder %v4075_v16, 0  ;;  %vm4090_vm7 = vcmp.lt.s32.totalorder %v4075_v16, 8  ;;  %vm4102_vm12 = vmand %vm8813_vm4, %vm4100_vm8 }
 0x171   : > { %vm8819_vm6 = vmand %vm4083_vm1, %vm4089_vm2 }
 0x172   : > { %vm8845_vm11 = vmand %vm4084_vm5, %vm4090_vm7 }
 0x173   : > { %vm4104_vm14 = vmand %vm8819_vm6, %vm4100_vm8 }
 0x174   : > { %vm4106_vm15 = vmand %vm8845_vm11, %vm4100_vm8 }
 0x177   : > { %v7250_v15 = vpop.f32.mrf.mxu1 }
 0x178   : > { %v7030_v48 = vpop.f32.mrf.mxu0 }
 0x179   : > { %v3860_v19 = vpop.f32.mrf.mxu1 }
 0x17a   : > { %v3861_v25 = vadd.f32 %v7026_v43, %v3860_v19  ;;  %v7031_v28 = vpop.f32.mrf.mxu0  ;;  %v8798_v43 = vadd.s32 8, %v8032_v24 }
 0x17b   : > { %v7251_v47 = vpop.f32.mrf.mxu1  ;;  %v7032_v29 = vadd.f32 %v7031_v28, %v7030_v48 }
 0x17c   : > { %v3891_v30 = vadd.f32 %v3861_v25, %v2490_v20  ;;  %v7033_v32 = vpop.f32.mrf.mxu0  ;;  %vm4115_vm3 = vcmp.le.s32.totalorder %v8798_v43, 8 }
 0x17d   : > { %v3863_v35 = vpop.f32.mrf.mxu1  ;;  %v3869_v22 = vadd.f32 %v7250_v15, %v7032_v29  ;;  %vm8830_vm9 = vmand %vm8813_vm4, %vm4115_vm3 }
 0x17e   : > { %v3906_v60 = vmul.f32 %v8780_v44, %v3891_v30  ;;  %v3864_v62 = vadd.f32 %v7029_v27, %v3863_v35  ;;  %v7034_v5 = vpop.f32.mrf.mxu0  ;;  %vm4119_vm10 = vmand %vm8819_vm6, %vm4115_vm3 }
 0x17f   : > { %v3893_v0 = vadd.f32 %v3869_v22, %v2498_v33  ;;  %v7035_v7 = vadd.f32 %v7034_v5, %v7033_v32  ;;  %vm4121_vm13 = vmand %vm8845_vm11, %vm4115_vm3 }
 0x180   : > { %v3921_v51 = vadd.f32 %v8787_v36, %v3906_v60  ;;  %v3892_v11 = vadd.f32 %v3864_v62, %v2493_v55 }
 0x181   : > { %v3908_v59 = vmul.f32 %v8780_v44, %v3893_v0  ;;  %v3872_v13 = vadd.f32 %v7251_v47, %v7035_v7 }
 0x182   : > { %v3929_v14 = vmax.f32 %v3921_v51, 0.0  ;;  %v3907_v15 = vmul.f32 %v8780_v44, %v3892_v11 }
 0x183   : > { %v3923_v17 = vadd.f32 %v8787_v36, %v3908_v59  ;;  %v3894_v18 = vadd.f32 %v3872_v13, %v2501_v12 }
 0x184   : > { %v3945_v1 = vcombine.high %v3929_v14, %v3929_v14  ;;  %v3952_v48 = vrot.slane %v3929_v14, %v8795_v8  ;;  %v3922_v42 = vadd.f32 %v8787_v36, %v3907_v15 }
 0x185   : > { %v3931_v39 = vmax.f32 %v3923_v17, 0.0  ;;  %v3909_v19 = vmul.f32 %v8780_v44, %v3894_v18 }
 0x186   : > { %v3959_v20 = vrot.slane %v3945_v1, %v8795_v8  ;;  %v3960_v23 = vcombine.high %v3952_v48, %v3952_v48  ;;  %v3930_v25 = vmax.f32 %v3922_v42, 0.0  ;;  %v6986_v42 = vadd.f32 %v8734_v37, %v8732_v21 }
 0x187   : > { %v3979_v28 = vcombine.high %v3931_v39, %v3931_v39  ;;  %v3986_v26 = vrot.slane %v3931_v39, %v8795_v8  ;;  %v3924_v29 = vadd.f32 %v8787_v36, %v3909_v19  ;;  %v1961_v37 = vadd.f32 %v8655_v53, %v8746_v41 }
 0x188   : > { %v3961_v30 = vcombine.high %v3959_v20, %v3959_v20  ;;  %v4152_v31 = vcombine.low %v3952_v48, %v3960_v23  ;;  %v3962_v32 = vcombine.high %v3930_v25, %v3930_v25  ;;  %v3969_v33 = vrot.slane %v3930_v25, %v8795_v8  ;;  %v7036_v34 = vpop.f32.mrf.mxu0 }
 0x189   : > { %v3993_v22 = vrot.slane %v3979_v28, %v8795_v8  ;;  %v3994_v55 = vcombine.high %v3986_v26, %v3986_v26  ;;  %v3932_v60 = vmax.f32 %v3924_v29, 0.0 }
 0x18a   : > { %v4153_v62 = vcombine.low %v3959_v20, %v3961_v30  ;;  %v4160_v5 = vrot.slane %v4152_v31, %v8795_v8  ;;  %v3976_v0 = vrot.slane %v3962_v32, %v8795_v8  ;;  %v3977_v6 = vcombine.high %v3969_v33, %v3969_v33  ;;  %v7037_v13 = vpop.f32.mrf.mxu0 }
 0x18b   : > { %v4175_v7 = vrot.slane %v3969_v33, %v8795_v8  ;;  %v3995_v51 = vcombine.high %v3993_v22, %v3993_v22  ;;  %v4199_v11 = vrot.slane %v3994_v55, %v8795_v8  ;;  %v3996_v12 = vcombine.high %v3932_v60, %v3932_v60 }
 0x18c   : > { %v4167_v14 = vrot.slane %v4153_v62, %v8795_v8  ;;  %v3978_v15 = vcombine.high %v3976_v0, %v3976_v0  ;;  %v4176_v17 = vcombine.low %v3977_v6, %v3976_v0  ;;  %v4003_v18 = vrot.slane %v3932_v60, %v8795_v8  ;;  %v7039_v29 = vpop.f32.mrf.mxu0 }
 0x18d   : > { %v4309_v1 = vsel %vm8830_vm9, %v4175_v7, 0.0  ;;  %v4311_v16 = vsel %vm4119_vm10, %v4199_v11, 0.0  ;;  %v8858_v48 = vrot.slane %v3996_v12, %v8795_v8  ;;  %v4200_v23 = vcombine.low %v3993_v22, %v3995_v51 }
 0x18e   : > { %v4168_v39 = vcombine.low %v4160_v5, %v4167_v14  ;;  %v6881_v19 = vpack.c.bf16 %v4309_v1, %v4309_v1  ;;  %v4177_v20 = vcombine.low %v3978_v15, %v3986_v26  ;;  %v6883_v25 = vpack.c.bf16 %v4311_v16, %v4311_v16  ;;  %v7040_v41 = vpop.f32.mrf.mxu0 }
 0x18f   : > { %v4011_v27 = vcombine.high %v4003_v18, %v4003_v18  ;;  %v4223_v28 = vrot.slane %v8858_v48, %v8795_v8  ;;  %v4184_v30 = vrot.slane %v4176_v17, %v8795_v8  ;;  %v6989_v55 = vadd.f32 %v8748_v45, %v8744_v40 }
 0x190   : > { %v4308_v31 = vsel %vm4102_vm12, %v4168_v39, 0.0  ;;  %4369 = vst [vmem:[#allocation2 + $0x4] sm:$0x1] %v6881_v19  ;;  %v4191_v21 = vrot.slane %v4177_v20, %v8795_v8  ;;  %4371 = vst [vmem:[#allocation2 + $0xc] sm:$0x1] %v6883_v25  ;;  %v2441_v60 = vadd.f32 %v6986_v42, %v1961_v37  ;;  %v4208_v62 = vrot.slane %v4200_v23, %v8795_v8 }
 0x191   : > { %v6880_v26 = vpack.c.bf16 %v4308_v31, %v4308_v31  ;;  %v4201_v32 = vcombine.low %v4003_v18, %v4011_v27  ;;  %v4313_v33 = vsel %vm4121_vm13, %v4223_v28, 0.0  ;;  %v6992_v5 = vadd.f32 %v8756_v52, %v8752_v49 }
 0x192   : > { %v4192_v35 = vcombine.low %v4184_v30, %v4191_v21  ;;  %v6885_v22 = vpack.c.bf16 %v4313_v33, %v4313_v33  ;;  %v7038_v0 = vadd.f32 %v7037_v13, %v7036_v34  ;;  %v1964_v40 = vadd.f32 %v8663_v58, %v8754_v50 }
 0x193   : > { %4368 = vst [vmem:[#allocation2] sm:$0xf] %v6880_v26  ;;  %v4215_v53 = vrot.slane %v4201_v32, %v8795_v8  ;;  %v1969_v51 = vadd.f32 %v8741_v54, %v8680_v4  ;;  %v2506_v11 = vadd.f32 %v8764_v63, %v2441_v60  ;;  %v7041_v34 = vadd.f32 %v7040_v41, %v7039_v29 }
 0x194   : > { %v4310_v47 = vsel %vm4104_vm14, %v4192_v35, 0.0  ;;  %4373 = vst [vmem:[#allocation2 + $0x14] sm:$0x1] %v6885_v22  ;;  %v2444_v49 = vadd.f32 %v6989_v55, %v1964_v40  ;;  %v6995_v58 = vadd.f32 %v8760_v57, %v8758_v56  ;;  %v4076_v50 = vadd.s32 3, %v8790_v2 }
 0x195   : > { %v6882_v45 = vpack.c.bf16 %v4310_v47, %v4310_v47  ;;  %v4216_v6 = vcombine.low %v4208_v62, %v4215_v53  ;;  %v7254_v7 = vpop.f32.mrf.mxu1  ;;  %v2449_v59 = vadd.f32 %v6992_v5, %v1969_v51  ;;  %v1972_v63 = vadd.f32 %v8750_v46, %v8691_v9 }
 0x196   : > { %v2509_v1 = vadd.f32 %v8771_v10, %v2444_v49  ;;  %v4077_v42 = vadd.s32 4, %v8790_v2  ;;  %vm4085_vm0 = vcmp.ge.s32.totalorder %v4076_v50, 0  ;;  %vm4091_vm1 = vcmp.lt.s32.totalorder %v4076_v50, 8 }
 0x197   : > { %4370 = vst [vmem:[#allocation2 + $0x8] sm:$0xf] %v6882_v45  ;;  %v4312_v52 = vsel %vm4106_vm15, %v4216_v6, 0.0  ;;  %v3876_v12 = vpop.f32.mrf.mxu1  ;;  %v7042_v14 = vpop.f32.mrf.mxu0  ;;  %v2514_v19 = vadd.f32 %v8762_v61, %v2449_v59  ;;  %v2452_v23 = vadd.f32 %v6995_v58, %v1972_v63  ;;  %v4012_v61 = vcombine.high %v8858_v48, %v8858_v48  ;;  %vm8931_vm7 = vmand %vm4085_vm0, %vm4091_vm1 }
 0x198   : > { %v6884_v15 = vpack.c.bf16 %v4312_v52, %v4312_v52  ;;  %v3877_v17 = vadd.f32 %v7038_v0, %v3876_v12  ;;  %vm4086_vm2 = vcmp.ge.s32.totalorder %v4077_v42, 0  ;;  %v8908_v30 = vadd.s32 5, %v8790_v2  ;;  %vm8951_vm10 = vmand %vm8931_vm7, %vm4115_vm3 }
 0x199   : > { %v7255_v13 = vpop.f32.mrf.mxu1  ;;  %v7043_v18 = vpop.f32.mrf.mxu0  ;;  %v2517_v33 = vadd.f32 %v8766_v3, %v2452_v23  ;;  %vm4092_vm4 = vcmp.lt.s32.totalorder %v4077_v42, 8  ;;  %vm4518_vm12 = vsmask.f32 3328  ;;  %vm4108_vm13 = vmand %vm8931_vm7, %vm4100_vm8  ;;  %vm4519_vm15 = vsmask.f32 7440 }
 0x19a   : > { %4372 = vst [vmem:[#allocation2 + $0x10] sm:$0xf] %v6884_v15  ;;  %v3895_v4 = vadd.f32 %v3877_v17, %v2506_v11  ;;  %v7044_v54 = vadd.f32 %v7043_v18, %v7042_v14  ;;  %v8901_v10 = vld [vmem:[#allocation2] sm:$0xf]  ;;  %vm4087_vm5 = vcmp.ge.s32.totalorder %v8908_v30, 0  ;;  %vm4093_vm6 = vcmp.lt.s32.totalorder %v8908_v30, 8  ;;  %vm8937_vm9 = vmand %vm4086_vm2, %vm4092_vm4 }
 0x19b   : > { %v3879_v16 = vpop.f32.mrf.mxu1  ;;  %v7045_v39 = vpop.f32.mrf.mxu0  ;;  %vm4125_vm11 = vmand %vm8937_vm9, %vm4115_vm3  ;;  %vm5247_vm4 = vcmask 1046532  }
 0x19c   : > { %v3910_v56 = vmul.f32 %v8780_v44, %v3895_v4  ;;  %v3880_v57 = vadd.f32 %v7041_v34, %v3879_v16  ;;  %v3885_v20 = vadd.f32 %v7254_v7, %v7044_v54  ;;  %vm8985_vm14 = vmand %vm4087_vm5, %vm4093_vm6  ;;  %vm5686_vm6 = vcmask 1046528  }
 0x19d   : > { %v7046_v25 = vpop.f32.mrf.mxu0  ;;  %vm4110_vm0 = vmand %vm8937_vm9, %vm4100_vm8 }
 0x19e   : > { %v3925_v27 = vadd.f32 %v8787_v36, %v3910_v56  ;;  %v3896_v28 = vadd.f32 %v3880_v57, %v2509_v1  ;;  %v3897_v9 = vadd.f32 %v3885_v20, %v2514_v19  ;;  %v7047_v46 = vadd.f32 %v7046_v25, %v7045_v39  ;;  %v8903_v29 = vld [vmem:[#allocation2 + $0x8] sm:$0xf]  ;;  %v8974_v25 = vld [vmem:[#allocation2 + $0x4] ss:$8 sps:$4 sm:$0x11]   ;;  %vm4127_vm1 = vmand %vm8985_vm14, %vm4115_vm3 }
 0x19f   : > { %v6579_v31 = vcombine.low %v8901_v10, %v8903_v29  ;;  %v8920_v53 = vld [vmem:[#allocation2 + $0x8] sm:$0xf]  ;;  %vm4112_vm2 = vmand %vm8985_vm14, %vm4100_vm8  ;;  %vm5246_vm8 = vcmask 1042432  }
 0x1a0   : > { %v3933_v21 = vmax.f32 %v3925_v27, 0.0  ;;  %v3911_v37 = vmul.f32 %v8780_v44, %v3896_v28  ;;  %v3912_v26 = vmul.f32 %v8780_v44, %v3897_v9  ;;  %v3888_v32 = vadd.f32 %v7255_v13, %v7047_v46  ;;  %vm9015_vm3 = vmor %vm4518_vm12, %vm4519_vm15 }
 0x1a1   : > { %v8915_v35 = vld [vmem:[#allocation2 + $0x10] sm:$0xf]  ;;  %v4522_v22 = vshrl.u32 %v6579_v31, 16  ;;  %v4525_v48 = vshll.u32 %v6579_v31, 16  ;;  %vm9126_vm5 = vmor %vm5246_vm8, %vm5247_vm4 }
 0x1a2   : > { %v4013_v55 = vcombine.high %v3933_v21, %v3933_v21  ;;  %v4020_v2 = vrot.slane %v3933_v21, %v8795_v8  ;;  %v3926_v60 = vadd.f32 %v8787_v36, %v3911_v37  ;;  %v3927_v62 = vadd.f32 %v8787_v36, %v3912_v26  ;;  %v8978_v31 = vld [vmem:[#allocation2 + $0x10] sm:$0xf] }
 0x1a3   : > { %v3898_v41 = vadd.f32 %v3888_v32, %v2517_v33  ;;  %v8926_v3 = vcombine.low %v8920_v53, %v8915_v35  ;;  %v8942_v11 = vrot.slane %v4522_v22, 4  ;;  %v8944_v49 = vrot.slane %v4525_v48, 5 }
 0x1a4   : > { %v4027_v5 = vrot.slane %v4013_v55, %v8795_v8  ;;  %v4028_v47 = vcombine.high %v4020_v2, %v4020_v2  ;;  %v4224_v40 = vcombine.low %v4012_v61, %v4020_v2  ;;  %v3934_v45 = vmax.f32 %v3926_v60, 0.0  ;;  %v8976_v61 = vld [vmem:[#allocation2 + $0xc] ss:$8 sps:$4 sm:$0x11]  }
 0x1a5   : > { %v3935_v7 = vmax.f32 %v3927_v62, 0.0  ;;  %v3913_v51 = vmul.f32 %v8780_v44, %v3898_v41  ;;  %v4550_v59 = vshrl.u32 %v8926_v3, 16  ;;  %v4528_v32 = vor.u32 %v8944_v49, %v8942_v11 }
 0x1a6   : > { %v4029_v52 = vcombine.high %v4027_v5, %v4027_v5  ;;  %v4225_v12 = vcombine.low %v4028_v47, %v4027_v5  ;;  %v4030_v14 = vcombine.high %v3934_v45, %v3934_v45  ;;  %v4037_v17 = vrot.slane %v3934_v45, %v8795_v8 }
 0x1a7   : > { %v4047_v44 = vcombine.high %v3935_v7, %v3935_v7  ;;  %v4054_v34 = vrot.slane %v3935_v7, %v8795_v8  ;;  %v3928_v58 = vadd.f32 %v8787_v36, %v3913_v51  ;;  %v4232_v50 = vrot.slane %v4224_v40, %v8795_v8 }
 0x1a8   : > { %v4239_v13 = vrot.slane %v4225_v12, %v8795_v8  ;;  %v4247_v18 = vrot.slane %v4029_v52, %v8795_v8  ;;  %v4044_v4 = vrot.slane %v4030_v14, %v8795_v8  ;;  %v4045_v36 = vcombine.high %v4037_v17, %v4037_v17  ;;  %v9019_v14 = vld [vmem:[#allocation2 + $0x14] ss:$0 sps:$4 sm:$0x11]  }
 0x1a9   : > { %v4061_v54 = vrot.slane %v4047_v44, %v8795_v8  ;;  %v4062_v63 = vcombine.high %v4054_v34, %v4054_v34  ;;  %v4271_v1 = vrot.slane %v4054_v34, %v8795_v8  ;;  %v3936_v19 = vmax.f32 %v3928_v58, 0.0  ;;  %v9021_v58 = vld [vmem:[#allocation2 + $0x10] sm:$0xf] }
 0x1aa   : > { %v4240_v16 = vcombine.low %v4232_v50, %v4239_v13  ;;  %v4315_v42 = vsel %vm8951_vm10, %v4247_v18, 0.0  ;;  %v4046_v39 = vcombine.high %v4044_v4, %v4044_v4  ;;  %v4248_v57 = vcombine.low %v4037_v17, %v4045_v36  ;;  %v7624_v12 = vld [vmem:[%s9487_s4 + $0x10] sm:$0xff]  }
 0x1ab   : > { %v6887_v56 = vpack.c.bf16 %v4315_v42, %v4315_v42  ;;  %v4272_v20 = vcombine.low %v4062_v63, %v4061_v54  ;;  %v4317_v23 = vsel %vm4125_vm11, %v4271_v1, 0.0  ;;  %v4063_v46 = vcombine.high %v4061_v54, %v4061_v54 }
 0x1ac   : > { %v4314_v27 = vsel %vm4108_vm13, %v4240_v16, 0.0  ;;  %v4249_v28 = vcombine.low %v4044_v4, %v4046_v39  ;;  %v6889_v9 = vpack.c.bf16 %v4317_v23, %v4317_v23  ;;  %v4070_v37 = vrot.slane %v3936_v19, %v8795_v8  ;;  %v7596_v4 = vld [vmem:[%s9487_s4 + $0x38] sm:$0xff]   ;;  %v7601_v39 = vld [vmem:[%s9487_s4 + $0x70] sm:$0xff]  }
 0x1ad   : > { %v6886_v21 = vpack.c.bf16 %v4314_v27, %v4314_v27  ;;  %4375 = vst [vmem:[#allocation2 + $0x1c] sm:$0x1] %v6887_v56  ;;  %v4256_v33 = vrot.slane %v4248_v57, %v8795_v8  ;;  %v4552_v48 = vrot.slane %v4550_v59, 4  ;;  %v4553_v55 = vshll.u32 %v8926_v3, 16  ;;  %v7603_v27 = vld [vmem:[%s9487_s4 + $0x30] sm:$0xff]  }
 0x1ae   : > { %v4263_v22 = vrot.slane %v4249_v28, %v8795_v8  ;;  %4377 = vst [vmem:[#allocation2 + $0x24] sm:$0x1] %v6889_v9  ;;  %v4071_v30 = vcombine.high %v4070_v37, %v4070_v37  ;;  %v4273_v2 = vcombine.low %v4063_v46, %v4070_v37  ;;  %v4531_v60 = vshll.u32 %v8974_v25, 16 }
 0x1af   : > { %4374 = vst [vmem:[#allocation2 + $0x18] sm:$0xf] %v6886_v21  ;;  %v6580_v62 = vcombine.low %v8978_v31, %v8978_v31  ;;  %v4280_v5 = vrot.slane %v4272_v20, %v8795_v8  ;;  %v4555_v3 = vrot.slane %v4553_v55, 5  ;;  %v4559_v47 = vshll.u32 %v8976_v61, 16 }
 0x1b0   : > { %v4264_v41 = vcombine.low %v4256_v33, %v4263_v22  ;;  %v4287_v0 = vrot.slane %v4273_v2, %v8795_v8  ;;  %v4295_v40 = vrot.slane %v4071_v30, %v8795_v8  ;;  %v4529_v51 = vrot.slane %v4528_v32, 4  ;;  %v7604_v32 = vld [vmem:[%s9487_s4 + $0x68] sm:$0xff]  }
 0x1b1   : > { %v4536_v45 = vshrl.u32 %v6580_v62, 16  ;;  %v4539_v6 = vshll.u32 %v6580_v62, 16  ;;  %v4556_v43 = vor.u32 %v4555_v3, %v4552_v48  ;;  %v4533_v8 = vrot.slane %v4531_v60, 5 }
 0x1b2   : > { %v4316_v7 = vsel %vm4110_vm0, %v4264_v41, 0.0  ;;  %v4288_v49 = vcombine.low %v4280_v5, %v4287_v0  ;;  %v4319_v52 = vsel %vm4127_vm1, %v4295_v40, 0.0  ;;  %v4561_v24 = vrot.slane %v4559_v47, 5 }
 0x1b3   : > { %v6888_v11 = vpack.c.bf16 %v4316_v7, %v4316_v7  ;;  %v6891_v59 = vpack.c.bf16 %v4319_v52, %v4319_v52  ;;  %v4557_v15 = vrot.slane %v4556_v43, 4  ;;  %v4538_v17 = vrot.slane %v4536_v45, 4 }
 0x1b4   : > { %v4318_v44 = vsel %vm4112_vm2, %v4288_v49, 0.0  ;;  %v4541_v34 = vrot.slane %v4539_v6, 5  ;;  %v4534_v13 = vsel %vm9015_vm3, %v4529_v51, %v4533_v8  ;;  %v9032_v54 = vld [vmem:[#allocation2 + $0x1c] ss:$0 sps:$4 sm:$0x11]   ;;  %v4545_v57 = vshll.u32 %v9019_v14, 16 }
 0x1b5   : > { %4376 = vst [vmem:[#allocation2 + $0x20] sm:$0xf] %v6888_v11  ;;  %v6890_v50 = vpack.c.bf16 %v4318_v44, %v4318_v44  ;;  %4379 = vst [vmem:[#allocation2 + $0x2c] sm:$0x1] %v6891_v59  ;;  %v4562_v18 = vsel %vm9015_vm3, %v4557_v15, %v4561_v24  ;;  %v4573_v28 = vshll.u32 %v9032_v54, 16  ;;  %v7606_v6 = vld [vmem:[%s9487_s4 + $0x28] sm:$0xff]  }
 0x1b6   : > { %v9030_v36 = vld [vmem:[#allocation2 + $0x18] sm:$0xf]  ;;  %v6643_v63 = vcombine.low %v4534_v13, %v4562_v18  ;;  %v6644_v1 = vcombine.high %v4534_v13, %v4562_v18  ;;  %v4542_v56 = vor.u32 %v4541_v34, %v4538_v17  ;;  %v9048_v9 = vld [vmem:[#allocation2 + $0x14] ss:$8 sps:$4 sm:$0x11]   ;;  %v4547_v5 = vrot.slane %v4545_v57, 5 }
 0x1b7   : > { %v6584_v16 = vcombine.low %v9030_v36, %v9030_v36  ;;  %v9036_v42 = vld [vmem:[#allocation2 + $0x18] sm:$0xf]  ;;  %4378 = vst [vmem:[#allocation2 + $0x28] sm:$0xf] %v6890_v50  ;;  %v4575_v3 = vrot.slane %v4573_v28, 5  ;;  %v4587_v47 = vshll.u32 %v9048_v9, 16 }
 0x1b8   : > { %v6587_v19 = vcombine.low %v9021_v58, %v9036_v42  ;;  %4882 = vmatprep.mubr.bf16.mxu0 %v6644_v1  ;;  %v9053_v33 = vld [vmem:[#allocation2 + $0x1c] ss:$8 sps:$4 sm:$0x11]   ;;  %v9055_v22 = vld [vmem:[#allocation2 + $0x18] sm:$0xf]  ;;  %v4543_v2 = vrot.slane %v4542_v56, 4 }
 0x1b9   : > { %v4564_v20 = vshrl.u32 %v6584_v16, 16  ;;  %v4567_v23 = vshll.u32 %v6584_v16, 16  ;;  %4883 = vmatmul.mubr.bf16.vlgmr.msra.gmra.mxu0 %v6643_v63  ;;  %v9066_v40 = vld [vmem:[#allocation2 + $0x24] ss:$0 sps:$4 sm:$0x11]   ;;  %v4615_v52 = vshll.u32 %v9053_v33, 16 }
 0x1ba   : > { %v4578_v46 = vshrl.u32 %v6587_v19, 16  ;;  %v4581_v21 = vshll.u32 %v6587_v19, 16  ;;  %7099 = vmatpush3.bf16.msra.mxu0 %v7596_v4  ;;  %v7611_v8 = vld [vmem:[%s9487_s4 + $0x60] sm:$0xff]   ;;  %v4548_v17 = vsel %vm9015_vm3, %v4543_v2, %v4547_v5  ;;  %v9086_v13 = vld [vmem:[%s8040_s23 + $0x30] sm:$0x1]  ;;  %v4601_v28 = vshll.u32 %v9066_v40, 16 }
 0x1bb   : > { %v4566_v37 = vrot.slane %v4564_v20, 4  ;;  %v4569_v26 = vrot.slane %v4567_v23, 5  ;;  %7100 = vmatprep.subr.bf16.mxu0 %v7601_v39  ;;  %v7613_v39 = vld [vmem:[%s9487_s4 + $0x20] sm:$0xff]   ;;  %v9092_v57 = vld [vmem:[%s8040_s23 + $0x50] sm:$0x1]  ;;  %v4589_v20 = vrot.slane %v4587_v47, 5  ;;  %v5631_v2 = vunpack.c.l.bf16 %v9086_v13 }
 0x1bc   : > { %v9057_v48 = vld [vmem:[#allocation2 + $0x20] sm:$0xf]  ;;  %v4580_v55 = vrot.slane %v4578_v46, 4  ;;  %v4583_v30 = vrot.slane %v4581_v21, 5  ;;  %v4617_v23 = vrot.slane %v4615_v52, 5  ;;  %v7620_v46 = vld [vmem:[%s9487_s4 + $0x58] sm:$0xff]  }
 0x1bd   : > { %v4570_v60 = vor.u32 %v4569_v26, %v4566_v37  ;;  %v6591_v62 = vcombine.low %v9055_v22, %v9057_v48  ;;  %v9061_v41 = vld [vmem:[#allocation2 + $0x20] sm:$0xf]  ;;  %v9073_v49 = vld [vmem:[#allocation2 + $0x2c] ss:$0 sps:$4 sm:$0x11]   ;;  %v7621_v47 = vld [vmem:[%s9487_s4 + $0x18] sm:$0xff]  }
 0x1be   : > { %v6588_v0 = vcombine.low %v9061_v41, %v9061_v41  ;;  %7101 = vmatpush3.bf16.msra.mxu0 %v7603_v27  ;;  %v4584_v7 = vor.u32 %v4583_v30, %v4580_v55  ;;  %v9071_v11 = vld [vmem:[#allocation2 + $0x28] sm:$0xf]  ;;  %v6815_v55 = vld [vmem:[%s8040_s23 + $0x20] sm:$0xe]  ;;  %v6808_v52 = vld [vmem:[%s8040_s23 + $0x34] sm:$0x1] }
 0x1bf   : > { %v4571_v45 = vrot.slane %v4570_v60, 4  ;;  %v4606_v51 = vshrl.u32 %v6591_v62, 16  ;;  %v4609_v43 = vshll.u32 %v6591_v62, 16  ;;  %7102 = vmatprep.subr.bf16.mxu0 %v7604_v32  ;;  %v6592_v59 = vcombine.low %v9071_v11, %v9071_v11  ;;  %v7673_v30 = vld [vmem:[#allocation2 + $0x20] ss:$0 sps:$4 sm:$0xee]  }
 0x1c0   : > { %v4592_v15 = vshrl.u32 %v6588_v0, 16  ;;  %v4595_v24 = vshll.u32 %v6588_v0, 16  ;;  %v4585_v1 = vrot.slane %v4584_v7, 4  ;;  %v4629_v32 = vshll.u32 %v9073_v49, 16  ;;  %v7623_v7 = vld [vmem:[%s9487_s4 + $0x50] sm:$0xff]  }
 0x1c1   : > { %v4576_v44 = vsel %vm9015_vm3, %v4571_v45, %v4575_v3  ;;  %v4608_v34 = vrot.slane %v4606_v51, 4  ;;  %v4611_v50 = vrot.slane %v4609_v43, 5  ;;  %v4620_v19 = vshrl.u32 %v6592_v59, 16  ;;  %v7674_v0 = vld [vmem:[#allocation2 + $0x28] ss:$0 sps:$4 sm:$0xee]  }
 0x1c2   : > { %v6645_v18 = vcombine.low %v4548_v17, %v4576_v44  ;;  %v4594_v4 = vrot.slane %v4592_v15, 4  ;;  %v4597_v63 = vrot.slane %v4595_v24, 5  ;;  %7103 = vmatpush3.bf16.msra.mxu0 %v7606_v6  ;;  %v4623_v56 = vshll.u32 %v6592_v59, 16  ;;  %v6799_v51 = vld [vmem:[%s8040_s23 + $0x20] sm:$0xff]  }
 0x1c3   : > { %v4612_v16 = vor.u32 %v4611_v50, %v4608_v34  ;;  %7104 = vmatprep.subr.bf16.mxu0 %v7611_v8  ;;  %v4622_v37 = vrot.slane %v4620_v19, 4  ;;  %v4590_v60 = vsel %vm9015_vm3, %v4585_v1, %v4589_v20  ;;  %v5633_v43 = vunpack.c.l.bf16 %v9092_v57  ;;  %v6816_v44 = vld [vmem:[%s8040_s23 + $0x40] sm:$0xe] }
 0x1c4   : > { %7272 = vmatprep.mubr.bf16.mxu1 %v6645_v18  ;;  %v4598_v27 = vor.u32 %v4597_v63, %v4594_v4  ;;  %v4625_v26 = vrot.slane %v4623_v56, 5  ;;  %v5674_v8 = vunpack.c.l.bf16 %v6815_v55  ;;  %v4603_v59 = vrot.slane %v4601_v28, 5  ;;  %v6810_v4 = vld [vmem:[%s8040_s23 + $0x54] sm:$0x1]  ;;  %v6801_v56 = vld [vmem:[%s8040_s23 + $0x40] sm:$0xff]   ;;  %v7627_v55 = vld [vmem:[%s9487_s4 + $0x8] sm:$0xff]  }
 0x1c5   : > { %v4613_v21 = vrot.slane %v4612_v16, 4  ;;  %v4631_v24 = vrot.slane %v4629_v32, 5  ;;  %v6716_v17 = vrot.slane %v7673_v30, 9  ;;  %v6674_v34 = vcombine.low %v8903_v29, %v8915_v35  ;;  %v7625_v32 = vld [vmem:[%s9487_s4 + $0xa8] sm:$0xff]   ;;  %v7667_v16 = vld [vmem:[%s9487_s4 + $0x210] sm:$0xff]  }
 0x1c6   : > { %7105 = vmatpush3.bf16.msra.mxu0 %v7613_v39  ;;  %v4599_v5 = vrot.slane %v4598_v27, 4  ;;  %v4626_v3 = vor.u32 %v4625_v26, %v4622_v37  ;;  %v5271_v50 = vrot.slane %v9066_v40, 5  ;;  %v6718_v13 = vrot.slane %v7674_v0, 9  ;;  %v6822_v0 = vld [vmem:[%s8040_s23 + $0x58] sm:$0x1] }
 0x1c7   : > { %v4618_v62 = vsel %vm9015_vm3, %v4613_v21, %v4617_v23  ;;  %7106 = vmatprep.subr.bf16.mxu0 %v7620_v46  ;;  %v5279_v18 = vrot.slane %v9073_v49, 5  ;;  %v5630_v29 = vunpack.c.l.bf16 %v6799_v51  ;;  %v5655_v35 = vunpack.c.l.bf16 %v6808_v52  ;;  %v7622_v49 = vld [vmem:[%s9487_s4 + $0xb0] sm:$0xff]   ;;  %v7626_v23 = vld [vmem:[%s9487_s4 + $0x48] sm:$0xff]  }
 0x1c8   : > { %v6647_v45 = vcombine.high %v4590_v60, %v4618_v62  ;;  %v6646_v6 = vcombine.low %v4590_v60, %v4618_v62  ;;  %v4627_v15 = vrot.slane %v4626_v3, 4  ;;  %v4604_v63 = vsel %vm9015_vm3, %v4599_v5, %v4603_v59  ;;  %v6820_v60 = vld [vmem:[%s8040_s23 + $0x38] sm:$0x1]  ;;  %v6835_v52 = vld [vmem:[%s8040_s23 + $0x28] sm:$0xe] }
 0x1c9   : > { %v9138_v39 = vsel %vm9126_vm5, %v6716_v17, %v5271_v50  ;;  %v9142_v19 = vsel %vm9126_vm5, %v6718_v13, %v5279_v18  ;;  %v5675_v57 = vunpack.c.l.bf16 %v6816_v44  ;;  %v6675_v20 = vcombine.low %v8978_v31, %v9030_v36  ;;  %v9177_v59 = vld [vmem:[%s8040_s23 + $0x48] sm:$0xff]  }
 0x1ca   : > { %4890 = vmatprep.mubr.bf16.mxu0 %v6647_v45  ;;  %v4632_v1 = vsel %vm9015_vm3, %v4627_v15, %v4631_v24  ;;  %7107 = vmatpush3.bf16.msra.mxu0 %v7621_v47  ;;  %v6772_v27 = vcombine.low %v9138_v39, %v9142_v19  ;;  %v5654_v28 = vunpack.c.h.bf16 %v6799_v51  ;;  %v5657_v46 = vunpack.c.l.bf16 %v6810_v4  ;;  %v9165_v47 = vld [vmem:[%s8040_s23 + $0x28] sm:$0xff]   ;;  %v7628_v45 = vld [vmem:[%s9487_s4 + $0xa0] sm:$0xff]   ;;  %v6828_v15 = vld [vmem:[%s8040_s23 + $0x3c] sm:$0x1] }
 0x1cb   : > { %4891 = vmatmul.mubr.bf16.gmra.mxu0 %v6646_v6  ;;  %v6648_v40 = vcombine.low %v4604_v63, %v4632_v1  ;;  %7108 = vmatprep.subr.bf16.mxu0 %v7623_v7  ;;  %v5687_v21 = vrot.slane %v5674_v8, 1  ;;  %v5688_v37 = vrot.slane %v5631_v2, 1  ;;  %v5632_v26 = vunpack.c.l.bf16 %v6801_v56  ;;  %v7633_v24 = vld [vmem:[%s9487_s4 + $0x1f8] sm:$0xff]   ;;  %v7645_v17 = vld [vmem:[#allocation2 + $0x8] ss:$8 sps:$4 sm:$0xee]  }
 0x1cc   : > { %5136 = vmatprep.mubr.bf16.mxu0 %v6674_v34  ;;  %v5656_v31 = vunpack.c.h.bf16 %v6801_v56  ;;  %v5663_v36 = vadd.f32 %v5655_v35, %v5631_v2  ;;  %v5690_v30 = vrot.slane %v5675_v57, 1  ;;  %v7629_v2 = vld [vmem:[%s9487_s4 + $0x40] sm:$0xff]   ;;  %v5662_v62 = vadd.f32 %v5654_v28, %v5630_v29  ;;  %v6836_v18 = vld [vmem:[%s8040_s23 + $0x48] sm:$0xe]  ;;  %v6830_v4 = vld [vmem:[%s8040_s23 + $0x5c] sm:$0x1] }
 0x1cd   : > { %7273 = vmatmul.mubr.bf16.vlgmr.msra.gmra.mxu1 %v6648_v40  ;;  %v5665_v5 = vadd.f32 %v5657_v46, %v5633_v43  ;;  %v5689_v3 = vsel %vm5686_vm6, %v5687_v21, %v5688_v37  ;;  %v5724_v51 = vunpack.c.l.bf16 %v6820_v60  ;;  %v5723_v50 = vunpack.c.l.bf16 %v9165_v47  ;;  %v7644_v1 = vld [vmem:[#allocation2] ss:$8 sps:$4 sm:$0xee]   ;;  %v9204_v60 = vld [vmem:[%s8040_s23 + $0x50] sm:$0x1] }
 0x1ce   : > { %7277 = vmatpush3.bf16.msra.mxu1 %v8739_v38  ;;  %7292 = vmatprep.mubr.bf16.mxu1 %v6675_v20  ;;  %v5691_v38 = vrot.slane %v5633_v43, 1  ;;  %v5664_v6 = vadd.f32 %v5656_v31, %v5632_v26  ;;  %v5708_v7 = vadd.f32 %v5688_v37, %v5663_v36  ;;  %v7630_v43 = vld [vmem:[%s9487_s4] sm:$0xff]   ;;  %v5707_v44 = vadd.f32 %v5689_v3, %v5662_v62  ;;  %v7639_v62 = vld [vmem:[%s9487_s4 + $0x1b0] sm:$0xff]  }
 0x1cf   : > { %7278 = vmatprep.subr.bf16.mxu1 %v7622_v49  ;;  %7109 = vmatpush3.bf16.msra.mxu0 %v7624_v12  ;;  %v5726_v13 = vunpack.c.l.bf16 %v6822_v0  ;;  %v5767_v63 = vunpack.c.l.bf16 %v6835_v52  ;;  %v5725_v35 = vunpack.c.l.bf16 %v9177_v59  ;;  %v7631_v12 = vld [vmem:[%s9487_s4 + $0x98] sm:$0xff]   ;;  %v6673_v56 = vcombine.low %v8901_v10, %v8920_v53  ;;  %v7637_v10 = vld [vmem:[%s9487_s4 + $0x1f0] sm:$0xff]  }
 0x1d0   : > { %7110 = vmatprep.subr.bf16.mxu0 %v7626_v23  ;;  %v5692_v8 = vsel %vm5686_vm6, %v5690_v30, %v5691_v38  ;;  %v5710_v34 = vadd.f32 %v5691_v38, %v5665_v5  ;;  %v5732_v40 = vadd.f32 %v5724_v51, %v5708_v7  ;;  %v5747_v57 = vunpack.c.h.bf16 %v9165_v47  ;;  %v7636_v23 = vld [vmem:[%s9487_s4 + $0x1b8] sm:$0xff]   ;;  %v7641_v5 = vld [vmem:[%s9487_s4 + $0x1e8] sm:$0xff]   ;;  %v9227_v52 = vld [vmem:[%s8040_s23 + $0x70] sm:$0x1] }
 0x1d1   : > { %v5709_v29 = vadd.f32 %v5692_v8, %v5664_v6  ;;  %v5768_v20 = vunpack.c.l.bf16 %v6836_v18  ;;  %v6713_v28 = vrot.slane %v7645_v17, 9  ;;  %v5731_v46 = vadd.f32 %v5723_v50, %v5707_v44  ;;  %v9220_v6 = vld [vmem:[#allocation2 + $0x10] ss:$0 sps:$4 sm:$0xee]   ;;  %v6857_v18 = vld [vmem:[%s8040_s23 + $0x40] sm:$0xe] }
 0x1d2   : > { %7279 = vmatpush3.bf16.msra.mxu1 %v7622_v49  ;;  %v5748_v49 = vunpack.c.l.bf16 %v6828_v15  ;;  %v5734_v21 = vadd.f32 %v5726_v13, %v5710_v34  ;;  %v5750_v37 = vunpack.c.l.bf16 %v6830_v4  ;;  %v6677_v26 = vcombine.low %v9036_v42, %v9057_v48  ;;  %v7635_v42 = vld [vmem:[%s9487_s4 + $0x90] sm:$0xff]   ;;  %v7643_v4 = vld [vmem:[%s9487_s4 + $0x1a8] sm:$0xff]  }
 0x1d3   : > { %7280 = vmatprep.subr.bf16.mxu1 %v7625_v32  ;;  %7111 = vmatpush3.bf16.msra.mxu0 %v7627_v55  ;;  %v5259_v53 = vrot.slane %v8976_v61, 5  ;;  %v5779_v31 = vrot.slane %v5767_v63, 1  ;;  %v5780_v36 = vrot.slane %v5724_v51, 1  ;;  %v5733_v55 = vadd.f32 %v5725_v35, %v5709_v29  ;;  %v7651_v61 = vld [vmem:[#allocation2 + $0x18] ss:$0 sps:$4 sm:$0xee]  }
 0x1d4   : > { %7112 = vmatprep.subr.bf16.mxu0 %v7629_v2  ;;  %v5749_v30 = vunpack.c.h.bf16 %v9177_v59  ;;  %v5756_v38 = vadd.f32 %v5748_v49, %v5732_v40  ;;  %v5782_v48 = vrot.slane %v5768_v20, 1  ;;  %v5783_v2 = vrot.slane %v5726_v13, 1  ;;  %v9224_v51 = vld [vmem:[%s8040_s23 + $0x40] sm:$0xff]   ;;  %v6850_v13 = vld [vmem:[%s8040_s23 + $0x54] sm:$0x1] }
 0x1d5   : > { %v5251_v3 = vrot.slane %v8974_v25, 5  ;;  %v9218_v47 = vsel %vm9126_vm5, %v6713_v28, %v5259_v53  ;;  %v5755_v0 = vadd.f32 %v5747_v57, %v5731_v46  ;;  %v5781_v7 = vsel %vm5686_vm6, %v5779_v31, %v5780_v36  ;;  %v9234_v59 = vld [vmem:[%s8040_s23 + $0x60] sm:$0xff]   ;;  %v9254_v35 = vld [vmem:[%s8040_s23 + $0x70] sm:$0x1]  ;;  %v9264_v20 = vld [vmem:[%s8040_s23 + $0x74] sm:$0x1] }
 0x1d6   : > { %7281 = vmatpush3.bf16.msra.mxu1 %v7625_v32  ;;  %v6711_v32 = vrot.slane %v7644_v1, 9  ;;  %v5800_v8 = vadd.f32 %v5780_v36, %v5756_v38  ;;  %v5820_v15 = vunpack.c.l.bf16 %v9204_v60  ;;  %v6676_v17 = vcombine.low %v9021_v58, %v9055_v22  ;;  %v6858_v22 = vld [vmem:[%s8040_s23 + $0x60] sm:$0xe] }
 0x1d7   : > { %7282 = vmatprep.subr.bf16.mxu1 %v7628_v45  ;;  %7113 = vmatpush3.bf16.msra.mxu0 %v7630_v43  ;;  %v5757_v43 = vadd.f32 %v5749_v30, %v5733_v55  ;;  %v6714_v34 = vrot.slane %v7651_v61, 9  ;;  %v5784_v50 = vsel %vm5686_vm6, %v5782_v48, %v5783_v2  ;;  %v5799_v63 = vadd.f32 %v5781_v7, %v5755_v0  ;;  %v7646_v40 = vld [vmem:[%s9487_s4 + $0x1e0] sm:$0xff]  }
 0x1d8   : > { %7136 = vmatprep.subr.bf16.mxu0 %v7633_v24  ;;  %v9231_v25 = vsel %vm9126_vm5, %v6711_v32, %v5251_v3  ;;  %v7638_v24 = vld [vmem:[%s9487_s4 + $0x88] sm:$0xff]   ;;  %v5819_v29 = vunpack.c.l.bf16 %v9224_v51  ;;  %v5822_v58 = vunpack.c.l.bf16 %v9227_v52  ;;  %v6712_v49 = vrot.slane %v9220_v6, 9  ;;  %v7648_v32 = vld [vmem:[%s9487_s4 + $0x1a0] sm:$0xff]   ;;  %v7649_v52 = vld [vmem:[%s9487_s4 + $0x238] sm:$0xff]  }
 0x1d9   : > { %v6768_v44 = vcombine.high %v9231_v25, %v9218_v47  ;;  %v5821_v57 = vunpack.c.l.bf16 %v9234_v59  ;;  %v5828_v28 = vadd.f32 %v5820_v15, %v5800_v8  ;;  %v5844_v46 = vunpack.c.l.bf16 %v6850_v13  ;;  %v6803_v61 = vld [vmem:[%s8040_s23 + $0x60] sm:$0xff]  }
 0x1da   : > { %7283 = vmatpush3.bf16.msra.mxu1 %v7628_v45  ;;  %5137 = vmatmul.mubr.bf16.vlgmr.msra.gmra.mxu0 %v6673_v56  ;;  %v5758_v45 = vadd.f32 %v5750_v37, %v5734_v21  ;;  %v5263_v56 = vrot.slane %v9032_v54, 5  ;;  %v5863_v21 = vunpack.c.l.bf16 %v6857_v18  ;;  %v6806_v37 = vld [vmem:[%s8040_s23 + $0x90] sm:$0x1]  ;;  %v6678_v54 = vcombine.low %v9061_v41, %v9071_v11  ;;  %v6814_v41 = vld [vmem:[%s8040_s23 + $0x94] sm:$0x1]  ;;  %v7652_v11 = vld [vmem:[%s9487_s4 + $0x1d8] sm:$0xff]  }
 0x1db   : > { %7284 = vmatprep.subr.bf16.mxu1 %v7631_v12  ;;  %5144 = vmatprep.mubr.bf16.mxu0 %v6677_v26  ;;  %v6817_v26 = vld [vmem:[%s8040_s23 + $0x60] sm:$0xe]  ;;  %v5843_v31 = vunpack.c.h.bf16 %v9224_v51  ;;  %v5864_v36 = vunpack.c.l.bf16 %v6858_v22  ;;  %v5827_v55 = vadd.f32 %v5819_v29, %v5799_v63  ;;  %v5845_v38 = vunpack.c.h.bf16 %v9234_v59  ;;  %v7655_v18 = vld [vmem:[%s9487_s4 + $0x1d0] sm:$0xff]  }
 0x1dc   : > { %7137 = vmatpush3.bf16.msra.mxu0 %v7636_v23  ;;  %v5802_v1 = vadd.f32 %v5783_v2, %v5758_v45  ;;  %v5801_v23 = vadd.f32 %v5784_v50, %v5757_v43  ;;  %v9276_v53 = vsel %vm9126_vm5, %v6714_v34, %v5263_v56  ;;  %v5846_v60 = vunpack.c.l.bf16 %v9264_v20  ;;  %v6805_v48 = vld [vmem:[%s8040_s23 + $0x80] sm:$0xff]   ;;  %v9298_v34 = vld [vmem:[#allocation2 + $0x10] ss:$8 sps:$4 sm:$0xee]  }
 0x1dd   : > { %7138 = vmatprep.subr.bf16.mxu0 %v7637_v10  ;;  %v6818_v10 = vld [vmem:[%s8040_s23 + $0x80] sm:$0xe]  ;;  %v5635_v2 = vunpack.c.l.bf16 %v9254_v35  ;;  %v5852_v45 = vadd.f32 %v5844_v46, %v5828_v28  ;;  %v5875_v7 = vrot.slane %v5863_v21, 1  ;;  %v5876_v51 = vrot.slane %v5820_v15, 1 }
 0x1de   : > { %7285 = vmatpush3.bf16.msra.mxu1 %v7631_v12  ;;  %v5255_v12 = vrot.slane %v9019_v14, 5  ;;  %v7642_v14 = vld [vmem:[%s9487_s4 + $0x80] sm:$0xff]   ;;  %v5830_v30 = vadd.f32 %v5822_v58, %v5802_v1  ;;  %v5677_v3 = vunpack.c.l.bf16 %v6818_v10  ;;  %v5829_v0 = vadd.f32 %v5821_v57, %v5801_v23  ;;  %v7654_v57 = vld [vmem:[%s9487_s4 + $0x230] sm:$0xff]   ;;  %v7658_v10 = vld [vmem:[%s9487_s4 + $0x1c8] sm:$0xff]  }
 0x1df   : > { %7286 = vmatprep.subr.bf16.mxu1 %v7635_v42  ;;  %v5878_v43 = vrot.slane %v5864_v36, 1  ;;  %v5879_v8 = vrot.slane %v5822_v58, 1  ;;  %v5636_v50 = vunpack.c.l.bf16 %v6805_v48  ;;  %v5658_v13 = vunpack.c.h.bf16 %v6803_v61  ;;  %v9307_v22 = vld [vmem:[#allocation2 + $0x18] ss:$8 sps:$4 sm:$0xee]  }
 0x1e0   : > { %7139 = vmatpush3.bf16.msra.mxu0 %v7639_v62  ;;  %v5637_v62 = vunpack.c.l.bf16 %v6806_v37  ;;  %v5660_v15 = vunpack.c.h.bf16 %v6805_v48  ;;  %v5694_v63 = vrot.slane %v5635_v2, 1  ;;  %v5696_v1 = vrot.slane %v5677_v3, 1  ;;  %v6824_v37 = vld [vmem:[%s8040_s23 + $0x78] sm:$0x1] }
 0x1e1   : > { %7140 = vmatprep.subr.bf16.mxu0 %v7641_v5  ;;  %v5676_v5 = vunpack.c.l.bf16 %v6817_v26  ;;  %v5256_v58 = vsel %vm9126_vm5, %v6712_v49, %v5255_v12  ;;  %v5851_v35 = vadd.f32 %v5843_v31, %v5827_v55  ;;  %v5854_v56 = vadd.f32 %v5846_v60, %v5830_v30  ;;  %v7656_v12 = vld [vmem:[%s9487_s4 + $0x190] sm:$0xff]   ;;  %v6826_v26 = vld [vmem:[%s8040_s23 + $0x98] sm:$0x1]  ;;  %v9330_v55 = vld [vmem:[%s8040_s23 + $0x88] sm:$0xff]  }
 0x1e2   : > { %7287 = vmatpush3.bf16.msra.mxu1 %v7635_v42  ;;  %5145 = vmatmul.mubr.bf16.gmra.mxu0 %v6676_v17  ;;  %v6812_v42 = vld [vmem:[%s8040_s23 + $0x74] sm:$0x1]  ;;  %v5661_v17 = vunpack.c.l.bf16 %v6814_v41  ;;  %v5697_v29 = vrot.slane %v5637_v62, 1  ;;  %v5877_v20 = vsel %vm5686_vm6, %v5875_v7, %v5876_v51  ;;  %v5880_v23 = vsel %vm5686_vm6, %v5878_v43, %v5879_v8  ;;  %v6838_v41 = vld [vmem:[%s8040_s23 + $0x88] sm:$0xe]  ;;  %v7661_v43 = vld [vmem:[%s9487_s4 + $0x1c0] sm:$0xff]  }
 0x1e3   : > { %7288 = vmatprep.subr.bf16.mxu1 %v7638_v24  ;;  %5530 = vmatprep.mubr.bf16.mxu0 %v6768_v44  ;;  %v5659_v59 = vunpack.c.l.bf16 %v6812_v42  ;;  %v7653_v44 = vld [vmem:[%s9487_s4 + $0x198] sm:$0xff]   ;;  %v6769_v49 = vcombine.low %v5256_v58, %v9276_v53  ;;  %v5668_v21 = vadd.f32 %v5660_v15, %v5636_v50  ;;  %v5896_v53 = vadd.f32 %v5876_v51, %v5852_v45  ;;  %v6837_v42 = vld [vmem:[%s8040_s23 + $0x68] sm:$0xe]  ;;  %v7660_v15 = vld [vmem:[%s9487_s4 + $0x220] sm:$0xff]  }
 0x1e4   : > { %7141 = vmatpush3.bf16.msra.mxu0 %v7643_v4  ;;  %v5693_v4 = vrot.slane %v5676_v5, 1  ;;  %v5669_v28 = vadd.f32 %v5661_v17, %v5637_v62  ;;  %v5698_v36 = vsel %vm5686_vm6, %v5696_v1, %v5697_v29  ;;  %v5895_v30 = vadd.f32 %v5877_v20, %v5851_v35  ;;  %v7659_v5 = vld [vmem:[%s9487_s4 + $0x188] sm:$0xff]   ;;  %v6832_v51 = vld [vmem:[%s8040_s23 + $0x7c] sm:$0x1] }
 0x1e5   : > { %7142 = vmatprep.subr.bf16.mxu0 %v7646_v40  ;;  %v5853_v40 = vadd.f32 %v5845_v38, %v5829_v0  ;;  %v5667_v6 = vadd.f32 %v5659_v59, %v5635_v2  ;;  %v5898_v60 = vadd.f32 %v5879_v8, %v5854_v56  ;;  %v5728_v2 = vunpack.c.l.bf16 %v6824_v37 }
 0x1e6   : > { %7289 = vmatpush3.bf16.msra.mxu1 %v7638_v24  ;;  %v5634_v24 = vunpack.c.l.bf16 %v6803_v61  ;;  %v5695_v31 = vsel %vm5686_vm6, %v5693_v4, %v5694_v63  ;;  %v5714_v48 = vadd.f32 %v5697_v29, %v5669_v28  ;;  %v5730_v62 = vunpack.c.l.bf16 %v6826_v26 }
 0x1e7   : > { %7290 = vmatprep.subr.bf16.mxu1 %v7642_v14  ;;  %v5897_v38 = vadd.f32 %v5880_v23, %v5853_v40  ;;  %v5712_v61 = vadd.f32 %v5694_v63, %v5667_v6  ;;  %v5713_v0 = vadd.f32 %v5698_v36, %v5668_v21  ;;  %v5729_v7 = vunpack.c.l.bf16 %v9330_v55  ;;  %v7664_v40 = vld [vmem:[#allocation3 + $0x38] sm:$0xff]   ;;  %v9366_v36 = vld [vmem:[%s8040_s23 + $0x80] sm:$0xff]  }
 0x1e8   : > { %7143 = vmatpush3.bf16.msra.mxu0 %v7648_v32  ;;  %v5666_v46 = vadd.f32 %v5658_v13, %v5634_v24  ;;  %v9327_v32 = vld [vmem:[%s8040_s23 + $0x68] sm:$0xff]   ;;  %v5275_v8 = vrot.slane %v9053_v33, 5  ;;  %v5904_v59 = vmul.f32 0.11111111, %v5896_v53  ;;  %v5769_v17 = vunpack.c.l.bf16 %v6837_v42  ;;  %v7662_v33 = vld [vmem:[%s9487_s4 + $0x180] sm:$0xff]  }
 0x1e9   : > { %7144 = vmatprep.subr.bf16.mxu0 %v7652_v11  ;;  %v7657_v11 = vld [vmem:[%s9487_s4 + $0x228] sm:$0xff]   ;;  %v5727_v45 = vunpack.c.l.bf16 %v9327_v32  ;;  %v5903_v24 = vmul.f32 0.11111111, %v5895_v30  ;;  %v5905_v50 = vmul.f32 0.11111111, %v5897_v38  ;;  %v5738_v4 = vadd.f32 %v5730_v62, %v5714_v48 }
 0x1ea   : > { %7291 = vmatpush3.bf16.msra.mxu1 %v7642_v14  ;;  %v6715_v14 = vrot.slane %v9298_v34, 9  ;;  %v5711_v3 = vadd.f32 %v5695_v31, %v5666_v46  ;;  %v5906_v13 = vmul.f32 0.11111111, %v5898_v60  ;;  %v5752_v63 = vunpack.c.l.bf16 %v6832_v51  ;;  %v7663_v46 = vld [vmem:[%s9487_s4 + $0x218] sm:$0xff]   ;;  %v6847_v60 = vld [vmem:[%s8040_s23 + $0xa0] sm:$0xff]  }
 0x1eb   : > { %7296 = vmatprep.subr.bf16.mxu1 %v7649_v52  ;;  %v5737_v58 = vadd.f32 %v5729_v7, %v5713_v0  ;;  %v5753_v35 = vunpack.c.h.bf16 %v9330_v55  ;;  %v5785_v56 = vrot.slane %v5769_v17, 1  ;;  %v5789_v23 = vrot.slane %v5730_v62, 1  ;;  %v6848_v42 = vld [vmem:[%s8040_s23 + $0xb0] sm:$0x1]  ;;  %v6860_v34 = vld [vmem:[%s8040_s23 + $0xa0] sm:$0xe] }
 0x1ec   : > { %7145 = vmatpush3.bf16.msra.mxu0 %v7653_v44  ;;  %v5770_v44 = vunpack.c.l.bf16 %v6838_v41  ;;  %v5735_v29 = vadd.f32 %v5727_v45, %v5711_v3  ;;  %v5919_v6 = vrot.slane %v5903_v24, 1  ;;  %v5920_v28 = vrot.slane %v5904_v59, 1  ;;  %v6854_v45 = vld [vmem:[%s8040_s23 + $0x94] sm:$0x1]  ;;  %v7670_v7 = vld [vmem:[#allocation3 + $0x28] sm:$0xff]   ;;  %v7669_v17 = vld [vmem:[%s9487_s4 + $0x208] sm:$0xff]  }
 0x1ed   : > { %7293 = vmatmul.mubr.bf16.vlgmr.msra.gmra.mxu1 %v6678_v54  ;;  %7146 = vmatprep.subr.bf16.mxu0 %v7655_v18  ;;  %v6717_v54 = vrot.slane %v9307_v22, 9  ;;  %v5736_v18 = vadd.f32 %v5728_v2, %v5712_v61  ;;  %v5751_v22 = vunpack.c.h.bf16 %v9327_v32  ;;  %v5267_v21 = vrot.slane %v9048_v9, 5  ;;  %v6846_v32 = vld [vmem:[%s8040_s23 + $0x90] sm:$0x1]  ;;  %v6856_v51 = vld [vmem:[%s8040_s23 + $0xb4] sm:$0x1] }
 0x1ee   : > { %7297 = vmatpush3.bf16.msra.mxu1 %v7649_v52  ;;  %7312 = vmatprep.mubr.bf16.mxu1 %v6769_v49  ;;  %v6834_v52 = vld [vmem:[%s8040_s23 + $0x9c] sm:$0x1]  ;;  %v5788_v20 = vrot.slane %v5770_v44, 1  ;;  %v5922_v49 = vrot.slane %v5905_v50, 1  ;;  %v5761_v31 = vadd.f32 %v5753_v35, %v5737_v58  ;;  %v6767_v55 = vcombine.low %v9231_v25, %v9218_v47  ;;  %v6859_v25 = vld [vmem:[%s8040_s23 + $0x80] sm:$0xe] }
 0x1ef   : > { %7298 = vmatprep.subr.bf16.mxu1 %v7654_v57  ;;  %v5754_v1 = vunpack.c.l.bf16 %v6834_v52  ;;  %v9363_v37 = vsel %vm9126_vm5, %v6717_v54, %v5275_v8  ;;  %v5760_v26 = vadd.f32 %v5752_v63, %v5736_v18  ;;  %v5759_v53 = vadd.f32 %v5751_v22, %v5735_v29  ;;  %v7668_v54 = vld [vmem:[#allocation3 + $0x30] sm:$0xff]   ;;  %s6873_s23 = sshll.u32 %s7789_s17, 3  ;;  %s6104_s17 = sshll.u32 %s381_s25, 4  ;;  %s9428_s17 = int_to_ptr.vmem [resolvable:$true] %s6104_s17 }
 0x1f0   : > { %7147 = vmatpush3.bf16.msra.mxu0 %v7656_v12  ;;  %v5923_v12 = vrot.slane %v5906_v13, 1  ;;  %v5268_v9 = vsel %vm9126_vm5, %v6715_v14, %v5267_v21  ;;  %v5790_v38 = vsel %vm5686_vm6, %v5788_v20, %v5789_v23  ;;  %v5823_v48 = vunpack.c.l.bf16 %v9366_v36  ;;  %v7671_v35 = vld [vmem:[%s9487_s4 + $0x200] sm:$0xff]   ;;  %s6101_s26 = sadd.s32 %s6873_s23, %s6211_s19  ;;  %s9432_s19 = scalar_lea.sflag [#allocation5], %s379_s18 }
 0x1f1   : > { %7148 = vmatprep.subr.bf16.mxu0 %v7658_v10  ;;  %v5762_v10 = vadd.f32 %v5754_v1, %v5738_v4  ;;  %v6771_v41 = vcombine.high %v5268_v9, %v9363_v37  ;;  %v5825_v3 = vunpack.c.l.bf16 %v6847_v60  ;;  %v5826_v0 = vunpack.c.l.bf16 %v6848_v42  ;;  %v7672_v1 = vld [vmem:[#allocation3 + $0x20] sm:$0xff]   ;;  %s6874_s11 = sshll.u32 %s6101_s26, 6  ;;  %s7705_s22 = scalar_lea.vmem %s9428_s17, 256 }
 0x1f2   : > { %7299 = vmatpush3.bf16.msra.mxu1 %v7654_v57  ;;  %v5786_v57 = vrot.slane %v5728_v2, 1  ;;  %v5924_v47 = vsel %vm5686_vm6, %v5922_v49, %v5923_v12  ;;  %v5824_v2 = vunpack.c.l.bf16 %v6846_v32  ;;  %v5865_v52 = vunpack.c.l.bf16 %v6859_v25  ;;  %s9426_s16 = scalar_lea.hbm %s9493_s10, %s6874_s11  ;;  %p7706_p12 = scmp.ne.s32.totalorder %s9428_s17, %s7705_s22 }
 0x1f3   : > { %7300 = vmatprep.subr.bf16.mxu1 %v7657_v11  ;;  %v5806_v61 = vadd.f32 %v5789_v23, %v5762_v10  ;;  %v6770_v8 = vcombine.low %v5268_v9, %v9363_v37  ;;  %v5847_v24 = vunpack.c.h.bf16 %v9366_v36  ;;  %v5848_v50 = vunpack.c.l.bf16 %v6854_v45  ;;  %v7675_v23 = vld [vmem:[#allocation3 + $0x18] sm:$0xff]   ;;  %v7676_v37 = vld [vmem:[#allocation3 + $0x10] sm:$0xff]   ;;  %v7677_v36 = vld [vmem:[#allocation3 + $0x8] sm:$0xff]   ;;  %p7712_p1 = scmp.lt.s32.totalorder %s9428_s17, %s7710_s7  ;;  %p7713_p2 = scmp.lt.s32.totalorder %s7711_s21, %s7705_s22 }
 0x1f4   : > { %7149 = vmatpush3.bf16.msra.mxu0 %v7659_v5  ;;  %v5787_v30 = vsel %vm5686_vm6, %v5785_v56, %v5786_v57  ;;  %v5804_v14 = vadd.f32 %v5786_v57, %v5760_v26  ;;  %v5805_v5 = vadd.f32 %v5790_v38, %v5761_v31  ;;  %v5849_v13 = vunpack.c.h.bf16 %v6847_v60  ;;  %p7707_p13 = pnand %p7706_p12, %p7918_p3 }
 0x1f5   : > { %7150 = vmatprep.subr.bf16.mxu0 %v7661_v43  ;;  %v5803_v62 = vadd.f32 %v5787_v30, %v5759_v53  ;;  %v5866_v43 = vunpack.c.l.bf16 %v6860_v34  ;;  %v5834_v4 = vadd.f32 %v5826_v0, %v5806_v61  ;;  %v5850_v63 = vunpack.c.l.bf16 %v6856_v51  ;;  %v7678_v30 = vld [vmem:[#allocation3] sm:$0xff]   ;;  %p7714_p4 = por %p7713_p2, %p7712_p1 }
 0x1f6   : > { %7301 = vmatpush3.bf16.msra.mxu1 %v7657_v11  ;;  %v5921_v11 = vsel %vm5686_vm6, %v5919_v6, %v5920_v28  ;;  %v5832_v44 = vadd.f32 %v5824_v2, %v5804_v14  ;;  %v5833_v18 = vadd.f32 %v5825_v3, %v5805_v5  ;;  %v5882_v29 = vrot.slane %v5824_v2, 1  ;;  %p7708_p0 = pneg %p7707_p13 }
 0x1f7   : > { %7302 = vmatprep.subr.bf16.mxu1 %v7660_v15  ;;  %v5935_v59 = vpack.c.bf16 %v5924_v47, %v5921_v11  ;;  %v5884_v58 = vrot.slane %v5866_v43, 1  ;;  %v5885_v22 = vrot.slane %v5826_v0, 1  ;;  %v5858_v20 = vadd.f32 %v5850_v63, %v5834_v4 }
 0x1f8   : > { %7151 = vmatpush3.bf16.msra.mxu0 %v7662_v33  ;;  %v5881_v33 = vrot.slane %v5865_v52, 1  ;;  %v5857_v57 = vadd.f32 %v5849_v13, %v5833_v18  ;;  %p7715_p5 = pnand %p7714_p4, %p7708_p0 }
 0x1f9   : > { %7316 = vmatprep.subr.bf16.mxu0 %v7664_v40  ;;  %v5886_v28 = vsel %vm5686_vm6, %v5884_v58, %v5885_v22  ;;  %v5902_v21 = vadd.f32 %v5885_v22, %v5858_v20 }
 0x1fa   : > { %7303 = vmatpush3.bf16.msra.mxu1 %v7660_v15  ;;  %v5831_v15 = vadd.f32 %v5823_v48, %v5803_v62  ;;  %v5883_v6 = vsel %vm5686_vm6, %v5881_v33, %v5882_v29 }
 0x1fb   : > { %7304 = vmatprep.subr.bf16.mxu1 %v7663_v46  ;;  %5531 = vmatmul.mubr.bf16.vlgmr.msra.gmra.mxu0 %v6767_v55  ;;  %v5910_v31 = vmul.f32 0.11111111, %v5902_v21 }
 0x1fc   : > { %5538 = vmatprep.mubr.bf16.mxu0 %v6771_v41  ;;  %7317 = vmatpush3.bf16.msra.mxu0 %v7664_v40  ;;  %v5856_v40 = vadd.f32 %v5848_v50, %v5832_v44  ;;  %v5855_v56 = vadd.f32 %v5847_v24, %v5831_v15 }
 0x1fd   : > { %7318 = vmatprep.subr.bf16.mxu0 %v7668_v54 }
 0x1fe   : > { %7305 = vmatpush3.bf16.msra.mxu1 %v7663_v46  ;;  %v5900_v49 = vadd.f32 %v5882_v29, %v5856_v40  ;;  %v5899_v12 = vadd.f32 %v5883_v6, %v5855_v56  ;;  %v5901_v46 = vadd.f32 %v5886_v28, %v5857_v57 }
 0x1ff   : > { %7306 = vmatprep.subr.bf16.mxu1 %v7667_v16 }
 0x200   : > { %7319 = vmatpush3.bf16.msra.mxu0 %v7668_v54  ;;  %v5908_v26 = vmul.f32 0.11111111, %v5900_v49  ;;  %v5907_v10 = vmul.f32 0.11111111, %v5899_v12  ;;  %v5909_v53 = vmul.f32 0.11111111, %v5901_v46 }
 0x201   : > { %7320 = vmatprep.subr.bf16.mxu0 %v7670_v7  ;;  %v5929_v54 = vrot.slane %v5910_v31, 1 }
 0x202   : > { %7307 = vmatpush3.bf16.msra.mxu1 %v7667_v16  ;;  %v5925_v32 = vrot.slane %v5907_v10, 1  ;;  %v5926_v55 = vrot.slane %v5908_v26, 1  ;;  %v5928_v9 = vrot.slane %v5909_v53, 1 }
 0x203   : > { %7308 = vmatprep.subr.bf16.mxu1 %v7669_v17  ;;  %5539 = vmatmul.mubr.bf16.gmra.mxu0 %v6770_v8 }
 0x204   : > { %7321 = vmatpush3.bf16.msra.mxu0 %v7670_v7  ;;  %7332 = vmatprep.mubr.bf16.mxu0 %v5935_v59  ;;  %v5927_v38 = vsel %vm5686_vm6, %v5925_v32, %v5926_v55  ;;  %v5930_v60 = vsel %vm5686_vm6, %v5928_v9, %v5929_v54 }
 0x205   : > { %7322 = vmatprep.subr.bf16.mxu0 %v7672_v1  ;;  %v5936_v42 = vpack.c.bf16 %v5930_v60, %v5927_v38 }
 0x206   : > { %7309 = vmatpush3.bf16.msra.mxu1 %v7669_v17 }
 0x207   : > { %7310 = vmatprep.subr.bf16.mxu1 %v7671_v35 }
 0x208   : > { %7323 = vmatpush3.bf16.msra.mxu0 %v7672_v1 }
 0x209   : > { %7324 = vmatprep.subr.bf16.mxu0 %v7675_v23 }
 0x20a   : > { %7311 = vmatpush3.bf16.msra.mxu1 %v7671_v35 }
 0x20c   : > { %7325 = vmatpush3.bf16.msra.mxu0 %v7675_v23 }
 0x20d   : > { %7313 = vmatmul.mubr.bf16.vlgmr.msra.gmra.mxu1 %v6772_v27  ;;  %7326 = vmatprep.subr.bf16.mxu0 %v7676_v37 }
 0x210   : > { %7327 = vmatpush3.bf16.msra.mxu0 %v7676_v37 }
 0x211   : > { %7328 = vmatprep.subr.bf16.mxu0 %v7677_v36 }
 0x214   : > { %7329 = vmatpush3.bf16.msra.mxu0 %v7677_v36 }
 0x215   : > { %7330 = vmatprep.subr.bf16.mxu0 %v7678_v30 }
 0x218   : > { %7331 = vmatpush3.bf16.msra.mxu0 %v7678_v30 }
 0x21b   : > { %7333 = vmatmul.mubr.bf16.vlgmr.msra.gmra.mxu0 %v5936_v42 }
 0x279   : > { %v7076_v39 = vpop.f32.mrf.mxu0 }
 0x27b   : > { %v7077_v19 = vpop.f32.mrf.mxu0 }
 0x27c   : > { %v7078_v56 = vadd.f32 %v7077_v19, %v7076_v39  ;;  %v6797_v39 = vld [vmem:[%s9488_s5] ss:$0 sm:$0xff] }
 0x27d   : > { %v7079_v27 = vpop.f32.mrf.mxu0 }
 0x27f   : > { %v7080_v41 = vpop.f32.mrf.mxu0 }
 0x280   : > { %v7081_v46 = vadd.f32 %v7080_v41, %v7079_v27  ;;  %v6869_v27 = vld [vmem:[%s9491_s8] ss:$0 sm:$0xff] }
 0x28b   : > { %v7082_v11 = vpop.f32.mrf.mxu0 }
 0x28d   : > { %v7083_v47 = vpop.f32.mrf.mxu0  ;;  %v7274_v62 = vpop.f32.mrf.mxu1 }
 0x28e   : > { %v7084_v4 = vadd.f32 %v7083_v47, %v7082_v11 }
 0x28f   : > { %v7085_v25 = vpop.f32.mrf.mxu0  ;;  %v4933_v3 = vpop.f32.mrf.mxu1 }
 0x290   : > { %v4942_v22 = vadd.f32 %v7274_v62, %v7084_v4  ;;  %v4934_v49 = vadd.f32 %v7078_v56, %v4933_v3 }
 0x291   : > { %v7086_v34 = vpop.f32.mrf.mxu0  ;;  %v7275_v45 = vpop.f32.mrf.mxu1 }
 0x292   : > { %v7087_v1 = vadd.f32 %v7086_v34, %v7085_v25  ;;  %v6870_v25 = vld [vmem:[%s9492_s9] ss:$0 sm:$0xff] }
 0x293   : > { %v4936_v52 = vpop.f32.mrf.mxu1 }
 0x294   : > { %v4945_v23 = vadd.f32 %v7275_v45, %v7087_v1  ;;  %v4937_v36 = vadd.f32 %v7081_v46, %v4936_v52 }
 0x29a   : > { %v7114_v16 = vpop.f32.mrf.mxu0 }
 0x29c   : > { %v7115_v14 = vpop.f32.mrf.mxu0 }
 0x29d   : > { %v7116_v57 = vadd.f32 %v7115_v14, %v7114_v16 }
 0x29e   : > { %v7117_v61 = vpop.f32.mrf.mxu0 }
 0x29f   : > { %v5139_v10 = vadd.f32 %v7116_v57, %v4934_v49 }
 0x2a0   : > { %v7118_v48 = vpop.f32.mrf.mxu0 }
 0x2a1   : > { %v7119_v21 = vadd.f32 %v7118_v48, %v7117_v61  ;;  %v6798_v48 = vld [vmem:[%s9489_s6] ss:$0 sm:$0xff] }
 0x2a2   : > { %v7120_v2 = vpop.f32.mrf.mxu0 }
 0x2a3   : > { %v5142_v38 = vadd.f32 %v7119_v21, %v4937_v36 }
 0x2a4   : > { %v7121_v5 = vpop.f32.mrf.mxu0 }
 0x2a5   : > { %v7122_v33 = vadd.f32 %v7121_v5, %v7120_v2 }
 0x2a6   : > { %v7123_v0 = vpop.f32.mrf.mxu0 }
 0x2a7   : > { %v5147_v6 = vadd.f32 %v7122_v33, %v4942_v22 }
 0x2a8   : > { %v7124_v7 = vpop.f32.mrf.mxu0 }
 0x2a9   : > { %v7125_v35 = vadd.f32 %v7124_v7, %v7123_v0 }
 0x2ab   : > { %v5150_v37 = vadd.f32 %v7125_v35, %v4945_v23 }
 0x2ad   : > { %v7294_v8 = vpop.f32.mrf.mxu1 }
 0x2ae   : > { %v5196_v32 = vadd.f32 %v7294_v8, %v5147_v6 }
 0x2af   : > { %v5187_v44 = vpop.f32.mrf.mxu1 }
 0x2b0   : > { %v5188_v54 = vadd.f32 %v5187_v44, %v5139_v10 }
 0x2b1   : > { %v7295_v50 = vpop.f32.mrf.mxu1 }
 0x2b2   : > { %v5199_v30 = vadd.f32 %v7295_v50, %v5150_v37 }
 0x2b3   : > { %v5190_v15 = vpop.f32.mrf.mxu1 }
 0x2b4   : > { %v5191_v41 = vadd.f32 %v5190_v15, %v5142_v38 }
 0x2bb   : > { %v7152_v51 = vpop.f32.mrf.mxu0 }
 0x2bd   : > { %v7153_v43 = vpop.f32.mrf.mxu0 }
 0x2be   : > { %v7154_v12 = vadd.f32 %v7153_v43, %v7152_v51 }
 0x2bf   : > { %v7155_v59 = vpop.f32.mrf.mxu0 }
 0x2c1   : > { %v7156_v17 = vpop.f32.mrf.mxu0 }
 0x2c2   : > { %v7157_v55 = vadd.f32 %v7156_v17, %v7155_v59 }
 0x2c3   : > { %v7158_v24 = vpop.f32.mrf.mxu0 }
 0x2c5   : > { %v7159_v13 = vpop.f32.mrf.mxu0 }
 0x2c6   : > { %v7160_v40 = vadd.f32 %v7159_v13, %v7158_v24 }
 0x2c7   : > { %v7161_v18 = vpop.f32.mrf.mxu0 }
 0x2c9   : > { %v7162_v29 = vpop.f32.mrf.mxu0 }
 0x2ca   : > { %v7163_v28 = vadd.f32 %v7162_v29, %v7161_v18 }
 0x2cd   : > { %v7314_v63 = vpop.f32.mrf.mxu1 }
 0x2ce   : > { %v5590_v26 = vadd.f32 %v7314_v63, %v7160_v40 }
 0x2cf   : > { %v5581_v58 = vpop.f32.mrf.mxu1 }
 0x2d0   : > { %v5582_v53 = vadd.f32 %v7154_v12, %v5581_v58  ;;  %v5598_v60 = vadd.f32 %v5590_v26, %v5196_v32 }
 0x2d1   : > { %v7315_v20 = vpop.f32.mrf.mxu1 }
 0x2d2   : > { %v5593_v9 = vadd.f32 %v7315_v20, %v7163_v28  ;;  %v5596_v19 = vadd.f32 %v5582_v53, %v5188_v54  ;;  %v5609_v34 = vmul.f32 %v6797_v39, %v5598_v60 }
 0x2d3   : > { %v5584_v31 = vpop.f32.mrf.mxu1 }
 0x2d4   : > { %v5585_v42 = vadd.f32 %v7157_v55, %v5584_v31  ;;  %v5599_v11 = vadd.f32 %v5593_v9, %v5199_v30  ;;  %v5607_v61 = vmul.f32 %v6797_v39, %v5596_v19  ;;  %v5620_v7 = vadd.f32 %v6798_v48, %v5609_v34 }
 0x2d6   : > { %v5597_v16 = vadd.f32 %v5585_v42, %v5191_v41  ;;  %v5610_v62 = vmul.f32 %v6797_v39, %v5599_v11  ;;  %v5618_v43 = vadd.f32 %v6798_v48, %v5607_v61 }
 0x2d8   : > { %v5608_v45 = vmul.f32 %v6797_v39, %v5597_v16  ;;  %v5621_v17 = vadd.f32 %v6798_v48, %v5610_v62 }
 0x2da   : > { %v5619_v15 = vadd.f32 %v6798_v48, %v5608_v45 }
 0x2db   : > { %v7334_v47 = vpop.f32.mrf.mxu0 }
 0x2dc   : > { %v6059_v14 = vmul.f32 %v7334_v47, %v6869_v27 }
 0x2dd   : > { %v6035_v2 = vpop.f32.mrf.mxu0 }
 0x2de   : > { %v6070_v5 = vadd.f32 %v6870_v25, %v6059_v14  ;;  %v6057_v3 = vmul.f32 %v6869_v27, %v6035_v2 }
 0x2df   : > { %v7335_v0 = vpop.f32.mrf.mxu0 }
 0x2e0   : > { %v6068_v51 = vadd.f32 %v6870_v25, %v6057_v3  ;;  %v6060_v52 = vmul.f32 %v7335_v0, %v6869_v27  ;;  %v6074_v59 = vadd.f32 %v6070_v5, %v5620_v7 }
 0x2e1   : > { %v6038_v8 = vpop.f32.mrf.mxu0 }
 0x2e2   : > { %v6071_v44 = vadd.f32 %v6870_v25, %v6060_v52  ;;  %v6058_v24 = vmul.f32 %v6869_v27, %v6038_v8  ;;  %v6072_v50 = vadd.f32 %v6068_v51, %v5618_v43  ;;  %v6078_v4 = vmax.f32 %v6074_v59, 0.0 }
 0x2e4   : > { %v6075_v13 = vadd.f32 %v6071_v44, %v5621_v17  ;;  %v6069_v18 = vadd.f32 %v6870_v25, %v6058_v24  ;;  %v6076_v33 = vmax.f32 %v6072_v50, 0.0 }
 0x2e6   : > { %v6079_v63 = vmax.f32 %v6075_v13, 0.0  ;;  %v6073_v1 = vadd.f32 %v6069_v18, %v5619_v15 }
 0x2e8   : > { %v6901_v29 = vpack.c.bf16 %v6079_v63, %v6078_v4  ;;  %v6077_v58 = vmax.f32 %v6073_v1, 0.0 }
 0x2ea   : > { %6903 = vst [vmem:[%s381_s25 + $0x8] sm:$0xff] %v6901_v29   ;;  %v6896_v22 = vpack.c.bf16 %v6077_v58, %v6076_v33 }
 0x2ec   : > { %6897 = vst [vmem:[%s381_s25] sm:$0xff] %v6896_v22  }
 0x2ed   : > { %7718 = shalt.err (!%p7715_p5)
}
 0x2ee   : > { %s7719_s18 = scalar_lea.hbm %s9426_s16, 256  ;;  %s7723_s26 = scalar_lea.hbm %s9493_s10, 1024 }
 0x2ef   : > { %p7720_p6 = scmp.ne.s32.totalorder %s9426_s16, %s7719_s18  ;;  %p7724_p11 = scmp.lt.s32.totalorder %s9426_s16, %s9493_s10 }
 0x2f0   : > { %p7725_p10 = scmp.lt.s32.totalorder %s7723_s26, %s7719_s18 }
 0x2f1   : > { %p7721_p7 = pnand %p7720_p6, %p7918_p3 }
 0x2f2   : > { %p7726_p12 = por %p7725_p10, %p7724_p11 }
 0x2f3   : > { %p7722_p9 = pneg %p7721_p7 }
 0x2f5   : > { %p7727_p13 = pnand %p7726_p12, %p7722_p9 }
 0x2f7   : > { %7730 = shalt.err (!%p7727_p13)
}
 0x2f8   : > { %s7809_s12 = smov 64   ;;  %s7810_s24 = smov 4  }
 0x2f9   : > { %7341 = dma.vmem_to_hbm [thread:$0]  (%p7918_p3), %s9428_s17, 256, %s9426_s16, %s9432_s19, %s7809_s12, %s7809_s12, %s7810_s24  }
 0x2fa PF: > { %p7353_p0 = scmp.ge.s32.totalorder %s7801_s20, 2  ;;  %s6119_s22 = sand.u32 1, %s7773_s13  }
 0x2fb   : > { %s6120_s29 = scalar_lea.sflag [#allocation5], %s6119_s22 }
 0x2fc   : > { %p7348_p1 = pnand %p7353_p0, %p7927_p8 }
 0x2fe   : > { %p7349_p2 = pneg %p7348_p1 }
 0x300   : > { %7768 = dma.done.wait (%p7349_p2), %s6120_s29, 256  }
 0x301   : > { %7770 = vsyncadd (%p7349_p2), %s6120_s29, 4294967040  ;;  %s24_s20 = sadd.s32 1, %s7801_s20   ;;  %s9542_s7 = sld [smem:[#allocation13_spill]] }
 0x302   : > { %p21_p4 = scmp.ge.s32.totalorder %s24_s20, 6   ;;  %s9543_s16 = sld [smem:[#allocation9_spill]] }
 0x303   : > { %s9544_s17 = sld [smem:[#allocation10_spill]]  ;;  %s9547_s13 = smov %s7777_s14 }
 0x304   : > { %s9545_s18 = sld [smem:[#allocation11_spill]]  ;;  %s9548_s14 = smov %s7781_s15 }
 0x305   : > { %s9546_s19 = sld [smem:[#allocation12_spill]]  ;;  %23 = sbr.rel (!%p21_p4) target bundleno = 8 (0x8), region = 109 }
 0x307   : > { %s9549_s15 = smov %s9542_s7 }
 0x30a   :  { %6125 = vsyncpa [#allocation4], 1 }
 0x30b   :  { %6127 = vsyncpa [#allocation4 + $0x1], 1 }
 0x30c   :  { %6128 = vsyncpa [#allocation5], 1 }
 0x30d   :  { %6130 = vsyncpa [#allocation5 + $0x1], 1 }

</bundles_post_ra>
